<compile_context>
chip_gen: v7x
topology: tpu7x:2x2x1
jax: 0.10.0
libtpu: 0.0.40
codegen_flags: <defaults>
</compile_context>

<pallas_src>
import jax
import jax.numpy as jnp
from jax.experimental import pallas as pl
from jax.experimental.pallas import tpu as pltpu

NUM_LABELS = 8      # pos_weight in the module has 8 entries
VIDEO_DIM = 768     # ViViT-B hidden size (sequence_output[:, 0, :])
AUDIO_DIM = 256     # wav2vec2-base classifier_proj_size (pooled projector output)
FUSED_DIM = VIDEO_DIM + AUDIO_DIM   # 1024, matches nn.Linear(1024, 4096)
PROJ_DIM = 4096
TN = 2048                            # projector-output tile; grid of 2
N_STEPS = PROJ_DIM // TN


def _softplus(z):
    # numerically-stable softplus, VPU/EUP friendly
    return jnp.maximum(z, 0.0) + jnp.log1p(jnp.exp(-jnp.abs(z)))


def fusion_head_kernel(x_ref, w1_ref, b1_ref, w2_ref, b2_ref, pw_ref, lab_ref,
                       logits_ref, loss_ref, act_ref):
    j = pl.program_id(0)

    # projector chunk: h_j = x @ W1[:, j*TN:(j+1)*TN] + b1_j ; a_j = tanh(h_j)
    # bf16 x / bf16 W1 on the MXU, f32 accumulation.
    h = jnp.dot(x_ref[...], w1_ref[...], preferred_element_type=jnp.float32)
    a = jnp.tanh(h + b1_ref[...]).astype(jnp.bfloat16)

    # Stage this chunk of tanh activations into VMEM (static, lane-aligned slices;
    # the grid is tiny so a per-step pl.when costs nothing).
    for t in range(N_STEPS):
        @pl.when(j == t)
        def _(t=t):
            act_ref[:, t * TN:(t + 1) * TN] = a

    @pl.when(j == pl.num_programs(0) - 1)
    def _():
        # Single classifier matmul over the full staged activations.
        logits = jnp.dot(act_ref[...], w2_ref[...],
                         preferred_element_type=jnp.float32) + b2_ref[...]
        logits_ref[...] = logits
        # BCEWithLogitsLoss with pos_weight, mean reduction (PyTorch semantics):
        #   l = -[ pw * y * log(sigmoid(z)) + (1 - y) * log(1 - sigmoid(z)) ]
        y = lab_ref[...]
        pw = pw_ref[...]
        log_sig = -_softplus(-logits)            # log(sigmoid(z))
        log_one_m_sig = -_softplus(logits)       # log(1 - sigmoid(z))
        l = -(pw * y * log_sig + (1.0 - y) * log_one_m_sig)
        loss_ref[...] = jnp.mean(l, axis=(0, 1), keepdims=True)


def multimodal_head(video, audio, w1, b1, w2, b2, pos_weight, labels):
    """Returns (loss, logits) like MultiModalClassification.forward."""
    B = video.shape[0]
    # concat is glue; the matmul / tanh / BCE hot path runs in the kernel.
    # Weights & activations are streamed in bf16 (f32 accumulation inside the kernel).
    x = jnp.concatenate([video, audio], axis=1).astype(jnp.bfloat16)   # (B, 1024)
    w1_ = w1.astype(jnp.bfloat16)                                      # (1024, 4096)
    w2_ = w2.astype(jnp.bfloat16)                                      # (4096, 8)
    b1_ = b1.reshape(1, PROJ_DIM).astype(jnp.float32)
    b2_ = b2.reshape(1, NUM_LABELS).astype(jnp.float32)
    pw_ = pos_weight.reshape(1, NUM_LABELS).astype(jnp.float32)
    lab_ = labels.astype(jnp.float32).reshape(B, NUM_LABELS)

    cost = pl.CostEstimate(
        flops=2 * B * FUSED_DIM * PROJ_DIM + 2 * B * PROJ_DIM * NUM_LABELS,
        transcendentals=B * PROJ_DIM + 2 * B * NUM_LABELS,
        bytes_accessed=(FUSED_DIM * PROJ_DIM * 2        # W1 (bf16)
                        + PROJ_DIM * NUM_LABELS * 2     # W2 (bf16)
                        + B * FUSED_DIM * 2             # x  (bf16)
                        + PROJ_DIM * 4                  # b1
                        + 3 * B * NUM_LABELS * 4 + 4))  # b2/pw/labels/logits/loss

    logits, loss = pl.pallas_call(
        fusion_head_kernel,
        out_shape=(jax.ShapeDtypeStruct((B, NUM_LABELS), jnp.float32),
                   jax.ShapeDtypeStruct((1, 1), jnp.float32)),
        grid_spec=pltpu.PrefetchScalarGridSpec(
            num_scalar_prefetch=0,
            grid=(N_STEPS,),
            in_specs=[
                pl.BlockSpec((B, FUSED_DIM), lambda j: (0, 0)),          # x (resident, bf16)
                pl.BlockSpec((FUSED_DIM, TN), lambda j: (0, j)),         # W1 chunk (bf16)
                pl.BlockSpec((1, TN), lambda j: (0, j)),                 # b1 chunk
                pl.BlockSpec((PROJ_DIM, NUM_LABELS), lambda j: (0, 0)),  # W2 (resident, bf16)
                pl.BlockSpec((1, NUM_LABELS), lambda j: (0, 0)),         # b2
                pl.BlockSpec((1, NUM_LABELS), lambda j: (0, 0)),         # pos_weight
                pl.BlockSpec((B, NUM_LABELS), lambda j: (0, 0)),         # labels
            ],
            out_specs=[
                pl.BlockSpec((B, NUM_LABELS), lambda j: (0, 0)),         # logits
                pl.BlockSpec((1, 1), lambda j: (0, 0)),                  # loss
            ],
            # staged tanh activations, read once by the final classifier matmul
            scratch_shapes=[pltpu.VMEM((B, PROJ_DIM), jnp.bfloat16)],
        ),
        compiler_params=pltpu.CompilerParams(
            dimension_semantics=("arbitrary",),
            vmem_limit_bytes=32 * 1024 * 1024),
        cost_estimate=cost,
    )(x, w1_, b1_, w2_, b2_, pw_, lab_)
    return loss[0, 0], logits


if __name__ == "__main__":
    B = 2
    key = jax.random.PRNGKey(0)
    k = jax.random.split(key, 8)

    # Stand-in extractor outputs (the transformer backbones are not translated,
    # see TODO(synk) above).
    video = jax.random.normal(k[0], (B, VIDEO_DIM), jnp.float32)   # ViViT CLS feature
    audio = jax.random.normal(k[1], (B, AUDIO_DIM), jnp.float32)   # wav2vec2 pooled feature
    labels = jax.random.bernoulli(k[2], 0.5, (B, NUM_LABELS)).astype(jnp.float32)

    # Deterministic parameter init (PyTorch nn.Linear style uniform(+-1/sqrt(fan_in))).
    def uniform(kk, shape, fan_in):
        bound = 1.0 / float(fan_in) ** 0.5
        return jax.random.uniform(kk, shape, jnp.float32, -bound, bound)

    w1 = uniform(k[3], (FUSED_DIM, PROJ_DIM), FUSED_DIM)     # projector: Linear(1024, 4096)
    b1 = uniform(k[4], (PROJ_DIM,), FUSED_DIM)
    w2 = uniform(k[5], (PROJ_DIM, NUM_LABELS), PROJ_DIM)     # classifier: Linear(4096, 8)
    b2 = uniform(k[6], (NUM_LABELS,), PROJ_DIM)

    pos_weight = jnp.array([1349 / 185, 1384 / 150, 1481 / 53, 1225 / 309,
                            1134 / 500, 1354 / 180, 924 / 610, 1346 / 188],
                           jnp.float32)

    loss, logits = jax.jit(multimodal_head)(video, audio, w1, b1, w2, b2,
                                            pos_weight, labels)
    jax.block_until_ready((loss, logits))

    # pure-JAX f32 reference check (bf16 weight streaming stays well inside tolerance)
    x = jnp.concatenate([video, audio], axis=1)
    ref_logits = jnp.tanh(x @ w1 + b1) @ w2 + b2
    ref_loss = jnp.mean(-(pos_weight * labels * jax.nn.log_sigmoid(ref_logits)
                          + (1.0 - labels) * jax.nn.log_sigmoid(-ref_logits)))
    assert logits.shape == (B, NUM_LABELS)
    assert jnp.allclose(logits, ref_logits, atol=5e-2, rtol=5e-2)
    assert jnp.allclose(loss, ref_loss, atol=5e-2, rtol=5e-2)

    print("KERNEL_OK")
</pallas_src>

<mosaic_0001>
module attributes {stable_mosaic.version = 11 : i64} {
  func.func @fusion_head_kernel(%arg0: i32, %arg1: memref<2x1024xbf16, #tpu.memory_space<vmem>>, %arg2: memref<1024x2048xbf16, #tpu.memory_space<vmem>>, %arg3: memref<1x2048xf32, #tpu.memory_space<vmem>>, %arg4: memref<4096x8xbf16, #tpu.memory_space<vmem>>, %arg5: memref<1x8xf32, #tpu.memory_space<vmem>>, %arg6: memref<1x8xf32, #tpu.memory_space<vmem>>, %arg7: memref<2x8xf32, #tpu.memory_space<vmem>>, %arg8: memref<2x8xf32, #tpu.memory_space<vmem>>, %arg9: memref<1x1xf32, #tpu.memory_space<vmem>>, %arg10: memref<2x4096xbf16, #tpu.memory_space<vmem>>) attributes {dimension_semantics = [#tpu.dimension_semantics<arbitrary>], iteration_bounds = array<i64: 2>, scalar_prefetch = 0 : i64, scratch_operands = 1 : i64, tpu.core_type = #tpu.core_type<tc>, window_params = [{pipeline_mode = #tpu.pipeline_mode<synchronous>, transform_indices = @transform_0, window_bounds = array<i64: 2, 1024>}, {transform_indices = @transform_1, window_bounds = array<i64: 1024, 2048>}, {transform_indices = @transform_2, window_bounds = array<i64: 1, 2048>}, {pipeline_mode = #tpu.pipeline_mode<synchronous>, transform_indices = @transform_3, window_bounds = array<i64: 4096, 8>}, {pipeline_mode = #tpu.pipeline_mode<synchronous>, transform_indices = @transform_4, window_bounds = array<i64: 1, 8>}, {pipeline_mode = #tpu.pipeline_mode<synchronous>, transform_indices = @transform_5, window_bounds = array<i64: 1, 8>}, {pipeline_mode = #tpu.pipeline_mode<synchronous>, transform_indices = @transform_6, window_bounds = array<i64: 2, 8>}, {pipeline_mode = #tpu.pipeline_mode<synchronous>, transform_indices = @transform_7, window_bounds = array<i64: 2, 8>}, {pipeline_mode = #tpu.pipeline_mode<synchronous>, transform_indices = @transform_8, window_bounds = array<i64: 1, 1>}]} {
    %c0 = arith.constant 0 : index
    %c0_0 = arith.constant 0 : index
    %0 = vector.load %arg1[%c0, %c0_0] : memref<2x1024xbf16, #tpu.memory_space<vmem>>, vector<2x1024xbf16>
    %c0_1 = arith.constant 0 : index
    %c0_2 = arith.constant 0 : index
    %1 = vector.load %arg2[%c0_1, %c0_2] : memref<1024x2048xbf16, #tpu.memory_space<vmem>>, vector<1024x2048xbf16>
    %cst = arith.constant dense<0.000000e+00> : vector<2x2048xf32>
    %2 = tpu.matmul %0, %1, %cst {dimension_numbers = #tpu.dot_dimension_numbers<[1], [0], [0], [1], [0, 0, 1, 1], [], []>} : vector<2x1024xbf16>, vector<1024x2048xbf16>, vector<2x2048xf32> -> vector<2x2048xf32>
    %c0_3 = arith.constant 0 : index
    %c0_4 = arith.constant 0 : index
    %3 = vector.load %arg3[%c0_3, %c0_4] : memref<1x2048xf32, #tpu.memory_space<vmem>>, vector<1x2048xf32>
    %4 = vector.broadcast %3 : vector<1x2048xf32> to vector<2x2048xf32>
    %5 = arith.addf %2, %4 : vector<2x2048xf32>
    %6 = math.tanh %5 : vector<2x2048xf32>
    %7 = arith.truncf %6 : vector<2x2048xf32> to vector<2x2048xbf16>
    %c0_i32 = arith.constant 0 : i32
    %8 = arith.cmpi eq, %arg0, %c0_i32 : i32
    %9 = arith.extui %8 : i1 to i32
    %c0_i32_5 = arith.constant 0 : i32
    %10 = arith.cmpi ne, %9, %c0_i32_5 : i32
    scf.if %10 {
      %c0_9 = arith.constant 0 : index
      %c0_10 = arith.constant 0 : index
      %17 = vector.load %arg10[%c0_9, %c0_10] : memref<2x4096xbf16, #tpu.memory_space<vmem>>, vector<2x2048xbf16>
      tpu.vector_store %arg10[%c0_9, %c0_10], %7 {strides = array<i32>} : memref<2x4096xbf16, #tpu.memory_space<vmem>>, vector<2x2048xbf16>,
    } else {
    }
    %c1_i32 = arith.constant 1 : i32
    %11 = arith.cmpi eq, %arg0, %c1_i32 : i32
    %12 = arith.extui %11 : i1 to i32
    %c0_i32_6 = arith.constant 0 : i32
    %13 = arith.cmpi ne, %12, %c0_i32_6 : i32
    scf.if %13 {
      %c0_9 = arith.constant 0 : index
      %c2048 = arith.constant 2048 : index
      %17 = vector.load %arg10[%c0_9, %c2048] : memref<2x4096xbf16, #tpu.memory_space<vmem>>, vector<2x2048xbf16>
      tpu.vector_store %arg10[%c0_9, %c2048], %7 {strides = array<i32>} : memref<2x4096xbf16, #tpu.memory_space<vmem>>, vector<2x2048xbf16>,
    } else {
    }
    %c1_i32_7 = arith.constant 1 : i32
    %14 = arith.cmpi eq, %arg0, %c1_i32_7 : i32
    %15 = arith.extui %14 : i1 to i32
    %c0_i32_8 = arith.constant 0 : i32
    %16 = arith.cmpi ne, %15, %c0_i32_8 : i32
    scf.if %16 {
      %c0_9 = arith.constant 0 : index
      %c0_10 = arith.constant 0 : index
      %17 = vector.load %arg10[%c0_9, %c0_10] : memref<2x4096xbf16, #tpu.memory_space<vmem>>, vector<2x4096xbf16>
      %c0_11 = arith.constant 0 : index
      %c0_12 = arith.constant 0 : index
      %18 = vector.load %arg4[%c0_11, %c0_12] : memref<4096x8xbf16, #tpu.memory_space<vmem>>, vector<4096x8xbf16>
      %cst_13 = arith.constant dense<0.000000e+00> : vector<2x8xf32>
      %19 = tpu.matmul %17, %18, %cst_13 {dimension_numbers = #tpu.dot_dimension_numbers<[1], [0], [0], [1], [0, 0, 1, 1], [], []>} : vector<2x4096xbf16>, vector<4096x8xbf16>, vector<2x8xf32> -> vector<2x8xf32>
      %c0_14 = arith.constant 0 : index
      %c0_15 = arith.constant 0 : index
      %20 = vector.load %arg5[%c0_14, %c0_15] : memref<1x8xf32, #tpu.memory_space<vmem>>, vector<1x8xf32>
      %21 = vector.broadcast %20 : vector<1x8xf32> to vector<2x8xf32>
      %22 = arith.addf %19, %21 : vector<2x8xf32>
      %c0_16 = arith.constant 0 : index
      %c0_17 = arith.constant 0 : index
      %23 = vector.load %arg8[%c0_16, %c0_17] : memref<2x8xf32, #tpu.memory_space<vmem>>, vector<2x8xf32>
      tpu.vector_store %arg8[%c0_16, %c0_17], %22 {strides = array<i32>} : memref<2x8xf32, #tpu.memory_space<vmem>>, vector<2x8xf32>,
      %c0_18 = arith.constant 0 : index
      %c0_19 = arith.constant 0 : index
      %24 = vector.load %arg7[%c0_18, %c0_19] : memref<2x8xf32, #tpu.memory_space<vmem>>, vector<2x8xf32>
      %c0_20 = arith.constant 0 : index
      %c0_21 = arith.constant 0 : index
      %25 = vector.load %arg6[%c0_20, %c0_21] : memref<1x8xf32, #tpu.memory_space<vmem>>, vector<1x8xf32>
      %cst_22 = arith.constant 0.000000e+00 : f32
      %26 = vector.broadcast %cst_22 : f32 to vector<2x8xf32>
      %27 = arith.subf %26, %22 : vector<2x8xf32>
      %cst_23 = arith.constant 0.000000e+00 : f32
      %28 = vector.broadcast %cst_23 : f32 to vector<2x8xf32>
      %29 = arith.maximumf %27, %28 : vector<2x8xf32>
      %30 = math.absf %27 : vector<2x8xf32>
      %cst_24 = arith.constant 0.000000e+00 : f32
      %31 = vector.broadcast %cst_24 : f32 to vector<2x8xf32>
      %32 = arith.subf %31, %30 : vector<2x8xf32>
      %33 = math.exp %32 : vector<2x8xf32>
      %34 = math.log1p %33 : vector<2x8xf32>
      %35 = arith.addf %29, %34 : vector<2x8xf32>
      %cst_25 = arith.constant 0.000000e+00 : f32
      %36 = vector.broadcast %cst_25 : f32 to vector<2x8xf32>
      %37 = arith.subf %36, %35 : vector<2x8xf32>
      %cst_26 = arith.constant 0.000000e+00 : f32
      %38 = vector.broadcast %cst_26 : f32 to vector<2x8xf32>
      %39 = arith.maximumf %22, %38 : vector<2x8xf32>
      %40 = math.absf %22 : vector<2x8xf32>
      %cst_27 = arith.constant 0.000000e+00 : f32
      %41 = vector.broadcast %cst_27 : f32 to vector<2x8xf32>
      %42 = arith.subf %41, %40 : vector<2x8xf32>
      %43 = math.exp %42 : vector<2x8xf32>
      %44 = math.log1p %43 : vector<2x8xf32>
      %45 = arith.addf %39, %44 : vector<2x8xf32>
      %cst_28 = arith.constant 0.000000e+00 : f32
      %46 = vector.broadcast %cst_28 : f32 to vector<2x8xf32>
      %47 = arith.subf %46, %45 : vector<2x8xf32>
      %48 = vector.broadcast %25 : vector<1x8xf32> to vector<2x8xf32>
      %49 = arith.mulf %48, %24 : vector<2x8xf32>
      %50 = arith.mulf %49, %37 : vector<2x8xf32>
      %cst_29 = arith.constant 1.000000e+00 : f32
      %51 = vector.broadcast %cst_29 : f32 to vector<2x8xf32>
      %52 = arith.subf %51, %24 : vector<2x8xf32>
      %53 = arith.mulf %52, %47 : vector<2x8xf32>
      %54 = arith.addf %50, %53 : vector<2x8xf32>
      %cst_30 = arith.constant 0.000000e+00 : f32
      %55 = vector.broadcast %cst_30 : f32 to vector<2x8xf32>
      %56 = arith.subf %55, %54 : vector<2x8xf32>
      %57 = vector.shape_cast %56 : vector<2x8xf32> to vector<1x2x8xf32>
      %cst_31 = arith.constant dense<0.000000e+00> : vector<1xf32>
      %58 = vector.multi_reduction <add>, %57, %cst_31 [1, 2] : vector<1x2x8xf32> to vector<1xf32>
      %59 = vector.shape_cast %58 : vector<1xf32> to vector<1x1x1xf32>
      %60 = vector.extract %59[0, 0, 0] : f32 from vector<1x1x1xf32>
      %61 = vector.broadcast %60 : f32 to vector<1x1xf32>
      %cst_32 = arith.constant 1.600000e+01 : f32
      %62 = vector.broadcast %cst_32 : f32 to vector<1x1xf32>
      %63 = arith.divf %61, %62 : vector<1x1xf32>
      %c0_33 = arith.constant 0 : index
      %c0_34 = arith.constant 0 : index
      %64 = vector.load %arg9[%c0_33, %c0_34] : memref<1x1xf32, #tpu.memory_space<vmem>>, vector<1x1xf32>
      tpu.vector_store %arg9[%c0_33, %c0_34], %63 {strides = array<i32>} : memref<1x1xf32, #tpu.memory_space<vmem>>, vector<1x1xf32>,
    } else {
    }
    return
  }
  func.func @transform_0(%arg0: i32) -> (i32, i32) {
    %c0_i32 = arith.constant 0 : i32
    %c0_i32_0 = arith.constant 0 : i32
    %c0_i32_1 = arith.constant 0 : i32
    return %c0_i32, %c0_i32_0 : i32, i32
  }
  func.func @transform_1(%arg0: i32) -> (i32, i32) {
    %c0_i32 = arith.constant 0 : i32
    %c0_i32_0 = arith.constant 0 : i32
    return %c0_i32, %arg0 : i32, i32
  }
  func.func @transform_2(%arg0: i32) -> (i32, i32) {
    %c0_i32 = arith.constant 0 : i32
    %c0_i32_0 = arith.constant 0 : i32
    return %c0_i32, %arg0 : i32, i32
  }
  func.func @transform_3(%arg0: i32) -> (i32, i32) {
    %c0_i32 = arith.constant 0 : i32
    %c0_i32_0 = arith.constant 0 : i32
    %c0_i32_1 = arith.constant 0 : i32
    return %c0_i32, %c0_i32_0 : i32, i32
  }
  func.func @transform_4(%arg0: i32) -> (i32, i32) {
    %c0_i32 = arith.constant 0 : i32
    %c0_i32_0 = arith.constant 0 : i32
    %c0_i32_1 = arith.constant 0 : i32
    return %c0_i32, %c0_i32_0 : i32, i32
  }
  func.func @transform_5(%arg0: i32) -> (i32, i32) {
    %c0_i32 = arith.constant 0 : i32
    %c0_i32_0 = arith.constant 0 : i32
    %c0_i32_1 = arith.constant 0 : i32
    return %c0_i32, %c0_i32_0 : i32, i32
  }
  func.func @transform_6(%arg0: i32) -> (i32, i32) {
    %c0_i32 = arith.constant 0 : i32
    %c0_i32_0 = arith.constant 0 : i32
    %c0_i32_1 = arith.constant 0 : i32
    return %c0_i32, %c0_i32_0 : i32, i32
  }
  func.func @transform_7(%arg0: i32) -> (i32, i32) {
    %c0_i32 = arith.constant 0 : i32
    %c0_i32_0 = arith.constant 0 : i32
    %c0_i32_1 = arith.constant 0 : i32
    return %c0_i32, %c0_i32_0 : i32, i32
  }
  func.func @transform_8(%arg0: i32) -> (i32, i32) {
    %c0_i32 = arith.constant 0 : i32
    %c0_i32_0 = arith.constant 0 : i32
    %c0_i32_1 = arith.constant 0 : i32
    return %c0_i32, %c0_i32_0 : i32, i32
  }
}

</mosaic_0001>

<bundles_post_ra>
// kernel: multimodal_head.1
= control target key start
LH: loop header
LB: loop body
LE: loop exit
PB: predicated region body
PF: predicated region fallthrough
CT: control target
= control target key end

     0   :  { %14 = vsyncpa [#allocation5], 0  ;;  %s19866_s0 = inlined_call_operand.vmem [shape: bf16[2,1024], index: 0, kind: input, shape index: {}]   ;;  %s19867_s1 = inlined_call_operand.vmem [shape: bf16[1024,4096], index: 1, kind: input, shape index: {}]   ;;  %s19868_s2 = inlined_call_operand.vmem [shape: f32[1,4096], index: 2, kind: input, shape index: {}]   ;;  %s19869_s3 = inlined_call_operand.vmem [shape: bf16[4096,8], index: 3, kind: input, shape index: {}]   ;;  %s19870_s4 = inlined_call_operand.vmem [shape: f32[1,8], index: 4, kind: input, shape index: {}]   ;;  %s19871_s5 = inlined_call_operand.vmem [shape: f32[1,8], index: 5, kind: input, shape index: {}]   ;;  %s19872_s6 = inlined_call_operand.vmem [shape: f32[2,8], index: 6, kind: input, shape index: {}]   ;;  %s19873_s7 = inlined_call_operand.hbm [shape: f32[2,8], index: 7, kind: output, shape index: {0}]   ;;  %s19874_s8 = inlined_call_operand.hbm [shape: f32[1,1], index: 8, kind: output, shape index: {1}]  }
   0x1   :  { %15 = vsyncpa [#allocation7], 0  ;;  %s15586_s27 = smov 0   ;;  %s15588_s28 = smov 0  }
   0x2   :  { %s15590_s29 = smov 0  }
   0x3 LB: > { %s15602_s30 = sadd.s32 4294967295, %s15536_s29   ;;  %s15605_s9 = sadd.s32 1, %s15536_s29   ;;  %s15536_s29 = sphi %s15590_s29, %s19878_s29   ;;  %s15532_s28 = sphi %s15588_s28, %s19877_s28   ;;  %s15528_s27 = sphi %s15586_s27, %s19876_s27  }
   0x4   : > { %s46_s10 = ssub.s32 %s15536_s29, %s15605_s9  ;;  %s49_s11 = sadd.s32 1, %s15532_s28 }
   0x5   : > { %p47_p0 = scmp.eq.s32.totalorder %s46_s10, 0  ;;  %p56_p1 = scmp.ne.s32.totalorder %s15532_s28, %s15528_s27 }
   0x6   : > { %p57_p2 = scmp.eq.s32.totalorder %s15536_s29, 0  ;;  %p13333_p4 = scmp.ge.s32.totalorder %s15536_s29, 2 }
   0x7   : > { %s15614_s12 = scalar_select %p47_p0, %s15532_s28, %s49_s11  }
   0x8   : > { %p58_p3 = por %p57_p2, %p56_p1  ;;  %249 = sbr.rel (%p13333_p4) target bundleno = 531 (0x213), region = 36 }
   0xf   : > { %252 = sbr.rel (!%p58_p3) target bundleno = 531 (0x213), region = 40  ;;  %s254_s13 = sand.u32 (%p58_p3), 1, %s15532_s28  }
  0x10   : > { %s14646_s14 = sshll.u32 (%p58_p3), %s15536_s29, 6  ;;  %s13334_s15 = sshll.u32 (%p58_p3), %s254_s13, 13 }
  0x11   : > { %s15622_s18 = scalar_lea.vmem (%p58_p3), %s19867_s1, %s14646_s14  ;;  %s15627_s19 = scalar_lea.vmem (%p58_p3), [#allocation3], %s13334_s15 }
  0x12   : > { %v272_v0 = vld [vmem:[%s15622_s18] sm:$0xff] (%p58_p3)  ;;  %v274_v1 = vld [vmem:[%s15622_s18 + $0x8] sm:$0xff] (%p58_p3)  ;;  %v276_v2 = vld [vmem:[%s15622_s18 + $0x10] sm:$0xff] (%p58_p3) }
  0x13   : > { %273 = vst [vmem:[%s15627_s19] sm:$0xff] (%p58_p3), %v272_v0  ;;  %275 = vst [vmem:[%s15627_s19 + $0x8] sm:$0xff] (%p58_p3), %v274_v1  ;;  %v278_v3 = vld [vmem:[%s15622_s18 + $0x18] sm:$0xff] (%p58_p3)  ;;  %v280_v4 = vld [vmem:[%s15622_s18 + $0x20] sm:$0xff] (%p58_p3) }
  0x14   : > { %277 = vst [vmem:[%s15627_s19 + $0x10] sm:$0xff] (%p58_p3), %v276_v2  ;;  %v282_v5 = vld [vmem:[%s15622_s18 + $0x28] sm:$0xff] (%p58_p3)  ;;  %279 = vst [vmem:[%s15627_s19 + $0x18] sm:$0xff] (%p58_p3), %v278_v3  ;;  %v284_v6 = vld [vmem:[%s15622_s18 + $0x30] sm:$0xff] (%p58_p3) }
  0x15   : > { %281 = vst [vmem:[%s15627_s19 + $0x20] sm:$0xff] (%p58_p3), %v280_v4  ;;  %283 = vst [vmem:[%s15627_s19 + $0x28] sm:$0xff] (%p58_p3), %v282_v5  ;;  %v286_v7 = vld [vmem:[%s15622_s18 + $0x38] sm:$0xff] (%p58_p3)  ;;  %v288_v8 = vld [vmem:[%s15622_s18 + $0x80] sm:$0xff] (%p58_p3) }
  0x16   : > { %285 = vst [vmem:[%s15627_s19 + $0x30] sm:$0xff] %v284_v6  ;;  %287 = vst [vmem:[%s15627_s19 + $0x38] sm:$0xff] %v286_v7  ;;  %v290_v9 = vld [vmem:[%s15622_s18 + $0x88] sm:$0xff]  ;;  %v292_v10 = vld [vmem:[%s15622_s18 + $0x90] sm:$0xff] }
  0x17   : > { %289 = vst [vmem:[%s15627_s19 + $0x40] sm:$0xff] %v288_v8  ;;  %v294_v11 = vld [vmem:[%s15622_s18 + $0x98] sm:$0xff]  ;;  %291 = vst [vmem:[%s15627_s19 + $0x48] sm:$0xff] %v290_v9  ;;  %v296_v12 = vld [vmem:[%s15622_s18 + $0xa0] sm:$0xff] }
  0x18   : > { %293 = vst [vmem:[%s15627_s19 + $0x50] sm:$0xff] %v292_v10  ;;  %295 = vst [vmem:[%s15627_s19 + $0x58] sm:$0xff] %v294_v11  ;;  %v298_v13 = vld [vmem:[%s15622_s18 + $0xa8] sm:$0xff]  ;;  %v300_v14 = vld [vmem:[%s15622_s18 + $0xb0] sm:$0xff] }
  0x19   : > { %297 = vst [vmem:[%s15627_s19 + $0x60] sm:$0xff] %v296_v12  ;;  %299 = vst [vmem:[%s15627_s19 + $0x68] sm:$0xff] %v298_v13  ;;  %v302_v15 = vld [vmem:[%s15622_s18 + $0xb8] sm:$0xff]  ;;  %v304_v16 = vld [vmem:[%s15622_s18 + $0x100] sm:$0xff] }
  0x1a   : > { %301 = vst [vmem:[%s15627_s19 + $0x70] sm:$0xff] %v300_v14  ;;  %v306_v17 = vld [vmem:[%s15622_s18 + $0x108] sm:$0xff]  ;;  %303 = vst [vmem:[%s15627_s19 + $0x78] sm:$0xff] %v302_v15  ;;  %v308_v18 = vld [vmem:[%s15622_s18 + $0x110] sm:$0xff] }
  0x1b   : > { %305 = vst [vmem:[%s15627_s19 + $0x80] sm:$0xff] %v304_v16  ;;  %307 = vst [vmem:[%s15627_s19 + $0x88] sm:$0xff] %v306_v17  ;;  %v310_v19 = vld [vmem:[%s15622_s18 + $0x118] sm:$0xff]  ;;  %v312_v20 = vld [vmem:[%s15622_s18 + $0x120] sm:$0xff] }
  0x1c   : > { %309 = vst [vmem:[%s15627_s19 + $0x90] sm:$0xff] %v308_v18  ;;  %311 = vst [vmem:[%s15627_s19 + $0x98] sm:$0xff] %v310_v19  ;;  %v314_v21 = vld [vmem:[%s15622_s18 + $0x128] sm:$0xff]  ;;  %v316_v22 = vld [vmem:[%s15622_s18 + $0x130] sm:$0xff] }
  0x1d   : > { %313 = vst [vmem:[%s15627_s19 + $0xa0] sm:$0xff] %v312_v20  ;;  %v318_v23 = vld [vmem:[%s15622_s18 + $0x138] sm:$0xff]  ;;  %315 = vst [vmem:[%s15627_s19 + $0xa8] sm:$0xff] %v314_v21  ;;  %v320_v24 = vld [vmem:[%s15622_s18 + $0x180] sm:$0xff] }
  0x1e   : > { %317 = vst [vmem:[%s15627_s19 + $0xb0] sm:$0xff] %v316_v22  ;;  %319 = vst [vmem:[%s15627_s19 + $0xb8] sm:$0xff] %v318_v23  ;;  %v322_v25 = vld [vmem:[%s15622_s18 + $0x188] sm:$0xff]  ;;  %v324_v26 = vld [vmem:[%s15622_s18 + $0x190] sm:$0xff] }
  0x1f   : > { %321 = vst [vmem:[%s15627_s19 + $0xc0] sm:$0xff] %v320_v24  ;;  %323 = vst [vmem:[%s15627_s19 + $0xc8] sm:$0xff] %v322_v25  ;;  %v326_v27 = vld [vmem:[%s15622_s18 + $0x198] sm:$0xff]  ;;  %v328_v28 = vld [vmem:[%s15622_s18 + $0x1a0] sm:$0xff] }
  0x20   : > { %325 = vst [vmem:[%s15627_s19 + $0xd0] sm:$0xff] %v324_v26  ;;  %v330_v29 = vld [vmem:[%s15622_s18 + $0x1a8] sm:$0xff]  ;;  %327 = vst [vmem:[%s15627_s19 + $0xd8] sm:$0xff] %v326_v27  ;;  %v332_v30 = vld [vmem:[%s15622_s18 + $0x1b0] sm:$0xff] }
  0x21   : > { %329 = vst [vmem:[%s15627_s19 + $0xe0] sm:$0xff] %v328_v28  ;;  %331 = vst [vmem:[%s15627_s19 + $0xe8] sm:$0xff] %v330_v29  ;;  %v334_v31 = vld [vmem:[%s15622_s18 + $0x1b8] sm:$0xff]  ;;  %v336_v32 = vld [vmem:[%s15622_s18 + $0x200] sm:$0xff] }
  0x22   : > { %333 = vst [vmem:[%s15627_s19 + $0xf0] sm:$0xff] %v332_v30  ;;  %335 = vst [vmem:[%s15627_s19 + $0xf8] sm:$0xff] %v334_v31  ;;  %v338_v33 = vld [vmem:[%s15622_s18 + $0x208] sm:$0xff]  ;;  %v340_v34 = vld [vmem:[%s15622_s18 + $0x210] sm:$0xff] }
  0x23   : > { %337 = vst [vmem:[%s15627_s19 + $0x100] sm:$0xff] %v336_v32  ;;  %v342_v35 = vld [vmem:[%s15622_s18 + $0x218] sm:$0xff]  ;;  %339 = vst [vmem:[%s15627_s19 + $0x108] sm:$0xff] %v338_v33  ;;  %v344_v36 = vld [vmem:[%s15622_s18 + $0x220] sm:$0xff] }
  0x24   : > { %341 = vst [vmem:[%s15627_s19 + $0x110] sm:$0xff] %v340_v34  ;;  %343 = vst [vmem:[%s15627_s19 + $0x118] sm:$0xff] %v342_v35  ;;  %v346_v37 = vld [vmem:[%s15622_s18 + $0x228] sm:$0xff]  ;;  %v348_v38 = vld [vmem:[%s15622_s18 + $0x230] sm:$0xff] }
  0x25   : > { %345 = vst [vmem:[%s15627_s19 + $0x120] sm:$0xff] %v344_v36  ;;  %347 = vst [vmem:[%s15627_s19 + $0x128] sm:$0xff] %v346_v37  ;;  %v350_v39 = vld [vmem:[%s15622_s18 + $0x238] sm:$0xff]  ;;  %v352_v40 = vld [vmem:[%s15622_s18 + $0x280] sm:$0xff] }
  0x26   : > { %349 = vst [vmem:[%s15627_s19 + $0x130] sm:$0xff] %v348_v38  ;;  %v354_v41 = vld [vmem:[%s15622_s18 + $0x288] sm:$0xff]  ;;  %351 = vst [vmem:[%s15627_s19 + $0x138] sm:$0xff] %v350_v39  ;;  %v356_v42 = vld [vmem:[%s15622_s18 + $0x290] sm:$0xff] }
  0x27   : > { %353 = vst [vmem:[%s15627_s19 + $0x140] sm:$0xff] %v352_v40  ;;  %355 = vst [vmem:[%s15627_s19 + $0x148] sm:$0xff] %v354_v41  ;;  %v358_v43 = vld [vmem:[%s15622_s18 + $0x298] sm:$0xff]  ;;  %v360_v44 = vld [vmem:[%s15622_s18 + $0x2a0] sm:$0xff] }
  0x28   : > { %357 = vst [vmem:[%s15627_s19 + $0x150] sm:$0xff] %v356_v42  ;;  %359 = vst [vmem:[%s15627_s19 + $0x158] sm:$0xff] %v358_v43  ;;  %v362_v45 = vld [vmem:[%s15622_s18 + $0x2a8] sm:$0xff]  ;;  %v364_v46 = vld [vmem:[%s15622_s18 + $0x2b0] sm:$0xff] }
  0x29   : > { %361 = vst [vmem:[%s15627_s19 + $0x160] sm:$0xff] %v360_v44  ;;  %v366_v47 = vld [vmem:[%s15622_s18 + $0x2b8] sm:$0xff]  ;;  %363 = vst [vmem:[%s15627_s19 + $0x168] sm:$0xff] %v362_v45  ;;  %v368_v48 = vld [vmem:[%s15622_s18 + $0x300] sm:$0xff] }
  0x2a   : > { %365 = vst [vmem:[%s15627_s19 + $0x170] sm:$0xff] %v364_v46  ;;  %367 = vst [vmem:[%s15627_s19 + $0x178] sm:$0xff] %v366_v47  ;;  %v370_v49 = vld [vmem:[%s15622_s18 + $0x308] sm:$0xff]  ;;  %v372_v50 = vld [vmem:[%s15622_s18 + $0x310] sm:$0xff] }
  0x2b   : > { %369 = vst [vmem:[%s15627_s19 + $0x180] sm:$0xff] %v368_v48  ;;  %371 = vst [vmem:[%s15627_s19 + $0x188] sm:$0xff] %v370_v49  ;;  %v374_v51 = vld [vmem:[%s15622_s18 + $0x318] sm:$0xff]  ;;  %v376_v52 = vld [vmem:[%s15622_s18 + $0x320] sm:$0xff] }
  0x2c   : > { %373 = vst [vmem:[%s15627_s19 + $0x190] sm:$0xff] %v372_v50  ;;  %v378_v53 = vld [vmem:[%s15622_s18 + $0x328] sm:$0xff]  ;;  %375 = vst [vmem:[%s15627_s19 + $0x198] sm:$0xff] %v374_v51  ;;  %v380_v54 = vld [vmem:[%s15622_s18 + $0x330] sm:$0xff] }
  0x2d   : > { %377 = vst [vmem:[%s15627_s19 + $0x1a0] sm:$0xff] %v376_v52  ;;  %379 = vst [vmem:[%s15627_s19 + $0x1a8] sm:$0xff] %v378_v53  ;;  %v382_v55 = vld [vmem:[%s15622_s18 + $0x338] sm:$0xff]  ;;  %v384_v56 = vld [vmem:[%s15622_s18 + $0x380] sm:$0xff] }
  0x2e   : > { %381 = vst [vmem:[%s15627_s19 + $0x1b0] sm:$0xff] %v380_v54  ;;  %383 = vst [vmem:[%s15627_s19 + $0x1b8] sm:$0xff] %v382_v55  ;;  %v386_v57 = vld [vmem:[%s15622_s18 + $0x388] sm:$0xff]  ;;  %v388_v58 = vld [vmem:[%s15622_s18 + $0x390] sm:$0xff] }
  0x2f   : > { %385 = vst [vmem:[%s15627_s19 + $0x1c0] sm:$0xff] %v384_v56  ;;  %v390_v59 = vld [vmem:[%s15622_s18 + $0x398] sm:$0xff]  ;;  %387 = vst [vmem:[%s15627_s19 + $0x1c8] sm:$0xff] %v386_v57  ;;  %v392_v60 = vld [vmem:[%s15622_s18 + $0x3a0] sm:$0xff] }
  0x30   : > { %389 = vst [vmem:[%s15627_s19 + $0x1d0] sm:$0xff] %v388_v58  ;;  %391 = vst [vmem:[%s15627_s19 + $0x1d8] sm:$0xff] %v390_v59  ;;  %v394_v61 = vld [vmem:[%s15622_s18 + $0x3a8] sm:$0xff]  ;;  %v396_v62 = vld [vmem:[%s15622_s18 + $0x3b0] sm:$0xff] }
  0x31   : > { %393 = vst [vmem:[%s15627_s19 + $0x1e0] sm:$0xff] %v392_v60  ;;  %395 = vst [vmem:[%s15627_s19 + $0x1e8] sm:$0xff] %v394_v61  ;;  %v398_v63 = vld [vmem:[%s15622_s18 + $0x3b8] sm:$0xff]  ;;  %v400_v0 = vld [vmem:[%s15622_s18 + $0x400] sm:$0xff] }
  0x32   : > { %397 = vst [vmem:[%s15627_s19 + $0x1f0] sm:$0xff] %v396_v62  ;;  %v402_v1 = vld [vmem:[%s15622_s18 + $0x408] sm:$0xff]  ;;  %399 = vst [vmem:[%s15627_s19 + $0x1f8] sm:$0xff] %v398_v63  ;;  %v404_v2 = vld [vmem:[%s15622_s18 + $0x410] sm:$0xff] }
  0x33   : > { %401 = vst [vmem:[%s15627_s19 + $0x200] sm:$0xff] %v400_v0  ;;  %403 = vst [vmem:[%s15627_s19 + $0x208] sm:$0xff] %v402_v1  ;;  %v406_v3 = vld [vmem:[%s15622_s18 + $0x418] sm:$0xff]  ;;  %v408_v4 = vld [vmem:[%s15622_s18 + $0x420] sm:$0xff] }
  0x34   : > { %405 = vst [vmem:[%s15627_s19 + $0x210] sm:$0xff] %v404_v2  ;;  %407 = vst [vmem:[%s15627_s19 + $0x218] sm:$0xff] %v406_v3  ;;  %v410_v5 = vld [vmem:[%s15622_s18 + $0x428] sm:$0xff]  ;;  %v412_v6 = vld [vmem:[%s15622_s18 + $0x430] sm:$0xff] }
  0x35   : > { %409 = vst [vmem:[%s15627_s19 + $0x220] sm:$0xff] %v408_v4  ;;  %v414_v7 = vld [vmem:[%s15622_s18 + $0x438] sm:$0xff]  ;;  %411 = vst [vmem:[%s15627_s19 + $0x228] sm:$0xff] %v410_v5  ;;  %v416_v8 = vld [vmem:[%s15622_s18 + $0x480] sm:$0xff] }
  0x36   : > { %413 = vst [vmem:[%s15627_s19 + $0x230] sm:$0xff] %v412_v6  ;;  %415 = vst [vmem:[%s15627_s19 + $0x238] sm:$0xff] %v414_v7  ;;  %v418_v9 = vld [vmem:[%s15622_s18 + $0x488] sm:$0xff]  ;;  %v420_v10 = vld [vmem:[%s15622_s18 + $0x490] sm:$0xff] }
  0x37   : > { %417 = vst [vmem:[%s15627_s19 + $0x240] sm:$0xff] %v416_v8  ;;  %419 = vst [vmem:[%s15627_s19 + $0x248] sm:$0xff] %v418_v9  ;;  %v422_v11 = vld [vmem:[%s15622_s18 + $0x498] sm:$0xff]  ;;  %v424_v12 = vld [vmem:[%s15622_s18 + $0x4a0] sm:$0xff] }
  0x38   : > { %421 = vst [vmem:[%s15627_s19 + $0x250] sm:$0xff] %v420_v10  ;;  %v426_v13 = vld [vmem:[%s15622_s18 + $0x4a8] sm:$0xff]  ;;  %423 = vst [vmem:[%s15627_s19 + $0x258] sm:$0xff] %v422_v11  ;;  %v428_v14 = vld [vmem:[%s15622_s18 + $0x4b0] sm:$0xff] }
  0x39   : > { %425 = vst [vmem:[%s15627_s19 + $0x260] sm:$0xff] %v424_v12  ;;  %427 = vst [vmem:[%s15627_s19 + $0x268] sm:$0xff] %v426_v13  ;;  %v430_v15 = vld [vmem:[%s15622_s18 + $0x4b8] sm:$0xff]  ;;  %v432_v16 = vld [vmem:[%s15622_s18 + $0x500] sm:$0xff] }
  0x3a   : > { %429 = vst [vmem:[%s15627_s19 + $0x270] sm:$0xff] %v428_v14  ;;  %431 = vst [vmem:[%s15627_s19 + $0x278] sm:$0xff] %v430_v15  ;;  %v434_v17 = vld [vmem:[%s15622_s18 + $0x508] sm:$0xff]  ;;  %v436_v18 = vld [vmem:[%s15622_s18 + $0x510] sm:$0xff] }
  0x3b   : > { %433 = vst [vmem:[%s15627_s19 + $0x280] sm:$0xff] %v432_v16  ;;  %v438_v19 = vld [vmem:[%s15622_s18 + $0x518] sm:$0xff]  ;;  %435 = vst [vmem:[%s15627_s19 + $0x288] sm:$0xff] %v434_v17  ;;  %v440_v20 = vld [vmem:[%s15622_s18 + $0x520] sm:$0xff] }
  0x3c   : > { %437 = vst [vmem:[%s15627_s19 + $0x290] sm:$0xff] %v436_v18  ;;  %439 = vst [vmem:[%s15627_s19 + $0x298] sm:$0xff] %v438_v19  ;;  %v442_v21 = vld [vmem:[%s15622_s18 + $0x528] sm:$0xff]  ;;  %v444_v22 = vld [vmem:[%s15622_s18 + $0x530] sm:$0xff] }
  0x3d   : > { %441 = vst [vmem:[%s15627_s19 + $0x2a0] sm:$0xff] %v440_v20  ;;  %443 = vst [vmem:[%s15627_s19 + $0x2a8] sm:$0xff] %v442_v21  ;;  %v446_v23 = vld [vmem:[%s15622_s18 + $0x538] sm:$0xff]  ;;  %v448_v24 = vld [vmem:[%s15622_s18 + $0x580] sm:$0xff] }
  0x3e   : > { %445 = vst [vmem:[%s15627_s19 + $0x2b0] sm:$0xff] %v444_v22  ;;  %v450_v25 = vld [vmem:[%s15622_s18 + $0x588] sm:$0xff]  ;;  %447 = vst [vmem:[%s15627_s19 + $0x2b8] sm:$0xff] %v446_v23  ;;  %v452_v26 = vld [vmem:[%s15622_s18 + $0x590] sm:$0xff] }
  0x3f   : > { %449 = vst [vmem:[%s15627_s19 + $0x2c0] sm:$0xff] %v448_v24  ;;  %451 = vst [vmem:[%s15627_s19 + $0x2c8] sm:$0xff] %v450_v25  ;;  %v454_v27 = vld [vmem:[%s15622_s18 + $0x598] sm:$0xff]  ;;  %v456_v28 = vld [vmem:[%s15622_s18 + $0x5a0] sm:$0xff] }
  0x40   : > { %453 = vst [vmem:[%s15627_s19 + $0x2d0] sm:$0xff] %v452_v26  ;;  %455 = vst [vmem:[%s15627_s19 + $0x2d8] sm:$0xff] %v454_v27  ;;  %v458_v29 = vld [vmem:[%s15622_s18 + $0x5a8] sm:$0xff]  ;;  %v460_v30 = vld [vmem:[%s15622_s18 + $0x5b0] sm:$0xff] }
  0x41   : > { %457 = vst [vmem:[%s15627_s19 + $0x2e0] sm:$0xff] %v456_v28  ;;  %v462_v31 = vld [vmem:[%s15622_s18 + $0x5b8] sm:$0xff]  ;;  %459 = vst [vmem:[%s15627_s19 + $0x2e8] sm:$0xff] %v458_v29  ;;  %v464_v32 = vld [vmem:[%s15622_s18 + $0x600] sm:$0xff] }
  0x42   : > { %461 = vst [vmem:[%s15627_s19 + $0x2f0] sm:$0xff] %v460_v30  ;;  %463 = vst [vmem:[%s15627_s19 + $0x2f8] sm:$0xff] %v462_v31  ;;  %v466_v33 = vld [vmem:[%s15622_s18 + $0x608] sm:$0xff]  ;;  %v468_v34 = vld [vmem:[%s15622_s18 + $0x610] sm:$0xff] }
  0x43   : > { %465 = vst [vmem:[%s15627_s19 + $0x300] sm:$0xff] %v464_v32  ;;  %467 = vst [vmem:[%s15627_s19 + $0x308] sm:$0xff] %v466_v33  ;;  %v470_v35 = vld [vmem:[%s15622_s18 + $0x618] sm:$0xff]  ;;  %v472_v36 = vld [vmem:[%s15622_s18 + $0x620] sm:$0xff] }
  0x44   : > { %469 = vst [vmem:[%s15627_s19 + $0x310] sm:$0xff] %v468_v34  ;;  %v474_v37 = vld [vmem:[%s15622_s18 + $0x628] sm:$0xff]  ;;  %471 = vst [vmem:[%s15627_s19 + $0x318] sm:$0xff] %v470_v35  ;;  %v476_v38 = vld [vmem:[%s15622_s18 + $0x630] sm:$0xff] }
  0x45   : > { %473 = vst [vmem:[%s15627_s19 + $0x320] sm:$0xff] %v472_v36  ;;  %475 = vst [vmem:[%s15627_s19 + $0x328] sm:$0xff] %v474_v37  ;;  %v478_v39 = vld [vmem:[%s15622_s18 + $0x638] sm:$0xff]  ;;  %v480_v40 = vld [vmem:[%s15622_s18 + $0x680] sm:$0xff] }
  0x46   : > { %477 = vst [vmem:[%s15627_s19 + $0x330] sm:$0xff] %v476_v38  ;;  %479 = vst [vmem:[%s15627_s19 + $0x338] sm:$0xff] %v478_v39  ;;  %v482_v41 = vld [vmem:[%s15622_s18 + $0x688] sm:$0xff]  ;;  %v484_v42 = vld [vmem:[%s15622_s18 + $0x690] sm:$0xff] }
  0x47   : > { %481 = vst [vmem:[%s15627_s19 + $0x340] sm:$0xff] %v480_v40  ;;  %v486_v43 = vld [vmem:[%s15622_s18 + $0x698] sm:$0xff]  ;;  %483 = vst [vmem:[%s15627_s19 + $0x348] sm:$0xff] %v482_v41  ;;  %v488_v44 = vld [vmem:[%s15622_s18 + $0x6a0] sm:$0xff] }
  0x48   : > { %485 = vst [vmem:[%s15627_s19 + $0x350] sm:$0xff] %v484_v42  ;;  %487 = vst [vmem:[%s15627_s19 + $0x358] sm:$0xff] %v486_v43  ;;  %v490_v45 = vld [vmem:[%s15622_s18 + $0x6a8] sm:$0xff]  ;;  %v492_v46 = vld [vmem:[%s15622_s18 + $0x6b0] sm:$0xff] }
  0x49   : > { %489 = vst [vmem:[%s15627_s19 + $0x360] sm:$0xff] %v488_v44  ;;  %491 = vst [vmem:[%s15627_s19 + $0x368] sm:$0xff] %v490_v45  ;;  %v494_v47 = vld [vmem:[%s15622_s18 + $0x6b8] sm:$0xff]  ;;  %v496_v48 = vld [vmem:[%s15622_s18 + $0x700] sm:$0xff] }
  0x4a   : > { %493 = vst [vmem:[%s15627_s19 + $0x370] sm:$0xff] %v492_v46  ;;  %v498_v49 = vld [vmem:[%s15622_s18 + $0x708] sm:$0xff]  ;;  %495 = vst [vmem:[%s15627_s19 + $0x378] sm:$0xff] %v494_v47  ;;  %v500_v50 = vld [vmem:[%s15622_s18 + $0x710] sm:$0xff] }
  0x4b   : > { %497 = vst [vmem:[%s15627_s19 + $0x380] sm:$0xff] %v496_v48  ;;  %499 = vst [vmem:[%s15627_s19 + $0x388] sm:$0xff] %v498_v49  ;;  %v502_v51 = vld [vmem:[%s15622_s18 + $0x718] sm:$0xff]  ;;  %v504_v52 = vld [vmem:[%s15622_s18 + $0x720] sm:$0xff] }
  0x4c   : > { %501 = vst [vmem:[%s15627_s19 + $0x390] sm:$0xff] %v500_v50  ;;  %503 = vst [vmem:[%s15627_s19 + $0x398] sm:$0xff] %v502_v51  ;;  %v506_v53 = vld [vmem:[%s15622_s18 + $0x728] sm:$0xff]  ;;  %v508_v54 = vld [vmem:[%s15622_s18 + $0x730] sm:$0xff] }
  0x4d   : > { %505 = vst [vmem:[%s15627_s19 + $0x3a0] sm:$0xff] %v504_v52  ;;  %v510_v55 = vld [vmem:[%s15622_s18 + $0x738] sm:$0xff]  ;;  %507 = vst [vmem:[%s15627_s19 + $0x3a8] sm:$0xff] %v506_v53  ;;  %v512_v56 = vld [vmem:[%s15622_s18 + $0x780] sm:$0xff] }
  0x4e   : > { %509 = vst [vmem:[%s15627_s19 + $0x3b0] sm:$0xff] %v508_v54  ;;  %511 = vst [vmem:[%s15627_s19 + $0x3b8] sm:$0xff] %v510_v55  ;;  %v514_v57 = vld [vmem:[%s15622_s18 + $0x788] sm:$0xff]  ;;  %v516_v58 = vld [vmem:[%s15622_s18 + $0x790] sm:$0xff] }
  0x4f   : > { %513 = vst [vmem:[%s15627_s19 + $0x3c0] sm:$0xff] %v512_v56  ;;  %515 = vst [vmem:[%s15627_s19 + $0x3c8] sm:$0xff] %v514_v57  ;;  %v518_v59 = vld [vmem:[%s15622_s18 + $0x798] sm:$0xff]  ;;  %v520_v60 = vld [vmem:[%s15622_s18 + $0x7a0] sm:$0xff] }
  0x50   : > { %517 = vst [vmem:[%s15627_s19 + $0x3d0] sm:$0xff] %v516_v58  ;;  %v522_v61 = vld [vmem:[%s15622_s18 + $0x7a8] sm:$0xff]  ;;  %519 = vst [vmem:[%s15627_s19 + $0x3d8] sm:$0xff] %v518_v59  ;;  %v524_v62 = vld [vmem:[%s15622_s18 + $0x7b0] sm:$0xff] }
  0x51   : > { %521 = vst [vmem:[%s15627_s19 + $0x3e0] sm:$0xff] %v520_v60  ;;  %523 = vst [vmem:[%s15627_s19 + $0x3e8] sm:$0xff] %v522_v61  ;;  %v526_v63 = vld [vmem:[%s15622_s18 + $0x7b8] sm:$0xff]  ;;  %v528_v0 = vld [vmem:[%s15622_s18 + $0x800] sm:$0xff] }
  0x52   : > { %525 = vst [vmem:[%s15627_s19 + $0x3f0] sm:$0xff] %v524_v62  ;;  %527 = vst [vmem:[%s15627_s19 + $0x3f8] sm:$0xff] %v526_v63  ;;  %v530_v1 = vld [vmem:[%s15622_s18 + $0x808] sm:$0xff]  ;;  %v532_v2 = vld [vmem:[%s15622_s18 + $0x810] sm:$0xff] }
  0x53   : > { %529 = vst [vmem:[%s15627_s19 + $0x400] sm:$0xff] %v528_v0  ;;  %v534_v3 = vld [vmem:[%s15622_s18 + $0x818] sm:$0xff]  ;;  %531 = vst [vmem:[%s15627_s19 + $0x408] sm:$0xff] %v530_v1  ;;  %v536_v4 = vld [vmem:[%s15622_s18 + $0x820] sm:$0xff] }
  0x54   : > { %533 = vst [vmem:[%s15627_s19 + $0x410] sm:$0xff] %v532_v2  ;;  %535 = vst [vmem:[%s15627_s19 + $0x418] sm:$0xff] %v534_v3  ;;  %v538_v5 = vld [vmem:[%s15622_s18 + $0x828] sm:$0xff]  ;;  %v540_v6 = vld [vmem:[%s15622_s18 + $0x830] sm:$0xff] }
  0x55   : > { %537 = vst [vmem:[%s15627_s19 + $0x420] sm:$0xff] %v536_v4  ;;  %539 = vst [vmem:[%s15627_s19 + $0x428] sm:$0xff] %v538_v5  ;;  %v542_v7 = vld [vmem:[%s15622_s18 + $0x838] sm:$0xff]  ;;  %v544_v8 = vld [vmem:[%s15622_s18 + $0x880] sm:$0xff] }
  0x56   : > { %541 = vst [vmem:[%s15627_s19 + $0x430] sm:$0xff] %v540_v6  ;;  %v546_v9 = vld [vmem:[%s15622_s18 + $0x888] sm:$0xff]  ;;  %543 = vst [vmem:[%s15627_s19 + $0x438] sm:$0xff] %v542_v7  ;;  %v548_v10 = vld [vmem:[%s15622_s18 + $0x890] sm:$0xff] }
  0x57   : > { %545 = vst [vmem:[%s15627_s19 + $0x440] sm:$0xff] %v544_v8  ;;  %547 = vst [vmem:[%s15627_s19 + $0x448] sm:$0xff] %v546_v9  ;;  %v550_v11 = vld [vmem:[%s15622_s18 + $0x898] sm:$0xff]  ;;  %v552_v12 = vld [vmem:[%s15622_s18 + $0x8a0] sm:$0xff] }
  0x58   : > { %549 = vst [vmem:[%s15627_s19 + $0x450] sm:$0xff] %v548_v10  ;;  %551 = vst [vmem:[%s15627_s19 + $0x458] sm:$0xff] %v550_v11  ;;  %v554_v13 = vld [vmem:[%s15622_s18 + $0x8a8] sm:$0xff]  ;;  %v556_v14 = vld [vmem:[%s15622_s18 + $0x8b0] sm:$0xff] }
  0x59   : > { %553 = vst [vmem:[%s15627_s19 + $0x460] sm:$0xff] %v552_v12  ;;  %v558_v15 = vld [vmem:[%s15622_s18 + $0x8b8] sm:$0xff]  ;;  %555 = vst [vmem:[%s15627_s19 + $0x468] sm:$0xff] %v554_v13  ;;  %v560_v16 = vld [vmem:[%s15622_s18 + $0x900] sm:$0xff] }
  0x5a   : > { %557 = vst [vmem:[%s15627_s19 + $0x470] sm:$0xff] %v556_v14  ;;  %559 = vst [vmem:[%s15627_s19 + $0x478] sm:$0xff] %v558_v15  ;;  %v562_v17 = vld [vmem:[%s15622_s18 + $0x908] sm:$0xff]  ;;  %v564_v18 = vld [vmem:[%s15622_s18 + $0x910] sm:$0xff] }
  0x5b   : > { %561 = vst [vmem:[%s15627_s19 + $0x480] sm:$0xff] %v560_v16  ;;  %563 = vst [vmem:[%s15627_s19 + $0x488] sm:$0xff] %v562_v17  ;;  %v566_v19 = vld [vmem:[%s15622_s18 + $0x918] sm:$0xff]  ;;  %v568_v20 = vld [vmem:[%s15622_s18 + $0x920] sm:$0xff] }
  0x5c   : > { %565 = vst [vmem:[%s15627_s19 + $0x490] sm:$0xff] %v564_v18  ;;  %v570_v21 = vld [vmem:[%s15622_s18 + $0x928] sm:$0xff]  ;;  %567 = vst [vmem:[%s15627_s19 + $0x498] sm:$0xff] %v566_v19  ;;  %v572_v22 = vld [vmem:[%s15622_s18 + $0x930] sm:$0xff] }
  0x5d   : > { %569 = vst [vmem:[%s15627_s19 + $0x4a0] sm:$0xff] %v568_v20  ;;  %571 = vst [vmem:[%s15627_s19 + $0x4a8] sm:$0xff] %v570_v21  ;;  %v574_v23 = vld [vmem:[%s15622_s18 + $0x938] sm:$0xff]  ;;  %v576_v24 = vld [vmem:[%s15622_s18 + $0x980] sm:$0xff] }
  0x5e   : > { %573 = vst [vmem:[%s15627_s19 + $0x4b0] sm:$0xff] %v572_v22  ;;  %575 = vst [vmem:[%s15627_s19 + $0x4b8] sm:$0xff] %v574_v23  ;;  %v578_v25 = vld [vmem:[%s15622_s18 + $0x988] sm:$0xff]  ;;  %v580_v26 = vld [vmem:[%s15622_s18 + $0x990] sm:$0xff] }
  0x5f   : > { %577 = vst [vmem:[%s15627_s19 + $0x4c0] sm:$0xff] %v576_v24  ;;  %v582_v27 = vld [vmem:[%s15622_s18 + $0x998] sm:$0xff]  ;;  %579 = vst [vmem:[%s15627_s19 + $0x4c8] sm:$0xff] %v578_v25  ;;  %v584_v28 = vld [vmem:[%s15622_s18 + $0x9a0] sm:$0xff] }
  0x60   : > { %581 = vst [vmem:[%s15627_s19 + $0x4d0] sm:$0xff] %v580_v26  ;;  %583 = vst [vmem:[%s15627_s19 + $0x4d8] sm:$0xff] %v582_v27  ;;  %v586_v29 = vld [vmem:[%s15622_s18 + $0x9a8] sm:$0xff]  ;;  %v588_v30 = vld [vmem:[%s15622_s18 + $0x9b0] sm:$0xff] }
  0x61   : > { %585 = vst [vmem:[%s15627_s19 + $0x4e0] sm:$0xff] %v584_v28  ;;  %587 = vst [vmem:[%s15627_s19 + $0x4e8] sm:$0xff] %v586_v29  ;;  %v590_v31 = vld [vmem:[%s15622_s18 + $0x9b8] sm:$0xff]  ;;  %v592_v32 = vld [vmem:[%s15622_s18 + $0xa00] sm:$0xff] }
  0x62   : > { %589 = vst [vmem:[%s15627_s19 + $0x4f0] sm:$0xff] %v588_v30  ;;  %v594_v33 = vld [vmem:[%s15622_s18 + $0xa08] sm:$0xff]  ;;  %591 = vst [vmem:[%s15627_s19 + $0x4f8] sm:$0xff] %v590_v31  ;;  %v596_v34 = vld [vmem:[%s15622_s18 + $0xa10] sm:$0xff] }
  0x63   : > { %593 = vst [vmem:[%s15627_s19 + $0x500] sm:$0xff] %v592_v32  ;;  %595 = vst [vmem:[%s15627_s19 + $0x508] sm:$0xff] %v594_v33  ;;  %v598_v35 = vld [vmem:[%s15622_s18 + $0xa18] sm:$0xff]  ;;  %v600_v36 = vld [vmem:[%s15622_s18 + $0xa20] sm:$0xff] }
  0x64   : > { %597 = vst [vmem:[%s15627_s19 + $0x510] sm:$0xff] %v596_v34  ;;  %599 = vst [vmem:[%s15627_s19 + $0x518] sm:$0xff] %v598_v35  ;;  %v602_v37 = vld [vmem:[%s15622_s18 + $0xa28] sm:$0xff]  ;;  %v604_v38 = vld [vmem:[%s15622_s18 + $0xa30] sm:$0xff] }
  0x65   : > { %601 = vst [vmem:[%s15627_s19 + $0x520] sm:$0xff] %v600_v36  ;;  %v606_v39 = vld [vmem:[%s15622_s18 + $0xa38] sm:$0xff]  ;;  %603 = vst [vmem:[%s15627_s19 + $0x528] sm:$0xff] %v602_v37  ;;  %v608_v40 = vld [vmem:[%s15622_s18 + $0xa80] sm:$0xff] }
  0x66   : > { %605 = vst [vmem:[%s15627_s19 + $0x530] sm:$0xff] %v604_v38  ;;  %607 = vst [vmem:[%s15627_s19 + $0x538] sm:$0xff] %v606_v39  ;;  %v610_v41 = vld [vmem:[%s15622_s18 + $0xa88] sm:$0xff]  ;;  %v612_v42 = vld [vmem:[%s15622_s18 + $0xa90] sm:$0xff] }
  0x67   : > { %609 = vst [vmem:[%s15627_s19 + $0x540] sm:$0xff] %v608_v40  ;;  %611 = vst [vmem:[%s15627_s19 + $0x548] sm:$0xff] %v610_v41  ;;  %v614_v43 = vld [vmem:[%s15622_s18 + $0xa98] sm:$0xff]  ;;  %v616_v44 = vld [vmem:[%s15622_s18 + $0xaa0] sm:$0xff] }
  0x68   : > { %613 = vst [vmem:[%s15627_s19 + $0x550] sm:$0xff] %v612_v42  ;;  %v618_v45 = vld [vmem:[%s15622_s18 + $0xaa8] sm:$0xff]  ;;  %615 = vst [vmem:[%s15627_s19 + $0x558] sm:$0xff] %v614_v43  ;;  %v620_v46 = vld [vmem:[%s15622_s18 + $0xab0] sm:$0xff] }
  0x69   : > { %617 = vst [vmem:[%s15627_s19 + $0x560] sm:$0xff] %v616_v44  ;;  %619 = vst [vmem:[%s15627_s19 + $0x568] sm:$0xff] %v618_v45  ;;  %v622_v47 = vld [vmem:[%s15622_s18 + $0xab8] sm:$0xff]  ;;  %v624_v48 = vld [vmem:[%s15622_s18 + $0xb00] sm:$0xff] }
  0x6a   : > { %621 = vst [vmem:[%s15627_s19 + $0x570] sm:$0xff] %v620_v46  ;;  %623 = vst [vmem:[%s15627_s19 + $0x578] sm:$0xff] %v622_v47  ;;  %v626_v49 = vld [vmem:[%s15622_s18 + $0xb08] sm:$0xff]  ;;  %v628_v50 = vld [vmem:[%s15622_s18 + $0xb10] sm:$0xff] }
  0x6b   : > { %625 = vst [vmem:[%s15627_s19 + $0x580] sm:$0xff] %v624_v48  ;;  %v630_v51 = vld [vmem:[%s15622_s18 + $0xb18] sm:$0xff]  ;;  %627 = vst [vmem:[%s15627_s19 + $0x588] sm:$0xff] %v626_v49  ;;  %v632_v52 = vld [vmem:[%s15622_s18 + $0xb20] sm:$0xff] }
  0x6c   : > { %629 = vst [vmem:[%s15627_s19 + $0x590] sm:$0xff] %v628_v50  ;;  %631 = vst [vmem:[%s15627_s19 + $0x598] sm:$0xff] %v630_v51  ;;  %v634_v53 = vld [vmem:[%s15622_s18 + $0xb28] sm:$0xff]  ;;  %v636_v54 = vld [vmem:[%s15622_s18 + $0xb30] sm:$0xff] }
  0x6d   : > { %633 = vst [vmem:[%s15627_s19 + $0x5a0] sm:$0xff] %v632_v52  ;;  %635 = vst [vmem:[%s15627_s19 + $0x5a8] sm:$0xff] %v634_v53  ;;  %v638_v55 = vld [vmem:[%s15622_s18 + $0xb38] sm:$0xff]  ;;  %v640_v56 = vld [vmem:[%s15622_s18 + $0xb80] sm:$0xff] }
  0x6e   : > { %637 = vst [vmem:[%s15627_s19 + $0x5b0] sm:$0xff] %v636_v54  ;;  %v642_v57 = vld [vmem:[%s15622_s18 + $0xb88] sm:$0xff]  ;;  %639 = vst [vmem:[%s15627_s19 + $0x5b8] sm:$0xff] %v638_v55  ;;  %v644_v58 = vld [vmem:[%s15622_s18 + $0xb90] sm:$0xff] }
  0x6f   : > { %641 = vst [vmem:[%s15627_s19 + $0x5c0] sm:$0xff] %v640_v56  ;;  %643 = vst [vmem:[%s15627_s19 + $0x5c8] sm:$0xff] %v642_v57  ;;  %v646_v59 = vld [vmem:[%s15622_s18 + $0xb98] sm:$0xff]  ;;  %v648_v60 = vld [vmem:[%s15622_s18 + $0xba0] sm:$0xff] }
  0x70   : > { %645 = vst [vmem:[%s15627_s19 + $0x5d0] sm:$0xff] %v644_v58  ;;  %647 = vst [vmem:[%s15627_s19 + $0x5d8] sm:$0xff] %v646_v59  ;;  %v650_v61 = vld [vmem:[%s15622_s18 + $0xba8] sm:$0xff]  ;;  %v652_v62 = vld [vmem:[%s15622_s18 + $0xbb0] sm:$0xff] }
  0x71   : > { %649 = vst [vmem:[%s15627_s19 + $0x5e0] sm:$0xff] %v648_v60  ;;  %v654_v63 = vld [vmem:[%s15622_s18 + $0xbb8] sm:$0xff]  ;;  %651 = vst [vmem:[%s15627_s19 + $0x5e8] sm:$0xff] %v650_v61  ;;  %v656_v0 = vld [vmem:[%s15622_s18 + $0xc00] sm:$0xff] }
  0x72   : > { %653 = vst [vmem:[%s15627_s19 + $0x5f0] sm:$0xff] %v652_v62  ;;  %655 = vst [vmem:[%s15627_s19 + $0x5f8] sm:$0xff] %v654_v63  ;;  %v658_v1 = vld [vmem:[%s15622_s18 + $0xc08] sm:$0xff]  ;;  %v660_v2 = vld [vmem:[%s15622_s18 + $0xc10] sm:$0xff] }
  0x73   : > { %657 = vst [vmem:[%s15627_s19 + $0x600] sm:$0xff] %v656_v0  ;;  %659 = vst [vmem:[%s15627_s19 + $0x608] sm:$0xff] %v658_v1  ;;  %v662_v3 = vld [vmem:[%s15622_s18 + $0xc18] sm:$0xff]  ;;  %v664_v4 = vld [vmem:[%s15622_s18 + $0xc20] sm:$0xff] }
  0x74   : > { %661 = vst [vmem:[%s15627_s19 + $0x610] sm:$0xff] %v660_v2  ;;  %v666_v5 = vld [vmem:[%s15622_s18 + $0xc28] sm:$0xff]  ;;  %663 = vst [vmem:[%s15627_s19 + $0x618] sm:$0xff] %v662_v3  ;;  %v668_v6 = vld [vmem:[%s15622_s18 + $0xc30] sm:$0xff] }
  0x75   : > { %665 = vst [vmem:[%s15627_s19 + $0x620] sm:$0xff] %v664_v4  ;;  %667 = vst [vmem:[%s15627_s19 + $0x628] sm:$0xff] %v666_v5  ;;  %v670_v7 = vld [vmem:[%s15622_s18 + $0xc38] sm:$0xff]  ;;  %v672_v8 = vld [vmem:[%s15622_s18 + $0xc80] sm:$0xff] }
  0x76   : > { %669 = vst [vmem:[%s15627_s19 + $0x630] sm:$0xff] %v668_v6  ;;  %671 = vst [vmem:[%s15627_s19 + $0x638] sm:$0xff] %v670_v7  ;;  %v674_v9 = vld [vmem:[%s15622_s18 + $0xc88] sm:$0xff]  ;;  %v676_v10 = vld [vmem:[%s15622_s18 + $0xc90] sm:$0xff] }
  0x77   : > { %673 = vst [vmem:[%s15627_s19 + $0x640] sm:$0xff] %v672_v8  ;;  %v678_v11 = vld [vmem:[%s15622_s18 + $0xc98] sm:$0xff]  ;;  %675 = vst [vmem:[%s15627_s19 + $0x648] sm:$0xff] %v674_v9  ;;  %v680_v12 = vld [vmem:[%s15622_s18 + $0xca0] sm:$0xff] }
  0x78   : > { %677 = vst [vmem:[%s15627_s19 + $0x650] sm:$0xff] %v676_v10  ;;  %679 = vst [vmem:[%s15627_s19 + $0x658] sm:$0xff] %v678_v11  ;;  %v682_v13 = vld [vmem:[%s15622_s18 + $0xca8] sm:$0xff]  ;;  %v684_v14 = vld [vmem:[%s15622_s18 + $0xcb0] sm:$0xff] }
  0x79   : > { %681 = vst [vmem:[%s15627_s19 + $0x660] sm:$0xff] %v680_v12  ;;  %683 = vst [vmem:[%s15627_s19 + $0x668] sm:$0xff] %v682_v13  ;;  %v686_v15 = vld [vmem:[%s15622_s18 + $0xcb8] sm:$0xff]  ;;  %v688_v16 = vld [vmem:[%s15622_s18 + $0xd00] sm:$0xff] }
  0x7a   : > { %685 = vst [vmem:[%s15627_s19 + $0x670] sm:$0xff] %v684_v14  ;;  %v690_v17 = vld [vmem:[%s15622_s18 + $0xd08] sm:$0xff]  ;;  %687 = vst [vmem:[%s15627_s19 + $0x678] sm:$0xff] %v686_v15  ;;  %v692_v18 = vld [vmem:[%s15622_s18 + $0xd10] sm:$0xff] }
  0x7b   : > { %689 = vst [vmem:[%s15627_s19 + $0x680] sm:$0xff] %v688_v16  ;;  %691 = vst [vmem:[%s15627_s19 + $0x688] sm:$0xff] %v690_v17  ;;  %v694_v19 = vld [vmem:[%s15622_s18 + $0xd18] sm:$0xff]  ;;  %v696_v20 = vld [vmem:[%s15622_s18 + $0xd20] sm:$0xff] }
  0x7c   : > { %693 = vst [vmem:[%s15627_s19 + $0x690] sm:$0xff] %v692_v18  ;;  %695 = vst [vmem:[%s15627_s19 + $0x698] sm:$0xff] %v694_v19  ;;  %v698_v21 = vld [vmem:[%s15622_s18 + $0xd28] sm:$0xff]  ;;  %v700_v22 = vld [vmem:[%s15622_s18 + $0xd30] sm:$0xff] }
  0x7d   : > { %697 = vst [vmem:[%s15627_s19 + $0x6a0] sm:$0xff] %v696_v20  ;;  %v702_v23 = vld [vmem:[%s15622_s18 + $0xd38] sm:$0xff]  ;;  %699 = vst [vmem:[%s15627_s19 + $0x6a8] sm:$0xff] %v698_v21  ;;  %v704_v24 = vld [vmem:[%s15622_s18 + $0xd80] sm:$0xff] }
  0x7e   : > { %701 = vst [vmem:[%s15627_s19 + $0x6b0] sm:$0xff] %v700_v22  ;;  %703 = vst [vmem:[%s15627_s19 + $0x6b8] sm:$0xff] %v702_v23  ;;  %v706_v25 = vld [vmem:[%s15622_s18 + $0xd88] sm:$0xff]  ;;  %v708_v26 = vld [vmem:[%s15622_s18 + $0xd90] sm:$0xff] }
  0x7f   : > { %705 = vst [vmem:[%s15627_s19 + $0x6c0] sm:$0xff] %v704_v24  ;;  %707 = vst [vmem:[%s15627_s19 + $0x6c8] sm:$0xff] %v706_v25  ;;  %v710_v27 = vld [vmem:[%s15622_s18 + $0xd98] sm:$0xff]  ;;  %v712_v28 = vld [vmem:[%s15622_s18 + $0xda0] sm:$0xff] }
  0x80   : > { %709 = vst [vmem:[%s15627_s19 + $0x6d0] sm:$0xff] %v708_v26  ;;  %v714_v29 = vld [vmem:[%s15622_s18 + $0xda8] sm:$0xff]  ;;  %711 = vst [vmem:[%s15627_s19 + $0x6d8] sm:$0xff] %v710_v27  ;;  %v716_v30 = vld [vmem:[%s15622_s18 + $0xdb0] sm:$0xff] }
  0x81   : > { %713 = vst [vmem:[%s15627_s19 + $0x6e0] sm:$0xff] %v712_v28  ;;  %715 = vst [vmem:[%s15627_s19 + $0x6e8] sm:$0xff] %v714_v29  ;;  %v718_v31 = vld [vmem:[%s15622_s18 + $0xdb8] sm:$0xff]  ;;  %v720_v32 = vld [vmem:[%s15622_s18 + $0xe00] sm:$0xff] }
  0x82   : > { %717 = vst [vmem:[%s15627_s19 + $0x6f0] sm:$0xff] %v716_v30  ;;  %719 = vst [vmem:[%s15627_s19 + $0x6f8] sm:$0xff] %v718_v31  ;;  %v722_v33 = vld [vmem:[%s15622_s18 + $0xe08] sm:$0xff]  ;;  %v724_v34 = vld [vmem:[%s15622_s18 + $0xe10] sm:$0xff] }
  0x83   : > { %721 = vst [vmem:[%s15627_s19 + $0x700] sm:$0xff] %v720_v32  ;;  %v726_v35 = vld [vmem:[%s15622_s18 + $0xe18] sm:$0xff]  ;;  %723 = vst [vmem:[%s15627_s19 + $0x708] sm:$0xff] %v722_v33  ;;  %v728_v36 = vld [vmem:[%s15622_s18 + $0xe20] sm:$0xff] }
  0x84   : > { %725 = vst [vmem:[%s15627_s19 + $0x710] sm:$0xff] %v724_v34  ;;  %727 = vst [vmem:[%s15627_s19 + $0x718] sm:$0xff] %v726_v35  ;;  %v730_v37 = vld [vmem:[%s15622_s18 + $0xe28] sm:$0xff]  ;;  %v732_v38 = vld [vmem:[%s15622_s18 + $0xe30] sm:$0xff] }
  0x85   : > { %729 = vst [vmem:[%s15627_s19 + $0x720] sm:$0xff] %v728_v36  ;;  %731 = vst [vmem:[%s15627_s19 + $0x728] sm:$0xff] %v730_v37  ;;  %v734_v39 = vld [vmem:[%s15622_s18 + $0xe38] sm:$0xff]  ;;  %v736_v40 = vld [vmem:[%s15622_s18 + $0xe80] sm:$0xff] }
  0x86   : > { %733 = vst [vmem:[%s15627_s19 + $0x730] sm:$0xff] %v732_v38  ;;  %v738_v41 = vld [vmem:[%s15622_s18 + $0xe88] sm:$0xff]  ;;  %735 = vst [vmem:[%s15627_s19 + $0x738] sm:$0xff] %v734_v39  ;;  %v740_v42 = vld [vmem:[%s15622_s18 + $0xe90] sm:$0xff] }
  0x87   : > { %737 = vst [vmem:[%s15627_s19 + $0x740] sm:$0xff] %v736_v40  ;;  %739 = vst [vmem:[%s15627_s19 + $0x748] sm:$0xff] %v738_v41  ;;  %v742_v43 = vld [vmem:[%s15622_s18 + $0xe98] sm:$0xff]  ;;  %v744_v44 = vld [vmem:[%s15622_s18 + $0xea0] sm:$0xff] }
  0x88   : > { %741 = vst [vmem:[%s15627_s19 + $0x750] sm:$0xff] %v740_v42  ;;  %743 = vst [vmem:[%s15627_s19 + $0x758] sm:$0xff] %v742_v43  ;;  %v746_v45 = vld [vmem:[%s15622_s18 + $0xea8] sm:$0xff]  ;;  %v748_v46 = vld [vmem:[%s15622_s18 + $0xeb0] sm:$0xff] }
  0x89   : > { %745 = vst [vmem:[%s15627_s19 + $0x760] sm:$0xff] %v744_v44  ;;  %v750_v47 = vld [vmem:[%s15622_s18 + $0xeb8] sm:$0xff]  ;;  %747 = vst [vmem:[%s15627_s19 + $0x768] sm:$0xff] %v746_v45  ;;  %v752_v48 = vld [vmem:[%s15622_s18 + $0xf00] sm:$0xff] }
  0x8a   : > { %749 = vst [vmem:[%s15627_s19 + $0x770] sm:$0xff] %v748_v46  ;;  %751 = vst [vmem:[%s15627_s19 + $0x778] sm:$0xff] %v750_v47  ;;  %v754_v49 = vld [vmem:[%s15622_s18 + $0xf08] sm:$0xff]  ;;  %v756_v50 = vld [vmem:[%s15622_s18 + $0xf10] sm:$0xff] }
  0x8b   : > { %753 = vst [vmem:[%s15627_s19 + $0x780] sm:$0xff] %v752_v48  ;;  %755 = vst [vmem:[%s15627_s19 + $0x788] sm:$0xff] %v754_v49  ;;  %v758_v51 = vld [vmem:[%s15622_s18 + $0xf18] sm:$0xff]  ;;  %v760_v52 = vld [vmem:[%s15622_s18 + $0xf20] sm:$0xff] }
  0x8c   : > { %757 = vst [vmem:[%s15627_s19 + $0x790] sm:$0xff] %v756_v50  ;;  %v762_v53 = vld [vmem:[%s15622_s18 + $0xf28] sm:$0xff]  ;;  %759 = vst [vmem:[%s15627_s19 + $0x798] sm:$0xff] %v758_v51  ;;  %v764_v54 = vld [vmem:[%s15622_s18 + $0xf30] sm:$0xff] }
  0x8d   : > { %761 = vst [vmem:[%s15627_s19 + $0x7a0] sm:$0xff] %v760_v52  ;;  %763 = vst [vmem:[%s15627_s19 + $0x7a8] sm:$0xff] %v762_v53  ;;  %v766_v55 = vld [vmem:[%s15622_s18 + $0xf38] sm:$0xff]  ;;  %v768_v56 = vld [vmem:[%s15622_s18 + $0xf80] sm:$0xff] }
  0x8e   : > { %765 = vst [vmem:[%s15627_s19 + $0x7b0] sm:$0xff] %v764_v54  ;;  %767 = vst [vmem:[%s15627_s19 + $0x7b8] sm:$0xff] %v766_v55  ;;  %v770_v57 = vld [vmem:[%s15622_s18 + $0xf88] sm:$0xff]  ;;  %v772_v58 = vld [vmem:[%s15622_s18 + $0xf90] sm:$0xff] }
  0x8f   : > { %769 = vst [vmem:[%s15627_s19 + $0x7c0] sm:$0xff] %v768_v56  ;;  %v774_v59 = vld [vmem:[%s15622_s18 + $0xf98] sm:$0xff]  ;;  %771 = vst [vmem:[%s15627_s19 + $0x7c8] sm:$0xff] %v770_v57  ;;  %v776_v60 = vld [vmem:[%s15622_s18 + $0xfa0] sm:$0xff] }
  0x90   : > { %773 = vst [vmem:[%s15627_s19 + $0x7d0] sm:$0xff] %v772_v58  ;;  %775 = vst [vmem:[%s15627_s19 + $0x7d8] sm:$0xff] %v774_v59  ;;  %v778_v61 = vld [vmem:[%s15622_s18 + $0xfa8] sm:$0xff]  ;;  %v780_v62 = vld [vmem:[%s15622_s18 + $0xfb0] sm:$0xff] }
  0x91   : > { %777 = vst [vmem:[%s15627_s19 + $0x7e0] sm:$0xff] %v776_v60  ;;  %779 = vst [vmem:[%s15627_s19 + $0x7e8] sm:$0xff] %v778_v61  ;;  %v782_v63 = vld [vmem:[%s15622_s18 + $0xfb8] sm:$0xff]  ;;  %v784_v0 = vld [vmem:[%s15622_s18 + $0x1000] sm:$0xff] }
  0x92   : > { %781 = vst [vmem:[%s15627_s19 + $0x7f0] sm:$0xff] %v780_v62  ;;  %v786_v1 = vld [vmem:[%s15622_s18 + $0x1008] sm:$0xff]  ;;  %783 = vst [vmem:[%s15627_s19 + $0x7f8] sm:$0xff] %v782_v63  ;;  %v788_v2 = vld [vmem:[%s15622_s18 + $0x1010] sm:$0xff] }
  0x93   : > { %785 = vst [vmem:[%s15627_s19 + $0x800] sm:$0xff] %v784_v0  ;;  %787 = vst [vmem:[%s15627_s19 + $0x808] sm:$0xff] %v786_v1  ;;  %v790_v3 = vld [vmem:[%s15622_s18 + $0x1018] sm:$0xff]  ;;  %v792_v4 = vld [vmem:[%s15622_s18 + $0x1020] sm:$0xff] }
  0x94   : > { %789 = vst [vmem:[%s15627_s19 + $0x810] sm:$0xff] %v788_v2  ;;  %791 = vst [vmem:[%s15627_s19 + $0x818] sm:$0xff] %v790_v3  ;;  %v794_v5 = vld [vmem:[%s15622_s18 + $0x1028] sm:$0xff]  ;;  %v796_v6 = vld [vmem:[%s15622_s18 + $0x1030] sm:$0xff] }
  0x95   : > { %793 = vst [vmem:[%s15627_s19 + $0x820] sm:$0xff] %v792_v4  ;;  %v798_v7 = vld [vmem:[%s15622_s18 + $0x1038] sm:$0xff]  ;;  %795 = vst [vmem:[%s15627_s19 + $0x828] sm:$0xff] %v794_v5  ;;  %v800_v8 = vld [vmem:[%s15622_s18 + $0x1080] sm:$0xff] }
  0x96   : > { %797 = vst [vmem:[%s15627_s19 + $0x830] sm:$0xff] %v796_v6  ;;  %799 = vst [vmem:[%s15627_s19 + $0x838] sm:$0xff] %v798_v7  ;;  %v802_v9 = vld [vmem:[%s15622_s18 + $0x1088] sm:$0xff]  ;;  %v804_v10 = vld [vmem:[%s15622_s18 + $0x1090] sm:$0xff] }
  0x97   : > { %801 = vst [vmem:[%s15627_s19 + $0x840] sm:$0xff] %v800_v8  ;;  %803 = vst [vmem:[%s15627_s19 + $0x848] sm:$0xff] %v802_v9  ;;  %v806_v11 = vld [vmem:[%s15622_s18 + $0x1098] sm:$0xff]  ;;  %v808_v12 = vld [vmem:[%s15622_s18 + $0x10a0] sm:$0xff] }
  0x98   : > { %805 = vst [vmem:[%s15627_s19 + $0x850] sm:$0xff] %v804_v10  ;;  %v810_v13 = vld [vmem:[%s15622_s18 + $0x10a8] sm:$0xff]  ;;  %807 = vst [vmem:[%s15627_s19 + $0x858] sm:$0xff] %v806_v11  ;;  %v812_v14 = vld [vmem:[%s15622_s18 + $0x10b0] sm:$0xff] }
  0x99   : > { %809 = vst [vmem:[%s15627_s19 + $0x860] sm:$0xff] %v808_v12  ;;  %811 = vst [vmem:[%s15627_s19 + $0x868] sm:$0xff] %v810_v13  ;;  %v814_v15 = vld [vmem:[%s15622_s18 + $0x10b8] sm:$0xff]  ;;  %v816_v16 = vld [vmem:[%s15622_s18 + $0x1100] sm:$0xff] }
  0x9a   : > { %813 = vst [vmem:[%s15627_s19 + $0x870] sm:$0xff] %v812_v14  ;;  %815 = vst [vmem:[%s15627_s19 + $0x878] sm:$0xff] %v814_v15  ;;  %v818_v17 = vld [vmem:[%s15622_s18 + $0x1108] sm:$0xff]  ;;  %v820_v18 = vld [vmem:[%s15622_s18 + $0x1110] sm:$0xff] }
  0x9b   : > { %817 = vst [vmem:[%s15627_s19 + $0x880] sm:$0xff] %v816_v16  ;;  %v822_v19 = vld [vmem:[%s15622_s18 + $0x1118] sm:$0xff]  ;;  %819 = vst [vmem:[%s15627_s19 + $0x888] sm:$0xff] %v818_v17  ;;  %v824_v20 = vld [vmem:[%s15622_s18 + $0x1120] sm:$0xff] }
  0x9c   : > { %821 = vst [vmem:[%s15627_s19 + $0x890] sm:$0xff] %v820_v18  ;;  %823 = vst [vmem:[%s15627_s19 + $0x898] sm:$0xff] %v822_v19  ;;  %v826_v21 = vld [vmem:[%s15622_s18 + $0x1128] sm:$0xff]  ;;  %v828_v22 = vld [vmem:[%s15622_s18 + $0x1130] sm:$0xff] }
  0x9d   : > { %825 = vst [vmem:[%s15627_s19 + $0x8a0] sm:$0xff] %v824_v20  ;;  %827 = vst [vmem:[%s15627_s19 + $0x8a8] sm:$0xff] %v826_v21  ;;  %v830_v23 = vld [vmem:[%s15622_s18 + $0x1138] sm:$0xff]  ;;  %v832_v24 = vld [vmem:[%s15622_s18 + $0x1180] sm:$0xff] }
  0x9e   : > { %829 = vst [vmem:[%s15627_s19 + $0x8b0] sm:$0xff] %v828_v22  ;;  %v834_v25 = vld [vmem:[%s15622_s18 + $0x1188] sm:$0xff]  ;;  %831 = vst [vmem:[%s15627_s19 + $0x8b8] sm:$0xff] %v830_v23  ;;  %v836_v26 = vld [vmem:[%s15622_s18 + $0x1190] sm:$0xff] }
  0x9f   : > { %833 = vst [vmem:[%s15627_s19 + $0x8c0] sm:$0xff] %v832_v24  ;;  %835 = vst [vmem:[%s15627_s19 + $0x8c8] sm:$0xff] %v834_v25  ;;  %v838_v27 = vld [vmem:[%s15622_s18 + $0x1198] sm:$0xff]  ;;  %v840_v28 = vld [vmem:[%s15622_s18 + $0x11a0] sm:$0xff] }
  0xa0   : > { %837 = vst [vmem:[%s15627_s19 + $0x8d0] sm:$0xff] %v836_v26  ;;  %839 = vst [vmem:[%s15627_s19 + $0x8d8] sm:$0xff] %v838_v27  ;;  %v842_v29 = vld [vmem:[%s15622_s18 + $0x11a8] sm:$0xff]  ;;  %v844_v30 = vld [vmem:[%s15622_s18 + $0x11b0] sm:$0xff] }
  0xa1   : > { %841 = vst [vmem:[%s15627_s19 + $0x8e0] sm:$0xff] %v840_v28  ;;  %v846_v31 = vld [vmem:[%s15622_s18 + $0x11b8] sm:$0xff]  ;;  %843 = vst [vmem:[%s15627_s19 + $0x8e8] sm:$0xff] %v842_v29  ;;  %v848_v32 = vld [vmem:[%s15622_s18 + $0x1200] sm:$0xff] }
  0xa2   : > { %845 = vst [vmem:[%s15627_s19 + $0x8f0] sm:$0xff] %v844_v30  ;;  %847 = vst [vmem:[%s15627_s19 + $0x8f8] sm:$0xff] %v846_v31  ;;  %v850_v33 = vld [vmem:[%s15622_s18 + $0x1208] sm:$0xff]  ;;  %v852_v34 = vld [vmem:[%s15622_s18 + $0x1210] sm:$0xff] }
  0xa3   : > { %849 = vst [vmem:[%s15627_s19 + $0x900] sm:$0xff] %v848_v32  ;;  %851 = vst [vmem:[%s15627_s19 + $0x908] sm:$0xff] %v850_v33  ;;  %v854_v35 = vld [vmem:[%s15622_s18 + $0x1218] sm:$0xff]  ;;  %v856_v36 = vld [vmem:[%s15622_s18 + $0x1220] sm:$0xff] }
  0xa4   : > { %853 = vst [vmem:[%s15627_s19 + $0x910] sm:$0xff] %v852_v34  ;;  %v858_v37 = vld [vmem:[%s15622_s18 + $0x1228] sm:$0xff]  ;;  %855 = vst [vmem:[%s15627_s19 + $0x918] sm:$0xff] %v854_v35  ;;  %v860_v38 = vld [vmem:[%s15622_s18 + $0x1230] sm:$0xff] }
  0xa5   : > { %857 = vst [vmem:[%s15627_s19 + $0x920] sm:$0xff] %v856_v36  ;;  %859 = vst [vmem:[%s15627_s19 + $0x928] sm:$0xff] %v858_v37  ;;  %v862_v39 = vld [vmem:[%s15622_s18 + $0x1238] sm:$0xff]  ;;  %v864_v40 = vld [vmem:[%s15622_s18 + $0x1280] sm:$0xff] }
  0xa6   : > { %861 = vst [vmem:[%s15627_s19 + $0x930] sm:$0xff] %v860_v38  ;;  %863 = vst [vmem:[%s15627_s19 + $0x938] sm:$0xff] %v862_v39  ;;  %v866_v41 = vld [vmem:[%s15622_s18 + $0x1288] sm:$0xff]  ;;  %v868_v42 = vld [vmem:[%s15622_s18 + $0x1290] sm:$0xff] }
  0xa7   : > { %865 = vst [vmem:[%s15627_s19 + $0x940] sm:$0xff] %v864_v40  ;;  %v870_v43 = vld [vmem:[%s15622_s18 + $0x1298] sm:$0xff]  ;;  %867 = vst [vmem:[%s15627_s19 + $0x948] sm:$0xff] %v866_v41  ;;  %v872_v44 = vld [vmem:[%s15622_s18 + $0x12a0] sm:$0xff] }
  0xa8   : > { %869 = vst [vmem:[%s15627_s19 + $0x950] sm:$0xff] %v868_v42  ;;  %871 = vst [vmem:[%s15627_s19 + $0x958] sm:$0xff] %v870_v43  ;;  %v874_v45 = vld [vmem:[%s15622_s18 + $0x12a8] sm:$0xff]  ;;  %v876_v46 = vld [vmem:[%s15622_s18 + $0x12b0] sm:$0xff] }
  0xa9   : > { %873 = vst [vmem:[%s15627_s19 + $0x960] sm:$0xff] %v872_v44  ;;  %875 = vst [vmem:[%s15627_s19 + $0x968] sm:$0xff] %v874_v45  ;;  %v878_v47 = vld [vmem:[%s15622_s18 + $0x12b8] sm:$0xff]  ;;  %v880_v48 = vld [vmem:[%s15622_s18 + $0x1300] sm:$0xff] }
  0xaa   : > { %877 = vst [vmem:[%s15627_s19 + $0x970] sm:$0xff] %v876_v46  ;;  %v882_v49 = vld [vmem:[%s15622_s18 + $0x1308] sm:$0xff]  ;;  %879 = vst [vmem:[%s15627_s19 + $0x978] sm:$0xff] %v878_v47  ;;  %v884_v50 = vld [vmem:[%s15622_s18 + $0x1310] sm:$0xff] }
  0xab   : > { %881 = vst [vmem:[%s15627_s19 + $0x980] sm:$0xff] %v880_v48  ;;  %883 = vst [vmem:[%s15627_s19 + $0x988] sm:$0xff] %v882_v49  ;;  %v886_v51 = vld [vmem:[%s15622_s18 + $0x1318] sm:$0xff]  ;;  %v888_v52 = vld [vmem:[%s15622_s18 + $0x1320] sm:$0xff] }
  0xac   : > { %885 = vst [vmem:[%s15627_s19 + $0x990] sm:$0xff] %v884_v50  ;;  %887 = vst [vmem:[%s15627_s19 + $0x998] sm:$0xff] %v886_v51  ;;  %v890_v53 = vld [vmem:[%s15622_s18 + $0x1328] sm:$0xff]  ;;  %v892_v54 = vld [vmem:[%s15622_s18 + $0x1330] sm:$0xff] }
  0xad   : > { %889 = vst [vmem:[%s15627_s19 + $0x9a0] sm:$0xff] %v888_v52  ;;  %v894_v55 = vld [vmem:[%s15622_s18 + $0x1338] sm:$0xff]  ;;  %891 = vst [vmem:[%s15627_s19 + $0x9a8] sm:$0xff] %v890_v53  ;;  %v896_v56 = vld [vmem:[%s15622_s18 + $0x1380] sm:$0xff] }
  0xae   : > { %893 = vst [vmem:[%s15627_s19 + $0x9b0] sm:$0xff] %v892_v54  ;;  %895 = vst [vmem:[%s15627_s19 + $0x9b8] sm:$0xff] %v894_v55  ;;  %v898_v57 = vld [vmem:[%s15622_s18 + $0x1388] sm:$0xff]  ;;  %v900_v58 = vld [vmem:[%s15622_s18 + $0x1390] sm:$0xff] }
  0xaf   : > { %897 = vst [vmem:[%s15627_s19 + $0x9c0] sm:$0xff] %v896_v56  ;;  %899 = vst [vmem:[%s15627_s19 + $0x9c8] sm:$0xff] %v898_v57  ;;  %v902_v59 = vld [vmem:[%s15622_s18 + $0x1398] sm:$0xff]  ;;  %v904_v60 = vld [vmem:[%s15622_s18 + $0x13a0] sm:$0xff] }
  0xb0   : > { %901 = vst [vmem:[%s15627_s19 + $0x9d0] sm:$0xff] %v900_v58  ;;  %v906_v61 = vld [vmem:[%s15622_s18 + $0x13a8] sm:$0xff]  ;;  %903 = vst [vmem:[%s15627_s19 + $0x9d8] sm:$0xff] %v902_v59  ;;  %v908_v62 = vld [vmem:[%s15622_s18 + $0x13b0] sm:$0xff] }
  0xb1   : > { %905 = vst [vmem:[%s15627_s19 + $0x9e0] sm:$0xff] %v904_v60  ;;  %907 = vst [vmem:[%s15627_s19 + $0x9e8] sm:$0xff] %v906_v61  ;;  %v910_v63 = vld [vmem:[%s15622_s18 + $0x13b8] sm:$0xff]  ;;  %v912_v0 = vld [vmem:[%s15622_s18 + $0x1400] sm:$0xff] }
  0xb2   : > { %909 = vst [vmem:[%s15627_s19 + $0x9f0] sm:$0xff] %v908_v62  ;;  %911 = vst [vmem:[%s15627_s19 + $0x9f8] sm:$0xff] %v910_v63  ;;  %v914_v1 = vld [vmem:[%s15622_s18 + $0x1408] sm:$0xff]  ;;  %v916_v2 = vld [vmem:[%s15622_s18 + $0x1410] sm:$0xff] }
  0xb3   : > { %913 = vst [vmem:[%s15627_s19 + $0xa00] sm:$0xff] %v912_v0  ;;  %v918_v3 = vld [vmem:[%s15622_s18 + $0x1418] sm:$0xff]  ;;  %915 = vst [vmem:[%s15627_s19 + $0xa08] sm:$0xff] %v914_v1  ;;  %v920_v4 = vld [vmem:[%s15622_s18 + $0x1420] sm:$0xff] }
  0xb4   : > { %917 = vst [vmem:[%s15627_s19 + $0xa10] sm:$0xff] %v916_v2  ;;  %919 = vst [vmem:[%s15627_s19 + $0xa18] sm:$0xff] %v918_v3  ;;  %v922_v5 = vld [vmem:[%s15622_s18 + $0x1428] sm:$0xff]  ;;  %v924_v6 = vld [vmem:[%s15622_s18 + $0x1430] sm:$0xff] }
  0xb5   : > { %921 = vst [vmem:[%s15627_s19 + $0xa20] sm:$0xff] %v920_v4  ;;  %923 = vst [vmem:[%s15627_s19 + $0xa28] sm:$0xff] %v922_v5  ;;  %v926_v7 = vld [vmem:[%s15622_s18 + $0x1438] sm:$0xff]  ;;  %v928_v8 = vld [vmem:[%s15622_s18 + $0x1480] sm:$0xff] }
  0xb6   : > { %925 = vst [vmem:[%s15627_s19 + $0xa30] sm:$0xff] %v924_v6  ;;  %v930_v9 = vld [vmem:[%s15622_s18 + $0x1488] sm:$0xff]  ;;  %927 = vst [vmem:[%s15627_s19 + $0xa38] sm:$0xff] %v926_v7  ;;  %v932_v10 = vld [vmem:[%s15622_s18 + $0x1490] sm:$0xff] }
  0xb7   : > { %929 = vst [vmem:[%s15627_s19 + $0xa40] sm:$0xff] %v928_v8  ;;  %931 = vst [vmem:[%s15627_s19 + $0xa48] sm:$0xff] %v930_v9  ;;  %v934_v11 = vld [vmem:[%s15622_s18 + $0x1498] sm:$0xff]  ;;  %v936_v12 = vld [vmem:[%s15622_s18 + $0x14a0] sm:$0xff] }
  0xb8   : > { %933 = vst [vmem:[%s15627_s19 + $0xa50] sm:$0xff] %v932_v10  ;;  %935 = vst [vmem:[%s15627_s19 + $0xa58] sm:$0xff] %v934_v11  ;;  %v938_v13 = vld [vmem:[%s15622_s18 + $0x14a8] sm:$0xff]  ;;  %v940_v14 = vld [vmem:[%s15622_s18 + $0x14b0] sm:$0xff] }
  0xb9   : > { %937 = vst [vmem:[%s15627_s19 + $0xa60] sm:$0xff] %v936_v12  ;;  %v942_v15 = vld [vmem:[%s15622_s18 + $0x14b8] sm:$0xff]  ;;  %939 = vst [vmem:[%s15627_s19 + $0xa68] sm:$0xff] %v938_v13  ;;  %v944_v16 = vld [vmem:[%s15622_s18 + $0x1500] sm:$0xff] }
  0xba   : > { %941 = vst [vmem:[%s15627_s19 + $0xa70] sm:$0xff] %v940_v14  ;;  %943 = vst [vmem:[%s15627_s19 + $0xa78] sm:$0xff] %v942_v15  ;;  %v946_v17 = vld [vmem:[%s15622_s18 + $0x1508] sm:$0xff]  ;;  %v948_v18 = vld [vmem:[%s15622_s18 + $0x1510] sm:$0xff] }
  0xbb   : > { %945 = vst [vmem:[%s15627_s19 + $0xa80] sm:$0xff] %v944_v16  ;;  %947 = vst [vmem:[%s15627_s19 + $0xa88] sm:$0xff] %v946_v17  ;;  %v950_v19 = vld [vmem:[%s15622_s18 + $0x1518] sm:$0xff]  ;;  %v952_v20 = vld [vmem:[%s15622_s18 + $0x1520] sm:$0xff] }
  0xbc   : > { %949 = vst [vmem:[%s15627_s19 + $0xa90] sm:$0xff] %v948_v18  ;;  %v954_v21 = vld [vmem:[%s15622_s18 + $0x1528] sm:$0xff]  ;;  %951 = vst [vmem:[%s15627_s19 + $0xa98] sm:$0xff] %v950_v19  ;;  %v956_v22 = vld [vmem:[%s15622_s18 + $0x1530] sm:$0xff] }
  0xbd   : > { %953 = vst [vmem:[%s15627_s19 + $0xaa0] sm:$0xff] %v952_v20  ;;  %955 = vst [vmem:[%s15627_s19 + $0xaa8] sm:$0xff] %v954_v21  ;;  %v958_v23 = vld [vmem:[%s15622_s18 + $0x1538] sm:$0xff]  ;;  %v960_v24 = vld [vmem:[%s15622_s18 + $0x1580] sm:$0xff] }
  0xbe   : > { %957 = vst [vmem:[%s15627_s19 + $0xab0] sm:$0xff] %v956_v22  ;;  %959 = vst [vmem:[%s15627_s19 + $0xab8] sm:$0xff] %v958_v23  ;;  %v962_v25 = vld [vmem:[%s15622_s18 + $0x1588] sm:$0xff]  ;;  %v964_v26 = vld [vmem:[%s15622_s18 + $0x1590] sm:$0xff] }
  0xbf   : > { %961 = vst [vmem:[%s15627_s19 + $0xac0] sm:$0xff] %v960_v24  ;;  %v966_v27 = vld [vmem:[%s15622_s18 + $0x1598] sm:$0xff]  ;;  %963 = vst [vmem:[%s15627_s19 + $0xac8] sm:$0xff] %v962_v25  ;;  %v968_v28 = vld [vmem:[%s15622_s18 + $0x15a0] sm:$0xff] }
  0xc0   : > { %965 = vst [vmem:[%s15627_s19 + $0xad0] sm:$0xff] %v964_v26  ;;  %967 = vst [vmem:[%s15627_s19 + $0xad8] sm:$0xff] %v966_v27  ;;  %v970_v29 = vld [vmem:[%s15622_s18 + $0x15a8] sm:$0xff]  ;;  %v972_v30 = vld [vmem:[%s15622_s18 + $0x15b0] sm:$0xff] }
  0xc1   : > { %969 = vst [vmem:[%s15627_s19 + $0xae0] sm:$0xff] %v968_v28  ;;  %971 = vst [vmem:[%s15627_s19 + $0xae8] sm:$0xff] %v970_v29  ;;  %v974_v31 = vld [vmem:[%s15622_s18 + $0x15b8] sm:$0xff]  ;;  %v976_v32 = vld [vmem:[%s15622_s18 + $0x1600] sm:$0xff] }
  0xc2   : > { %973 = vst [vmem:[%s15627_s19 + $0xaf0] sm:$0xff] %v972_v30  ;;  %v978_v33 = vld [vmem:[%s15622_s18 + $0x1608] sm:$0xff]  ;;  %975 = vst [vmem:[%s15627_s19 + $0xaf8] sm:$0xff] %v974_v31  ;;  %v980_v34 = vld [vmem:[%s15622_s18 + $0x1610] sm:$0xff] }
  0xc3   : > { %977 = vst [vmem:[%s15627_s19 + $0xb00] sm:$0xff] %v976_v32  ;;  %979 = vst [vmem:[%s15627_s19 + $0xb08] sm:$0xff] %v978_v33  ;;  %v982_v35 = vld [vmem:[%s15622_s18 + $0x1618] sm:$0xff]  ;;  %v984_v36 = vld [vmem:[%s15622_s18 + $0x1620] sm:$0xff] }
  0xc4   : > { %981 = vst [vmem:[%s15627_s19 + $0xb10] sm:$0xff] %v980_v34  ;;  %983 = vst [vmem:[%s15627_s19 + $0xb18] sm:$0xff] %v982_v35  ;;  %v986_v37 = vld [vmem:[%s15622_s18 + $0x1628] sm:$0xff]  ;;  %v988_v38 = vld [vmem:[%s15622_s18 + $0x1630] sm:$0xff] }
  0xc5   : > { %985 = vst [vmem:[%s15627_s19 + $0xb20] sm:$0xff] %v984_v36  ;;  %v990_v39 = vld [vmem:[%s15622_s18 + $0x1638] sm:$0xff]  ;;  %987 = vst [vmem:[%s15627_s19 + $0xb28] sm:$0xff] %v986_v37  ;;  %v992_v40 = vld [vmem:[%s15622_s18 + $0x1680] sm:$0xff] }
  0xc6   : > { %989 = vst [vmem:[%s15627_s19 + $0xb30] sm:$0xff] %v988_v38  ;;  %991 = vst [vmem:[%s15627_s19 + $0xb38] sm:$0xff] %v990_v39  ;;  %v994_v41 = vld [vmem:[%s15622_s18 + $0x1688] sm:$0xff]  ;;  %v996_v42 = vld [vmem:[%s15622_s18 + $0x1690] sm:$0xff] }
  0xc7   : > { %993 = vst [vmem:[%s15627_s19 + $0xb40] sm:$0xff] %v992_v40  ;;  %995 = vst [vmem:[%s15627_s19 + $0xb48] sm:$0xff] %v994_v41  ;;  %v998_v43 = vld [vmem:[%s15622_s18 + $0x1698] sm:$0xff]  ;;  %v1000_v44 = vld [vmem:[%s15622_s18 + $0x16a0] sm:$0xff] }
  0xc8   : > { %997 = vst [vmem:[%s15627_s19 + $0xb50] sm:$0xff] %v996_v42  ;;  %v1002_v45 = vld [vmem:[%s15622_s18 + $0x16a8] sm:$0xff]  ;;  %999 = vst [vmem:[%s15627_s19 + $0xb58] sm:$0xff] %v998_v43  ;;  %v1004_v46 = vld [vmem:[%s15622_s18 + $0x16b0] sm:$0xff] }
  0xc9   : > { %1001 = vst [vmem:[%s15627_s19 + $0xb60] sm:$0xff] %v1000_v44  ;;  %1003 = vst [vmem:[%s15627_s19 + $0xb68] sm:$0xff] %v1002_v45  ;;  %v1006_v47 = vld [vmem:[%s15622_s18 + $0x16b8] sm:$0xff]  ;;  %v1008_v48 = vld [vmem:[%s15622_s18 + $0x1700] sm:$0xff] }
  0xca   : > { %1005 = vst [vmem:[%s15627_s19 + $0xb70] sm:$0xff] %v1004_v46  ;;  %1007 = vst [vmem:[%s15627_s19 + $0xb78] sm:$0xff] %v1006_v47  ;;  %v1010_v49 = vld [vmem:[%s15622_s18 + $0x1708] sm:$0xff]  ;;  %v1012_v50 = vld [vmem:[%s15622_s18 + $0x1710] sm:$0xff] }
  0xcb   : > { %1009 = vst [vmem:[%s15627_s19 + $0xb80] sm:$0xff] %v1008_v48  ;;  %v1014_v51 = vld [vmem:[%s15622_s18 + $0x1718] sm:$0xff]  ;;  %1011 = vst [vmem:[%s15627_s19 + $0xb88] sm:$0xff] %v1010_v49  ;;  %v1016_v52 = vld [vmem:[%s15622_s18 + $0x1720] sm:$0xff] }
  0xcc   : > { %1013 = vst [vmem:[%s15627_s19 + $0xb90] sm:$0xff] %v1012_v50  ;;  %1015 = vst [vmem:[%s15627_s19 + $0xb98] sm:$0xff] %v1014_v51  ;;  %v1018_v53 = vld [vmem:[%s15622_s18 + $0x1728] sm:$0xff]  ;;  %v1020_v54 = vld [vmem:[%s15622_s18 + $0x1730] sm:$0xff] }
  0xcd   : > { %1017 = vst [vmem:[%s15627_s19 + $0xba0] sm:$0xff] %v1016_v52  ;;  %1019 = vst [vmem:[%s15627_s19 + $0xba8] sm:$0xff] %v1018_v53  ;;  %v1022_v55 = vld [vmem:[%s15622_s18 + $0x1738] sm:$0xff]  ;;  %v1024_v56 = vld [vmem:[%s15622_s18 + $0x1780] sm:$0xff] }
  0xce   : > { %1021 = vst [vmem:[%s15627_s19 + $0xbb0] sm:$0xff] %v1020_v54  ;;  %v1026_v57 = vld [vmem:[%s15622_s18 + $0x1788] sm:$0xff]  ;;  %1023 = vst [vmem:[%s15627_s19 + $0xbb8] sm:$0xff] %v1022_v55  ;;  %v1028_v58 = vld [vmem:[%s15622_s18 + $0x1790] sm:$0xff] }
  0xcf   : > { %1025 = vst [vmem:[%s15627_s19 + $0xbc0] sm:$0xff] %v1024_v56  ;;  %1027 = vst [vmem:[%s15627_s19 + $0xbc8] sm:$0xff] %v1026_v57  ;;  %v1030_v59 = vld [vmem:[%s15622_s18 + $0x1798] sm:$0xff]  ;;  %v1032_v60 = vld [vmem:[%s15622_s18 + $0x17a0] sm:$0xff] }
  0xd0   : > { %1029 = vst [vmem:[%s15627_s19 + $0xbd0] sm:$0xff] %v1028_v58  ;;  %1031 = vst [vmem:[%s15627_s19 + $0xbd8] sm:$0xff] %v1030_v59  ;;  %v1034_v61 = vld [vmem:[%s15622_s18 + $0x17a8] sm:$0xff]  ;;  %v1036_v62 = vld [vmem:[%s15622_s18 + $0x17b0] sm:$0xff] }
  0xd1   : > { %1033 = vst [vmem:[%s15627_s19 + $0xbe0] sm:$0xff] %v1032_v60  ;;  %v1038_v63 = vld [vmem:[%s15622_s18 + $0x17b8] sm:$0xff]  ;;  %1035 = vst [vmem:[%s15627_s19 + $0xbe8] sm:$0xff] %v1034_v61  ;;  %v1040_v0 = vld [vmem:[%s15622_s18 + $0x1800] sm:$0xff] }
  0xd2   : > { %1037 = vst [vmem:[%s15627_s19 + $0xbf0] sm:$0xff] %v1036_v62  ;;  %1039 = vst [vmem:[%s15627_s19 + $0xbf8] sm:$0xff] %v1038_v63  ;;  %v1042_v1 = vld [vmem:[%s15622_s18 + $0x1808] sm:$0xff]  ;;  %v1044_v2 = vld [vmem:[%s15622_s18 + $0x1810] sm:$0xff] }
  0xd3   : > { %1041 = vst [vmem:[%s15627_s19 + $0xc00] sm:$0xff] %v1040_v0  ;;  %1043 = vst [vmem:[%s15627_s19 + $0xc08] sm:$0xff] %v1042_v1  ;;  %v1046_v3 = vld [vmem:[%s15622_s18 + $0x1818] sm:$0xff]  ;;  %v1048_v4 = vld [vmem:[%s15622_s18 + $0x1820] sm:$0xff] }
  0xd4   : > { %1045 = vst [vmem:[%s15627_s19 + $0xc10] sm:$0xff] %v1044_v2  ;;  %v1050_v5 = vld [vmem:[%s15622_s18 + $0x1828] sm:$0xff]  ;;  %1047 = vst [vmem:[%s15627_s19 + $0xc18] sm:$0xff] %v1046_v3  ;;  %v1052_v6 = vld [vmem:[%s15622_s18 + $0x1830] sm:$0xff] }
  0xd5   : > { %1049 = vst [vmem:[%s15627_s19 + $0xc20] sm:$0xff] %v1048_v4  ;;  %1051 = vst [vmem:[%s15627_s19 + $0xc28] sm:$0xff] %v1050_v5  ;;  %v1054_v7 = vld [vmem:[%s15622_s18 + $0x1838] sm:$0xff]  ;;  %v1056_v8 = vld [vmem:[%s15622_s18 + $0x1880] sm:$0xff] }
  0xd6   : > { %1053 = vst [vmem:[%s15627_s19 + $0xc30] sm:$0xff] %v1052_v6  ;;  %1055 = vst [vmem:[%s15627_s19 + $0xc38] sm:$0xff] %v1054_v7  ;;  %v1058_v9 = vld [vmem:[%s15622_s18 + $0x1888] sm:$0xff]  ;;  %v1060_v10 = vld [vmem:[%s15622_s18 + $0x1890] sm:$0xff] }
  0xd7   : > { %1057 = vst [vmem:[%s15627_s19 + $0xc40] sm:$0xff] %v1056_v8  ;;  %v1062_v11 = vld [vmem:[%s15622_s18 + $0x1898] sm:$0xff]  ;;  %1059 = vst [vmem:[%s15627_s19 + $0xc48] sm:$0xff] %v1058_v9  ;;  %v1064_v12 = vld [vmem:[%s15622_s18 + $0x18a0] sm:$0xff] }
  0xd8   : > { %1061 = vst [vmem:[%s15627_s19 + $0xc50] sm:$0xff] %v1060_v10  ;;  %1063 = vst [vmem:[%s15627_s19 + $0xc58] sm:$0xff] %v1062_v11  ;;  %v1066_v13 = vld [vmem:[%s15622_s18 + $0x18a8] sm:$0xff]  ;;  %v1068_v14 = vld [vmem:[%s15622_s18 + $0x18b0] sm:$0xff] }
  0xd9   : > { %1065 = vst [vmem:[%s15627_s19 + $0xc60] sm:$0xff] %v1064_v12  ;;  %1067 = vst [vmem:[%s15627_s19 + $0xc68] sm:$0xff] %v1066_v13  ;;  %v1070_v15 = vld [vmem:[%s15622_s18 + $0x18b8] sm:$0xff]  ;;  %v1072_v16 = vld [vmem:[%s15622_s18 + $0x1900] sm:$0xff] }
  0xda   : > { %1069 = vst [vmem:[%s15627_s19 + $0xc70] sm:$0xff] %v1068_v14  ;;  %v1074_v17 = vld [vmem:[%s15622_s18 + $0x1908] sm:$0xff]  ;;  %1071 = vst [vmem:[%s15627_s19 + $0xc78] sm:$0xff] %v1070_v15  ;;  %v1076_v18 = vld [vmem:[%s15622_s18 + $0x1910] sm:$0xff] }
  0xdb   : > { %1073 = vst [vmem:[%s15627_s19 + $0xc80] sm:$0xff] %v1072_v16  ;;  %1075 = vst [vmem:[%s15627_s19 + $0xc88] sm:$0xff] %v1074_v17  ;;  %v1078_v19 = vld [vmem:[%s15622_s18 + $0x1918] sm:$0xff]  ;;  %v1080_v20 = vld [vmem:[%s15622_s18 + $0x1920] sm:$0xff] }
  0xdc   : > { %1077 = vst [vmem:[%s15627_s19 + $0xc90] sm:$0xff] %v1076_v18  ;;  %1079 = vst [vmem:[%s15627_s19 + $0xc98] sm:$0xff] %v1078_v19  ;;  %v1082_v21 = vld [vmem:[%s15622_s18 + $0x1928] sm:$0xff]  ;;  %v1084_v22 = vld [vmem:[%s15622_s18 + $0x1930] sm:$0xff] }
  0xdd   : > { %1081 = vst [vmem:[%s15627_s19 + $0xca0] sm:$0xff] %v1080_v20  ;;  %v1086_v23 = vld [vmem:[%s15622_s18 + $0x1938] sm:$0xff]  ;;  %1083 = vst [vmem:[%s15627_s19 + $0xca8] sm:$0xff] %v1082_v21  ;;  %v1088_v24 = vld [vmem:[%s15622_s18 + $0x1980] sm:$0xff] }
  0xde   : > { %1085 = vst [vmem:[%s15627_s19 + $0xcb0] sm:$0xff] %v1084_v22  ;;  %1087 = vst [vmem:[%s15627_s19 + $0xcb8] sm:$0xff] %v1086_v23  ;;  %v1090_v25 = vld [vmem:[%s15622_s18 + $0x1988] sm:$0xff]  ;;  %v1092_v26 = vld [vmem:[%s15622_s18 + $0x1990] sm:$0xff] }
  0xdf   : > { %1089 = vst [vmem:[%s15627_s19 + $0xcc0] sm:$0xff] %v1088_v24  ;;  %1091 = vst [vmem:[%s15627_s19 + $0xcc8] sm:$0xff] %v1090_v25  ;;  %v1094_v27 = vld [vmem:[%s15622_s18 + $0x1998] sm:$0xff]  ;;  %v1096_v28 = vld [vmem:[%s15622_s18 + $0x19a0] sm:$0xff] }
  0xe0   : > { %1093 = vst [vmem:[%s15627_s19 + $0xcd0] sm:$0xff] %v1092_v26  ;;  %v1098_v29 = vld [vmem:[%s15622_s18 + $0x19a8] sm:$0xff]  ;;  %1095 = vst [vmem:[%s15627_s19 + $0xcd8] sm:$0xff] %v1094_v27  ;;  %v1100_v30 = vld [vmem:[%s15622_s18 + $0x19b0] sm:$0xff] }
  0xe1   : > { %1097 = vst [vmem:[%s15627_s19 + $0xce0] sm:$0xff] %v1096_v28  ;;  %1099 = vst [vmem:[%s15627_s19 + $0xce8] sm:$0xff] %v1098_v29  ;;  %v1102_v31 = vld [vmem:[%s15622_s18 + $0x19b8] sm:$0xff]  ;;  %v1104_v32 = vld [vmem:[%s15622_s18 + $0x1a00] sm:$0xff] }
  0xe2   : > { %1101 = vst [vmem:[%s15627_s19 + $0xcf0] sm:$0xff] %v1100_v30  ;;  %1103 = vst [vmem:[%s15627_s19 + $0xcf8] sm:$0xff] %v1102_v31  ;;  %v1106_v33 = vld [vmem:[%s15622_s18 + $0x1a08] sm:$0xff]  ;;  %v1108_v34 = vld [vmem:[%s15622_s18 + $0x1a10] sm:$0xff] }
  0xe3   : > { %1105 = vst [vmem:[%s15627_s19 + $0xd00] sm:$0xff] %v1104_v32  ;;  %v1110_v35 = vld [vmem:[%s15622_s18 + $0x1a18] sm:$0xff]  ;;  %1107 = vst [vmem:[%s15627_s19 + $0xd08] sm:$0xff] %v1106_v33  ;;  %v1112_v36 = vld [vmem:[%s15622_s18 + $0x1a20] sm:$0xff] }
  0xe4   : > { %1109 = vst [vmem:[%s15627_s19 + $0xd10] sm:$0xff] %v1108_v34  ;;  %1111 = vst [vmem:[%s15627_s19 + $0xd18] sm:$0xff] %v1110_v35  ;;  %v1114_v37 = vld [vmem:[%s15622_s18 + $0x1a28] sm:$0xff]  ;;  %v1116_v38 = vld [vmem:[%s15622_s18 + $0x1a30] sm:$0xff] }
  0xe5   : > { %1113 = vst [vmem:[%s15627_s19 + $0xd20] sm:$0xff] %v1112_v36  ;;  %1115 = vst [vmem:[%s15627_s19 + $0xd28] sm:$0xff] %v1114_v37  ;;  %v1118_v39 = vld [vmem:[%s15622_s18 + $0x1a38] sm:$0xff]  ;;  %v1120_v40 = vld [vmem:[%s15622_s18 + $0x1a80] sm:$0xff] }
  0xe6   : > { %1117 = vst [vmem:[%s15627_s19 + $0xd30] sm:$0xff] %v1116_v38  ;;  %v1122_v41 = vld [vmem:[%s15622_s18 + $0x1a88] sm:$0xff]  ;;  %1119 = vst [vmem:[%s15627_s19 + $0xd38] sm:$0xff] %v1118_v39  ;;  %v1124_v42 = vld [vmem:[%s15622_s18 + $0x1a90] sm:$0xff] }
  0xe7   : > { %1121 = vst [vmem:[%s15627_s19 + $0xd40] sm:$0xff] %v1120_v40  ;;  %1123 = vst [vmem:[%s15627_s19 + $0xd48] sm:$0xff] %v1122_v41  ;;  %v1126_v43 = vld [vmem:[%s15622_s18 + $0x1a98] sm:$0xff]  ;;  %v1128_v44 = vld [vmem:[%s15622_s18 + $0x1aa0] sm:$0xff] }
  0xe8   : > { %1125 = vst [vmem:[%s15627_s19 + $0xd50] sm:$0xff] %v1124_v42  ;;  %1127 = vst [vmem:[%s15627_s19 + $0xd58] sm:$0xff] %v1126_v43  ;;  %v1130_v45 = vld [vmem:[%s15622_s18 + $0x1aa8] sm:$0xff]  ;;  %v1132_v46 = vld [vmem:[%s15622_s18 + $0x1ab0] sm:$0xff] }
  0xe9   : > { %1129 = vst [vmem:[%s15627_s19 + $0xd60] sm:$0xff] %v1128_v44  ;;  %v1134_v47 = vld [vmem:[%s15622_s18 + $0x1ab8] sm:$0xff]  ;;  %1131 = vst [vmem:[%s15627_s19 + $0xd68] sm:$0xff] %v1130_v45  ;;  %v1136_v48 = vld [vmem:[%s15622_s18 + $0x1b00] sm:$0xff] }
  0xea   : > { %1133 = vst [vmem:[%s15627_s19 + $0xd70] sm:$0xff] %v1132_v46  ;;  %1135 = vst [vmem:[%s15627_s19 + $0xd78] sm:$0xff] %v1134_v47  ;;  %v1138_v49 = vld [vmem:[%s15622_s18 + $0x1b08] sm:$0xff]  ;;  %v1140_v50 = vld [vmem:[%s15622_s18 + $0x1b10] sm:$0xff] }
  0xeb   : > { %1137 = vst [vmem:[%s15627_s19 + $0xd80] sm:$0xff] %v1136_v48  ;;  %1139 = vst [vmem:[%s15627_s19 + $0xd88] sm:$0xff] %v1138_v49  ;;  %v1142_v51 = vld [vmem:[%s15622_s18 + $0x1b18] sm:$0xff]  ;;  %v1144_v52 = vld [vmem:[%s15622_s18 + $0x1b20] sm:$0xff] }
  0xec   : > { %1141 = vst [vmem:[%s15627_s19 + $0xd90] sm:$0xff] %v1140_v50  ;;  %v1146_v53 = vld [vmem:[%s15622_s18 + $0x1b28] sm:$0xff]  ;;  %1143 = vst [vmem:[%s15627_s19 + $0xd98] sm:$0xff] %v1142_v51  ;;  %v1148_v54 = vld [vmem:[%s15622_s18 + $0x1b30] sm:$0xff] }
  0xed   : > { %1145 = vst [vmem:[%s15627_s19 + $0xda0] sm:$0xff] %v1144_v52  ;;  %1147 = vst [vmem:[%s15627_s19 + $0xda8] sm:$0xff] %v1146_v53  ;;  %v1150_v55 = vld [vmem:[%s15622_s18 + $0x1b38] sm:$0xff]  ;;  %v1152_v56 = vld [vmem:[%s15622_s18 + $0x1b80] sm:$0xff] }
  0xee   : > { %1149 = vst [vmem:[%s15627_s19 + $0xdb0] sm:$0xff] %v1148_v54  ;;  %1151 = vst [vmem:[%s15627_s19 + $0xdb8] sm:$0xff] %v1150_v55  ;;  %v1154_v57 = vld [vmem:[%s15622_s18 + $0x1b88] sm:$0xff]  ;;  %v1156_v58 = vld [vmem:[%s15622_s18 + $0x1b90] sm:$0xff] }
  0xef   : > { %1153 = vst [vmem:[%s15627_s19 + $0xdc0] sm:$0xff] %v1152_v56  ;;  %v1158_v59 = vld [vmem:[%s15622_s18 + $0x1b98] sm:$0xff]  ;;  %1155 = vst [vmem:[%s15627_s19 + $0xdc8] sm:$0xff] %v1154_v57  ;;  %v1160_v60 = vld [vmem:[%s15622_s18 + $0x1ba0] sm:$0xff] }
  0xf0   : > { %1157 = vst [vmem:[%s15627_s19 + $0xdd0] sm:$0xff] %v1156_v58  ;;  %1159 = vst [vmem:[%s15627_s19 + $0xdd8] sm:$0xff] %v1158_v59  ;;  %v1162_v61 = vld [vmem:[%s15622_s18 + $0x1ba8] sm:$0xff]  ;;  %v1164_v62 = vld [vmem:[%s15622_s18 + $0x1bb0] sm:$0xff] }
  0xf1   : > { %1161 = vst [vmem:[%s15627_s19 + $0xde0] sm:$0xff] %v1160_v60  ;;  %1163 = vst [vmem:[%s15627_s19 + $0xde8] sm:$0xff] %v1162_v61  ;;  %v1166_v63 = vld [vmem:[%s15622_s18 + $0x1bb8] sm:$0xff]  ;;  %v1168_v0 = vld [vmem:[%s15622_s18 + $0x1c00] sm:$0xff] }
  0xf2   : > { %1165 = vst [vmem:[%s15627_s19 + $0xdf0] sm:$0xff] %v1164_v62  ;;  %v1170_v1 = vld [vmem:[%s15622_s18 + $0x1c08] sm:$0xff]  ;;  %1167 = vst [vmem:[%s15627_s19 + $0xdf8] sm:$0xff] %v1166_v63  ;;  %v1172_v2 = vld [vmem:[%s15622_s18 + $0x1c10] sm:$0xff] }
  0xf3   : > { %1169 = vst [vmem:[%s15627_s19 + $0xe00] sm:$0xff] %v1168_v0  ;;  %1171 = vst [vmem:[%s15627_s19 + $0xe08] sm:$0xff] %v1170_v1  ;;  %v1174_v3 = vld [vmem:[%s15622_s18 + $0x1c18] sm:$0xff]  ;;  %v1176_v4 = vld [vmem:[%s15622_s18 + $0x1c20] sm:$0xff] }
  0xf4   : > { %1173 = vst [vmem:[%s15627_s19 + $0xe10] sm:$0xff] %v1172_v2  ;;  %1175 = vst [vmem:[%s15627_s19 + $0xe18] sm:$0xff] %v1174_v3  ;;  %v1178_v5 = vld [vmem:[%s15622_s18 + $0x1c28] sm:$0xff]  ;;  %v1180_v6 = vld [vmem:[%s15622_s18 + $0x1c30] sm:$0xff] }
  0xf5   : > { %1177 = vst [vmem:[%s15627_s19 + $0xe20] sm:$0xff] %v1176_v4  ;;  %v1182_v7 = vld [vmem:[%s15622_s18 + $0x1c38] sm:$0xff]  ;;  %1179 = vst [vmem:[%s15627_s19 + $0xe28] sm:$0xff] %v1178_v5  ;;  %v1184_v8 = vld [vmem:[%s15622_s18 + $0x1c80] sm:$0xff] }
  0xf6   : > { %1181 = vst [vmem:[%s15627_s19 + $0xe30] sm:$0xff] %v1180_v6  ;;  %1183 = vst [vmem:[%s15627_s19 + $0xe38] sm:$0xff] %v1182_v7  ;;  %v1186_v9 = vld [vmem:[%s15622_s18 + $0x1c88] sm:$0xff]  ;;  %v1188_v10 = vld [vmem:[%s15622_s18 + $0x1c90] sm:$0xff] }
  0xf7   : > { %1185 = vst [vmem:[%s15627_s19 + $0xe40] sm:$0xff] %v1184_v8  ;;  %1187 = vst [vmem:[%s15627_s19 + $0xe48] sm:$0xff] %v1186_v9  ;;  %v1190_v11 = vld [vmem:[%s15622_s18 + $0x1c98] sm:$0xff]  ;;  %v1192_v12 = vld [vmem:[%s15622_s18 + $0x1ca0] sm:$0xff] }
  0xf8   : > { %1189 = vst [vmem:[%s15627_s19 + $0xe50] sm:$0xff] %v1188_v10  ;;  %v1194_v13 = vld [vmem:[%s15622_s18 + $0x1ca8] sm:$0xff]  ;;  %1191 = vst [vmem:[%s15627_s19 + $0xe58] sm:$0xff] %v1190_v11  ;;  %v1196_v14 = vld [vmem:[%s15622_s18 + $0x1cb0] sm:$0xff] }
  0xf9   : > { %1193 = vst [vmem:[%s15627_s19 + $0xe60] sm:$0xff] %v1192_v12  ;;  %1195 = vst [vmem:[%s15627_s19 + $0xe68] sm:$0xff] %v1194_v13  ;;  %v1198_v15 = vld [vmem:[%s15622_s18 + $0x1cb8] sm:$0xff]  ;;  %v1200_v16 = vld [vmem:[%s15622_s18 + $0x1d00] sm:$0xff] }
  0xfa   : > { %1197 = vst [vmem:[%s15627_s19 + $0xe70] sm:$0xff] %v1196_v14  ;;  %1199 = vst [vmem:[%s15627_s19 + $0xe78] sm:$0xff] %v1198_v15  ;;  %v1202_v17 = vld [vmem:[%s15622_s18 + $0x1d08] sm:$0xff]  ;;  %v1204_v18 = vld [vmem:[%s15622_s18 + $0x1d10] sm:$0xff] }
  0xfb   : > { %1201 = vst [vmem:[%s15627_s19 + $0xe80] sm:$0xff] %v1200_v16  ;;  %v1206_v19 = vld [vmem:[%s15622_s18 + $0x1d18] sm:$0xff]  ;;  %1203 = vst [vmem:[%s15627_s19 + $0xe88] sm:$0xff] %v1202_v17  ;;  %v1208_v20 = vld [vmem:[%s15622_s18 + $0x1d20] sm:$0xff] }
  0xfc   : > { %1205 = vst [vmem:[%s15627_s19 + $0xe90] sm:$0xff] %v1204_v18  ;;  %1207 = vst [vmem:[%s15627_s19 + $0xe98] sm:$0xff] %v1206_v19  ;;  %v1210_v21 = vld [vmem:[%s15622_s18 + $0x1d28] sm:$0xff]  ;;  %v1212_v22 = vld [vmem:[%s15622_s18 + $0x1d30] sm:$0xff] }
  0xfd   : > { %1209 = vst [vmem:[%s15627_s19 + $0xea0] sm:$0xff] %v1208_v20  ;;  %1211 = vst [vmem:[%s15627_s19 + $0xea8] sm:$0xff] %v1210_v21  ;;  %v1214_v23 = vld [vmem:[%s15622_s18 + $0x1d38] sm:$0xff]  ;;  %v1216_v24 = vld [vmem:[%s15622_s18 + $0x1d80] sm:$0xff] }
  0xfe   : > { %1213 = vst [vmem:[%s15627_s19 + $0xeb0] sm:$0xff] %v1212_v22  ;;  %v1218_v25 = vld [vmem:[%s15622_s18 + $0x1d88] sm:$0xff]  ;;  %1215 = vst [vmem:[%s15627_s19 + $0xeb8] sm:$0xff] %v1214_v23  ;;  %v1220_v26 = vld [vmem:[%s15622_s18 + $0x1d90] sm:$0xff] }
  0xff   : > { %1217 = vst [vmem:[%s15627_s19 + $0xec0] sm:$0xff] %v1216_v24  ;;  %1219 = vst [vmem:[%s15627_s19 + $0xec8] sm:$0xff] %v1218_v25  ;;  %v1222_v27 = vld [vmem:[%s15622_s18 + $0x1d98] sm:$0xff]  ;;  %v1224_v28 = vld [vmem:[%s15622_s18 + $0x1da0] sm:$0xff] }
 0x100   : > { %1221 = vst [vmem:[%s15627_s19 + $0xed0] sm:$0xff] %v1220_v26  ;;  %1223 = vst [vmem:[%s15627_s19 + $0xed8] sm:$0xff] %v1222_v27  ;;  %v1226_v29 = vld [vmem:[%s15622_s18 + $0x1da8] sm:$0xff]  ;;  %v1228_v30 = vld [vmem:[%s15622_s18 + $0x1db0] sm:$0xff] }
 0x101   : > { %1225 = vst [vmem:[%s15627_s19 + $0xee0] sm:$0xff] %v1224_v28  ;;  %v1230_v31 = vld [vmem:[%s15622_s18 + $0x1db8] sm:$0xff]  ;;  %1227 = vst [vmem:[%s15627_s19 + $0xee8] sm:$0xff] %v1226_v29  ;;  %v1232_v32 = vld [vmem:[%s15622_s18 + $0x1e00] sm:$0xff] }
 0x102   : > { %1229 = vst [vmem:[%s15627_s19 + $0xef0] sm:$0xff] %v1228_v30  ;;  %1231 = vst [vmem:[%s15627_s19 + $0xef8] sm:$0xff] %v1230_v31  ;;  %v1234_v33 = vld [vmem:[%s15622_s18 + $0x1e08] sm:$0xff]  ;;  %v1236_v34 = vld [vmem:[%s15622_s18 + $0x1e10] sm:$0xff] }
 0x103   : > { %1233 = vst [vmem:[%s15627_s19 + $0xf00] sm:$0xff] %v1232_v32  ;;  %1235 = vst [vmem:[%s15627_s19 + $0xf08] sm:$0xff] %v1234_v33  ;;  %v1238_v35 = vld [vmem:[%s15622_s18 + $0x1e18] sm:$0xff]  ;;  %v1240_v36 = vld [vmem:[%s15622_s18 + $0x1e20] sm:$0xff] }
 0x104   : > { %1237 = vst [vmem:[%s15627_s19 + $0xf10] sm:$0xff] %v1236_v34  ;;  %v1242_v37 = vld [vmem:[%s15622_s18 + $0x1e28] sm:$0xff]  ;;  %1239 = vst [vmem:[%s15627_s19 + $0xf18] sm:$0xff] %v1238_v35  ;;  %v1244_v38 = vld [vmem:[%s15622_s18 + $0x1e30] sm:$0xff] }
 0x105   : > { %1241 = vst [vmem:[%s15627_s19 + $0xf20] sm:$0xff] %v1240_v36  ;;  %1243 = vst [vmem:[%s15627_s19 + $0xf28] sm:$0xff] %v1242_v37  ;;  %v1246_v39 = vld [vmem:[%s15622_s18 + $0x1e38] sm:$0xff]  ;;  %v1248_v40 = vld [vmem:[%s15622_s18 + $0x1e80] sm:$0xff] }
 0x106   : > { %1245 = vst [vmem:[%s15627_s19 + $0xf30] sm:$0xff] %v1244_v38  ;;  %1247 = vst [vmem:[%s15627_s19 + $0xf38] sm:$0xff] %v1246_v39  ;;  %v1250_v41 = vld [vmem:[%s15622_s18 + $0x1e88] sm:$0xff]  ;;  %v1252_v42 = vld [vmem:[%s15622_s18 + $0x1e90] sm:$0xff] }
 0x107   : > { %1249 = vst [vmem:[%s15627_s19 + $0xf40] sm:$0xff] %v1248_v40  ;;  %v1254_v43 = vld [vmem:[%s15622_s18 + $0x1e98] sm:$0xff]  ;;  %1251 = vst [vmem:[%s15627_s19 + $0xf48] sm:$0xff] %v1250_v41  ;;  %v1256_v44 = vld [vmem:[%s15622_s18 + $0x1ea0] sm:$0xff] }
 0x108   : > { %1253 = vst [vmem:[%s15627_s19 + $0xf50] sm:$0xff] %v1252_v42  ;;  %1255 = vst [vmem:[%s15627_s19 + $0xf58] sm:$0xff] %v1254_v43  ;;  %v1258_v45 = vld [vmem:[%s15622_s18 + $0x1ea8] sm:$0xff]  ;;  %v1260_v46 = vld [vmem:[%s15622_s18 + $0x1eb0] sm:$0xff] }
 0x109   : > { %1257 = vst [vmem:[%s15627_s19 + $0xf60] sm:$0xff] %v1256_v44  ;;  %1259 = vst [vmem:[%s15627_s19 + $0xf68] sm:$0xff] %v1258_v45  ;;  %v1262_v47 = vld [vmem:[%s15622_s18 + $0x1eb8] sm:$0xff]  ;;  %v1264_v48 = vld [vmem:[%s15622_s18 + $0x1f00] sm:$0xff] }
 0x10a   : > { %1261 = vst [vmem:[%s15627_s19 + $0xf70] sm:$0xff] %v1260_v46  ;;  %v1266_v49 = vld [vmem:[%s15622_s18 + $0x1f08] sm:$0xff]  ;;  %1263 = vst [vmem:[%s15627_s19 + $0xf78] sm:$0xff] %v1262_v47  ;;  %v1268_v50 = vld [vmem:[%s15622_s18 + $0x1f10] sm:$0xff] }
 0x10b   : > { %1265 = vst [vmem:[%s15627_s19 + $0xf80] sm:$0xff] %v1264_v48  ;;  %1267 = vst [vmem:[%s15627_s19 + $0xf88] sm:$0xff] %v1266_v49  ;;  %v1270_v51 = vld [vmem:[%s15622_s18 + $0x1f18] sm:$0xff]  ;;  %v1272_v52 = vld [vmem:[%s15622_s18 + $0x1f20] sm:$0xff] }
 0x10c   : > { %1269 = vst [vmem:[%s15627_s19 + $0xf90] sm:$0xff] %v1268_v50  ;;  %1271 = vst [vmem:[%s15627_s19 + $0xf98] sm:$0xff] %v1270_v51  ;;  %v1274_v53 = vld [vmem:[%s15622_s18 + $0x1f28] sm:$0xff]  ;;  %v1276_v54 = vld [vmem:[%s15622_s18 + $0x1f30] sm:$0xff] }
 0x10d   : > { %1273 = vst [vmem:[%s15627_s19 + $0xfa0] sm:$0xff] %v1272_v52  ;;  %v1278_v55 = vld [vmem:[%s15622_s18 + $0x1f38] sm:$0xff]  ;;  %1275 = vst [vmem:[%s15627_s19 + $0xfa8] sm:$0xff] %v1274_v53  ;;  %v1280_v56 = vld [vmem:[%s15622_s18 + $0x1f80] sm:$0xff] }
 0x10e   : > { %1277 = vst [vmem:[%s15627_s19 + $0xfb0] sm:$0xff] %v1276_v54  ;;  %1279 = vst [vmem:[%s15627_s19 + $0xfb8] sm:$0xff] %v1278_v55  ;;  %v1282_v57 = vld [vmem:[%s15622_s18 + $0x1f88] sm:$0xff]  ;;  %v1284_v58 = vld [vmem:[%s15622_s18 + $0x1f90] sm:$0xff] }
 0x10f   : > { %1281 = vst [vmem:[%s15627_s19 + $0xfc0] sm:$0xff] %v1280_v56  ;;  %1283 = vst [vmem:[%s15627_s19 + $0xfc8] sm:$0xff] %v1282_v57  ;;  %v1286_v59 = vld [vmem:[%s15622_s18 + $0x1f98] sm:$0xff]  ;;  %v1288_v60 = vld [vmem:[%s15622_s18 + $0x1fa0] sm:$0xff] }
 0x110   : > { %1285 = vst [vmem:[%s15627_s19 + $0xfd0] sm:$0xff] %v1284_v58  ;;  %v1290_v61 = vld [vmem:[%s15622_s18 + $0x1fa8] sm:$0xff]  ;;  %1287 = vst [vmem:[%s15627_s19 + $0xfd8] sm:$0xff] %v1286_v59  ;;  %v1292_v62 = vld [vmem:[%s15622_s18 + $0x1fb0] sm:$0xff] }
 0x111   : > { %1289 = vst [vmem:[%s15627_s19 + $0xfe0] sm:$0xff] %v1288_v60  ;;  %1291 = vst [vmem:[%s15627_s19 + $0xfe8] sm:$0xff] %v1290_v61  ;;  %v1294_v63 = vld [vmem:[%s15622_s18 + $0x1fb8] sm:$0xff]  ;;  %v1296_v0 = vld [vmem:[%s15622_s18 + $0x2000] sm:$0xff] }
 0x112   : > { %1293 = vst [vmem:[%s15627_s19 + $0xff0] sm:$0xff] %v1292_v62  ;;  %1295 = vst [vmem:[%s15627_s19 + $0xff8] sm:$0xff] %v1294_v63  ;;  %v1298_v1 = vld [vmem:[%s15622_s18 + $0x2008] sm:$0xff]  ;;  %v1300_v2 = vld [vmem:[%s15622_s18 + $0x2010] sm:$0xff] }
 0x113   : > { %1297 = vst [vmem:[%s15627_s19 + $0x1000] sm:$0xff] %v1296_v0  ;;  %v1302_v3 = vld [vmem:[%s15622_s18 + $0x2018] sm:$0xff]  ;;  %1299 = vst [vmem:[%s15627_s19 + $0x1008] sm:$0xff] %v1298_v1  ;;  %v1304_v4 = vld [vmem:[%s15622_s18 + $0x2020] sm:$0xff] }
 0x114   : > { %1301 = vst [vmem:[%s15627_s19 + $0x1010] sm:$0xff] %v1300_v2  ;;  %1303 = vst [vmem:[%s15627_s19 + $0x1018] sm:$0xff] %v1302_v3  ;;  %v1306_v5 = vld [vmem:[%s15622_s18 + $0x2028] sm:$0xff]  ;;  %v1308_v6 = vld [vmem:[%s15622_s18 + $0x2030] sm:$0xff] }
 0x115   : > { %1305 = vst [vmem:[%s15627_s19 + $0x1020] sm:$0xff] %v1304_v4  ;;  %1307 = vst [vmem:[%s15627_s19 + $0x1028] sm:$0xff] %v1306_v5  ;;  %v1310_v7 = vld [vmem:[%s15622_s18 + $0x2038] sm:$0xff]  ;;  %v1312_v8 = vld [vmem:[%s15622_s18 + $0x2080] sm:$0xff] }
 0x116   : > { %1309 = vst [vmem:[%s15627_s19 + $0x1030] sm:$0xff] %v1308_v6  ;;  %v1314_v9 = vld [vmem:[%s15622_s18 + $0x2088] sm:$0xff]  ;;  %1311 = vst [vmem:[%s15627_s19 + $0x1038] sm:$0xff] %v1310_v7  ;;  %v1316_v10 = vld [vmem:[%s15622_s18 + $0x2090] sm:$0xff] }
 0x117   : > { %1313 = vst [vmem:[%s15627_s19 + $0x1040] sm:$0xff] %v1312_v8  ;;  %1315 = vst [vmem:[%s15627_s19 + $0x1048] sm:$0xff] %v1314_v9  ;;  %v1318_v11 = vld [vmem:[%s15622_s18 + $0x2098] sm:$0xff]  ;;  %v1320_v12 = vld [vmem:[%s15622_s18 + $0x20a0] sm:$0xff] }
 0x118   : > { %1317 = vst [vmem:[%s15627_s19 + $0x1050] sm:$0xff] %v1316_v10  ;;  %1319 = vst [vmem:[%s15627_s19 + $0x1058] sm:$0xff] %v1318_v11  ;;  %v1322_v13 = vld [vmem:[%s15622_s18 + $0x20a8] sm:$0xff]  ;;  %v1324_v14 = vld [vmem:[%s15622_s18 + $0x20b0] sm:$0xff] }
 0x119   : > { %1321 = vst [vmem:[%s15627_s19 + $0x1060] sm:$0xff] %v1320_v12  ;;  %v1326_v15 = vld [vmem:[%s15622_s18 + $0x20b8] sm:$0xff]  ;;  %1323 = vst [vmem:[%s15627_s19 + $0x1068] sm:$0xff] %v1322_v13  ;;  %v1328_v16 = vld [vmem:[%s15622_s18 + $0x2100] sm:$0xff] }
 0x11a   : > { %1325 = vst [vmem:[%s15627_s19 + $0x1070] sm:$0xff] %v1324_v14  ;;  %1327 = vst [vmem:[%s15627_s19 + $0x1078] sm:$0xff] %v1326_v15  ;;  %v1330_v17 = vld [vmem:[%s15622_s18 + $0x2108] sm:$0xff]  ;;  %v1332_v18 = vld [vmem:[%s15622_s18 + $0x2110] sm:$0xff] }
 0x11b   : > { %1329 = vst [vmem:[%s15627_s19 + $0x1080] sm:$0xff] %v1328_v16  ;;  %1331 = vst [vmem:[%s15627_s19 + $0x1088] sm:$0xff] %v1330_v17  ;;  %v1334_v19 = vld [vmem:[%s15622_s18 + $0x2118] sm:$0xff]  ;;  %v1336_v20 = vld [vmem:[%s15622_s18 + $0x2120] sm:$0xff] }
 0x11c   : > { %1333 = vst [vmem:[%s15627_s19 + $0x1090] sm:$0xff] %v1332_v18  ;;  %v1338_v21 = vld [vmem:[%s15622_s18 + $0x2128] sm:$0xff]  ;;  %1335 = vst [vmem:[%s15627_s19 + $0x1098] sm:$0xff] %v1334_v19  ;;  %v1340_v22 = vld [vmem:[%s15622_s18 + $0x2130] sm:$0xff] }
 0x11d   : > { %1337 = vst [vmem:[%s15627_s19 + $0x10a0] sm:$0xff] %v1336_v20  ;;  %1339 = vst [vmem:[%s15627_s19 + $0x10a8] sm:$0xff] %v1338_v21  ;;  %v1342_v23 = vld [vmem:[%s15622_s18 + $0x2138] sm:$0xff]  ;;  %v1344_v24 = vld [vmem:[%s15622_s18 + $0x2180] sm:$0xff] }
 0x11e   : > { %1341 = vst [vmem:[%s15627_s19 + $0x10b0] sm:$0xff] %v1340_v22  ;;  %1343 = vst [vmem:[%s15627_s19 + $0x10b8] sm:$0xff] %v1342_v23  ;;  %v1346_v25 = vld [vmem:[%s15622_s18 + $0x2188] sm:$0xff]  ;;  %v1348_v26 = vld [vmem:[%s15622_s18 + $0x2190] sm:$0xff] }
 0x11f   : > { %1345 = vst [vmem:[%s15627_s19 + $0x10c0] sm:$0xff] %v1344_v24  ;;  %v1350_v27 = vld [vmem:[%s15622_s18 + $0x2198] sm:$0xff]  ;;  %1347 = vst [vmem:[%s15627_s19 + $0x10c8] sm:$0xff] %v1346_v25  ;;  %v1352_v28 = vld [vmem:[%s15622_s18 + $0x21a0] sm:$0xff] }
 0x120   : > { %1349 = vst [vmem:[%s15627_s19 + $0x10d0] sm:$0xff] %v1348_v26  ;;  %1351 = vst [vmem:[%s15627_s19 + $0x10d8] sm:$0xff] %v1350_v27  ;;  %v1354_v29 = vld [vmem:[%s15622_s18 + $0x21a8] sm:$0xff]  ;;  %v1356_v30 = vld [vmem:[%s15622_s18 + $0x21b0] sm:$0xff] }
 0x121   : > { %1353 = vst [vmem:[%s15627_s19 + $0x10e0] sm:$0xff] %v1352_v28  ;;  %1355 = vst [vmem:[%s15627_s19 + $0x10e8] sm:$0xff] %v1354_v29  ;;  %v1358_v31 = vld [vmem:[%s15622_s18 + $0x21b8] sm:$0xff]  ;;  %v1360_v32 = vld [vmem:[%s15622_s18 + $0x2200] sm:$0xff] }
 0x122   : > { %1357 = vst [vmem:[%s15627_s19 + $0x10f0] sm:$0xff] %v1356_v30  ;;  %v1362_v33 = vld [vmem:[%s15622_s18 + $0x2208] sm:$0xff]  ;;  %1359 = vst [vmem:[%s15627_s19 + $0x10f8] sm:$0xff] %v1358_v31  ;;  %v1364_v34 = vld [vmem:[%s15622_s18 + $0x2210] sm:$0xff] }
 0x123   : > { %1361 = vst [vmem:[%s15627_s19 + $0x1100] sm:$0xff] %v1360_v32  ;;  %1363 = vst [vmem:[%s15627_s19 + $0x1108] sm:$0xff] %v1362_v33  ;;  %v1366_v35 = vld [vmem:[%s15622_s18 + $0x2218] sm:$0xff]  ;;  %v1368_v36 = vld [vmem:[%s15622_s18 + $0x2220] sm:$0xff] }
 0x124   : > { %1365 = vst [vmem:[%s15627_s19 + $0x1110] sm:$0xff] %v1364_v34  ;;  %1367 = vst [vmem:[%s15627_s19 + $0x1118] sm:$0xff] %v1366_v35  ;;  %v1370_v37 = vld [vmem:[%s15622_s18 + $0x2228] sm:$0xff]  ;;  %v1372_v38 = vld [vmem:[%s15622_s18 + $0x2230] sm:$0xff] }
 0x125   : > { %1369 = vst [vmem:[%s15627_s19 + $0x1120] sm:$0xff] %v1368_v36  ;;  %v1374_v39 = vld [vmem:[%s15622_s18 + $0x2238] sm:$0xff]  ;;  %1371 = vst [vmem:[%s15627_s19 + $0x1128] sm:$0xff] %v1370_v37  ;;  %v1376_v40 = vld [vmem:[%s15622_s18 + $0x2280] sm:$0xff] }
 0x126   : > { %1373 = vst [vmem:[%s15627_s19 + $0x1130] sm:$0xff] %v1372_v38  ;;  %1375 = vst [vmem:[%s15627_s19 + $0x1138] sm:$0xff] %v1374_v39  ;;  %v1378_v41 = vld [vmem:[%s15622_s18 + $0x2288] sm:$0xff]  ;;  %v1380_v42 = vld [vmem:[%s15622_s18 + $0x2290] sm:$0xff] }
 0x127   : > { %1377 = vst [vmem:[%s15627_s19 + $0x1140] sm:$0xff] %v1376_v40  ;;  %1379 = vst [vmem:[%s15627_s19 + $0x1148] sm:$0xff] %v1378_v41  ;;  %v1382_v43 = vld [vmem:[%s15622_s18 + $0x2298] sm:$0xff]  ;;  %v1384_v44 = vld [vmem:[%s15622_s18 + $0x22a0] sm:$0xff] }
 0x128   : > { %1381 = vst [vmem:[%s15627_s19 + $0x1150] sm:$0xff] %v1380_v42  ;;  %v1386_v45 = vld [vmem:[%s15622_s18 + $0x22a8] sm:$0xff]  ;;  %1383 = vst [vmem:[%s15627_s19 + $0x1158] sm:$0xff] %v1382_v43  ;;  %v1388_v46 = vld [vmem:[%s15622_s18 + $0x22b0] sm:$0xff] }
 0x129   : > { %1385 = vst [vmem:[%s15627_s19 + $0x1160] sm:$0xff] %v1384_v44  ;;  %1387 = vst [vmem:[%s15627_s19 + $0x1168] sm:$0xff] %v1386_v45  ;;  %v1390_v47 = vld [vmem:[%s15622_s18 + $0x22b8] sm:$0xff]  ;;  %v1392_v48 = vld [vmem:[%s15622_s18 + $0x2300] sm:$0xff] }
 0x12a   : > { %1389 = vst [vmem:[%s15627_s19 + $0x1170] sm:$0xff] %v1388_v46  ;;  %1391 = vst [vmem:[%s15627_s19 + $0x1178] sm:$0xff] %v1390_v47  ;;  %v1394_v49 = vld [vmem:[%s15622_s18 + $0x2308] sm:$0xff]  ;;  %v1396_v50 = vld [vmem:[%s15622_s18 + $0x2310] sm:$0xff] }
 0x12b   : > { %1393 = vst [vmem:[%s15627_s19 + $0x1180] sm:$0xff] %v1392_v48  ;;  %v1398_v51 = vld [vmem:[%s15622_s18 + $0x2318] sm:$0xff]  ;;  %1395 = vst [vmem:[%s15627_s19 + $0x1188] sm:$0xff] %v1394_v49  ;;  %v1400_v52 = vld [vmem:[%s15622_s18 + $0x2320] sm:$0xff] }
 0x12c   : > { %1397 = vst [vmem:[%s15627_s19 + $0x1190] sm:$0xff] %v1396_v50  ;;  %1399 = vst [vmem:[%s15627_s19 + $0x1198] sm:$0xff] %v1398_v51  ;;  %v1402_v53 = vld [vmem:[%s15622_s18 + $0x2328] sm:$0xff]  ;;  %v1404_v54 = vld [vmem:[%s15622_s18 + $0x2330] sm:$0xff] }
 0x12d   : > { %1401 = vst [vmem:[%s15627_s19 + $0x11a0] sm:$0xff] %v1400_v52  ;;  %1403 = vst [vmem:[%s15627_s19 + $0x11a8] sm:$0xff] %v1402_v53  ;;  %v1406_v55 = vld [vmem:[%s15622_s18 + $0x2338] sm:$0xff]  ;;  %v1408_v56 = vld [vmem:[%s15622_s18 + $0x2380] sm:$0xff] }
 0x12e   : > { %1405 = vst [vmem:[%s15627_s19 + $0x11b0] sm:$0xff] %v1404_v54  ;;  %v1410_v57 = vld [vmem:[%s15622_s18 + $0x2388] sm:$0xff]  ;;  %1407 = vst [vmem:[%s15627_s19 + $0x11b8] sm:$0xff] %v1406_v55  ;;  %v1412_v58 = vld [vmem:[%s15622_s18 + $0x2390] sm:$0xff] }
 0x12f   : > { %1409 = vst [vmem:[%s15627_s19 + $0x11c0] sm:$0xff] %v1408_v56  ;;  %1411 = vst [vmem:[%s15627_s19 + $0x11c8] sm:$0xff] %v1410_v57  ;;  %v1414_v59 = vld [vmem:[%s15622_s18 + $0x2398] sm:$0xff]  ;;  %v1416_v60 = vld [vmem:[%s15622_s18 + $0x23a0] sm:$0xff] }
 0x130   : > { %1413 = vst [vmem:[%s15627_s19 + $0x11d0] sm:$0xff] %v1412_v58  ;;  %1415 = vst [vmem:[%s15627_s19 + $0x11d8] sm:$0xff] %v1414_v59  ;;  %v1418_v61 = vld [vmem:[%s15622_s18 + $0x23a8] sm:$0xff]  ;;  %v1420_v62 = vld [vmem:[%s15622_s18 + $0x23b0] sm:$0xff] }
 0x131   : > { %1417 = vst [vmem:[%s15627_s19 + $0x11e0] sm:$0xff] %v1416_v60  ;;  %v1422_v63 = vld [vmem:[%s15622_s18 + $0x23b8] sm:$0xff]  ;;  %1419 = vst [vmem:[%s15627_s19 + $0x11e8] sm:$0xff] %v1418_v61  ;;  %v1424_v0 = vld [vmem:[%s15622_s18 + $0x2400] sm:$0xff] }
 0x132   : > { %1421 = vst [vmem:[%s15627_s19 + $0x11f0] sm:$0xff] %v1420_v62  ;;  %1423 = vst [vmem:[%s15627_s19 + $0x11f8] sm:$0xff] %v1422_v63  ;;  %v1426_v1 = vld [vmem:[%s15622_s18 + $0x2408] sm:$0xff]  ;;  %v1428_v2 = vld [vmem:[%s15622_s18 + $0x2410] sm:$0xff] }
 0x133   : > { %1425 = vst [vmem:[%s15627_s19 + $0x1200] sm:$0xff] %v1424_v0  ;;  %1427 = vst [vmem:[%s15627_s19 + $0x1208] sm:$0xff] %v1426_v1  ;;  %v1430_v3 = vld [vmem:[%s15622_s18 + $0x2418] sm:$0xff]  ;;  %v1432_v4 = vld [vmem:[%s15622_s18 + $0x2420] sm:$0xff] }
 0x134   : > { %1429 = vst [vmem:[%s15627_s19 + $0x1210] sm:$0xff] %v1428_v2  ;;  %v1434_v5 = vld [vmem:[%s15622_s18 + $0x2428] sm:$0xff]  ;;  %1431 = vst [vmem:[%s15627_s19 + $0x1218] sm:$0xff] %v1430_v3  ;;  %v1436_v6 = vld [vmem:[%s15622_s18 + $0x2430] sm:$0xff] }
 0x135   : > { %1433 = vst [vmem:[%s15627_s19 + $0x1220] sm:$0xff] %v1432_v4  ;;  %1435 = vst [vmem:[%s15627_s19 + $0x1228] sm:$0xff] %v1434_v5  ;;  %v1438_v7 = vld [vmem:[%s15622_s18 + $0x2438] sm:$0xff]  ;;  %v1440_v8 = vld [vmem:[%s15622_s18 + $0x2480] sm:$0xff] }
 0x136   : > { %1437 = vst [vmem:[%s15627_s19 + $0x1230] sm:$0xff] %v1436_v6  ;;  %1439 = vst [vmem:[%s15627_s19 + $0x1238] sm:$0xff] %v1438_v7  ;;  %v1442_v9 = vld [vmem:[%s15622_s18 + $0x2488] sm:$0xff]  ;;  %v1444_v10 = vld [vmem:[%s15622_s18 + $0x2490] sm:$0xff] }
 0x137   : > { %1441 = vst [vmem:[%s15627_s19 + $0x1240] sm:$0xff] %v1440_v8  ;;  %v1446_v11 = vld [vmem:[%s15622_s18 + $0x2498] sm:$0xff]  ;;  %1443 = vst [vmem:[%s15627_s19 + $0x1248] sm:$0xff] %v1442_v9  ;;  %v1448_v12 = vld [vmem:[%s15622_s18 + $0x24a0] sm:$0xff] }
 0x138   : > { %1445 = vst [vmem:[%s15627_s19 + $0x1250] sm:$0xff] %v1444_v10  ;;  %1447 = vst [vmem:[%s15627_s19 + $0x1258] sm:$0xff] %v1446_v11  ;;  %v1450_v13 = vld [vmem:[%s15622_s18 + $0x24a8] sm:$0xff]  ;;  %v1452_v14 = vld [vmem:[%s15622_s18 + $0x24b0] sm:$0xff] }
 0x139   : > { %1449 = vst [vmem:[%s15627_s19 + $0x1260] sm:$0xff] %v1448_v12  ;;  %1451 = vst [vmem:[%s15627_s19 + $0x1268] sm:$0xff] %v1450_v13  ;;  %v1454_v15 = vld [vmem:[%s15622_s18 + $0x24b8] sm:$0xff]  ;;  %v1456_v16 = vld [vmem:[%s15622_s18 + $0x2500] sm:$0xff] }
 0x13a   : > { %1453 = vst [vmem:[%s15627_s19 + $0x1270] sm:$0xff] %v1452_v14  ;;  %v1458_v17 = vld [vmem:[%s15622_s18 + $0x2508] sm:$0xff]  ;;  %1455 = vst [vmem:[%s15627_s19 + $0x1278] sm:$0xff] %v1454_v15  ;;  %v1460_v18 = vld [vmem:[%s15622_s18 + $0x2510] sm:$0xff] }
 0x13b   : > { %1457 = vst [vmem:[%s15627_s19 + $0x1280] sm:$0xff] %v1456_v16  ;;  %1459 = vst [vmem:[%s15627_s19 + $0x1288] sm:$0xff] %v1458_v17  ;;  %v1462_v19 = vld [vmem:[%s15622_s18 + $0x2518] sm:$0xff]  ;;  %v1464_v20 = vld [vmem:[%s15622_s18 + $0x2520] sm:$0xff] }
 0x13c   : > { %1461 = vst [vmem:[%s15627_s19 + $0x1290] sm:$0xff] %v1460_v18  ;;  %1463 = vst [vmem:[%s15627_s19 + $0x1298] sm:$0xff] %v1462_v19  ;;  %v1466_v21 = vld [vmem:[%s15622_s18 + $0x2528] sm:$0xff]  ;;  %v1468_v22 = vld [vmem:[%s15622_s18 + $0x2530] sm:$0xff] }
 0x13d   : > { %1465 = vst [vmem:[%s15627_s19 + $0x12a0] sm:$0xff] %v1464_v20  ;;  %v1470_v23 = vld [vmem:[%s15622_s18 + $0x2538] sm:$0xff]  ;;  %1467 = vst [vmem:[%s15627_s19 + $0x12a8] sm:$0xff] %v1466_v21  ;;  %v1472_v24 = vld [vmem:[%s15622_s18 + $0x2580] sm:$0xff] }
 0x13e   : > { %1469 = vst [vmem:[%s15627_s19 + $0x12b0] sm:$0xff] %v1468_v22  ;;  %1471 = vst [vmem:[%s15627_s19 + $0x12b8] sm:$0xff] %v1470_v23  ;;  %v1474_v25 = vld [vmem:[%s15622_s18 + $0x2588] sm:$0xff]  ;;  %v1476_v26 = vld [vmem:[%s15622_s18 + $0x2590] sm:$0xff] }
 0x13f   : > { %1473 = vst [vmem:[%s15627_s19 + $0x12c0] sm:$0xff] %v1472_v24  ;;  %1475 = vst [vmem:[%s15627_s19 + $0x12c8] sm:$0xff] %v1474_v25  ;;  %v1478_v27 = vld [vmem:[%s15622_s18 + $0x2598] sm:$0xff]  ;;  %v1480_v28 = vld [vmem:[%s15622_s18 + $0x25a0] sm:$0xff] }
 0x140   : > { %1477 = vst [vmem:[%s15627_s19 + $0x12d0] sm:$0xff] %v1476_v26  ;;  %v1482_v29 = vld [vmem:[%s15622_s18 + $0x25a8] sm:$0xff]  ;;  %1479 = vst [vmem:[%s15627_s19 + $0x12d8] sm:$0xff] %v1478_v27  ;;  %v1484_v30 = vld [vmem:[%s15622_s18 + $0x25b0] sm:$0xff] }
 0x141   : > { %1481 = vst [vmem:[%s15627_s19 + $0x12e0] sm:$0xff] %v1480_v28  ;;  %1483 = vst [vmem:[%s15627_s19 + $0x12e8] sm:$0xff] %v1482_v29  ;;  %v1486_v31 = vld [vmem:[%s15622_s18 + $0x25b8] sm:$0xff]  ;;  %v1488_v32 = vld [vmem:[%s15622_s18 + $0x2600] sm:$0xff] }
 0x142   : > { %1485 = vst [vmem:[%s15627_s19 + $0x12f0] sm:$0xff] %v1484_v30  ;;  %1487 = vst [vmem:[%s15627_s19 + $0x12f8] sm:$0xff] %v1486_v31  ;;  %v1490_v33 = vld [vmem:[%s15622_s18 + $0x2608] sm:$0xff]  ;;  %v1492_v34 = vld [vmem:[%s15622_s18 + $0x2610] sm:$0xff] }
 0x143   : > { %1489 = vst [vmem:[%s15627_s19 + $0x1300] sm:$0xff] %v1488_v32  ;;  %v1494_v35 = vld [vmem:[%s15622_s18 + $0x2618] sm:$0xff]  ;;  %1491 = vst [vmem:[%s15627_s19 + $0x1308] sm:$0xff] %v1490_v33  ;;  %v1496_v36 = vld [vmem:[%s15622_s18 + $0x2620] sm:$0xff] }
 0x144   : > { %1493 = vst [vmem:[%s15627_s19 + $0x1310] sm:$0xff] %v1492_v34  ;;  %1495 = vst [vmem:[%s15627_s19 + $0x1318] sm:$0xff] %v1494_v35  ;;  %v1498_v37 = vld [vmem:[%s15622_s18 + $0x2628] sm:$0xff]  ;;  %v1500_v38 = vld [vmem:[%s15622_s18 + $0x2630] sm:$0xff] }
 0x145   : > { %1497 = vst [vmem:[%s15627_s19 + $0x1320] sm:$0xff] %v1496_v36  ;;  %1499 = vst [vmem:[%s15627_s19 + $0x1328] sm:$0xff] %v1498_v37  ;;  %v1502_v39 = vld [vmem:[%s15622_s18 + $0x2638] sm:$0xff]  ;;  %v1504_v40 = vld [vmem:[%s15622_s18 + $0x2680] sm:$0xff] }
 0x146   : > { %1501 = vst [vmem:[%s15627_s19 + $0x1330] sm:$0xff] %v1500_v38  ;;  %v1506_v41 = vld [vmem:[%s15622_s18 + $0x2688] sm:$0xff]  ;;  %1503 = vst [vmem:[%s15627_s19 + $0x1338] sm:$0xff] %v1502_v39  ;;  %v1508_v42 = vld [vmem:[%s15622_s18 + $0x2690] sm:$0xff] }
 0x147   : > { %1505 = vst [vmem:[%s15627_s19 + $0x1340] sm:$0xff] %v1504_v40  ;;  %1507 = vst [vmem:[%s15627_s19 + $0x1348] sm:$0xff] %v1506_v41  ;;  %v1510_v43 = vld [vmem:[%s15622_s18 + $0x2698] sm:$0xff]  ;;  %v1512_v44 = vld [vmem:[%s15622_s18 + $0x26a0] sm:$0xff] }
 0x148   : > { %1509 = vst [vmem:[%s15627_s19 + $0x1350] sm:$0xff] %v1508_v42  ;;  %1511 = vst [vmem:[%s15627_s19 + $0x1358] sm:$0xff] %v1510_v43  ;;  %v1514_v45 = vld [vmem:[%s15622_s18 + $0x26a8] sm:$0xff]  ;;  %v1516_v46 = vld [vmem:[%s15622_s18 + $0x26b0] sm:$0xff] }
 0x149   : > { %1513 = vst [vmem:[%s15627_s19 + $0x1360] sm:$0xff] %v1512_v44  ;;  %v1518_v47 = vld [vmem:[%s15622_s18 + $0x26b8] sm:$0xff]  ;;  %1515 = vst [vmem:[%s15627_s19 + $0x1368] sm:$0xff] %v1514_v45  ;;  %v1520_v48 = vld [vmem:[%s15622_s18 + $0x2700] sm:$0xff] }
 0x14a   : > { %1517 = vst [vmem:[%s15627_s19 + $0x1370] sm:$0xff] %v1516_v46  ;;  %1519 = vst [vmem:[%s15627_s19 + $0x1378] sm:$0xff] %v1518_v47  ;;  %v1522_v49 = vld [vmem:[%s15622_s18 + $0x2708] sm:$0xff]  ;;  %v1524_v50 = vld [vmem:[%s15622_s18 + $0x2710] sm:$0xff] }
 0x14b   : > { %1521 = vst [vmem:[%s15627_s19 + $0x1380] sm:$0xff] %v1520_v48  ;;  %1523 = vst [vmem:[%s15627_s19 + $0x1388] sm:$0xff] %v1522_v49  ;;  %v1526_v51 = vld [vmem:[%s15622_s18 + $0x2718] sm:$0xff]  ;;  %v1528_v52 = vld [vmem:[%s15622_s18 + $0x2720] sm:$0xff] }
 0x14c   : > { %1525 = vst [vmem:[%s15627_s19 + $0x1390] sm:$0xff] %v1524_v50  ;;  %v1530_v53 = vld [vmem:[%s15622_s18 + $0x2728] sm:$0xff]  ;;  %1527 = vst [vmem:[%s15627_s19 + $0x1398] sm:$0xff] %v1526_v51  ;;  %v1532_v54 = vld [vmem:[%s15622_s18 + $0x2730] sm:$0xff] }
 0x14d   : > { %1529 = vst [vmem:[%s15627_s19 + $0x13a0] sm:$0xff] %v1528_v52  ;;  %1531 = vst [vmem:[%s15627_s19 + $0x13a8] sm:$0xff] %v1530_v53  ;;  %v1534_v55 = vld [vmem:[%s15622_s18 + $0x2738] sm:$0xff]  ;;  %v1536_v56 = vld [vmem:[%s15622_s18 + $0x2780] sm:$0xff] }
 0x14e   : > { %1533 = vst [vmem:[%s15627_s19 + $0x13b0] sm:$0xff] %v1532_v54  ;;  %1535 = vst [vmem:[%s15627_s19 + $0x13b8] sm:$0xff] %v1534_v55  ;;  %v1538_v57 = vld [vmem:[%s15622_s18 + $0x2788] sm:$0xff]  ;;  %v1540_v58 = vld [vmem:[%s15622_s18 + $0x2790] sm:$0xff] }
 0x14f   : > { %1537 = vst [vmem:[%s15627_s19 + $0x13c0] sm:$0xff] %v1536_v56  ;;  %v1542_v59 = vld [vmem:[%s15622_s18 + $0x2798] sm:$0xff]  ;;  %1539 = vst [vmem:[%s15627_s19 + $0x13c8] sm:$0xff] %v1538_v57  ;;  %v1544_v60 = vld [vmem:[%s15622_s18 + $0x27a0] sm:$0xff] }
 0x150   : > { %1541 = vst [vmem:[%s15627_s19 + $0x13d0] sm:$0xff] %v1540_v58  ;;  %1543 = vst [vmem:[%s15627_s19 + $0x13d8] sm:$0xff] %v1542_v59  ;;  %v1546_v61 = vld [vmem:[%s15622_s18 + $0x27a8] sm:$0xff]  ;;  %v1548_v62 = vld [vmem:[%s15622_s18 + $0x27b0] sm:$0xff] }
 0x151   : > { %1545 = vst [vmem:[%s15627_s19 + $0x13e0] sm:$0xff] %v1544_v60  ;;  %1547 = vst [vmem:[%s15627_s19 + $0x13e8] sm:$0xff] %v1546_v61  ;;  %v1550_v63 = vld [vmem:[%s15622_s18 + $0x27b8] sm:$0xff]  ;;  %v1552_v0 = vld [vmem:[%s15622_s18 + $0x2800] sm:$0xff] }
 0x152   : > { %1549 = vst [vmem:[%s15627_s19 + $0x13f0] sm:$0xff] %v1548_v62  ;;  %v1554_v1 = vld [vmem:[%s15622_s18 + $0x2808] sm:$0xff]  ;;  %1551 = vst [vmem:[%s15627_s19 + $0x13f8] sm:$0xff] %v1550_v63  ;;  %v1556_v2 = vld [vmem:[%s15622_s18 + $0x2810] sm:$0xff] }
 0x153   : > { %1553 = vst [vmem:[%s15627_s19 + $0x1400] sm:$0xff] %v1552_v0  ;;  %1555 = vst [vmem:[%s15627_s19 + $0x1408] sm:$0xff] %v1554_v1  ;;  %v1558_v3 = vld [vmem:[%s15622_s18 + $0x2818] sm:$0xff]  ;;  %v1560_v4 = vld [vmem:[%s15622_s18 + $0x2820] sm:$0xff] }
 0x154   : > { %1557 = vst [vmem:[%s15627_s19 + $0x1410] sm:$0xff] %v1556_v2  ;;  %1559 = vst [vmem:[%s15627_s19 + $0x1418] sm:$0xff] %v1558_v3  ;;  %v1562_v5 = vld [vmem:[%s15622_s18 + $0x2828] sm:$0xff]  ;;  %v1564_v6 = vld [vmem:[%s15622_s18 + $0x2830] sm:$0xff] }
 0x155   : > { %1561 = vst [vmem:[%s15627_s19 + $0x1420] sm:$0xff] %v1560_v4  ;;  %v1566_v7 = vld [vmem:[%s15622_s18 + $0x2838] sm:$0xff]  ;;  %1563 = vst [vmem:[%s15627_s19 + $0x1428] sm:$0xff] %v1562_v5  ;;  %v1568_v8 = vld [vmem:[%s15622_s18 + $0x2880] sm:$0xff] }
 0x156   : > { %1565 = vst [vmem:[%s15627_s19 + $0x1430] sm:$0xff] %v1564_v6  ;;  %1567 = vst [vmem:[%s15627_s19 + $0x1438] sm:$0xff] %v1566_v7  ;;  %v1570_v9 = vld [vmem:[%s15622_s18 + $0x2888] sm:$0xff]  ;;  %v1572_v10 = vld [vmem:[%s15622_s18 + $0x2890] sm:$0xff] }
 0x157   : > { %1569 = vst [vmem:[%s15627_s19 + $0x1440] sm:$0xff] %v1568_v8  ;;  %1571 = vst [vmem:[%s15627_s19 + $0x1448] sm:$0xff] %v1570_v9  ;;  %v1574_v11 = vld [vmem:[%s15622_s18 + $0x2898] sm:$0xff]  ;;  %v1576_v12 = vld [vmem:[%s15622_s18 + $0x28a0] sm:$0xff] }
 0x158   : > { %1573 = vst [vmem:[%s15627_s19 + $0x1450] sm:$0xff] %v1572_v10  ;;  %v1578_v13 = vld [vmem:[%s15622_s18 + $0x28a8] sm:$0xff]  ;;  %1575 = vst [vmem:[%s15627_s19 + $0x1458] sm:$0xff] %v1574_v11  ;;  %v1580_v14 = vld [vmem:[%s15622_s18 + $0x28b0] sm:$0xff] }
 0x159   : > { %1577 = vst [vmem:[%s15627_s19 + $0x1460] sm:$0xff] %v1576_v12  ;;  %1579 = vst [vmem:[%s15627_s19 + $0x1468] sm:$0xff] %v1578_v13  ;;  %v1582_v15 = vld [vmem:[%s15622_s18 + $0x28b8] sm:$0xff]  ;;  %v1584_v16 = vld [vmem:[%s15622_s18 + $0x2900] sm:$0xff] }
 0x15a   : > { %1581 = vst [vmem:[%s15627_s19 + $0x1470] sm:$0xff] %v1580_v14  ;;  %1583 = vst [vmem:[%s15627_s19 + $0x1478] sm:$0xff] %v1582_v15  ;;  %v1586_v17 = vld [vmem:[%s15622_s18 + $0x2908] sm:$0xff]  ;;  %v1588_v18 = vld [vmem:[%s15622_s18 + $0x2910] sm:$0xff] }
 0x15b   : > { %1585 = vst [vmem:[%s15627_s19 + $0x1480] sm:$0xff] %v1584_v16  ;;  %v1590_v19 = vld [vmem:[%s15622_s18 + $0x2918] sm:$0xff]  ;;  %1587 = vst [vmem:[%s15627_s19 + $0x1488] sm:$0xff] %v1586_v17  ;;  %v1592_v20 = vld [vmem:[%s15622_s18 + $0x2920] sm:$0xff] }
 0x15c   : > { %1589 = vst [vmem:[%s15627_s19 + $0x1490] sm:$0xff] %v1588_v18  ;;  %1591 = vst [vmem:[%s15627_s19 + $0x1498] sm:$0xff] %v1590_v19  ;;  %v1594_v21 = vld [vmem:[%s15622_s18 + $0x2928] sm:$0xff]  ;;  %v1596_v22 = vld [vmem:[%s15622_s18 + $0x2930] sm:$0xff] }
 0x15d   : > { %1593 = vst [vmem:[%s15627_s19 + $0x14a0] sm:$0xff] %v1592_v20  ;;  %1595 = vst [vmem:[%s15627_s19 + $0x14a8] sm:$0xff] %v1594_v21  ;;  %v1598_v23 = vld [vmem:[%s15622_s18 + $0x2938] sm:$0xff]  ;;  %v1600_v24 = vld [vmem:[%s15622_s18 + $0x2980] sm:$0xff] }
 0x15e   : > { %1597 = vst [vmem:[%s15627_s19 + $0x14b0] sm:$0xff] %v1596_v22  ;;  %v1602_v25 = vld [vmem:[%s15622_s18 + $0x2988] sm:$0xff]  ;;  %1599 = vst [vmem:[%s15627_s19 + $0x14b8] sm:$0xff] %v1598_v23  ;;  %v1604_v26 = vld [vmem:[%s15622_s18 + $0x2990] sm:$0xff] }
 0x15f   : > { %1601 = vst [vmem:[%s15627_s19 + $0x14c0] sm:$0xff] %v1600_v24  ;;  %1603 = vst [vmem:[%s15627_s19 + $0x14c8] sm:$0xff] %v1602_v25  ;;  %v1606_v27 = vld [vmem:[%s15622_s18 + $0x2998] sm:$0xff]  ;;  %v1608_v28 = vld [vmem:[%s15622_s18 + $0x29a0] sm:$0xff] }
 0x160   : > { %1605 = vst [vmem:[%s15627_s19 + $0x14d0] sm:$0xff] %v1604_v26  ;;  %1607 = vst [vmem:[%s15627_s19 + $0x14d8] sm:$0xff] %v1606_v27  ;;  %v1610_v29 = vld [vmem:[%s15622_s18 + $0x29a8] sm:$0xff]  ;;  %v1612_v30 = vld [vmem:[%s15622_s18 + $0x29b0] sm:$0xff] }
 0x161   : > { %1609 = vst [vmem:[%s15627_s19 + $0x14e0] sm:$0xff] %v1608_v28  ;;  %v1614_v31 = vld [vmem:[%s15622_s18 + $0x29b8] sm:$0xff]  ;;  %1611 = vst [vmem:[%s15627_s19 + $0x14e8] sm:$0xff] %v1610_v29  ;;  %v1616_v32 = vld [vmem:[%s15622_s18 + $0x2a00] sm:$0xff] }
 0x162   : > { %1613 = vst [vmem:[%s15627_s19 + $0x14f0] sm:$0xff] %v1612_v30  ;;  %1615 = vst [vmem:[%s15627_s19 + $0x14f8] sm:$0xff] %v1614_v31  ;;  %v1618_v33 = vld [vmem:[%s15622_s18 + $0x2a08] sm:$0xff]  ;;  %v1620_v34 = vld [vmem:[%s15622_s18 + $0x2a10] sm:$0xff] }
 0x163   : > { %1617 = vst [vmem:[%s15627_s19 + $0x1500] sm:$0xff] %v1616_v32  ;;  %1619 = vst [vmem:[%s15627_s19 + $0x1508] sm:$0xff] %v1618_v33  ;;  %v1622_v35 = vld [vmem:[%s15622_s18 + $0x2a18] sm:$0xff]  ;;  %v1624_v36 = vld [vmem:[%s15622_s18 + $0x2a20] sm:$0xff] }
 0x164   : > { %1621 = vst [vmem:[%s15627_s19 + $0x1510] sm:$0xff] %v1620_v34  ;;  %v1626_v37 = vld [vmem:[%s15622_s18 + $0x2a28] sm:$0xff]  ;;  %1623 = vst [vmem:[%s15627_s19 + $0x1518] sm:$0xff] %v1622_v35  ;;  %v1628_v38 = vld [vmem:[%s15622_s18 + $0x2a30] sm:$0xff] }
 0x165   : > { %1625 = vst [vmem:[%s15627_s19 + $0x1520] sm:$0xff] %v1624_v36  ;;  %1627 = vst [vmem:[%s15627_s19 + $0x1528] sm:$0xff] %v1626_v37  ;;  %v1630_v39 = vld [vmem:[%s15622_s18 + $0x2a38] sm:$0xff]  ;;  %v1632_v40 = vld [vmem:[%s15622_s18 + $0x2a80] sm:$0xff] }
 0x166   : > { %1629 = vst [vmem:[%s15627_s19 + $0x1530] sm:$0xff] %v1628_v38  ;;  %1631 = vst [vmem:[%s15627_s19 + $0x1538] sm:$0xff] %v1630_v39  ;;  %v1634_v41 = vld [vmem:[%s15622_s18 + $0x2a88] sm:$0xff]  ;;  %v1636_v42 = vld [vmem:[%s15622_s18 + $0x2a90] sm:$0xff] }
 0x167   : > { %1633 = vst [vmem:[%s15627_s19 + $0x1540] sm:$0xff] %v1632_v40  ;;  %v1638_v43 = vld [vmem:[%s15622_s18 + $0x2a98] sm:$0xff]  ;;  %1635 = vst [vmem:[%s15627_s19 + $0x1548] sm:$0xff] %v1634_v41  ;;  %v1640_v44 = vld [vmem:[%s15622_s18 + $0x2aa0] sm:$0xff] }
 0x168   : > { %1637 = vst [vmem:[%s15627_s19 + $0x1550] sm:$0xff] %v1636_v42  ;;  %1639 = vst [vmem:[%s15627_s19 + $0x1558] sm:$0xff] %v1638_v43  ;;  %v1642_v45 = vld [vmem:[%s15622_s18 + $0x2aa8] sm:$0xff]  ;;  %v1644_v46 = vld [vmem:[%s15622_s18 + $0x2ab0] sm:$0xff] }
 0x169   : > { %1641 = vst [vmem:[%s15627_s19 + $0x1560] sm:$0xff] %v1640_v44  ;;  %1643 = vst [vmem:[%s15627_s19 + $0x1568] sm:$0xff] %v1642_v45  ;;  %v1646_v47 = vld [vmem:[%s15622_s18 + $0x2ab8] sm:$0xff]  ;;  %v1648_v48 = vld [vmem:[%s15622_s18 + $0x2b00] sm:$0xff] }
 0x16a   : > { %1645 = vst [vmem:[%s15627_s19 + $0x1570] sm:$0xff] %v1644_v46  ;;  %v1650_v49 = vld [vmem:[%s15622_s18 + $0x2b08] sm:$0xff]  ;;  %1647 = vst [vmem:[%s15627_s19 + $0x1578] sm:$0xff] %v1646_v47  ;;  %v1652_v50 = vld [vmem:[%s15622_s18 + $0x2b10] sm:$0xff] }
 0x16b   : > { %1649 = vst [vmem:[%s15627_s19 + $0x1580] sm:$0xff] %v1648_v48  ;;  %1651 = vst [vmem:[%s15627_s19 + $0x1588] sm:$0xff] %v1650_v49  ;;  %v1654_v51 = vld [vmem:[%s15622_s18 + $0x2b18] sm:$0xff]  ;;  %v1656_v52 = vld [vmem:[%s15622_s18 + $0x2b20] sm:$0xff] }
 0x16c   : > { %1653 = vst [vmem:[%s15627_s19 + $0x1590] sm:$0xff] %v1652_v50  ;;  %1655 = vst [vmem:[%s15627_s19 + $0x1598] sm:$0xff] %v1654_v51  ;;  %v1658_v53 = vld [vmem:[%s15622_s18 + $0x2b28] sm:$0xff]  ;;  %v1660_v54 = vld [vmem:[%s15622_s18 + $0x2b30] sm:$0xff] }
 0x16d   : > { %1657 = vst [vmem:[%s15627_s19 + $0x15a0] sm:$0xff] %v1656_v52  ;;  %v1662_v55 = vld [vmem:[%s15622_s18 + $0x2b38] sm:$0xff]  ;;  %1659 = vst [vmem:[%s15627_s19 + $0x15a8] sm:$0xff] %v1658_v53  ;;  %v1664_v56 = vld [vmem:[%s15622_s18 + $0x2b80] sm:$0xff] }
 0x16e   : > { %1661 = vst [vmem:[%s15627_s19 + $0x15b0] sm:$0xff] %v1660_v54  ;;  %1663 = vst [vmem:[%s15627_s19 + $0x15b8] sm:$0xff] %v1662_v55  ;;  %v1666_v57 = vld [vmem:[%s15622_s18 + $0x2b88] sm:$0xff]  ;;  %v1668_v58 = vld [vmem:[%s15622_s18 + $0x2b90] sm:$0xff] }
 0x16f   : > { %1665 = vst [vmem:[%s15627_s19 + $0x15c0] sm:$0xff] %v1664_v56  ;;  %1667 = vst [vmem:[%s15627_s19 + $0x15c8] sm:$0xff] %v1666_v57  ;;  %v1670_v59 = vld [vmem:[%s15622_s18 + $0x2b98] sm:$0xff]  ;;  %v1672_v60 = vld [vmem:[%s15622_s18 + $0x2ba0] sm:$0xff] }
 0x170   : > { %1669 = vst [vmem:[%s15627_s19 + $0x15d0] sm:$0xff] %v1668_v58  ;;  %v1674_v61 = vld [vmem:[%s15622_s18 + $0x2ba8] sm:$0xff]  ;;  %1671 = vst [vmem:[%s15627_s19 + $0x15d8] sm:$0xff] %v1670_v59  ;;  %v1676_v62 = vld [vmem:[%s15622_s18 + $0x2bb0] sm:$0xff] }
 0x171   : > { %1673 = vst [vmem:[%s15627_s19 + $0x15e0] sm:$0xff] %v1672_v60  ;;  %1675 = vst [vmem:[%s15627_s19 + $0x15e8] sm:$0xff] %v1674_v61  ;;  %v1678_v63 = vld [vmem:[%s15622_s18 + $0x2bb8] sm:$0xff]  ;;  %v1680_v0 = vld [vmem:[%s15622_s18 + $0x2c00] sm:$0xff] }
 0x172   : > { %1677 = vst [vmem:[%s15627_s19 + $0x15f0] sm:$0xff] %v1676_v62  ;;  %1679 = vst [vmem:[%s15627_s19 + $0x15f8] sm:$0xff] %v1678_v63  ;;  %v1682_v1 = vld [vmem:[%s15622_s18 + $0x2c08] sm:$0xff]  ;;  %v1684_v2 = vld [vmem:[%s15622_s18 + $0x2c10] sm:$0xff] }
 0x173   : > { %1681 = vst [vmem:[%s15627_s19 + $0x1600] sm:$0xff] %v1680_v0  ;;  %v1686_v3 = vld [vmem:[%s15622_s18 + $0x2c18] sm:$0xff]  ;;  %1683 = vst [vmem:[%s15627_s19 + $0x1608] sm:$0xff] %v1682_v1  ;;  %v1688_v4 = vld [vmem:[%s15622_s18 + $0x2c20] sm:$0xff] }
 0x174   : > { %1685 = vst [vmem:[%s15627_s19 + $0x1610] sm:$0xff] %v1684_v2  ;;  %1687 = vst [vmem:[%s15627_s19 + $0x1618] sm:$0xff] %v1686_v3  ;;  %v1690_v5 = vld [vmem:[%s15622_s18 + $0x2c28] sm:$0xff]  ;;  %v1692_v6 = vld [vmem:[%s15622_s18 + $0x2c30] sm:$0xff] }
 0x175   : > { %1689 = vst [vmem:[%s15627_s19 + $0x1620] sm:$0xff] %v1688_v4  ;;  %1691 = vst [vmem:[%s15627_s19 + $0x1628] sm:$0xff] %v1690_v5  ;;  %v1694_v7 = vld [vmem:[%s15622_s18 + $0x2c38] sm:$0xff]  ;;  %v1696_v8 = vld [vmem:[%s15622_s18 + $0x2c80] sm:$0xff] }
 0x176   : > { %1693 = vst [vmem:[%s15627_s19 + $0x1630] sm:$0xff] %v1692_v6  ;;  %v1698_v9 = vld [vmem:[%s15622_s18 + $0x2c88] sm:$0xff]  ;;  %1695 = vst [vmem:[%s15627_s19 + $0x1638] sm:$0xff] %v1694_v7  ;;  %v1700_v10 = vld [vmem:[%s15622_s18 + $0x2c90] sm:$0xff] }
 0x177   : > { %1697 = vst [vmem:[%s15627_s19 + $0x1640] sm:$0xff] %v1696_v8  ;;  %1699 = vst [vmem:[%s15627_s19 + $0x1648] sm:$0xff] %v1698_v9  ;;  %v1702_v11 = vld [vmem:[%s15622_s18 + $0x2c98] sm:$0xff]  ;;  %v1704_v12 = vld [vmem:[%s15622_s18 + $0x2ca0] sm:$0xff] }
 0x178   : > { %1701 = vst [vmem:[%s15627_s19 + $0x1650] sm:$0xff] %v1700_v10  ;;  %1703 = vst [vmem:[%s15627_s19 + $0x1658] sm:$0xff] %v1702_v11  ;;  %v1706_v13 = vld [vmem:[%s15622_s18 + $0x2ca8] sm:$0xff]  ;;  %v1708_v14 = vld [vmem:[%s15622_s18 + $0x2cb0] sm:$0xff] }
 0x179   : > { %1705 = vst [vmem:[%s15627_s19 + $0x1660] sm:$0xff] %v1704_v12  ;;  %v1710_v15 = vld [vmem:[%s15622_s18 + $0x2cb8] sm:$0xff]  ;;  %1707 = vst [vmem:[%s15627_s19 + $0x1668] sm:$0xff] %v1706_v13  ;;  %v1712_v16 = vld [vmem:[%s15622_s18 + $0x2d00] sm:$0xff] }
 0x17a   : > { %1709 = vst [vmem:[%s15627_s19 + $0x1670] sm:$0xff] %v1708_v14  ;;  %1711 = vst [vmem:[%s15627_s19 + $0x1678] sm:$0xff] %v1710_v15  ;;  %v1714_v17 = vld [vmem:[%s15622_s18 + $0x2d08] sm:$0xff]  ;;  %v1716_v18 = vld [vmem:[%s15622_s18 + $0x2d10] sm:$0xff] }
 0x17b   : > { %1713 = vst [vmem:[%s15627_s19 + $0x1680] sm:$0xff] %v1712_v16  ;;  %1715 = vst [vmem:[%s15627_s19 + $0x1688] sm:$0xff] %v1714_v17  ;;  %v1718_v19 = vld [vmem:[%s15622_s18 + $0x2d18] sm:$0xff]  ;;  %v1720_v20 = vld [vmem:[%s15622_s18 + $0x2d20] sm:$0xff] }
 0x17c   : > { %1717 = vst [vmem:[%s15627_s19 + $0x1690] sm:$0xff] %v1716_v18  ;;  %v1722_v21 = vld [vmem:[%s15622_s18 + $0x2d28] sm:$0xff]  ;;  %1719 = vst [vmem:[%s15627_s19 + $0x1698] sm:$0xff] %v1718_v19  ;;  %v1724_v22 = vld [vmem:[%s15622_s18 + $0x2d30] sm:$0xff] }
 0x17d   : > { %1721 = vst [vmem:[%s15627_s19 + $0x16a0] sm:$0xff] %v1720_v20  ;;  %1723 = vst [vmem:[%s15627_s19 + $0x16a8] sm:$0xff] %v1722_v21  ;;  %v1726_v23 = vld [vmem:[%s15622_s18 + $0x2d38] sm:$0xff]  ;;  %v1728_v24 = vld [vmem:[%s15622_s18 + $0x2d80] sm:$0xff] }
 0x17e   : > { %1725 = vst [vmem:[%s15627_s19 + $0x16b0] sm:$0xff] %v1724_v22  ;;  %1727 = vst [vmem:[%s15627_s19 + $0x16b8] sm:$0xff] %v1726_v23  ;;  %v1730_v25 = vld [vmem:[%s15622_s18 + $0x2d88] sm:$0xff]  ;;  %v1732_v26 = vld [vmem:[%s15622_s18 + $0x2d90] sm:$0xff] }
 0x17f   : > { %1729 = vst [vmem:[%s15627_s19 + $0x16c0] sm:$0xff] %v1728_v24  ;;  %v1734_v27 = vld [vmem:[%s15622_s18 + $0x2d98] sm:$0xff]  ;;  %1731 = vst [vmem:[%s15627_s19 + $0x16c8] sm:$0xff] %v1730_v25  ;;  %v1736_v28 = vld [vmem:[%s15622_s18 + $0x2da0] sm:$0xff] }
 0x180   : > { %1733 = vst [vmem:[%s15627_s19 + $0x16d0] sm:$0xff] %v1732_v26  ;;  %1735 = vst [vmem:[%s15627_s19 + $0x16d8] sm:$0xff] %v1734_v27  ;;  %v1738_v29 = vld [vmem:[%s15622_s18 + $0x2da8] sm:$0xff]  ;;  %v1740_v30 = vld [vmem:[%s15622_s18 + $0x2db0] sm:$0xff] }
 0x181   : > { %1737 = vst [vmem:[%s15627_s19 + $0x16e0] sm:$0xff] %v1736_v28  ;;  %1739 = vst [vmem:[%s15627_s19 + $0x16e8] sm:$0xff] %v1738_v29  ;;  %v1742_v31 = vld [vmem:[%s15622_s18 + $0x2db8] sm:$0xff]  ;;  %v1744_v32 = vld [vmem:[%s15622_s18 + $0x2e00] sm:$0xff] }
 0x182   : > { %1741 = vst [vmem:[%s15627_s19 + $0x16f0] sm:$0xff] %v1740_v30  ;;  %v1746_v33 = vld [vmem:[%s15622_s18 + $0x2e08] sm:$0xff]  ;;  %1743 = vst [vmem:[%s15627_s19 + $0x16f8] sm:$0xff] %v1742_v31  ;;  %v1748_v34 = vld [vmem:[%s15622_s18 + $0x2e10] sm:$0xff] }
 0x183   : > { %1745 = vst [vmem:[%s15627_s19 + $0x1700] sm:$0xff] %v1744_v32  ;;  %1747 = vst [vmem:[%s15627_s19 + $0x1708] sm:$0xff] %v1746_v33  ;;  %v1750_v35 = vld [vmem:[%s15622_s18 + $0x2e18] sm:$0xff]  ;;  %v1752_v36 = vld [vmem:[%s15622_s18 + $0x2e20] sm:$0xff] }
 0x184   : > { %1749 = vst [vmem:[%s15627_s19 + $0x1710] sm:$0xff] %v1748_v34  ;;  %1751 = vst [vmem:[%s15627_s19 + $0x1718] sm:$0xff] %v1750_v35  ;;  %v1754_v37 = vld [vmem:[%s15622_s18 + $0x2e28] sm:$0xff]  ;;  %v1756_v38 = vld [vmem:[%s15622_s18 + $0x2e30] sm:$0xff] }
 0x185   : > { %1753 = vst [vmem:[%s15627_s19 + $0x1720] sm:$0xff] %v1752_v36  ;;  %v1758_v39 = vld [vmem:[%s15622_s18 + $0x2e38] sm:$0xff]  ;;  %1755 = vst [vmem:[%s15627_s19 + $0x1728] sm:$0xff] %v1754_v37  ;;  %v1760_v40 = vld [vmem:[%s15622_s18 + $0x2e80] sm:$0xff] }
 0x186   : > { %1757 = vst [vmem:[%s15627_s19 + $0x1730] sm:$0xff] %v1756_v38  ;;  %1759 = vst [vmem:[%s15627_s19 + $0x1738] sm:$0xff] %v1758_v39  ;;  %v1762_v41 = vld [vmem:[%s15622_s18 + $0x2e88] sm:$0xff]  ;;  %v1764_v42 = vld [vmem:[%s15622_s18 + $0x2e90] sm:$0xff] }
 0x187   : > { %1761 = vst [vmem:[%s15627_s19 + $0x1740] sm:$0xff] %v1760_v40  ;;  %1763 = vst [vmem:[%s15627_s19 + $0x1748] sm:$0xff] %v1762_v41  ;;  %v1766_v43 = vld [vmem:[%s15622_s18 + $0x2e98] sm:$0xff]  ;;  %v1768_v44 = vld [vmem:[%s15622_s18 + $0x2ea0] sm:$0xff] }
 0x188   : > { %1765 = vst [vmem:[%s15627_s19 + $0x1750] sm:$0xff] %v1764_v42  ;;  %v1770_v45 = vld [vmem:[%s15622_s18 + $0x2ea8] sm:$0xff]  ;;  %1767 = vst [vmem:[%s15627_s19 + $0x1758] sm:$0xff] %v1766_v43  ;;  %v1772_v46 = vld [vmem:[%s15622_s18 + $0x2eb0] sm:$0xff] }
 0x189   : > { %1769 = vst [vmem:[%s15627_s19 + $0x1760] sm:$0xff] %v1768_v44  ;;  %1771 = vst [vmem:[%s15627_s19 + $0x1768] sm:$0xff] %v1770_v45  ;;  %v1774_v47 = vld [vmem:[%s15622_s18 + $0x2eb8] sm:$0xff]  ;;  %v1776_v48 = vld [vmem:[%s15622_s18 + $0x2f00] sm:$0xff] }
 0x18a   : > { %1773 = vst [vmem:[%s15627_s19 + $0x1770] sm:$0xff] %v1772_v46  ;;  %1775 = vst [vmem:[%s15627_s19 + $0x1778] sm:$0xff] %v1774_v47  ;;  %v1778_v49 = vld [vmem:[%s15622_s18 + $0x2f08] sm:$0xff]  ;;  %v1780_v50 = vld [vmem:[%s15622_s18 + $0x2f10] sm:$0xff] }
 0x18b   : > { %1777 = vst [vmem:[%s15627_s19 + $0x1780] sm:$0xff] %v1776_v48  ;;  %v1782_v51 = vld [vmem:[%s15622_s18 + $0x2f18] sm:$0xff]  ;;  %1779 = vst [vmem:[%s15627_s19 + $0x1788] sm:$0xff] %v1778_v49  ;;  %v1784_v52 = vld [vmem:[%s15622_s18 + $0x2f20] sm:$0xff] }
 0x18c   : > { %1781 = vst [vmem:[%s15627_s19 + $0x1790] sm:$0xff] %v1780_v50  ;;  %1783 = vst [vmem:[%s15627_s19 + $0x1798] sm:$0xff] %v1782_v51  ;;  %v1786_v53 = vld [vmem:[%s15622_s18 + $0x2f28] sm:$0xff]  ;;  %v1788_v54 = vld [vmem:[%s15622_s18 + $0x2f30] sm:$0xff] }
 0x18d   : > { %1785 = vst [vmem:[%s15627_s19 + $0x17a0] sm:$0xff] %v1784_v52  ;;  %1787 = vst [vmem:[%s15627_s19 + $0x17a8] sm:$0xff] %v1786_v53  ;;  %v1790_v55 = vld [vmem:[%s15622_s18 + $0x2f38] sm:$0xff]  ;;  %v1792_v56 = vld [vmem:[%s15622_s18 + $0x2f80] sm:$0xff] }
 0x18e   : > { %1789 = vst [vmem:[%s15627_s19 + $0x17b0] sm:$0xff] %v1788_v54  ;;  %v1794_v57 = vld [vmem:[%s15622_s18 + $0x2f88] sm:$0xff]  ;;  %1791 = vst [vmem:[%s15627_s19 + $0x17b8] sm:$0xff] %v1790_v55  ;;  %v1796_v58 = vld [vmem:[%s15622_s18 + $0x2f90] sm:$0xff] }
 0x18f   : > { %1793 = vst [vmem:[%s15627_s19 + $0x17c0] sm:$0xff] %v1792_v56  ;;  %1795 = vst [vmem:[%s15627_s19 + $0x17c8] sm:$0xff] %v1794_v57  ;;  %v1798_v59 = vld [vmem:[%s15622_s18 + $0x2f98] sm:$0xff]  ;;  %v1800_v60 = vld [vmem:[%s15622_s18 + $0x2fa0] sm:$0xff] }
 0x190   : > { %1797 = vst [vmem:[%s15627_s19 + $0x17d0] sm:$0xff] %v1796_v58  ;;  %1799 = vst [vmem:[%s15627_s19 + $0x17d8] sm:$0xff] %v1798_v59  ;;  %v1802_v61 = vld [vmem:[%s15622_s18 + $0x2fa8] sm:$0xff]  ;;  %v1804_v62 = vld [vmem:[%s15622_s18 + $0x2fb0] sm:$0xff] }
 0x191   : > { %1801 = vst [vmem:[%s15627_s19 + $0x17e0] sm:$0xff] %v1800_v60  ;;  %v1806_v63 = vld [vmem:[%s15622_s18 + $0x2fb8] sm:$0xff]  ;;  %1803 = vst [vmem:[%s15627_s19 + $0x17e8] sm:$0xff] %v1802_v61  ;;  %v1808_v0 = vld [vmem:[%s15622_s18 + $0x3000] sm:$0xff] }
 0x192   : > { %1805 = vst [vmem:[%s15627_s19 + $0x17f0] sm:$0xff] %v1804_v62  ;;  %1807 = vst [vmem:[%s15627_s19 + $0x17f8] sm:$0xff] %v1806_v63  ;;  %v1810_v1 = vld [vmem:[%s15622_s18 + $0x3008] sm:$0xff]  ;;  %v1812_v2 = vld [vmem:[%s15622_s18 + $0x3010] sm:$0xff] }
 0x193   : > { %1809 = vst [vmem:[%s15627_s19 + $0x1800] sm:$0xff] %v1808_v0  ;;  %1811 = vst [vmem:[%s15627_s19 + $0x1808] sm:$0xff] %v1810_v1  ;;  %v1814_v3 = vld [vmem:[%s15622_s18 + $0x3018] sm:$0xff]  ;;  %v1816_v4 = vld [vmem:[%s15622_s18 + $0x3020] sm:$0xff] }
 0x194   : > { %1813 = vst [vmem:[%s15627_s19 + $0x1810] sm:$0xff] %v1812_v2  ;;  %v1818_v5 = vld [vmem:[%s15622_s18 + $0x3028] sm:$0xff]  ;;  %1815 = vst [vmem:[%s15627_s19 + $0x1818] sm:$0xff] %v1814_v3  ;;  %v1820_v6 = vld [vmem:[%s15622_s18 + $0x3030] sm:$0xff] }
 0x195   : > { %1817 = vst [vmem:[%s15627_s19 + $0x1820] sm:$0xff] %v1816_v4  ;;  %1819 = vst [vmem:[%s15627_s19 + $0x1828] sm:$0xff] %v1818_v5  ;;  %v1822_v7 = vld [vmem:[%s15622_s18 + $0x3038] sm:$0xff]  ;;  %v1824_v8 = vld [vmem:[%s15622_s18 + $0x3080] sm:$0xff] }
 0x196   : > { %1821 = vst [vmem:[%s15627_s19 + $0x1830] sm:$0xff] %v1820_v6  ;;  %1823 = vst [vmem:[%s15627_s19 + $0x1838] sm:$0xff] %v1822_v7  ;;  %v1826_v9 = vld [vmem:[%s15622_s18 + $0x3088] sm:$0xff]  ;;  %v1828_v10 = vld [vmem:[%s15622_s18 + $0x3090] sm:$0xff] }
 0x197   : > { %1825 = vst [vmem:[%s15627_s19 + $0x1840] sm:$0xff] %v1824_v8  ;;  %v1830_v11 = vld [vmem:[%s15622_s18 + $0x3098] sm:$0xff]  ;;  %1827 = vst [vmem:[%s15627_s19 + $0x1848] sm:$0xff] %v1826_v9  ;;  %v1832_v12 = vld [vmem:[%s15622_s18 + $0x30a0] sm:$0xff] }
 0x198   : > { %1829 = vst [vmem:[%s15627_s19 + $0x1850] sm:$0xff] %v1828_v10  ;;  %1831 = vst [vmem:[%s15627_s19 + $0x1858] sm:$0xff] %v1830_v11  ;;  %v1834_v13 = vld [vmem:[%s15622_s18 + $0x30a8] sm:$0xff]  ;;  %v1836_v14 = vld [vmem:[%s15622_s18 + $0x30b0] sm:$0xff] }
 0x199   : > { %1833 = vst [vmem:[%s15627_s19 + $0x1860] sm:$0xff] %v1832_v12  ;;  %1835 = vst [vmem:[%s15627_s19 + $0x1868] sm:$0xff] %v1834_v13  ;;  %v1838_v15 = vld [vmem:[%s15622_s18 + $0x30b8] sm:$0xff]  ;;  %v1840_v16 = vld [vmem:[%s15622_s18 + $0x3100] sm:$0xff] }
 0x19a   : > { %1837 = vst [vmem:[%s15627_s19 + $0x1870] sm:$0xff] %v1836_v14  ;;  %v1842_v17 = vld [vmem:[%s15622_s18 + $0x3108] sm:$0xff]  ;;  %1839 = vst [vmem:[%s15627_s19 + $0x1878] sm:$0xff] %v1838_v15  ;;  %v1844_v18 = vld [vmem:[%s15622_s18 + $0x3110] sm:$0xff] }
 0x19b   : > { %1841 = vst [vmem:[%s15627_s19 + $0x1880] sm:$0xff] %v1840_v16  ;;  %1843 = vst [vmem:[%s15627_s19 + $0x1888] sm:$0xff] %v1842_v17  ;;  %v1846_v19 = vld [vmem:[%s15622_s18 + $0x3118] sm:$0xff]  ;;  %v1848_v20 = vld [vmem:[%s15622_s18 + $0x3120] sm:$0xff] }
 0x19c   : > { %1845 = vst [vmem:[%s15627_s19 + $0x1890] sm:$0xff] %v1844_v18  ;;  %1847 = vst [vmem:[%s15627_s19 + $0x1898] sm:$0xff] %v1846_v19  ;;  %v1850_v21 = vld [vmem:[%s15622_s18 + $0x3128] sm:$0xff]  ;;  %v1852_v22 = vld [vmem:[%s15622_s18 + $0x3130] sm:$0xff] }
 0x19d   : > { %1849 = vst [vmem:[%s15627_s19 + $0x18a0] sm:$0xff] %v1848_v20  ;;  %v1854_v23 = vld [vmem:[%s15622_s18 + $0x3138] sm:$0xff]  ;;  %1851 = vst [vmem:[%s15627_s19 + $0x18a8] sm:$0xff] %v1850_v21  ;;  %v1856_v24 = vld [vmem:[%s15622_s18 + $0x3180] sm:$0xff] }
 0x19e   : > { %1853 = vst [vmem:[%s15627_s19 + $0x18b0] sm:$0xff] %v1852_v22  ;;  %1855 = vst [vmem:[%s15627_s19 + $0x18b8] sm:$0xff] %v1854_v23  ;;  %v1858_v25 = vld [vmem:[%s15622_s18 + $0x3188] sm:$0xff]  ;;  %v1860_v26 = vld [vmem:[%s15622_s18 + $0x3190] sm:$0xff] }
 0x19f   : > { %1857 = vst [vmem:[%s15627_s19 + $0x18c0] sm:$0xff] %v1856_v24  ;;  %1859 = vst [vmem:[%s15627_s19 + $0x18c8] sm:$0xff] %v1858_v25  ;;  %v1862_v27 = vld [vmem:[%s15622_s18 + $0x3198] sm:$0xff]  ;;  %v1864_v28 = vld [vmem:[%s15622_s18 + $0x31a0] sm:$0xff] }
 0x1a0   : > { %1861 = vst [vmem:[%s15627_s19 + $0x18d0] sm:$0xff] %v1860_v26  ;;  %v1866_v29 = vld [vmem:[%s15622_s18 + $0x31a8] sm:$0xff]  ;;  %1863 = vst [vmem:[%s15627_s19 + $0x18d8] sm:$0xff] %v1862_v27  ;;  %v1868_v30 = vld [vmem:[%s15622_s18 + $0x31b0] sm:$0xff] }
 0x1a1   : > { %1865 = vst [vmem:[%s15627_s19 + $0x18e0] sm:$0xff] %v1864_v28  ;;  %1867 = vst [vmem:[%s15627_s19 + $0x18e8] sm:$0xff] %v1866_v29  ;;  %v1870_v31 = vld [vmem:[%s15622_s18 + $0x31b8] sm:$0xff]  ;;  %v1872_v32 = vld [vmem:[%s15622_s18 + $0x3200] sm:$0xff] }
 0x1a2   : > { %1869 = vst [vmem:[%s15627_s19 + $0x18f0] sm:$0xff] %v1868_v30  ;;  %1871 = vst [vmem:[%s15627_s19 + $0x18f8] sm:$0xff] %v1870_v31  ;;  %v1874_v33 = vld [vmem:[%s15622_s18 + $0x3208] sm:$0xff]  ;;  %v1876_v34 = vld [vmem:[%s15622_s18 + $0x3210] sm:$0xff] }
 0x1a3   : > { %1873 = vst [vmem:[%s15627_s19 + $0x1900] sm:$0xff] %v1872_v32  ;;  %v1878_v35 = vld [vmem:[%s15622_s18 + $0x3218] sm:$0xff]  ;;  %1875 = vst [vmem:[%s15627_s19 + $0x1908] sm:$0xff] %v1874_v33  ;;  %v1880_v36 = vld [vmem:[%s15622_s18 + $0x3220] sm:$0xff] }
 0x1a4   : > { %1877 = vst [vmem:[%s15627_s19 + $0x1910] sm:$0xff] %v1876_v34  ;;  %1879 = vst [vmem:[%s15627_s19 + $0x1918] sm:$0xff] %v1878_v35  ;;  %v1882_v37 = vld [vmem:[%s15622_s18 + $0x3228] sm:$0xff]  ;;  %v1884_v38 = vld [vmem:[%s15622_s18 + $0x3230] sm:$0xff] }
 0x1a5   : > { %1881 = vst [vmem:[%s15627_s19 + $0x1920] sm:$0xff] %v1880_v36  ;;  %1883 = vst [vmem:[%s15627_s19 + $0x1928] sm:$0xff] %v1882_v37  ;;  %v1886_v39 = vld [vmem:[%s15622_s18 + $0x3238] sm:$0xff]  ;;  %v1888_v40 = vld [vmem:[%s15622_s18 + $0x3280] sm:$0xff] }
 0x1a6   : > { %1885 = vst [vmem:[%s15627_s19 + $0x1930] sm:$0xff] %v1884_v38  ;;  %v1890_v41 = vld [vmem:[%s15622_s18 + $0x3288] sm:$0xff]  ;;  %1887 = vst [vmem:[%s15627_s19 + $0x1938] sm:$0xff] %v1886_v39  ;;  %v1892_v42 = vld [vmem:[%s15622_s18 + $0x3290] sm:$0xff] }
 0x1a7   : > { %1889 = vst [vmem:[%s15627_s19 + $0x1940] sm:$0xff] %v1888_v40  ;;  %1891 = vst [vmem:[%s15627_s19 + $0x1948] sm:$0xff] %v1890_v41  ;;  %v1894_v43 = vld [vmem:[%s15622_s18 + $0x3298] sm:$0xff]  ;;  %v1896_v44 = vld [vmem:[%s15622_s18 + $0x32a0] sm:$0xff] }
 0x1a8   : > { %1893 = vst [vmem:[%s15627_s19 + $0x1950] sm:$0xff] %v1892_v42  ;;  %1895 = vst [vmem:[%s15627_s19 + $0x1958] sm:$0xff] %v1894_v43  ;;  %v1898_v45 = vld [vmem:[%s15622_s18 + $0x32a8] sm:$0xff]  ;;  %v1900_v46 = vld [vmem:[%s15622_s18 + $0x32b0] sm:$0xff] }
 0x1a9   : > { %1897 = vst [vmem:[%s15627_s19 + $0x1960] sm:$0xff] %v1896_v44  ;;  %v1902_v47 = vld [vmem:[%s15622_s18 + $0x32b8] sm:$0xff]  ;;  %1899 = vst [vmem:[%s15627_s19 + $0x1968] sm:$0xff] %v1898_v45  ;;  %v1904_v48 = vld [vmem:[%s15622_s18 + $0x3300] sm:$0xff] }
 0x1aa   : > { %1901 = vst [vmem:[%s15627_s19 + $0x1970] sm:$0xff] %v1900_v46  ;;  %1903 = vst [vmem:[%s15627_s19 + $0x1978] sm:$0xff] %v1902_v47  ;;  %v1906_v49 = vld [vmem:[%s15622_s18 + $0x3308] sm:$0xff]  ;;  %v1908_v50 = vld [vmem:[%s15622_s18 + $0x3310] sm:$0xff] }
 0x1ab   : > { %1905 = vst [vmem:[%s15627_s19 + $0x1980] sm:$0xff] %v1904_v48  ;;  %1907 = vst [vmem:[%s15627_s19 + $0x1988] sm:$0xff] %v1906_v49  ;;  %v1910_v51 = vld [vmem:[%s15622_s18 + $0x3318] sm:$0xff]  ;;  %v1912_v52 = vld [vmem:[%s15622_s18 + $0x3320] sm:$0xff] }
 0x1ac   : > { %1909 = vst [vmem:[%s15627_s19 + $0x1990] sm:$0xff] %v1908_v50  ;;  %v1914_v53 = vld [vmem:[%s15622_s18 + $0x3328] sm:$0xff]  ;;  %1911 = vst [vmem:[%s15627_s19 + $0x1998] sm:$0xff] %v1910_v51  ;;  %v1916_v54 = vld [vmem:[%s15622_s18 + $0x3330] sm:$0xff] }
 0x1ad   : > { %1913 = vst [vmem:[%s15627_s19 + $0x19a0] sm:$0xff] %v1912_v52  ;;  %1915 = vst [vmem:[%s15627_s19 + $0x19a8] sm:$0xff] %v1914_v53  ;;  %v1918_v55 = vld [vmem:[%s15622_s18 + $0x3338] sm:$0xff]  ;;  %v1920_v56 = vld [vmem:[%s15622_s18 + $0x3380] sm:$0xff] }
 0x1ae   : > { %1917 = vst [vmem:[%s15627_s19 + $0x19b0] sm:$0xff] %v1916_v54  ;;  %1919 = vst [vmem:[%s15627_s19 + $0x19b8] sm:$0xff] %v1918_v55  ;;  %v1922_v57 = vld [vmem:[%s15622_s18 + $0x3388] sm:$0xff]  ;;  %v1924_v58 = vld [vmem:[%s15622_s18 + $0x3390] sm:$0xff] }
 0x1af   : > { %1921 = vst [vmem:[%s15627_s19 + $0x19c0] sm:$0xff] %v1920_v56  ;;  %v1926_v59 = vld [vmem:[%s15622_s18 + $0x3398] sm:$0xff]  ;;  %1923 = vst [vmem:[%s15627_s19 + $0x19c8] sm:$0xff] %v1922_v57  ;;  %v1928_v60 = vld [vmem:[%s15622_s18 + $0x33a0] sm:$0xff] }
 0x1b0   : > { %1925 = vst [vmem:[%s15627_s19 + $0x19d0] sm:$0xff] %v1924_v58  ;;  %1927 = vst [vmem:[%s15627_s19 + $0x19d8] sm:$0xff] %v1926_v59  ;;  %v1930_v61 = vld [vmem:[%s15622_s18 + $0x33a8] sm:$0xff]  ;;  %v1932_v62 = vld [vmem:[%s15622_s18 + $0x33b0] sm:$0xff] }
 0x1b1   : > { %1929 = vst [vmem:[%s15627_s19 + $0x19e0] sm:$0xff] %v1928_v60  ;;  %1931 = vst [vmem:[%s15627_s19 + $0x19e8] sm:$0xff] %v1930_v61  ;;  %v1934_v63 = vld [vmem:[%s15622_s18 + $0x33b8] sm:$0xff]  ;;  %v1936_v0 = vld [vmem:[%s15622_s18 + $0x3400] sm:$0xff] }
 0x1b2   : > { %1933 = vst [vmem:[%s15627_s19 + $0x19f0] sm:$0xff] %v1932_v62  ;;  %v1938_v1 = vld [vmem:[%s15622_s18 + $0x3408] sm:$0xff]  ;;  %1935 = vst [vmem:[%s15627_s19 + $0x19f8] sm:$0xff] %v1934_v63  ;;  %v1940_v2 = vld [vmem:[%s15622_s18 + $0x3410] sm:$0xff] }
 0x1b3   : > { %1937 = vst [vmem:[%s15627_s19 + $0x1a00] sm:$0xff] %v1936_v0  ;;  %1939 = vst [vmem:[%s15627_s19 + $0x1a08] sm:$0xff] %v1938_v1  ;;  %v1942_v3 = vld [vmem:[%s15622_s18 + $0x3418] sm:$0xff]  ;;  %v1944_v4 = vld [vmem:[%s15622_s18 + $0x3420] sm:$0xff] }
 0x1b4   : > { %1941 = vst [vmem:[%s15627_s19 + $0x1a10] sm:$0xff] %v1940_v2  ;;  %1943 = vst [vmem:[%s15627_s19 + $0x1a18] sm:$0xff] %v1942_v3  ;;  %v1946_v5 = vld [vmem:[%s15622_s18 + $0x3428] sm:$0xff]  ;;  %v1948_v6 = vld [vmem:[%s15622_s18 + $0x3430] sm:$0xff] }
 0x1b5   : > { %1945 = vst [vmem:[%s15627_s19 + $0x1a20] sm:$0xff] %v1944_v4  ;;  %v1950_v7 = vld [vmem:[%s15622_s18 + $0x3438] sm:$0xff]  ;;  %1947 = vst [vmem:[%s15627_s19 + $0x1a28] sm:$0xff] %v1946_v5  ;;  %v1952_v8 = vld [vmem:[%s15622_s18 + $0x3480] sm:$0xff] }
 0x1b6   : > { %1949 = vst [vmem:[%s15627_s19 + $0x1a30] sm:$0xff] %v1948_v6  ;;  %1951 = vst [vmem:[%s15627_s19 + $0x1a38] sm:$0xff] %v1950_v7  ;;  %v1954_v9 = vld [vmem:[%s15622_s18 + $0x3488] sm:$0xff]  ;;  %v1956_v10 = vld [vmem:[%s15622_s18 + $0x3490] sm:$0xff] }
 0x1b7   : > { %1953 = vst [vmem:[%s15627_s19 + $0x1a40] sm:$0xff] %v1952_v8  ;;  %1955 = vst [vmem:[%s15627_s19 + $0x1a48] sm:$0xff] %v1954_v9  ;;  %v1958_v11 = vld [vmem:[%s15622_s18 + $0x3498] sm:$0xff]  ;;  %v1960_v12 = vld [vmem:[%s15622_s18 + $0x34a0] sm:$0xff] }
 0x1b8   : > { %1957 = vst [vmem:[%s15627_s19 + $0x1a50] sm:$0xff] %v1956_v10  ;;  %v1962_v13 = vld [vmem:[%s15622_s18 + $0x34a8] sm:$0xff]  ;;  %1959 = vst [vmem:[%s15627_s19 + $0x1a58] sm:$0xff] %v1958_v11  ;;  %v1964_v14 = vld [vmem:[%s15622_s18 + $0x34b0] sm:$0xff] }
 0x1b9   : > { %1961 = vst [vmem:[%s15627_s19 + $0x1a60] sm:$0xff] %v1960_v12  ;;  %1963 = vst [vmem:[%s15627_s19 + $0x1a68] sm:$0xff] %v1962_v13  ;;  %v1966_v15 = vld [vmem:[%s15622_s18 + $0x34b8] sm:$0xff]  ;;  %v1968_v16 = vld [vmem:[%s15622_s18 + $0x3500] sm:$0xff] }
 0x1ba   : > { %1965 = vst [vmem:[%s15627_s19 + $0x1a70] sm:$0xff] %v1964_v14  ;;  %1967 = vst [vmem:[%s15627_s19 + $0x1a78] sm:$0xff] %v1966_v15  ;;  %v1970_v17 = vld [vmem:[%s15622_s18 + $0x3508] sm:$0xff]  ;;  %v1972_v18 = vld [vmem:[%s15622_s18 + $0x3510] sm:$0xff] }
 0x1bb   : > { %1969 = vst [vmem:[%s15627_s19 + $0x1a80] sm:$0xff] %v1968_v16  ;;  %v1974_v19 = vld [vmem:[%s15622_s18 + $0x3518] sm:$0xff]  ;;  %1971 = vst [vmem:[%s15627_s19 + $0x1a88] sm:$0xff] %v1970_v17  ;;  %v1976_v20 = vld [vmem:[%s15622_s18 + $0x3520] sm:$0xff] }
 0x1bc   : > { %1973 = vst [vmem:[%s15627_s19 + $0x1a90] sm:$0xff] %v1972_v18  ;;  %1975 = vst [vmem:[%s15627_s19 + $0x1a98] sm:$0xff] %v1974_v19  ;;  %v1978_v21 = vld [vmem:[%s15622_s18 + $0x3528] sm:$0xff]  ;;  %v1980_v22 = vld [vmem:[%s15622_s18 + $0x3530] sm:$0xff] }
 0x1bd   : > { %1977 = vst [vmem:[%s15627_s19 + $0x1aa0] sm:$0xff] %v1976_v20  ;;  %1979 = vst [vmem:[%s15627_s19 + $0x1aa8] sm:$0xff] %v1978_v21  ;;  %v1982_v23 = vld [vmem:[%s15622_s18 + $0x3538] sm:$0xff]  ;;  %v1984_v24 = vld [vmem:[%s15622_s18 + $0x3580] sm:$0xff] }
 0x1be   : > { %1981 = vst [vmem:[%s15627_s19 + $0x1ab0] sm:$0xff] %v1980_v22  ;;  %v1986_v25 = vld [vmem:[%s15622_s18 + $0x3588] sm:$0xff]  ;;  %1983 = vst [vmem:[%s15627_s19 + $0x1ab8] sm:$0xff] %v1982_v23  ;;  %v1988_v26 = vld [vmem:[%s15622_s18 + $0x3590] sm:$0xff] }
 0x1bf   : > { %1985 = vst [vmem:[%s15627_s19 + $0x1ac0] sm:$0xff] %v1984_v24  ;;  %1987 = vst [vmem:[%s15627_s19 + $0x1ac8] sm:$0xff] %v1986_v25  ;;  %v1990_v27 = vld [vmem:[%s15622_s18 + $0x3598] sm:$0xff]  ;;  %v1992_v28 = vld [vmem:[%s15622_s18 + $0x35a0] sm:$0xff] }
 0x1c0   : > { %1989 = vst [vmem:[%s15627_s19 + $0x1ad0] sm:$0xff] %v1988_v26  ;;  %1991 = vst [vmem:[%s15627_s19 + $0x1ad8] sm:$0xff] %v1990_v27  ;;  %v1994_v29 = vld [vmem:[%s15622_s18 + $0x35a8] sm:$0xff]  ;;  %v1996_v30 = vld [vmem:[%s15622_s18 + $0x35b0] sm:$0xff] }
 0x1c1   : > { %1993 = vst [vmem:[%s15627_s19 + $0x1ae0] sm:$0xff] %v1992_v28  ;;  %v1998_v31 = vld [vmem:[%s15622_s18 + $0x35b8] sm:$0xff]  ;;  %1995 = vst [vmem:[%s15627_s19 + $0x1ae8] sm:$0xff] %v1994_v29  ;;  %v2000_v32 = vld [vmem:[%s15622_s18 + $0x3600] sm:$0xff] }
 0x1c2   : > { %1997 = vst [vmem:[%s15627_s19 + $0x1af0] sm:$0xff] %v1996_v30  ;;  %1999 = vst [vmem:[%s15627_s19 + $0x1af8] sm:$0xff] %v1998_v31  ;;  %v2002_v33 = vld [vmem:[%s15622_s18 + $0x3608] sm:$0xff]  ;;  %v2004_v34 = vld [vmem:[%s15622_s18 + $0x3610] sm:$0xff] }
 0x1c3   : > { %2001 = vst [vmem:[%s15627_s19 + $0x1b00] sm:$0xff] %v2000_v32  ;;  %2003 = vst [vmem:[%s15627_s19 + $0x1b08] sm:$0xff] %v2002_v33  ;;  %v2006_v35 = vld [vmem:[%s15622_s18 + $0x3618] sm:$0xff]  ;;  %v2008_v36 = vld [vmem:[%s15622_s18 + $0x3620] sm:$0xff] }
 0x1c4   : > { %2005 = vst [vmem:[%s15627_s19 + $0x1b10] sm:$0xff] %v2004_v34  ;;  %v2010_v37 = vld [vmem:[%s15622_s18 + $0x3628] sm:$0xff]  ;;  %2007 = vst [vmem:[%s15627_s19 + $0x1b18] sm:$0xff] %v2006_v35  ;;  %v2012_v38 = vld [vmem:[%s15622_s18 + $0x3630] sm:$0xff] }
 0x1c5   : > { %2009 = vst [vmem:[%s15627_s19 + $0x1b20] sm:$0xff] %v2008_v36  ;;  %2011 = vst [vmem:[%s15627_s19 + $0x1b28] sm:$0xff] %v2010_v37  ;;  %v2014_v39 = vld [vmem:[%s15622_s18 + $0x3638] sm:$0xff]  ;;  %v2016_v40 = vld [vmem:[%s15622_s18 + $0x3680] sm:$0xff] }
 0x1c6   : > { %2013 = vst [vmem:[%s15627_s19 + $0x1b30] sm:$0xff] %v2012_v38  ;;  %2015 = vst [vmem:[%s15627_s19 + $0x1b38] sm:$0xff] %v2014_v39  ;;  %v2018_v41 = vld [vmem:[%s15622_s18 + $0x3688] sm:$0xff]  ;;  %v2020_v42 = vld [vmem:[%s15622_s18 + $0x3690] sm:$0xff] }
 0x1c7   : > { %2017 = vst [vmem:[%s15627_s19 + $0x1b40] sm:$0xff] %v2016_v40  ;;  %v2022_v43 = vld [vmem:[%s15622_s18 + $0x3698] sm:$0xff]  ;;  %2019 = vst [vmem:[%s15627_s19 + $0x1b48] sm:$0xff] %v2018_v41  ;;  %v2024_v44 = vld [vmem:[%s15622_s18 + $0x36a0] sm:$0xff] }
 0x1c8   : > { %2021 = vst [vmem:[%s15627_s19 + $0x1b50] sm:$0xff] %v2020_v42  ;;  %2023 = vst [vmem:[%s15627_s19 + $0x1b58] sm:$0xff] %v2022_v43  ;;  %v2026_v45 = vld [vmem:[%s15622_s18 + $0x36a8] sm:$0xff]  ;;  %v2028_v46 = vld [vmem:[%s15622_s18 + $0x36b0] sm:$0xff] }
 0x1c9   : > { %2025 = vst [vmem:[%s15627_s19 + $0x1b60] sm:$0xff] %v2024_v44  ;;  %2027 = vst [vmem:[%s15627_s19 + $0x1b68] sm:$0xff] %v2026_v45  ;;  %v2030_v47 = vld [vmem:[%s15622_s18 + $0x36b8] sm:$0xff]  ;;  %v2032_v48 = vld [vmem:[%s15622_s18 + $0x3700] sm:$0xff] }
 0x1ca   : > { %2029 = vst [vmem:[%s15627_s19 + $0x1b70] sm:$0xff] %v2028_v46  ;;  %v2034_v49 = vld [vmem:[%s15622_s18 + $0x3708] sm:$0xff]  ;;  %2031 = vst [vmem:[%s15627_s19 + $0x1b78] sm:$0xff] %v2030_v47  ;;  %v2036_v50 = vld [vmem:[%s15622_s18 + $0x3710] sm:$0xff] }
 0x1cb   : > { %2033 = vst [vmem:[%s15627_s19 + $0x1b80] sm:$0xff] %v2032_v48  ;;  %2035 = vst [vmem:[%s15627_s19 + $0x1b88] sm:$0xff] %v2034_v49  ;;  %v2038_v51 = vld [vmem:[%s15622_s18 + $0x3718] sm:$0xff]  ;;  %v2040_v52 = vld [vmem:[%s15622_s18 + $0x3720] sm:$0xff] }
 0x1cc   : > { %2037 = vst [vmem:[%s15627_s19 + $0x1b90] sm:$0xff] %v2036_v50  ;;  %2039 = vst [vmem:[%s15627_s19 + $0x1b98] sm:$0xff] %v2038_v51  ;;  %v2042_v53 = vld [vmem:[%s15622_s18 + $0x3728] sm:$0xff]  ;;  %v2044_v54 = vld [vmem:[%s15622_s18 + $0x3730] sm:$0xff] }
 0x1cd   : > { %2041 = vst [vmem:[%s15627_s19 + $0x1ba0] sm:$0xff] %v2040_v52  ;;  %v2046_v55 = vld [vmem:[%s15622_s18 + $0x3738] sm:$0xff]  ;;  %2043 = vst [vmem:[%s15627_s19 + $0x1ba8] sm:$0xff] %v2042_v53  ;;  %v2048_v56 = vld [vmem:[%s15622_s18 + $0x3780] sm:$0xff] }
 0x1ce   : > { %2045 = vst [vmem:[%s15627_s19 + $0x1bb0] sm:$0xff] %v2044_v54  ;;  %2047 = vst [vmem:[%s15627_s19 + $0x1bb8] sm:$0xff] %v2046_v55  ;;  %v2050_v57 = vld [vmem:[%s15622_s18 + $0x3788] sm:$0xff]  ;;  %v2052_v58 = vld [vmem:[%s15622_s18 + $0x3790] sm:$0xff] }
 0x1cf   : > { %2049 = vst [vmem:[%s15627_s19 + $0x1bc0] sm:$0xff] %v2048_v56  ;;  %2051 = vst [vmem:[%s15627_s19 + $0x1bc8] sm:$0xff] %v2050_v57  ;;  %v2054_v59 = vld [vmem:[%s15622_s18 + $0x3798] sm:$0xff]  ;;  %v2056_v60 = vld [vmem:[%s15622_s18 + $0x37a0] sm:$0xff] }
 0x1d0   : > { %2053 = vst [vmem:[%s15627_s19 + $0x1bd0] sm:$0xff] %v2052_v58  ;;  %v2058_v61 = vld [vmem:[%s15622_s18 + $0x37a8] sm:$0xff]  ;;  %2055 = vst [vmem:[%s15627_s19 + $0x1bd8] sm:$0xff] %v2054_v59  ;;  %v2060_v62 = vld [vmem:[%s15622_s18 + $0x37b0] sm:$0xff] }
 0x1d1   : > { %2057 = vst [vmem:[%s15627_s19 + $0x1be0] sm:$0xff] %v2056_v60  ;;  %2059 = vst [vmem:[%s15627_s19 + $0x1be8] sm:$0xff] %v2058_v61  ;;  %v2062_v63 = vld [vmem:[%s15622_s18 + $0x37b8] sm:$0xff]  ;;  %v2064_v0 = vld [vmem:[%s15622_s18 + $0x3800] sm:$0xff] }
 0x1d2   : > { %2061 = vst [vmem:[%s15627_s19 + $0x1bf0] sm:$0xff] %v2060_v62  ;;  %2063 = vst [vmem:[%s15627_s19 + $0x1bf8] sm:$0xff] %v2062_v63  ;;  %v2066_v1 = vld [vmem:[%s15622_s18 + $0x3808] sm:$0xff]  ;;  %v2068_v2 = vld [vmem:[%s15622_s18 + $0x3810] sm:$0xff] }
 0x1d3   : > { %2065 = vst [vmem:[%s15627_s19 + $0x1c00] sm:$0xff] %v2064_v0  ;;  %v2070_v3 = vld [vmem:[%s15622_s18 + $0x3818] sm:$0xff]  ;;  %2067 = vst [vmem:[%s15627_s19 + $0x1c08] sm:$0xff] %v2066_v1  ;;  %v2072_v4 = vld [vmem:[%s15622_s18 + $0x3820] sm:$0xff] }
 0x1d4   : > { %2069 = vst [vmem:[%s15627_s19 + $0x1c10] sm:$0xff] %v2068_v2  ;;  %2071 = vst [vmem:[%s15627_s19 + $0x1c18] sm:$0xff] %v2070_v3  ;;  %v2074_v5 = vld [vmem:[%s15622_s18 + $0x3828] sm:$0xff]  ;;  %v2076_v6 = vld [vmem:[%s15622_s18 + $0x3830] sm:$0xff] }
 0x1d5   : > { %2073 = vst [vmem:[%s15627_s19 + $0x1c20] sm:$0xff] %v2072_v4  ;;  %2075 = vst [vmem:[%s15627_s19 + $0x1c28] sm:$0xff] %v2074_v5  ;;  %v2078_v7 = vld [vmem:[%s15622_s18 + $0x3838] sm:$0xff]  ;;  %v2080_v8 = vld [vmem:[%s15622_s18 + $0x3880] sm:$0xff] }
 0x1d6   : > { %2077 = vst [vmem:[%s15627_s19 + $0x1c30] sm:$0xff] %v2076_v6  ;;  %v2082_v9 = vld [vmem:[%s15622_s18 + $0x3888] sm:$0xff]  ;;  %2079 = vst [vmem:[%s15627_s19 + $0x1c38] sm:$0xff] %v2078_v7  ;;  %v2084_v10 = vld [vmem:[%s15622_s18 + $0x3890] sm:$0xff] }
 0x1d7   : > { %2081 = vst [vmem:[%s15627_s19 + $0x1c40] sm:$0xff] %v2080_v8  ;;  %2083 = vst [vmem:[%s15627_s19 + $0x1c48] sm:$0xff] %v2082_v9  ;;  %v2086_v11 = vld [vmem:[%s15622_s18 + $0x3898] sm:$0xff]  ;;  %v2088_v12 = vld [vmem:[%s15622_s18 + $0x38a0] sm:$0xff] }
 0x1d8   : > { %2085 = vst [vmem:[%s15627_s19 + $0x1c50] sm:$0xff] %v2084_v10  ;;  %2087 = vst [vmem:[%s15627_s19 + $0x1c58] sm:$0xff] %v2086_v11  ;;  %v2090_v13 = vld [vmem:[%s15622_s18 + $0x38a8] sm:$0xff]  ;;  %v2092_v14 = vld [vmem:[%s15622_s18 + $0x38b0] sm:$0xff] }
 0x1d9   : > { %2089 = vst [vmem:[%s15627_s19 + $0x1c60] sm:$0xff] %v2088_v12  ;;  %v2094_v15 = vld [vmem:[%s15622_s18 + $0x38b8] sm:$0xff]  ;;  %2091 = vst [vmem:[%s15627_s19 + $0x1c68] sm:$0xff] %v2090_v13  ;;  %v2096_v16 = vld [vmem:[%s15622_s18 + $0x3900] sm:$0xff] }
 0x1da   : > { %2093 = vst [vmem:[%s15627_s19 + $0x1c70] sm:$0xff] %v2092_v14  ;;  %2095 = vst [vmem:[%s15627_s19 + $0x1c78] sm:$0xff] %v2094_v15  ;;  %v2098_v17 = vld [vmem:[%s15622_s18 + $0x3908] sm:$0xff]  ;;  %v2100_v18 = vld [vmem:[%s15622_s18 + $0x3910] sm:$0xff] }
 0x1db   : > { %2097 = vst [vmem:[%s15627_s19 + $0x1c80] sm:$0xff] %v2096_v16  ;;  %2099 = vst [vmem:[%s15627_s19 + $0x1c88] sm:$0xff] %v2098_v17  ;;  %v2102_v19 = vld [vmem:[%s15622_s18 + $0x3918] sm:$0xff]  ;;  %v2104_v20 = vld [vmem:[%s15622_s18 + $0x3920] sm:$0xff] }
 0x1dc   : > { %2101 = vst [vmem:[%s15627_s19 + $0x1c90] sm:$0xff] %v2100_v18  ;;  %v2106_v21 = vld [vmem:[%s15622_s18 + $0x3928] sm:$0xff]  ;;  %2103 = vst [vmem:[%s15627_s19 + $0x1c98] sm:$0xff] %v2102_v19  ;;  %v2108_v22 = vld [vmem:[%s15622_s18 + $0x3930] sm:$0xff] }
 0x1dd   : > { %2105 = vst [vmem:[%s15627_s19 + $0x1ca0] sm:$0xff] %v2104_v20  ;;  %2107 = vst [vmem:[%s15627_s19 + $0x1ca8] sm:$0xff] %v2106_v21  ;;  %v2110_v23 = vld [vmem:[%s15622_s18 + $0x3938] sm:$0xff]  ;;  %v2112_v24 = vld [vmem:[%s15622_s18 + $0x3980] sm:$0xff] }
 0x1de   : > { %2109 = vst [vmem:[%s15627_s19 + $0x1cb0] sm:$0xff] %v2108_v22  ;;  %2111 = vst [vmem:[%s15627_s19 + $0x1cb8] sm:$0xff] %v2110_v23  ;;  %v2114_v25 = vld [vmem:[%s15622_s18 + $0x3988] sm:$0xff]  ;;  %v2116_v26 = vld [vmem:[%s15622_s18 + $0x3990] sm:$0xff] }
 0x1df   : > { %2113 = vst [vmem:[%s15627_s19 + $0x1cc0] sm:$0xff] %v2112_v24  ;;  %v2118_v27 = vld [vmem:[%s15622_s18 + $0x3998] sm:$0xff]  ;;  %2115 = vst [vmem:[%s15627_s19 + $0x1cc8] sm:$0xff] %v2114_v25  ;;  %v2120_v28 = vld [vmem:[%s15622_s18 + $0x39a0] sm:$0xff] }
 0x1e0   : > { %2117 = vst [vmem:[%s15627_s19 + $0x1cd0] sm:$0xff] %v2116_v26  ;;  %2119 = vst [vmem:[%s15627_s19 + $0x1cd8] sm:$0xff] %v2118_v27  ;;  %v2122_v29 = vld [vmem:[%s15622_s18 + $0x39a8] sm:$0xff]  ;;  %v2124_v30 = vld [vmem:[%s15622_s18 + $0x39b0] sm:$0xff] }
 0x1e1   : > { %2121 = vst [vmem:[%s15627_s19 + $0x1ce0] sm:$0xff] %v2120_v28  ;;  %2123 = vst [vmem:[%s15627_s19 + $0x1ce8] sm:$0xff] %v2122_v29  ;;  %v2126_v31 = vld [vmem:[%s15622_s18 + $0x39b8] sm:$0xff]  ;;  %v2128_v32 = vld [vmem:[%s15622_s18 + $0x3a00] sm:$0xff] }
 0x1e2   : > { %2125 = vst [vmem:[%s15627_s19 + $0x1cf0] sm:$0xff] %v2124_v30  ;;  %v2130_v33 = vld [vmem:[%s15622_s18 + $0x3a08] sm:$0xff]  ;;  %2127 = vst [vmem:[%s15627_s19 + $0x1cf8] sm:$0xff] %v2126_v31  ;;  %v2132_v34 = vld [vmem:[%s15622_s18 + $0x3a10] sm:$0xff] }
 0x1e3   : > { %2129 = vst [vmem:[%s15627_s19 + $0x1d00] sm:$0xff] %v2128_v32  ;;  %2131 = vst [vmem:[%s15627_s19 + $0x1d08] sm:$0xff] %v2130_v33  ;;  %v2134_v35 = vld [vmem:[%s15622_s18 + $0x3a18] sm:$0xff]  ;;  %v2136_v36 = vld [vmem:[%s15622_s18 + $0x3a20] sm:$0xff] }
 0x1e4   : > { %2133 = vst [vmem:[%s15627_s19 + $0x1d10] sm:$0xff] %v2132_v34  ;;  %2135 = vst [vmem:[%s15627_s19 + $0x1d18] sm:$0xff] %v2134_v35  ;;  %v2138_v37 = vld [vmem:[%s15622_s18 + $0x3a28] sm:$0xff]  ;;  %v2140_v38 = vld [vmem:[%s15622_s18 + $0x3a30] sm:$0xff] }
 0x1e5   : > { %2137 = vst [vmem:[%s15627_s19 + $0x1d20] sm:$0xff] %v2136_v36  ;;  %v2142_v39 = vld [vmem:[%s15622_s18 + $0x3a38] sm:$0xff]  ;;  %2139 = vst [vmem:[%s15627_s19 + $0x1d28] sm:$0xff] %v2138_v37  ;;  %v2144_v40 = vld [vmem:[%s15622_s18 + $0x3a80] sm:$0xff] }
 0x1e6   : > { %2141 = vst [vmem:[%s15627_s19 + $0x1d30] sm:$0xff] %v2140_v38  ;;  %2143 = vst [vmem:[%s15627_s19 + $0x1d38] sm:$0xff] %v2142_v39  ;;  %v2146_v41 = vld [vmem:[%s15622_s18 + $0x3a88] sm:$0xff]  ;;  %v2148_v42 = vld [vmem:[%s15622_s18 + $0x3a90] sm:$0xff] }
 0x1e7   : > { %2145 = vst [vmem:[%s15627_s19 + $0x1d40] sm:$0xff] %v2144_v40  ;;  %2147 = vst [vmem:[%s15627_s19 + $0x1d48] sm:$0xff] %v2146_v41  ;;  %v2150_v43 = vld [vmem:[%s15622_s18 + $0x3a98] sm:$0xff]  ;;  %v2152_v44 = vld [vmem:[%s15622_s18 + $0x3aa0] sm:$0xff] }
 0x1e8   : > { %2149 = vst [vmem:[%s15627_s19 + $0x1d50] sm:$0xff] %v2148_v42  ;;  %v2154_v45 = vld [vmem:[%s15622_s18 + $0x3aa8] sm:$0xff]  ;;  %2151 = vst [vmem:[%s15627_s19 + $0x1d58] sm:$0xff] %v2150_v43  ;;  %v2156_v46 = vld [vmem:[%s15622_s18 + $0x3ab0] sm:$0xff] }
 0x1e9   : > { %2153 = vst [vmem:[%s15627_s19 + $0x1d60] sm:$0xff] %v2152_v44  ;;  %2155 = vst [vmem:[%s15627_s19 + $0x1d68] sm:$0xff] %v2154_v45  ;;  %v2158_v47 = vld [vmem:[%s15622_s18 + $0x3ab8] sm:$0xff]  ;;  %v2160_v48 = vld [vmem:[%s15622_s18 + $0x3b00] sm:$0xff] }
 0x1ea   : > { %2157 = vst [vmem:[%s15627_s19 + $0x1d70] sm:$0xff] %v2156_v46  ;;  %2159 = vst [vmem:[%s15627_s19 + $0x1d78] sm:$0xff] %v2158_v47  ;;  %v2162_v49 = vld [vmem:[%s15622_s18 + $0x3b08] sm:$0xff]  ;;  %v2164_v50 = vld [vmem:[%s15622_s18 + $0x3b10] sm:$0xff] }
 0x1eb   : > { %2161 = vst [vmem:[%s15627_s19 + $0x1d80] sm:$0xff] %v2160_v48  ;;  %v2166_v51 = vld [vmem:[%s15622_s18 + $0x3b18] sm:$0xff]  ;;  %2163 = vst [vmem:[%s15627_s19 + $0x1d88] sm:$0xff] %v2162_v49  ;;  %v2168_v52 = vld [vmem:[%s15622_s18 + $0x3b20] sm:$0xff] }
 0x1ec   : > { %2165 = vst [vmem:[%s15627_s19 + $0x1d90] sm:$0xff] %v2164_v50  ;;  %2167 = vst [vmem:[%s15627_s19 + $0x1d98] sm:$0xff] %v2166_v51  ;;  %v2170_v53 = vld [vmem:[%s15622_s18 + $0x3b28] sm:$0xff]  ;;  %v2172_v54 = vld [vmem:[%s15622_s18 + $0x3b30] sm:$0xff] }
 0x1ed   : > { %2169 = vst [vmem:[%s15627_s19 + $0x1da0] sm:$0xff] %v2168_v52  ;;  %2171 = vst [vmem:[%s15627_s19 + $0x1da8] sm:$0xff] %v2170_v53  ;;  %v2174_v55 = vld [vmem:[%s15622_s18 + $0x3b38] sm:$0xff]  ;;  %v2176_v56 = vld [vmem:[%s15622_s18 + $0x3b80] sm:$0xff] }
 0x1ee   : > { %2173 = vst [vmem:[%s15627_s19 + $0x1db0] sm:$0xff] %v2172_v54  ;;  %v2178_v57 = vld [vmem:[%s15622_s18 + $0x3b88] sm:$0xff]  ;;  %2175 = vst [vmem:[%s15627_s19 + $0x1db8] sm:$0xff] %v2174_v55  ;;  %v2180_v58 = vld [vmem:[%s15622_s18 + $0x3b90] sm:$0xff] }
 0x1ef   : > { %2177 = vst [vmem:[%s15627_s19 + $0x1dc0] sm:$0xff] %v2176_v56  ;;  %2179 = vst [vmem:[%s15627_s19 + $0x1dc8] sm:$0xff] %v2178_v57  ;;  %v2182_v59 = vld [vmem:[%s15622_s18 + $0x3b98] sm:$0xff]  ;;  %v2184_v60 = vld [vmem:[%s15622_s18 + $0x3ba0] sm:$0xff] }
 0x1f0   : > { %2181 = vst [vmem:[%s15627_s19 + $0x1dd0] sm:$0xff] %v2180_v58  ;;  %2183 = vst [vmem:[%s15627_s19 + $0x1dd8] sm:$0xff] %v2182_v59  ;;  %v2186_v61 = vld [vmem:[%s15622_s18 + $0x3ba8] sm:$0xff]  ;;  %v2188_v62 = vld [vmem:[%s15622_s18 + $0x3bb0] sm:$0xff] }
 0x1f1   : > { %2185 = vst [vmem:[%s15627_s19 + $0x1de0] sm:$0xff] %v2184_v60  ;;  %v2190_v63 = vld [vmem:[%s15622_s18 + $0x3bb8] sm:$0xff]  ;;  %2187 = vst [vmem:[%s15627_s19 + $0x1de8] sm:$0xff] %v2186_v61  ;;  %v2192_v0 = vld [vmem:[%s15622_s18 + $0x3c00] sm:$0xff] }
 0x1f2   : > { %2189 = vst [vmem:[%s15627_s19 + $0x1df0] sm:$0xff] %v2188_v62  ;;  %2191 = vst [vmem:[%s15627_s19 + $0x1df8] sm:$0xff] %v2190_v63  ;;  %v2194_v1 = vld [vmem:[%s15622_s18 + $0x3c08] sm:$0xff]  ;;  %v2196_v2 = vld [vmem:[%s15622_s18 + $0x3c10] sm:$0xff] }
 0x1f3   : > { %2193 = vst [vmem:[%s15627_s19 + $0x1e00] sm:$0xff] %v2192_v0  ;;  %2195 = vst [vmem:[%s15627_s19 + $0x1e08] sm:$0xff] %v2194_v1  ;;  %v2198_v3 = vld [vmem:[%s15622_s18 + $0x3c18] sm:$0xff]  ;;  %v2200_v4 = vld [vmem:[%s15622_s18 + $0x3c20] sm:$0xff] }
 0x1f4   : > { %2197 = vst [vmem:[%s15627_s19 + $0x1e10] sm:$0xff] %v2196_v2  ;;  %v2202_v5 = vld [vmem:[%s15622_s18 + $0x3c28] sm:$0xff]  ;;  %2199 = vst [vmem:[%s15627_s19 + $0x1e18] sm:$0xff] %v2198_v3  ;;  %v2204_v6 = vld [vmem:[%s15622_s18 + $0x3c30] sm:$0xff] }
 0x1f5   : > { %2201 = vst [vmem:[%s15627_s19 + $0x1e20] sm:$0xff] %v2200_v4  ;;  %2203 = vst [vmem:[%s15627_s19 + $0x1e28] sm:$0xff] %v2202_v5  ;;  %v2206_v7 = vld [vmem:[%s15622_s18 + $0x3c38] sm:$0xff]  ;;  %v2208_v8 = vld [vmem:[%s15622_s18 + $0x3c80] sm:$0xff] }
 0x1f6   : > { %2205 = vst [vmem:[%s15627_s19 + $0x1e30] sm:$0xff] %v2204_v6  ;;  %2207 = vst [vmem:[%s15627_s19 + $0x1e38] sm:$0xff] %v2206_v7  ;;  %v2210_v9 = vld [vmem:[%s15622_s18 + $0x3c88] sm:$0xff]  ;;  %v2212_v10 = vld [vmem:[%s15622_s18 + $0x3c90] sm:$0xff] }
 0x1f7   : > { %2209 = vst [vmem:[%s15627_s19 + $0x1e40] sm:$0xff] %v2208_v8  ;;  %v2214_v11 = vld [vmem:[%s15622_s18 + $0x3c98] sm:$0xff]  ;;  %2211 = vst [vmem:[%s15627_s19 + $0x1e48] sm:$0xff] %v2210_v9  ;;  %v2216_v12 = vld [vmem:[%s15622_s18 + $0x3ca0] sm:$0xff] }
 0x1f8   : > { %2213 = vst [vmem:[%s15627_s19 + $0x1e50] sm:$0xff] %v2212_v10  ;;  %2215 = vst [vmem:[%s15627_s19 + $0x1e58] sm:$0xff] %v2214_v11  ;;  %v2218_v13 = vld [vmem:[%s15622_s18 + $0x3ca8] sm:$0xff]  ;;  %v2220_v14 = vld [vmem:[%s15622_s18 + $0x3cb0] sm:$0xff] }
 0x1f9   : > { %2217 = vst [vmem:[%s15627_s19 + $0x1e60] sm:$0xff] %v2216_v12  ;;  %2219 = vst [vmem:[%s15627_s19 + $0x1e68] sm:$0xff] %v2218_v13  ;;  %v2222_v15 = vld [vmem:[%s15622_s18 + $0x3cb8] sm:$0xff]  ;;  %v2224_v16 = vld [vmem:[%s15622_s18 + $0x3d00] sm:$0xff] }
 0x1fa   : > { %2221 = vst [vmem:[%s15627_s19 + $0x1e70] sm:$0xff] %v2220_v14  ;;  %v2226_v17 = vld [vmem:[%s15622_s18 + $0x3d08] sm:$0xff]  ;;  %2223 = vst [vmem:[%s15627_s19 + $0x1e78] sm:$0xff] %v2222_v15  ;;  %v2228_v18 = vld [vmem:[%s15622_s18 + $0x3d10] sm:$0xff] }
 0x1fb   : > { %2225 = vst [vmem:[%s15627_s19 + $0x1e80] sm:$0xff] %v2224_v16  ;;  %2227 = vst [vmem:[%s15627_s19 + $0x1e88] sm:$0xff] %v2226_v17  ;;  %v2230_v19 = vld [vmem:[%s15622_s18 + $0x3d18] sm:$0xff]  ;;  %v2232_v20 = vld [vmem:[%s15622_s18 + $0x3d20] sm:$0xff] }
 0x1fc   : > { %2229 = vst [vmem:[%s15627_s19 + $0x1e90] sm:$0xff] %v2228_v18  ;;  %2231 = vst [vmem:[%s15627_s19 + $0x1e98] sm:$0xff] %v2230_v19  ;;  %v2234_v21 = vld [vmem:[%s15622_s18 + $0x3d28] sm:$0xff]  ;;  %v2236_v22 = vld [vmem:[%s15622_s18 + $0x3d30] sm:$0xff] }
 0x1fd   : > { %2233 = vst [vmem:[%s15627_s19 + $0x1ea0] sm:$0xff] %v2232_v20  ;;  %v2238_v23 = vld [vmem:[%s15622_s18 + $0x3d38] sm:$0xff]  ;;  %2235 = vst [vmem:[%s15627_s19 + $0x1ea8] sm:$0xff] %v2234_v21  ;;  %v2240_v24 = vld [vmem:[%s15622_s18 + $0x3d80] sm:$0xff] }
 0x1fe   : > { %2237 = vst [vmem:[%s15627_s19 + $0x1eb0] sm:$0xff] %v2236_v22  ;;  %2239 = vst [vmem:[%s15627_s19 + $0x1eb8] sm:$0xff] %v2238_v23  ;;  %v2242_v25 = vld [vmem:[%s15622_s18 + $0x3d88] sm:$0xff]  ;;  %v2244_v26 = vld [vmem:[%s15622_s18 + $0x3d90] sm:$0xff] }
 0x1ff   : > { %2241 = vst [vmem:[%s15627_s19 + $0x1ec0] sm:$0xff] %v2240_v24  ;;  %2243 = vst [vmem:[%s15627_s19 + $0x1ec8] sm:$0xff] %v2242_v25  ;;  %v2246_v27 = vld [vmem:[%s15622_s18 + $0x3d98] sm:$0xff]  ;;  %v2248_v28 = vld [vmem:[%s15622_s18 + $0x3da0] sm:$0xff] }
 0x200   : > { %2245 = vst [vmem:[%s15627_s19 + $0x1ed0] sm:$0xff] %v2244_v26  ;;  %v2250_v29 = vld [vmem:[%s15622_s18 + $0x3da8] sm:$0xff]  ;;  %2247 = vst [vmem:[%s15627_s19 + $0x1ed8] sm:$0xff] %v2246_v27  ;;  %v2252_v30 = vld [vmem:[%s15622_s18 + $0x3db0] sm:$0xff] }
 0x201   : > { %2249 = vst [vmem:[%s15627_s19 + $0x1ee0] sm:$0xff] %v2248_v28  ;;  %2251 = vst [vmem:[%s15627_s19 + $0x1ee8] sm:$0xff] %v2250_v29  ;;  %v2254_v31 = vld [vmem:[%s15622_s18 + $0x3db8] sm:$0xff]  ;;  %v2256_v32 = vld [vmem:[%s15622_s18 + $0x3e00] sm:$0xff] }
 0x202   : > { %2253 = vst [vmem:[%s15627_s19 + $0x1ef0] sm:$0xff] %v2252_v30  ;;  %2255 = vst [vmem:[%s15627_s19 + $0x1ef8] sm:$0xff] %v2254_v31  ;;  %v2258_v33 = vld [vmem:[%s15622_s18 + $0x3e08] sm:$0xff]  ;;  %v2260_v34 = vld [vmem:[%s15622_s18 + $0x3e10] sm:$0xff] }
 0x203   : > { %2257 = vst [vmem:[%s15627_s19 + $0x1f00] sm:$0xff] %v2256_v32  ;;  %v2262_v35 = vld [vmem:[%s15622_s18 + $0x3e18] sm:$0xff]  ;;  %2259 = vst [vmem:[%s15627_s19 + $0x1f08] sm:$0xff] %v2258_v33  ;;  %v2264_v36 = vld [vmem:[%s15622_s18 + $0x3e20] sm:$0xff] }
 0x204   : > { %2261 = vst [vmem:[%s15627_s19 + $0x1f10] sm:$0xff] %v2260_v34  ;;  %2263 = vst [vmem:[%s15627_s19 + $0x1f18] sm:$0xff] %v2262_v35  ;;  %v2266_v37 = vld [vmem:[%s15622_s18 + $0x3e28] sm:$0xff]  ;;  %v2268_v38 = vld [vmem:[%s15622_s18 + $0x3e30] sm:$0xff] }
 0x205   : > { %2265 = vst [vmem:[%s15627_s19 + $0x1f20] sm:$0xff] %v2264_v36  ;;  %2267 = vst [vmem:[%s15627_s19 + $0x1f28] sm:$0xff] %v2266_v37  ;;  %v2270_v39 = vld [vmem:[%s15622_s18 + $0x3e38] sm:$0xff]  ;;  %v2272_v40 = vld [vmem:[%s15622_s18 + $0x3e80] sm:$0xff] }
 0x206   : > { %2269 = vst [vmem:[%s15627_s19 + $0x1f30] sm:$0xff] %v2268_v38  ;;  %v2274_v41 = vld [vmem:[%s15622_s18 + $0x3e88] sm:$0xff]  ;;  %2271 = vst [vmem:[%s15627_s19 + $0x1f38] sm:$0xff] %v2270_v39  ;;  %v2276_v42 = vld [vmem:[%s15622_s18 + $0x3e90] sm:$0xff] }
 0x207   : > { %2273 = vst [vmem:[%s15627_s19 + $0x1f40] sm:$0xff] %v2272_v40  ;;  %2275 = vst [vmem:[%s15627_s19 + $0x1f48] sm:$0xff] %v2274_v41  ;;  %v2278_v43 = vld [vmem:[%s15622_s18 + $0x3e98] sm:$0xff]  ;;  %v2280_v44 = vld [vmem:[%s15622_s18 + $0x3ea0] sm:$0xff] }
 0x208   : > { %2277 = vst [vmem:[%s15627_s19 + $0x1f50] sm:$0xff] %v2276_v42  ;;  %2279 = vst [vmem:[%s15627_s19 + $0x1f58] sm:$0xff] %v2278_v43  ;;  %v2282_v45 = vld [vmem:[%s15622_s18 + $0x3ea8] sm:$0xff]  ;;  %v2284_v46 = vld [vmem:[%s15622_s18 + $0x3eb0] sm:$0xff] }
 0x209   : > { %2281 = vst [vmem:[%s15627_s19 + $0x1f60] sm:$0xff] %v2280_v44  ;;  %v2286_v47 = vld [vmem:[%s15622_s18 + $0x3eb8] sm:$0xff]  ;;  %2283 = vst [vmem:[%s15627_s19 + $0x1f68] sm:$0xff] %v2282_v45  ;;  %v2288_v48 = vld [vmem:[%s15622_s18 + $0x3f00] sm:$0xff] }
 0x20a   : > { %2285 = vst [vmem:[%s15627_s19 + $0x1f70] sm:$0xff] %v2284_v46  ;;  %2287 = vst [vmem:[%s15627_s19 + $0x1f78] sm:$0xff] %v2286_v47  ;;  %v2290_v49 = vld [vmem:[%s15622_s18 + $0x3f08] sm:$0xff]  ;;  %v2292_v50 = vld [vmem:[%s15622_s18 + $0x3f10] sm:$0xff] }
 0x20b   : > { %2289 = vst [vmem:[%s15627_s19 + $0x1f80] sm:$0xff] %v2288_v48  ;;  %2291 = vst [vmem:[%s15627_s19 + $0x1f88] sm:$0xff] %v2290_v49  ;;  %v2294_v51 = vld [vmem:[%s15622_s18 + $0x3f18] sm:$0xff]  ;;  %v2296_v52 = vld [vmem:[%s15622_s18 + $0x3f20] sm:$0xff] }
 0x20c   : > { %2293 = vst [vmem:[%s15627_s19 + $0x1f90] sm:$0xff] %v2292_v50  ;;  %v2298_v53 = vld [vmem:[%s15622_s18 + $0x3f28] sm:$0xff]  ;;  %2295 = vst [vmem:[%s15627_s19 + $0x1f98] sm:$0xff] %v2294_v51  ;;  %v2300_v54 = vld [vmem:[%s15622_s18 + $0x3f30] sm:$0xff] }
 0x20d   : > { %2297 = vst [vmem:[%s15627_s19 + $0x1fa0] sm:$0xff] %v2296_v52  ;;  %2299 = vst [vmem:[%s15627_s19 + $0x1fa8] sm:$0xff] %v2298_v53  ;;  %v2302_v55 = vld [vmem:[%s15622_s18 + $0x3f38] sm:$0xff]  ;;  %v2304_v56 = vld [vmem:[%s15622_s18 + $0x3f80] sm:$0xff] }
 0x20e   : > { %2301 = vst [vmem:[%s15627_s19 + $0x1fb0] sm:$0xff] %v2300_v54  ;;  %2303 = vst [vmem:[%s15627_s19 + $0x1fb8] sm:$0xff] %v2302_v55  ;;  %v2306_v57 = vld [vmem:[%s15622_s18 + $0x3f88] sm:$0xff]  ;;  %v2308_v58 = vld [vmem:[%s15622_s18 + $0x3f90] sm:$0xff] }
 0x20f   : > { %2305 = vst [vmem:[%s15627_s19 + $0x1fc0] sm:$0xff] %v2304_v56  ;;  %v2310_v59 = vld [vmem:[%s15622_s18 + $0x3f98] sm:$0xff]  ;;  %2307 = vst [vmem:[%s15627_s19 + $0x1fc8] sm:$0xff] %v2306_v57  ;;  %v2312_v60 = vld [vmem:[%s15622_s18 + $0x3fa0] sm:$0xff] }
 0x210   : > { %2309 = vst [vmem:[%s15627_s19 + $0x1fd0] sm:$0xff] %v2308_v58  ;;  %2311 = vst [vmem:[%s15627_s19 + $0x1fd8] sm:$0xff] %v2310_v59  ;;  %v2314_v61 = vld [vmem:[%s15622_s18 + $0x3fa8] sm:$0xff]  ;;  %v2316_v62 = vld [vmem:[%s15622_s18 + $0x3fb0] sm:$0xff] }
 0x211   : > { %2313 = vst [vmem:[%s15627_s19 + $0x1fe0] sm:$0xff] %v2312_v60  ;;  %2315 = vst [vmem:[%s15627_s19 + $0x1fe8] sm:$0xff] %v2314_v61  ;;  %v2318_v63 = vld [vmem:[%s15622_s18 + $0x3fb8] sm:$0xff] }
 0x212   : > { %2317 = vst [vmem:[%s15627_s19 + $0x1ff0] sm:$0xff] %v2316_v62  ;;  %2319 = vst [vmem:[%s15627_s19 + $0x1ff8] sm:$0xff] %v2318_v63 }
 0x213 PF: > { %p13337_p5 = scmp.ge.s32.totalorder %s15536_s29, 1  ;;  %p2332_p6 = scmp.lt.s32.totalorder %s15536_s29, 3 }
 0x215   : > { %p2333_p7 = pnand %p13337_p5, %p2332_p6 }
 0x216   : > { %s2339_s20 = sand.u32 (!%p2333_p7), 1, %s15528_s27   ;;  %v3407_v0 = vlaneseq (!%p2333_p7)  ;;  %v15538_v1 = vmov (!%p2333_p7), 1966171168   ;;  %v17699_v25 = vld [vmem:[%s19866_s0] sm:$0xff] (!%p2333_p7)  ;;  %s13339_s25 = sshll.u32 (!%p2333_p7), %s15602_s30, 4 }
 0x217   : > { %2336 = sbr.rel (%p2333_p7) target bundleno = 2584 (0xa18), region = 67  ;;  %s13338_s21 = sshll.u32 (!%p2333_p7), %s2339_s20, 13  ;;  %v3490_v2 = vunpack.c.l.s4 (!%p2333_p7), %v15538_v1 }
 0x218   : > { %v17677_v3 = vshrl.u32 (!%p2333_p7), %v3407_v0, 7  ;;  %s17679_s22 = scalar_lea.vmem (!%p2333_p7), [#allocation3], %s13338_s21  ;;  %p18216_p8 = scmp.lt.s32.totalorder (!%p2333_p7), %s13339_s25, 31 }
 0x219   : > { %v2379_v4 = vld [vmem:[%s17679_s22] sm:$0xff] (!%p2333_p7)  ;;  %v2380_v6 = vld [vmem:[%s17679_s22 + $0x8] sm:$0xff] (!%p2333_p7)  ;;  %v3491_v7 = vunpack.c.0.s8 (!%p2333_p7), %v3490_v2  ;;  %p14364_p9 = scmp.ne.s32.totalorder (!%p2333_p7), %s15602_s30, 0 }
 0x21a   : > { %v2387_v5 = vld [vmem:[%s17679_s22 + $0x40] sm:$0xff] (!%p2333_p7)  ;;  %v2388_v9 = vld [vmem:[%s17679_s22 + $0x48] sm:$0xff] (!%p2333_p7) }
 0x21b   : > { %v13341_v8 = vcombine.high (!%p2333_p7), %v2379_v4, %v2387_v5  ;;  %v13340_v10 = vcombine.low (!%p2333_p7), %v2379_v4, %v2387_v5  ;;  %v2395_v11 = vld [vmem:[%s17679_s22 + $0x80] sm:$0xff] (!%p2333_p7)  ;;  %v13343_v13 = vcombine.high (!%p2333_p7), %v2380_v6, %v2388_v9  ;;  %v13342_v14 = vcombine.low (!%p2333_p7), %v2380_v6, %v2388_v9  ;;  %v2396_v16 = vld [vmem:[%s17679_s22 + $0x88] sm:$0xff] (!%p2333_p7) }
 0x21c   : > { %v2403_v12 = vld [vmem:[%s17679_s22 + $0xc0] sm:$0xff] (!%p2333_p7)  ;;  %v2404_v17 = vld [vmem:[%s17679_s22 + $0xc8] sm:$0xff] (!%p2333_p7)  ;;  %v17694_v23 = vsub.s32 (!%p2333_p7), %v3491_v7, %v17677_v3 }
 0x21d   : > { %v13357_v15 = vcombine.high (!%p2333_p7), %v2395_v11, %v2403_v12  ;;  %v2411_v18 = vld [vmem:[%s17679_s22 + $0x100] sm:$0xff] (!%p2333_p7)  ;;  %8665 = vmatprep.subr.bf16.mxu0 (!%p2333_p7), %v13341_v8  ;;  %v13359_v19 = vcombine.high (!%p2333_p7), %v2396_v16, %v2404_v17  ;;  %v2412_v21 = vld [vmem:[%s17679_s22 + $0x108] sm:$0xff] (!%p2333_p7)  ;;  %8829 = vmatprep.subr.bf16.mxu1 (!%p2333_p7), %v13343_v13  ;;  %v13356_v24 = vcombine.low (!%p2333_p7), %v2395_v11, %v2403_v12 }
 0x21e   : > { %v2419_v20 = vld [vmem:[%s17679_s22 + $0x140] sm:$0xff]  ;;  %v2420_v22 = vld [vmem:[%s17679_s22 + $0x148] sm:$0xff]  ;;  %8666 = vmatpush1.bf16.msra.mxu0 %v13340_v10  ;;  %8830 = vmatpush1.bf16.msra.mxu1 %v13342_v14  ;;  %v13358_v26 = vcombine.low %v2396_v16, %v2404_v17  ;;  %v17707_v33 = vrot.slane %v17699_v25, %v17694_v23  ;;  %s19880_s25 = smov (!%p18216_p8, %s13339_s25), 31 }
 0x21f   : > { %8667 = vmatprep.subr.bf16.mxu0 %v13357_v15  ;;  %v13373_v27 = vcombine.high %v2411_v18, %v2419_v20  ;;  %8831 = vmatprep.subr.bf16.mxu1 %v13359_v19  ;;  %v13375_v28 = vcombine.high %v2412_v21, %v2420_v22  ;;  %v2427_v29 = vld [vmem:[%s17679_s22 + $0x180] sm:$0xff]  ;;  %v2428_v31 = vld [vmem:[%s17679_s22 + $0x188] sm:$0xff]  ;;  %v13372_v34 = vcombine.low %v2411_v18, %v2419_v20  ;;  %s18235_s10 = scalar_lea.vmem %s19868_s2, %s19880_s25 }
 0x220   : > { %v2435_v30 = vld [vmem:[%s17679_s22 + $0x1c0] sm:$0xff]  ;;  %v2436_v32 = vld [vmem:[%s17679_s22 + $0x1c8] sm:$0xff]  ;;  %v13374_v35 = vcombine.low %v2412_v21, %v2420_v22  ;;  %v3503_v37 = vcombine.high %v17707_v33, %v17707_v33 }
 0x221   : > { %v13389_v36 = vcombine.high %v2427_v29, %v2435_v30  ;;  %v13391_v38 = vcombine.high %v2428_v31, %v2436_v32  ;;  %v2443_v39 = vld [vmem:[%s17679_s22 + $0x200] sm:$0xff]  ;;  %v2444_v41 = vld [vmem:[%s17679_s22 + $0x208] sm:$0xff]  ;;  %v13388_v44 = vcombine.low %v2427_v29, %v2435_v30  ;;  %v13390_v45 = vcombine.low %v2428_v31, %v2436_v32 }
 0x222   : > { %8668 = vmatpush1.bf16.msra.mxu0 %v13356_v24  ;;  %8832 = vmatpush1.bf16.msra.mxu1 %v13358_v26  ;;  %v2451_v40 = vld [vmem:[%s17679_s22 + $0x240] sm:$0xff]  ;;  %v2452_v42 = vld [vmem:[%s17679_s22 + $0x248] sm:$0xff]  ;;  %v17716_v43 = vrot.slane %v3503_v37, %v17694_v23 }
 0x223   : > { %8669 = vmatprep.subr.bf16.mxu0 %v13373_v27  ;;  %8833 = vmatprep.subr.bf16.mxu1 %v13375_v28  ;;  %v13405_v46 = vcombine.high %v2443_v39, %v2451_v40  ;;  %v13407_v47 = vcombine.high %v2444_v41, %v2452_v42  ;;  %v2459_v48 = vld [vmem:[%s17679_s22 + $0x280] sm:$0xff]  ;;  %v2460_v50 = vld [vmem:[%s17679_s22 + $0x288] sm:$0xff]  ;;  %v13404_v52 = vcombine.low %v2443_v39, %v2451_v40 }
 0x224   : > { %v2467_v49 = vld [vmem:[%s17679_s22 + $0x2c0] sm:$0xff]  ;;  %v2468_v51 = vld [vmem:[%s17679_s22 + $0x2c8] sm:$0xff]  ;;  %8697 = vmatprep.mubr.bf16.mxu0 %v17716_v43  ;;  %8861 = vmatprep.mubr.bf16.mxu1 %v17716_v43  ;;  %v13406_v53 = vcombine.low %v2444_v41, %v2452_v42 }
 0x225   : > { %v13421_v54 = vcombine.high %v2459_v48, %v2467_v49  ;;  %v13423_v55 = vcombine.high %v2460_v50, %v2468_v51  ;;  %v2475_v56 = vld [vmem:[%s17679_s22 + $0x300] sm:$0xff]  ;;  %v2476_v58 = vld [vmem:[%s17679_s22 + $0x308] sm:$0xff]  ;;  %v13420_v60 = vcombine.low %v2459_v48, %v2467_v49  ;;  %v13422_v61 = vcombine.low %v2460_v50, %v2468_v51 }
 0x226   : > { %8670 = vmatpush1.bf16.msra.mxu0 %v13372_v34  ;;  %8834 = vmatpush1.bf16.msra.mxu1 %v13374_v35  ;;  %v2483_v57 = vld [vmem:[%s17679_s22 + $0x340] sm:$0xff]  ;;  %v2484_v59 = vld [vmem:[%s17679_s22 + $0x348] sm:$0xff] }
 0x227   : > { %8671 = vmatprep.subr.bf16.mxu0 %v13389_v36  ;;  %8835 = vmatprep.subr.bf16.mxu1 %v13391_v38  ;;  %v13437_v62 = vcombine.high %v2475_v56, %v2483_v57  ;;  %v13439_v63 = vcombine.high %v2476_v58, %v2484_v59  ;;  %v2491_v0 = vld [vmem:[%s17679_s22 + $0x380] sm:$0xff]  ;;  %v2492_v2 = vld [vmem:[%s17679_s22 + $0x388] sm:$0xff]  ;;  %v13436_v5 = vcombine.low %v2475_v56, %v2483_v57 }
 0x228   : > { %v2499_v1 = vld [vmem:[%s17679_s22 + $0x3c0] sm:$0xff]  ;;  %v2500_v4 = vld [vmem:[%s17679_s22 + $0x3c8] sm:$0xff]  ;;  %v13438_v6 = vcombine.low %v2476_v58, %v2484_v59 }
 0x229   : > { %v13453_v7 = vcombine.high %v2491_v0, %v2499_v1  ;;  %v13455_v8 = vcombine.high %v2492_v2, %v2500_v4  ;;  %v2507_v9 = vld [vmem:[%s17679_s22 + $0x400] sm:$0xff]  ;;  %v2508_v11 = vld [vmem:[%s17679_s22 + $0x408] sm:$0xff]  ;;  %v13452_v13 = vcombine.low %v2491_v0, %v2499_v1  ;;  %v13454_v14 = vcombine.low %v2492_v2, %v2500_v4 }
 0x22a   : > { %8672 = vmatpush1.bf16.msra.mxu0 %v13388_v44  ;;  %8836 = vmatpush1.bf16.msra.mxu1 %v13390_v45  ;;  %v2515_v10 = vld [vmem:[%s17679_s22 + $0x440] sm:$0xff]  ;;  %v2516_v12 = vld [vmem:[%s17679_s22 + $0x448] sm:$0xff] }
 0x22b   : > { %8673 = vmatprep.subr.bf16.mxu0 %v13405_v46  ;;  %8837 = vmatprep.subr.bf16.mxu1 %v13407_v47  ;;  %v13469_v15 = vcombine.high %v2507_v9, %v2515_v10  ;;  %v13471_v16 = vcombine.high %v2508_v11, %v2516_v12  ;;  %v2523_v17 = vld [vmem:[%s17679_s22 + $0x480] sm:$0xff]  ;;  %v2524_v19 = vld [vmem:[%s17679_s22 + $0x488] sm:$0xff]  ;;  %v13468_v21 = vcombine.low %v2507_v9, %v2515_v10 }
 0x22c   : > { %v2531_v18 = vld [vmem:[%s17679_s22 + $0x4c0] sm:$0xff]  ;;  %v2532_v20 = vld [vmem:[%s17679_s22 + $0x4c8] sm:$0xff]  ;;  %v13470_v22 = vcombine.low %v2508_v11, %v2516_v12 }
 0x22d   : > { %v13485_v24 = vcombine.high %v2523_v17, %v2531_v18  ;;  %v13487_v26 = vcombine.high %v2524_v19, %v2532_v20  ;;  %v2539_v27 = vld [vmem:[%s17679_s22 + $0x500] sm:$0xff]  ;;  %v2540_v29 = vld [vmem:[%s17679_s22 + $0x508] sm:$0xff]  ;;  %v13484_v31 = vcombine.low %v2523_v17, %v2531_v18  ;;  %v13486_v32 = vcombine.low %v2524_v19, %v2532_v20 }
 0x22e   : > { %8674 = vmatpush1.bf16.msra.mxu0 %v13404_v52  ;;  %8838 = vmatpush1.bf16.msra.mxu1 %v13406_v53  ;;  %v2547_v28 = vld [vmem:[%s17679_s22 + $0x540] sm:$0xff]  ;;  %v2548_v30 = vld [vmem:[%s17679_s22 + $0x548] sm:$0xff] }
 0x22f   : > { %8675 = vmatprep.subr.bf16.mxu0 %v13421_v54  ;;  %8839 = vmatprep.subr.bf16.mxu1 %v13423_v55  ;;  %v13501_v34 = vcombine.high %v2539_v27, %v2547_v28  ;;  %v13503_v35 = vcombine.high %v2540_v29, %v2548_v30  ;;  %v2555_v36 = vld [vmem:[%s17679_s22 + $0x580] sm:$0xff]  ;;  %v2556_v38 = vld [vmem:[%s17679_s22 + $0x588] sm:$0xff]  ;;  %v13500_v40 = vcombine.low %v2539_v27, %v2547_v28 }
 0x230   : > { %v2563_v37 = vld [vmem:[%s17679_s22 + $0x5c0] sm:$0xff]  ;;  %v2564_v39 = vld [vmem:[%s17679_s22 + $0x5c8] sm:$0xff]  ;;  %v13502_v41 = vcombine.low %v2540_v29, %v2548_v30  ;;  %v17774_v27 = vrot.slane %v17707_v33, %v17694_v23  ;;  %v17783_v33 = vcombine.high %v17716_v43, %v17716_v43 }
 0x231   : > { %v13517_v42 = vcombine.high %v2555_v36, %v2563_v37  ;;  %v13519_v44 = vcombine.high %v2556_v38, %v2564_v39  ;;  %v2571_v45 = vld [vmem:[%s17679_s22 + $0x600] sm:$0xff]  ;;  %v2572_v47 = vld [vmem:[%s17679_s22 + $0x608] sm:$0xff]  ;;  %v13516_v49 = vcombine.low %v2555_v36, %v2563_v37  ;;  %v13518_v50 = vcombine.low %v2556_v38, %v2564_v39 }
 0x232   : > { %8676 = vmatpush1.bf16.msra.mxu0 %v13420_v60  ;;  %8840 = vmatpush1.bf16.msra.mxu1 %v13422_v61  ;;  %v2579_v46 = vld [vmem:[%s17679_s22 + $0x640] sm:$0xff]  ;;  %v2580_v48 = vld [vmem:[%s17679_s22 + $0x648] sm:$0xff] }
 0x233   : > { %8677 = vmatprep.subr.bf16.mxu0 %v13437_v62  ;;  %8841 = vmatprep.subr.bf16.mxu1 %v13439_v63  ;;  %v13533_v51 = vcombine.high %v2571_v45, %v2579_v46  ;;  %v13535_v52 = vcombine.high %v2572_v47, %v2580_v48  ;;  %v2587_v53 = vld [vmem:[%s17679_s22 + $0x680] sm:$0xff]  ;;  %v2588_v55 = vld [vmem:[%s17679_s22 + $0x688] sm:$0xff]  ;;  %v13532_v57 = vcombine.low %v2571_v45, %v2579_v46 }
 0x234   : > { %v2595_v54 = vld [vmem:[%s17679_s22 + $0x6c0] sm:$0xff]  ;;  %v2596_v56 = vld [vmem:[%s17679_s22 + $0x6c8] sm:$0xff]  ;;  %v13534_v58 = vcombine.low %v2572_v47, %v2580_v48 }
 0x235   : > { %v13549_v59 = vcombine.high %v2587_v53, %v2595_v54  ;;  %v13551_v60 = vcombine.high %v2588_v55, %v2596_v56  ;;  %v2603_v61 = vld [vmem:[%s17679_s22 + $0x700] sm:$0xff]  ;;  %v2604_v63 = vld [vmem:[%s17679_s22 + $0x708] sm:$0xff]  ;;  %v13548_v1 = vcombine.low %v2587_v53, %v2595_v54  ;;  %v13550_v2 = vcombine.low %v2588_v55, %v2596_v56 }
 0x236   : > { %8678 = vmatpush1.bf16.msra.mxu0 %v13436_v5  ;;  %8842 = vmatpush1.bf16.msra.mxu1 %v13438_v6  ;;  %v2611_v62 = vld [vmem:[%s17679_s22 + $0x740] sm:$0xff]  ;;  %v2612_v0 = vld [vmem:[%s17679_s22 + $0x748] sm:$0xff] }
 0x237   : > { %8679 = vmatprep.subr.bf16.mxu0 %v13453_v7  ;;  %8843 = vmatprep.subr.bf16.mxu1 %v13455_v8  ;;  %v13565_v4 = vcombine.high %v2603_v61, %v2611_v62  ;;  %v13567_v5 = vcombine.high %v2604_v63, %v2612_v0  ;;  %v2619_v6 = vld [vmem:[%s17679_s22 + $0x780] sm:$0xff]  ;;  %v2620_v8 = vld [vmem:[%s17679_s22 + $0x788] sm:$0xff]  ;;  %v13564_v10 = vcombine.low %v2603_v61, %v2611_v62 }
 0x238   : > { %v2627_v7 = vld [vmem:[%s17679_s22 + $0x7c0] sm:$0xff]  ;;  %v2628_v9 = vld [vmem:[%s17679_s22 + $0x7c8] sm:$0xff]  ;;  %v13566_v11 = vcombine.low %v2604_v63, %v2612_v0 }
 0x239   : > { %v13581_v12 = vcombine.high %v2619_v6, %v2627_v7  ;;  %v2644_v17 = vld [vmem:[%s17679_s22 + $0x848] sm:$0xff]  ;;  %v13580_v18 = vcombine.low %v2619_v6, %v2627_v7  ;;  %v13582_v19 = vcombine.low %v2620_v8, %v2628_v9  ;;  %v2667_v36 = vld [vmem:[%s17679_s22 + $0x900] sm:$0xff] }
 0x23a   : > { %8680 = vmatpush1.bf16.msra.mxu0 %v13452_v13  ;;  %8844 = vmatpush1.bf16.msra.mxu1 %v13454_v14  ;;  %v13583_v13 = vcombine.high %v2620_v8, %v2628_v9  ;;  %v2635_v14 = vld [vmem:[%s17679_s22 + $0x800] sm:$0xff]  ;;  %v2652_v28 = vld [vmem:[%s17679_s22 + $0x888] sm:$0xff] }
 0x23b   : > { %8681 = vmatprep.subr.bf16.mxu0 %v13469_v15  ;;  %8845 = vmatprep.subr.bf16.mxu1 %v13471_v16  ;;  %v2643_v15 = vld [vmem:[%s17679_s22 + $0x840] sm:$0xff]  ;;  %v2636_v16 = vld [vmem:[%s17679_s22 + $0x808] sm:$0xff] }
 0x23c   : > { %v13597_v20 = vcombine.high %v2635_v14, %v2643_v15  ;;  %v2660_v29 = vld [vmem:[%s17679_s22 + $0x8c8] sm:$0xff]  ;;  %v2675_v37 = vld [vmem:[%s17679_s22 + $0x940] sm:$0xff] }
 0x23d   : > { %v2668_v39 = vld [vmem:[%s17679_s22 + $0x908] sm:$0xff]  ;;  %v13629_v45 = vcombine.high %v2667_v36, %v2675_v37  ;;  %v2683_v47 = vld [vmem:[%s17679_s22 + $0x980] sm:$0xff] }
 0x23e   : > { %8682 = vmatpush1.bf16.msra.mxu0 %v13468_v21  ;;  %8846 = vmatpush1.bf16.msra.mxu1 %v13470_v22  ;;  %v3488_v21 = vcombine.high %v17699_v25, %v17699_v25  ;;  %v13599_v22 = vcombine.high %v2636_v16, %v2644_v17  ;;  %v13598_v25 = vcombine.low %v2636_v16, %v2644_v17  ;;  %v2691_v48 = vld [vmem:[%s17679_s22 + $0x9c0] sm:$0xff] }
 0x23f   : > { %8683 = vmatprep.subr.bf16.mxu0 %v13485_v24  ;;  %8847 = vmatprep.subr.bf16.mxu1 %v13487_v26  ;;  %v2651_v24 = vld [vmem:[%s17679_s22 + $0x880] sm:$0xff]  ;;  %v13645_v53 = vcombine.high %v2683_v47, %v2691_v48 }
 0x240   : > { %v2659_v26 = vld [vmem:[%s17679_s22 + $0x8c0] sm:$0xff]  ;;  %v3502_v30 = vrot.slane %v3488_v21, %v17694_v23 }
 0x241   : > { %v2699_v55 = vld [vmem:[%s17679_s22 + $0xa00] sm:$0xff] }
 0x242   : > { %8684 = vmatpush1.bf16.msra.mxu0 %v13484_v31  ;;  %8848 = vmatpush1.bf16.msra.mxu1 %v13486_v32  ;;  %v13596_v31 = vcombine.low %v2635_v14, %v2643_v15  ;;  %v13613_v32 = vcombine.high %v2651_v24, %v2659_v26  ;;  %v17786_v38 = vrot.slane %v3502_v30, %v17694_v23  ;;  %v2707_v56 = vld [vmem:[%s17679_s22 + $0xa40] sm:$0xff] }
 0x243   : > { %8685 = vmatprep.subr.bf16.mxu0 %v13501_v34  ;;  %8849 = vmatprep.subr.bf16.mxu1 %v13503_v35  ;;  %v3504_v34 = vcombine.high %v3502_v30, %v3502_v30  ;;  %v13615_v35 = vcombine.high %v2652_v28, %v2660_v29  ;;  %v13661_v61 = vcombine.high %v2699_v55, %v2707_v56  ;;  %v2715_v63 = vld [vmem:[%s17679_s22 + $0xa80] sm:$0xff]  ;;  %v2772_v30 = vld [vmem:[%s17679_s22 + $0xc48] sm:$0xff] }
 0x244   : > { %v2723_v0 = vld [vmem:[%s17679_s22 + $0xac0] sm:$0xff] }
 0x245   : > { %v13677_v6 = vcombine.high %v2715_v63, %v2723_v0  ;;  %v2731_v8 = vld [vmem:[%s17679_s22 + $0xb00] sm:$0xff] }
 0x246   : > { %8686 = vmatpush1.bf16.msra.mxu0 %v13500_v40  ;;  %8850 = vmatpush1.bf16.msra.mxu1 %v13502_v41  ;;  %v2676_v40 = vld [vmem:[%s17679_s22 + $0x948] sm:$0xff]  ;;  %v17792_v41 = vrot.slane %v3504_v34, %v17694_v23  ;;  %v2739_v9 = vld [vmem:[%s17679_s22 + $0xb40] sm:$0xff] }
 0x247   : > { %8687 = vmatprep.subr.bf16.mxu0 %v13517_v42  ;;  %8851 = vmatprep.subr.bf16.mxu1 %v13519_v44  ;;  %v13612_v42 = vcombine.low %v2651_v24, %v2659_v26  ;;  %v13614_v44 = vcombine.low %v2652_v28, %v2660_v29  ;;  %v13631_v46 = vcombine.high %v2668_v39, %v2676_v40  ;;  %v2747_v16 = vld [vmem:[%s17679_s22 + $0xb80] sm:$0xff]  ;;  %v2764_v29 = vld [vmem:[%s17679_s22 + $0xc08] sm:$0xff] }
 0x248   : > { %v13693_v14 = vcombine.high %v2731_v8, %v2739_v9  ;;  %v2755_v17 = vld [vmem:[%s17679_s22 + $0xbc0] sm:$0xff]  ;;  %v13727_v34 = vcombine.high %v2764_v29, %v2772_v30 }
 0x249   : > { %v2763_v26 = vld [vmem:[%s17679_s22 + $0xc00] sm:$0xff] }
 0x24a   : > { %8688 = vmatpush1.bf16.msra.mxu0 %v13516_v49  ;;  %8852 = vmatpush1.bf16.msra.mxu1 %v13518_v50  ;;  %v2684_v49 = vld [vmem:[%s17679_s22 + $0x988] sm:$0xff]  ;;  %v2771_v28 = vld [vmem:[%s17679_s22 + $0xc40] sm:$0xff] }
 0x24b   : > { %8689 = vmatprep.subr.bf16.mxu0 %v13533_v51  ;;  %8853 = vmatprep.subr.bf16.mxu1 %v13535_v52  ;;  %v2692_v50 = vld [vmem:[%s17679_s22 + $0x9c8] sm:$0xff]  ;;  %v13628_v51 = vcombine.low %v2667_v36, %v2675_v37  ;;  %v13630_v52 = vcombine.low %v2668_v39, %v2676_v40  ;;  %v2787_v36 = vld [vmem:[%s17679_s22 + $0xcc0] sm:$0xff]  ;;  %v13724_v40 = vcombine.low %v2763_v26, %v2771_v28 }
 0x24c   : > { %v13647_v54 = vcombine.high %v2684_v49, %v2692_v50  ;;  %v2780_v37 = vld [vmem:[%s17679_s22 + $0xc88] sm:$0xff] }
 0x24d   : > { %v2788_v39 = vld [vmem:[%s17679_s22 + $0xcc8] sm:$0xff] }
 0x24e   : > { %8690 = vmatpush1.bf16.msra.mxu0 %v13532_v57  ;;  %8854 = vmatpush1.bf16.msra.mxu1 %v13534_v58  ;;  %v2700_v57 = vld [vmem:[%s17679_s22 + $0xa08] sm:$0xff] }
 0x24f   : > { %8691 = vmatprep.subr.bf16.mxu0 %v13549_v59  ;;  %8855 = vmatprep.subr.bf16.mxu1 %v13551_v60  ;;  %v2708_v58 = vld [vmem:[%s17679_s22 + $0xa48] sm:$0xff]  ;;  %v13644_v59 = vcombine.low %v2683_v47, %v2691_v48  ;;  %v13646_v60 = vcombine.low %v2684_v49, %v2692_v50  ;;  %v2803_v47 = vld [vmem:[%s17679_s22 + $0xd40] sm:$0xff] }
 0x250   : > { %v13663_v62 = vcombine.high %v2700_v57, %v2708_v58  ;;  %v2796_v48 = vld [vmem:[%s17679_s22 + $0xd08] sm:$0xff] }
 0x251   : > { %v2804_v49 = vld [vmem:[%s17679_s22 + $0xd48] sm:$0xff] }
 0x252   : > { %8692 = vmatpush1.bf16.msra.mxu0 %v13548_v1  ;;  %8856 = vmatpush1.bf16.msra.mxu1 %v13550_v2  ;;  %v2716_v1 = vld [vmem:[%s17679_s22 + $0xa88] sm:$0xff] }
 0x253   : > { %8693 = vmatprep.subr.bf16.mxu0 %v13565_v4  ;;  %8857 = vmatprep.subr.bf16.mxu1 %v13567_v5  ;;  %v2724_v2 = vld [vmem:[%s17679_s22 + $0xac8] sm:$0xff]  ;;  %v13660_v4 = vcombine.low %v2699_v55, %v2707_v56  ;;  %v13662_v5 = vcombine.low %v2700_v57, %v2708_v58  ;;  %v2819_v55 = vld [vmem:[%s17679_s22 + $0xdc0] sm:$0xff] }
 0x254   : > { %v13679_v7 = vcombine.high %v2716_v1, %v2724_v2  ;;  %v2812_v56 = vld [vmem:[%s17679_s22 + $0xd88] sm:$0xff] }
 0x255   : > { %v2820_v57 = vld [vmem:[%s17679_s22 + $0xdc8] sm:$0xff] }
 0x256   : > { %8694 = vmatpush1.bf16.msra.mxu0 %v13564_v10  ;;  %8858 = vmatpush1.bf16.msra.mxu1 %v13566_v11  ;;  %v2732_v10 = vld [vmem:[%s17679_s22 + $0xb08] sm:$0xff] }
 0x257   : > { %8695 = vmatprep.subr.bf16.mxu0 %v13581_v12  ;;  %8859 = vmatprep.subr.bf16.mxu1 %v13583_v13  ;;  %v2740_v11 = vld [vmem:[%s17679_s22 + $0xb48] sm:$0xff]  ;;  %v13676_v12 = vcombine.low %v2715_v63, %v2723_v0  ;;  %v13678_v13 = vcombine.low %v2716_v1, %v2724_v2  ;;  %v2835_v63 = vld [vmem:[%s17679_s22 + $0xe40] sm:$0xff] }
 0x258   : > { %v13695_v15 = vcombine.high %v2732_v10, %v2740_v11  ;;  %v13694_v21 = vcombine.low %v2732_v10, %v2740_v11  ;;  %v2828_v0 = vld [vmem:[%s17679_s22 + $0xe08] sm:$0xff] }
 0x259   : > { %v2836_v1 = vld [vmem:[%s17679_s22 + $0xe48] sm:$0xff] }
 0x25a   : > { %8696 = vmatpush1.bf16.msra.mxu0 %v13580_v18  ;;  %8860 = vmatpush1.bf16.msra.mxu1 %v13582_v19  ;;  %v2748_v18 = vld [vmem:[%s17679_s22 + $0xb88] sm:$0xff] }
 0x25b   : > { %8706 = vmatprep.subr.bf16.mxu0 %v13597_v20  ;;  %8870 = vmatprep.subr.bf16.mxu1 %v13599_v22  ;;  %v2756_v19 = vld [vmem:[%s17679_s22 + $0xbc8] sm:$0xff]  ;;  %v13692_v20 = vcombine.low %v2731_v8, %v2739_v9  ;;  %v13709_v22 = vcombine.high %v2747_v16, %v2755_v17  ;;  %v2851_v8 = vld [vmem:[%s17679_s22 + $0xec0] sm:$0xff] }
 0x25c   : > { %v13711_v24 = vcombine.high %v2748_v18, %v2756_v19  ;;  %v2844_v9 = vld [vmem:[%s17679_s22 + $0xe88] sm:$0xff] }
 0x25d   : > { %8698 = vmatmul.mubr.bf16.vlgmr.msra.gmra.mrb[0].mxu0 %v17774_v27  ;;  %8862 = vmatmul.mubr.bf16.vlgmr.msra.gmra.mrb[0].mxu1 %v17774_v27  ;;  %v2852_v10 = vld [vmem:[%s17679_s22 + $0xec8] sm:$0xff] }
 0x25e   : > { %8707 = vmatpush1.bf16.msra.mxu0 %v13596_v31  ;;  %8871 = vmatpush1.bf16.msra.mxu1 %v13598_v25  ;;  %v13708_v31 = vcombine.low %v2747_v16, %v2755_v17  ;;  %v13710_v25 = vcombine.low %v2748_v18, %v2756_v19  ;;  %v2867_v16 = vld [vmem:[%s17679_s22 + $0xf40] sm:$0xff]  ;;  %v2860_v17 = vld [vmem:[%s17679_s22 + $0xf08] sm:$0xff] }
 0x25f   : > { %8708 = vmatprep.subr.bf16.mxu0 %v13613_v32  ;;  %8872 = vmatprep.subr.bf16.mxu1 %v13615_v35  ;;  %v13725_v32 = vcombine.high %v2763_v26, %v2771_v28  ;;  %v2779_v35 = vld [vmem:[%s17679_s22 + $0xc80] sm:$0xff]  ;;  %v2868_v18 = vld [vmem:[%s17679_s22 + $0xf48] sm:$0xff] }
 0x260   : > { %8738 = vmatprep.mubr.bf16.mxu0 %v17783_v33  ;;  %8902 = vmatprep.mubr.bf16.mxu1 %v17783_v33  ;;  %v13740_v50 = vcombine.low %v2779_v35, %v2787_v36  ;;  %v2883_v26 = vld [vmem:[%s17679_s22 + $0xfc0] sm:$0xff]  ;;  %v2876_v28 = vld [vmem:[%s17679_s22 + $0xf88] sm:$0xff] }
 0x262   : > { %8709 = vmatpush1.bf16.msra.mxu0 %v13612_v42  ;;  %8873 = vmatpush1.bf16.msra.mxu1 %v13614_v44  ;;  %v13726_v42 = vcombine.low %v2764_v29, %v2772_v30  ;;  %v13741_v44 = vcombine.high %v2779_v35, %v2787_v36  ;;  %v2884_v29 = vld [vmem:[%s17679_s22 + $0xfc8] sm:$0xff]  ;;  %v2899_v35 = vld [vmem:[%s17679_s22 + $0x1040] sm:$0xff] }
 0x263   : > { %8710 = vmatprep.subr.bf16.mxu0 %v13629_v45  ;;  %8874 = vmatprep.subr.bf16.mxu1 %v13631_v46  ;;  %v13743_v45 = vcombine.high %v2780_v37, %v2788_v39  ;;  %v2795_v46 = vld [vmem:[%s17679_s22 + $0xd00] sm:$0xff]  ;;  %v2892_v36 = vld [vmem:[%s17679_s22 + $0x1008] sm:$0xff] }
 0x264   : > { %v13756_v58 = vcombine.low %v2795_v46, %v2803_v47 }
 0x266   : > { %8711 = vmatpush1.bf16.msra.mxu0 %v13628_v51  ;;  %8875 = vmatpush1.bf16.msra.mxu1 %v13630_v52  ;;  %v13742_v51 = vcombine.low %v2780_v37, %v2788_v39  ;;  %v13757_v52 = vcombine.high %v2795_v46, %v2803_v47  ;;  %v2900_v37 = vld [vmem:[%s17679_s22 + $0x1048] sm:$0xff]  ;;  %v2915_v46 = vld [vmem:[%s17679_s22 + $0x10c0] sm:$0xff]  ;;  %v17857_v47 = vcombine.high %v17774_v27, %v17774_v27 }
 0x267   : > { %8712 = vmatprep.subr.bf16.mxu0 %v13645_v53  ;;  %8876 = vmatprep.subr.bf16.mxu1 %v13647_v54  ;;  %v13759_v53 = vcombine.high %v2796_v48, %v2804_v49  ;;  %v2811_v54 = vld [vmem:[%s17679_s22 + $0xd80] sm:$0xff] }
 0x268   : > { %v13772_v2 = vcombine.low %v2811_v54, %v2819_v55 }
 0x26a   : > { %8713 = vmatpush1.bf16.msra.mxu0 %v13644_v59  ;;  %8877 = vmatpush1.bf16.msra.mxu1 %v13646_v60  ;;  %v13758_v59 = vcombine.low %v2796_v48, %v2804_v49  ;;  %v13773_v60 = vcombine.high %v2811_v54, %v2819_v55  ;;  %v2908_v48 = vld [vmem:[%s17679_s22 + $0x1088] sm:$0xff]  ;;  %v2923_v54 = vld [vmem:[%s17679_s22 + $0x1100] sm:$0xff] }
 0x26b   : > { %8714 = vmatprep.subr.bf16.mxu0 %v13661_v61  ;;  %8878 = vmatprep.subr.bf16.mxu1 %v13663_v62  ;;  %v13775_v61 = vcombine.high %v2812_v56, %v2820_v57  ;;  %v2827_v62 = vld [vmem:[%s17679_s22 + $0xe00] sm:$0xff]  ;;  %v2916_v49 = vld [vmem:[%s17679_s22 + $0x10c8] sm:$0xff] }
 0x26c   : > { %v13788_v11 = vcombine.low %v2827_v62, %v2835_v63  ;;  %v2931_v55 = vld [vmem:[%s17679_s22 + $0x1140] sm:$0xff] }
 0x26e   : > { %8715 = vmatpush1.bf16.msra.mxu0 %v13660_v4  ;;  %8879 = vmatpush1.bf16.msra.mxu1 %v13662_v5  ;;  %v13774_v4 = vcombine.low %v2812_v56, %v2820_v57  ;;  %v13789_v5 = vcombine.high %v2827_v62, %v2835_v63  ;;  %v2924_v56 = vld [vmem:[%s17679_s22 + $0x1108] sm:$0xff]  ;;  %v2939_v62 = vld [vmem:[%s17679_s22 + $0x1180] sm:$0xff] }
 0x26f   : > { %8716 = vmatprep.subr.bf16.mxu0 %v13677_v6  ;;  %8880 = vmatprep.subr.bf16.mxu1 %v13679_v7  ;;  %v13791_v6 = vcombine.high %v2828_v0, %v2836_v1  ;;  %v2843_v7 = vld [vmem:[%s17679_s22 + $0xe80] sm:$0xff]  ;;  %v2932_v57 = vld [vmem:[%s17679_s22 + $0x1148] sm:$0xff] }
 0x270   : > { %v13804_v19 = vcombine.low %v2843_v7, %v2851_v8  ;;  %v2947_v63 = vld [vmem:[%s17679_s22 + $0x11c0] sm:$0xff] }
 0x272   : > { %8717 = vmatpush1.bf16.msra.mxu0 %v13676_v12  ;;  %8881 = vmatpush1.bf16.msra.mxu1 %v13678_v13  ;;  %v13790_v12 = vcombine.low %v2828_v0, %v2836_v1  ;;  %v13805_v13 = vcombine.high %v2843_v7, %v2851_v8  ;;  %v2940_v0 = vld [vmem:[%s17679_s22 + $0x1188] sm:$0xff]  ;;  %v2955_v7 = vld [vmem:[%s17679_s22 + $0x1200] sm:$0xff] }
 0x273   : > { %8718 = vmatprep.subr.bf16.mxu0 %v13693_v14  ;;  %8882 = vmatprep.subr.bf16.mxu1 %v13695_v15  ;;  %v13807_v14 = vcombine.high %v2844_v9, %v2852_v10  ;;  %v2859_v15 = vld [vmem:[%s17679_s22 + $0xf00] sm:$0xff]  ;;  %v2948_v1 = vld [vmem:[%s17679_s22 + $0x11c8] sm:$0xff] }
 0x274   : > { %v13820_v30 = vcombine.low %v2859_v15, %v2867_v16  ;;  %v2963_v8 = vld [vmem:[%s17679_s22 + $0x1240] sm:$0xff] }
 0x276   : > { %8719 = vmatpush1.bf16.msra.mxu0 %v13692_v20  ;;  %8883 = vmatpush1.bf16.msra.mxu1 %v13694_v21  ;;  %v13806_v20 = vcombine.low %v2844_v9, %v2852_v10  ;;  %v13821_v21 = vcombine.high %v2859_v15, %v2867_v16  ;;  %v2956_v9 = vld [vmem:[%s17679_s22 + $0x1208] sm:$0xff]  ;;  %v2971_v15 = vld [vmem:[%s17679_s22 + $0x1280] sm:$0xff] }
 0x277   : > { %8720 = vmatprep.subr.bf16.mxu0 %v13709_v22  ;;  %8884 = vmatprep.subr.bf16.mxu1 %v13711_v24  ;;  %v13823_v22 = vcombine.high %v2860_v17, %v2868_v18  ;;  %v2875_v24 = vld [vmem:[%s17679_s22 + $0xf80] sm:$0xff]  ;;  %v2964_v10 = vld [vmem:[%s17679_s22 + $0x1248] sm:$0xff] }
 0x278   : > { %v13836_v39 = vcombine.low %v2875_v24, %v2883_v26  ;;  %v2979_v16 = vld [vmem:[%s17679_s22 + $0x12c0] sm:$0xff] }
 0x27a   : > { %8721 = vmatpush1.bf16.msra.mxu0 %v13708_v31  ;;  %8885 = vmatpush1.bf16.msra.mxu1 %v13710_v25  ;;  %v13822_v31 = vcombine.low %v2860_v17, %v2868_v18  ;;  %v13837_v25 = vcombine.high %v2875_v24, %v2883_v26  ;;  %v2972_v17 = vld [vmem:[%s17679_s22 + $0x1288] sm:$0xff]  ;;  %v2987_v24 = vld [vmem:[%s17679_s22 + $0x1300] sm:$0xff] }
 0x27b   : > { %8722 = vmatprep.subr.bf16.mxu0 %v13725_v32  ;;  %8886 = vmatprep.subr.bf16.mxu1 %v13727_v34  ;;  %v13839_v32 = vcombine.high %v2876_v28, %v2884_v29  ;;  %v2891_v34 = vld [vmem:[%s17679_s22 + $0x1000] sm:$0xff]  ;;  %v2980_v18 = vld [vmem:[%s17679_s22 + $0x12c8] sm:$0xff] }
 0x27c   : > { %v2995_v26 = vld [vmem:[%s17679_s22 + $0x1340] sm:$0xff] }
 0x27e   : > { %8723 = vmatpush1.bf16.msra.mxu0 %v13724_v40  ;;  %8887 = vmatpush1.bf16.msra.mxu1 %v13726_v42  ;;  %v13838_v40 = vcombine.low %v2876_v28, %v2884_v29  ;;  %v13853_v42 = vcombine.high %v2891_v34, %v2899_v35  ;;  %v2988_v28 = vld [vmem:[%s17679_s22 + $0x1308] sm:$0xff] }
 0x27f   : > { %8724 = vmatprep.subr.bf16.mxu0 %v13741_v44  ;;  %8888 = vmatprep.subr.bf16.mxu1 %v13743_v45  ;;  %v13855_v44 = vcombine.high %v2892_v36, %v2900_v37  ;;  %v2907_v45 = vld [vmem:[%s17679_s22 + $0x1080] sm:$0xff]  ;;  %v2996_v29 = vld [vmem:[%s17679_s22 + $0x1348] sm:$0xff] }
 0x282   : > { %8725 = vmatpush1.bf16.msra.mxu0 %v13740_v50  ;;  %8889 = vmatpush1.bf16.msra.mxu1 %v13742_v51  ;;  %v13852_v50 = vcombine.low %v2891_v34, %v2899_v35  ;;  %v13854_v51 = vcombine.low %v2892_v36, %v2900_v37  ;;  %v3003_v34 = vld [vmem:[%s17679_s22 + $0x1380] sm:$0xff]  ;;  %v3004_v36 = vld [vmem:[%s17679_s22 + $0x1388] sm:$0xff] }
 0x283   : > { %8726 = vmatprep.subr.bf16.mxu0 %v13757_v52  ;;  %8890 = vmatprep.subr.bf16.mxu1 %v13759_v53  ;;  %v13869_v52 = vcombine.high %v2907_v45, %v2915_v46  ;;  %v13871_v53 = vcombine.high %v2908_v48, %v2916_v49  ;;  %v3011_v35 = vld [vmem:[%s17679_s22 + $0x13c0] sm:$0xff]  ;;  %v3012_v37 = vld [vmem:[%s17679_s22 + $0x13c8] sm:$0xff] }
 0x286   : > { %8727 = vmatpush1.bf16.msra.mxu0 %v13756_v58  ;;  %8891 = vmatpush1.bf16.msra.mxu1 %v13758_v59  ;;  %v13868_v58 = vcombine.low %v2907_v45, %v2915_v46  ;;  %v13870_v59 = vcombine.low %v2908_v48, %v2916_v49  ;;  %v3019_v45 = vld [vmem:[%s17679_s22 + $0x1400] sm:$0xff]  ;;  %v3020_v48 = vld [vmem:[%s17679_s22 + $0x1408] sm:$0xff] }
 0x287   : > { %8728 = vmatprep.subr.bf16.mxu0 %v13773_v60  ;;  %8892 = vmatprep.subr.bf16.mxu1 %v13775_v61  ;;  %v13885_v60 = vcombine.high %v2923_v54, %v2931_v55  ;;  %v13887_v61 = vcombine.high %v2924_v56, %v2932_v57  ;;  %v3027_v46 = vld [vmem:[%s17679_s22 + $0x1440] sm:$0xff]  ;;  %v3028_v49 = vld [vmem:[%s17679_s22 + $0x1448] sm:$0xff] }
 0x28a   : > { %8729 = vmatpush1.bf16.msra.mxu0 %v13772_v2  ;;  %8893 = vmatpush1.bf16.msra.mxu1 %v13774_v4  ;;  %v13884_v2 = vcombine.low %v2923_v54, %v2931_v55  ;;  %v13886_v4 = vcombine.low %v2924_v56, %v2932_v57  ;;  %v3035_v54 = vld [vmem:[%s17679_s22 + $0x1480] sm:$0xff]  ;;  %v3036_v56 = vld [vmem:[%s17679_s22 + $0x1488] sm:$0xff] }
 0x28b   : > { %8730 = vmatprep.subr.bf16.mxu0 %v13789_v5  ;;  %8894 = vmatprep.subr.bf16.mxu1 %v13791_v6  ;;  %v13901_v5 = vcombine.high %v2939_v62, %v2947_v63  ;;  %v13903_v6 = vcombine.high %v2940_v0, %v2948_v1  ;;  %v3043_v55 = vld [vmem:[%s17679_s22 + $0x14c0] sm:$0xff]  ;;  %v3044_v57 = vld [vmem:[%s17679_s22 + $0x14c8] sm:$0xff] }
 0x28e   : > { %8731 = vmatpush1.bf16.msra.mxu0 %v13788_v11  ;;  %8895 = vmatpush1.bf16.msra.mxu1 %v13790_v12  ;;  %v13900_v11 = vcombine.low %v2939_v62, %v2947_v63  ;;  %v13902_v12 = vcombine.low %v2940_v0, %v2948_v1  ;;  %v3051_v62 = vld [vmem:[%s17679_s22 + $0x1500] sm:$0xff]  ;;  %v3052_v0 = vld [vmem:[%s17679_s22 + $0x1508] sm:$0xff] }
 0x28f   : > { %8732 = vmatprep.subr.bf16.mxu0 %v13805_v13  ;;  %8896 = vmatprep.subr.bf16.mxu1 %v13807_v14  ;;  %v13917_v13 = vcombine.high %v2955_v7, %v2963_v8  ;;  %v13919_v14 = vcombine.high %v2956_v9, %v2964_v10  ;;  %v3059_v63 = vld [vmem:[%s17679_s22 + $0x1540] sm:$0xff]  ;;  %v3060_v1 = vld [vmem:[%s17679_s22 + $0x1548] sm:$0xff] }
 0x292   : > { %8733 = vmatpush1.bf16.msra.mxu0 %v13804_v19  ;;  %8897 = vmatpush1.bf16.msra.mxu1 %v13806_v20  ;;  %v13916_v19 = vcombine.low %v2955_v7, %v2963_v8  ;;  %v13918_v20 = vcombine.low %v2956_v9, %v2964_v10  ;;  %v3067_v7 = vld [vmem:[%s17679_s22 + $0x1580] sm:$0xff]  ;;  %v3068_v9 = vld [vmem:[%s17679_s22 + $0x1588] sm:$0xff] }
 0x293   : > { %8734 = vmatprep.subr.bf16.mxu0 %v13821_v21  ;;  %8898 = vmatprep.subr.bf16.mxu1 %v13823_v22  ;;  %v13933_v21 = vcombine.high %v2971_v15, %v2979_v16  ;;  %v13935_v22 = vcombine.high %v2972_v17, %v2980_v18  ;;  %v3075_v8 = vld [vmem:[%s17679_s22 + $0x15c0] sm:$0xff]  ;;  %v3076_v10 = vld [vmem:[%s17679_s22 + $0x15c8] sm:$0xff] }
 0x296   : > { %8735 = vmatpush1.bf16.msra.mxu0 %v13820_v30  ;;  %8899 = vmatpush1.bf16.msra.mxu1 %v13822_v31  ;;  %v13932_v30 = vcombine.low %v2971_v15, %v2979_v16  ;;  %v13934_v31 = vcombine.low %v2972_v17, %v2980_v18  ;;  %v3083_v15 = vld [vmem:[%s17679_s22 + $0x1600] sm:$0xff]  ;;  %v3084_v17 = vld [vmem:[%s17679_s22 + $0x1608] sm:$0xff] }
 0x297   : > { %8736 = vmatprep.subr.bf16.mxu0 %v13837_v25  ;;  %8900 = vmatprep.subr.bf16.mxu1 %v13839_v32  ;;  %v13949_v25 = vcombine.high %v2987_v24, %v2995_v26  ;;  %v13951_v32 = vcombine.high %v2988_v28, %v2996_v29  ;;  %v3091_v16 = vld [vmem:[%s17679_s22 + $0x1640] sm:$0xff]  ;;  %v3092_v18 = vld [vmem:[%s17679_s22 + $0x1648] sm:$0xff] }
 0x29a   : > { %8737 = vmatpush1.bf16.msra.mxu0 %v13836_v39  ;;  %8901 = vmatpush1.bf16.msra.mxu1 %v13838_v40  ;;  %v13948_v39 = vcombine.low %v2987_v24, %v2995_v26  ;;  %v13950_v40 = vcombine.low %v2988_v28, %v2996_v29  ;;  %v3099_v24 = vld [vmem:[%s17679_s22 + $0x1680] sm:$0xff]  ;;  %v3100_v28 = vld [vmem:[%s17679_s22 + $0x1688] sm:$0xff] }
 0x29b   : > { %8747 = vmatprep.subr.bf16.mxu0 %v13853_v42  ;;  %8911 = vmatprep.subr.bf16.mxu1 %v13855_v44  ;;  %v13965_v42 = vcombine.high %v3003_v34, %v3011_v35  ;;  %v13967_v44 = vcombine.high %v3004_v36, %v3012_v37  ;;  %v3107_v26 = vld [vmem:[%s17679_s22 + $0x16c0] sm:$0xff]  ;;  %v3108_v29 = vld [vmem:[%s17679_s22 + $0x16c8] sm:$0xff] }
 0x29d   : > { %8739 = vmatmul.mubr.bf16.vlgmr.msra.gmra.mrb[0].mxu0 %v17857_v47  ;;  %8903 = vmatmul.mubr.bf16.vlgmr.msra.gmra.mrb[0].mxu1 %v17857_v47 }
 0x29e   : > { %8748 = vmatpush1.bf16.msra.mxu0 %v13852_v50  ;;  %8912 = vmatpush1.bf16.msra.mxu1 %v13854_v51  ;;  %v13964_v50 = vcombine.low %v3003_v34, %v3011_v35  ;;  %v13966_v51 = vcombine.low %v3004_v36, %v3012_v37  ;;  %v3115_v34 = vld [vmem:[%s17679_s22 + $0x1700] sm:$0xff]  ;;  %v3116_v36 = vld [vmem:[%s17679_s22 + $0x1708] sm:$0xff] }
 0x29f   : > { %8749 = vmatprep.subr.bf16.mxu0 %v13869_v52  ;;  %8913 = vmatprep.subr.bf16.mxu1 %v13871_v53  ;;  %v13981_v52 = vcombine.high %v3019_v45, %v3027_v46  ;;  %v13983_v53 = vcombine.high %v3020_v48, %v3028_v49  ;;  %v3123_v35 = vld [vmem:[%s17679_s22 + $0x1740] sm:$0xff]  ;;  %v3124_v37 = vld [vmem:[%s17679_s22 + $0x1748] sm:$0xff] }
 0x2a0   : > { %8779 = vmatprep.mubr.bf16.mxu0 %v17792_v41  ;;  %8943 = vmatprep.mubr.bf16.mxu1 %v17792_v41 }
 0x2a2   : > { %8750 = vmatpush1.bf16.msra.mxu0 %v13868_v58  ;;  %8914 = vmatpush1.bf16.msra.mxu1 %v13870_v59  ;;  %v13980_v58 = vcombine.low %v3019_v45, %v3027_v46  ;;  %v13982_v59 = vcombine.low %v3020_v48, %v3028_v49  ;;  %v3131_v45 = vld [vmem:[%s17679_s22 + $0x1780] sm:$0xff]  ;;  %v3132_v48 = vld [vmem:[%s17679_s22 + $0x1788] sm:$0xff] }
 0x2a3   : > { %8751 = vmatprep.subr.bf16.mxu0 %v13885_v60  ;;  %8915 = vmatprep.subr.bf16.mxu1 %v13887_v61  ;;  %v13997_v60 = vcombine.high %v3035_v54, %v3043_v55  ;;  %v13999_v61 = vcombine.high %v3036_v56, %v3044_v57  ;;  %v3139_v46 = vld [vmem:[%s17679_s22 + $0x17c0] sm:$0xff]  ;;  %v3140_v49 = vld [vmem:[%s17679_s22 + $0x17c8] sm:$0xff] }
 0x2a6   : > { %8752 = vmatpush1.bf16.msra.mxu0 %v13884_v2  ;;  %8916 = vmatpush1.bf16.msra.mxu1 %v13886_v4  ;;  %v13996_v2 = vcombine.low %v3035_v54, %v3043_v55  ;;  %v13998_v4 = vcombine.low %v3036_v56, %v3044_v57  ;;  %v3147_v54 = vld [vmem:[%s17679_s22 + $0x1800] sm:$0xff]  ;;  %v3148_v56 = vld [vmem:[%s17679_s22 + $0x1808] sm:$0xff] }
 0x2a7   : > { %8753 = vmatprep.subr.bf16.mxu0 %v13901_v5  ;;  %8917 = vmatprep.subr.bf16.mxu1 %v13903_v6  ;;  %v14013_v5 = vcombine.high %v3051_v62, %v3059_v63  ;;  %v14015_v6 = vcombine.high %v3052_v0, %v3060_v1  ;;  %v3155_v55 = vld [vmem:[%s17679_s22 + $0x1840] sm:$0xff]  ;;  %v3156_v57 = vld [vmem:[%s17679_s22 + $0x1848] sm:$0xff] }
 0x2aa   : > { %8754 = vmatpush1.bf16.msra.mxu0 %v13900_v11  ;;  %8918 = vmatpush1.bf16.msra.mxu1 %v13902_v12  ;;  %v14012_v11 = vcombine.low %v3051_v62, %v3059_v63  ;;  %v14014_v12 = vcombine.low %v3052_v0, %v3060_v1  ;;  %v3163_v62 = vld [vmem:[%s17679_s22 + $0x1880] sm:$0xff]  ;;  %v3164_v0 = vld [vmem:[%s17679_s22 + $0x1888] sm:$0xff] }
 0x2ab   : > { %8755 = vmatprep.subr.bf16.mxu0 %v13917_v13  ;;  %8919 = vmatprep.subr.bf16.mxu1 %v13919_v14  ;;  %v14029_v13 = vcombine.high %v3067_v7, %v3075_v8  ;;  %v14031_v14 = vcombine.high %v3068_v9, %v3076_v10  ;;  %v3171_v63 = vld [vmem:[%s17679_s22 + $0x18c0] sm:$0xff]  ;;  %v3172_v1 = vld [vmem:[%s17679_s22 + $0x18c8] sm:$0xff] }
 0x2ae   : > { %8756 = vmatpush1.bf16.msra.mxu0 %v13916_v19  ;;  %8920 = vmatpush1.bf16.msra.mxu1 %v13918_v20  ;;  %v14028_v19 = vcombine.low %v3067_v7, %v3075_v8  ;;  %v14030_v20 = vcombine.low %v3068_v9, %v3076_v10  ;;  %v3179_v7 = vld [vmem:[%s17679_s22 + $0x1900] sm:$0xff]  ;;  %v17933_v9 = vcombine.high %v17792_v41, %v17792_v41  ;;  %v3180_v10 = vld [vmem:[%s17679_s22 + $0x1908] sm:$0xff] }
 0x2af   : > { %8757 = vmatprep.subr.bf16.mxu0 %v13933_v21  ;;  %8921 = vmatprep.subr.bf16.mxu1 %v13935_v22  ;;  %v14045_v21 = vcombine.high %v3083_v15, %v3091_v16  ;;  %v14047_v22 = vcombine.high %v3084_v17, %v3092_v18  ;;  %v3187_v8 = vld [vmem:[%s17679_s22 + $0x1940] sm:$0xff] }
 0x2b2   : > { %8758 = vmatpush1.bf16.msra.mxu0 %v13932_v30  ;;  %8922 = vmatpush1.bf16.msra.mxu1 %v13934_v31  ;;  %v14044_v30 = vcombine.low %v3083_v15, %v3091_v16  ;;  %v14046_v31 = vcombine.low %v3084_v17, %v3092_v18  ;;  %v3195_v16 = vld [vmem:[%s17679_s22 + $0x1980] sm:$0xff]  ;;  %v3196_v18 = vld [vmem:[%s17679_s22 + $0x1988] sm:$0xff] }
 0x2b3   : > { %8759 = vmatprep.subr.bf16.mxu0 %v13949_v25  ;;  %8923 = vmatprep.subr.bf16.mxu1 %v13951_v32  ;;  %v14061_v25 = vcombine.high %v3099_v24, %v3107_v26  ;;  %v14063_v32 = vcombine.high %v3100_v28, %v3108_v29  ;;  %v3203_v17 = vld [vmem:[%s17679_s22 + $0x19c0] sm:$0xff] }
 0x2b6   : > { %8760 = vmatpush1.bf16.msra.mxu0 %v13948_v39  ;;  %8924 = vmatpush1.bf16.msra.mxu1 %v13950_v40  ;;  %v14060_v39 = vcombine.low %v3099_v24, %v3107_v26  ;;  %v14062_v40 = vcombine.low %v3100_v28, %v3108_v29  ;;  %v3211_v26 = vld [vmem:[%s17679_s22 + $0x1a00] sm:$0xff]  ;;  %v3212_v29 = vld [vmem:[%s17679_s22 + $0x1a08] sm:$0xff] }
 0x2b7   : > { %8761 = vmatprep.subr.bf16.mxu0 %v13965_v42  ;;  %8925 = vmatprep.subr.bf16.mxu1 %v13967_v44  ;;  %v14077_v42 = vcombine.high %v3115_v34, %v3123_v35  ;;  %v14079_v44 = vcombine.high %v3116_v36, %v3124_v37  ;;  %v3219_v28 = vld [vmem:[%s17679_s22 + $0x1a40] sm:$0xff] }
 0x2ba   : > { %8762 = vmatpush1.bf16.msra.mxu0 %v13964_v50  ;;  %8926 = vmatpush1.bf16.msra.mxu1 %v13966_v51  ;;  %v14076_v50 = vcombine.low %v3115_v34, %v3123_v35  ;;  %v14078_v51 = vcombine.low %v3116_v36, %v3124_v37  ;;  %v3227_v35 = vld [vmem:[%s17679_s22 + $0x1a80] sm:$0xff]  ;;  %v3228_v37 = vld [vmem:[%s17679_s22 + $0x1a88] sm:$0xff] }
 0x2bb   : > { %8763 = vmatprep.subr.bf16.mxu0 %v13981_v52  ;;  %8927 = vmatprep.subr.bf16.mxu1 %v13983_v53  ;;  %v14093_v52 = vcombine.high %v3131_v45, %v3139_v46  ;;  %v14095_v53 = vcombine.high %v3132_v48, %v3140_v49  ;;  %v3235_v36 = vld [vmem:[%s17679_s22 + $0x1ac0] sm:$0xff] }
 0x2be   : > { %8764 = vmatpush1.bf16.msra.mxu0 %v13980_v58  ;;  %8928 = vmatpush1.bf16.msra.mxu1 %v13982_v59  ;;  %v14092_v58 = vcombine.low %v3131_v45, %v3139_v46  ;;  %v14094_v59 = vcombine.low %v3132_v48, %v3140_v49  ;;  %v3243_v46 = vld [vmem:[%s17679_s22 + $0x1b00] sm:$0xff]  ;;  %v3244_v49 = vld [vmem:[%s17679_s22 + $0x1b08] sm:$0xff] }
 0x2bf   : > { %8765 = vmatprep.subr.bf16.mxu0 %v13997_v60  ;;  %8929 = vmatprep.subr.bf16.mxu1 %v13999_v61  ;;  %v14109_v60 = vcombine.high %v3147_v54, %v3155_v55  ;;  %v14111_v61 = vcombine.high %v3148_v56, %v3156_v57  ;;  %v3251_v48 = vld [vmem:[%s17679_s22 + $0x1b40] sm:$0xff] }
 0x2c2   : > { %8766 = vmatpush1.bf16.msra.mxu0 %v13996_v2  ;;  %8930 = vmatpush1.bf16.msra.mxu1 %v13998_v4  ;;  %v14108_v2 = vcombine.low %v3147_v54, %v3155_v55  ;;  %v14110_v4 = vcombine.low %v3148_v56, %v3156_v57  ;;  %v3259_v55 = vld [vmem:[%s17679_s22 + $0x1b80] sm:$0xff]  ;;  %v3260_v57 = vld [vmem:[%s17679_s22 + $0x1b88] sm:$0xff] }
 0x2c3   : > { %8767 = vmatprep.subr.bf16.mxu0 %v14013_v5  ;;  %8931 = vmatprep.subr.bf16.mxu1 %v14015_v6  ;;  %v14125_v5 = vcombine.high %v3163_v62, %v3171_v63  ;;  %v14127_v6 = vcombine.high %v3164_v0, %v3172_v1  ;;  %v3267_v56 = vld [vmem:[%s17679_s22 + $0x1bc0] sm:$0xff] }
 0x2c6   : > { %8768 = vmatpush1.bf16.msra.mxu0 %v14012_v11  ;;  %8932 = vmatpush1.bf16.msra.mxu1 %v14014_v12  ;;  %v3188_v11 = vld [vmem:[%s17679_s22 + $0x1948] sm:$0xff]  ;;  %v14124_v12 = vcombine.low %v3163_v62, %v3171_v63  ;;  %v3275_v63 = vld [vmem:[%s17679_s22 + $0x1c00] sm:$0xff] }
 0x2c7   : > { %8769 = vmatprep.subr.bf16.mxu0 %v14029_v13  ;;  %8933 = vmatprep.subr.bf16.mxu1 %v14031_v14  ;;  %v14126_v13 = vcombine.low %v3164_v0, %v3172_v1  ;;  %v14141_v14 = vcombine.high %v3179_v7, %v3187_v8  ;;  %v14143_v15 = vcombine.high %v3180_v10, %v3188_v11  ;;  %v3283_v0 = vld [vmem:[%s17679_s22 + $0x1c40] sm:$0xff]  ;;  %v3276_v1 = vld [vmem:[%s17679_s22 + $0x1c08] sm:$0xff] }
 0x2ca   : > { %8770 = vmatpush1.bf16.msra.mxu0 %v14028_v19  ;;  %8934 = vmatpush1.bf16.msra.mxu1 %v14030_v20  ;;  %v3204_v19 = vld [vmem:[%s17679_s22 + $0x19c8] sm:$0xff]  ;;  %v14140_v20 = vcombine.low %v3179_v7, %v3187_v8  ;;  %v3291_v8 = vld [vmem:[%s17679_s22 + $0x1c80] sm:$0xff] }
 0x2cb   : > { %8771 = vmatprep.subr.bf16.mxu0 %v14045_v21  ;;  %8935 = vmatprep.subr.bf16.mxu1 %v14047_v22  ;;  %v14142_v21 = vcombine.low %v3180_v10, %v3188_v11  ;;  %v14157_v22 = vcombine.high %v3195_v16, %v3203_v17  ;;  %v14159_v24 = vcombine.high %v3196_v18, %v3204_v19  ;;  %v3299_v10 = vld [vmem:[%s17679_s22 + $0x1cc0] sm:$0xff]  ;;  %v3292_v11 = vld [vmem:[%s17679_s22 + $0x1c88] sm:$0xff] }
 0x2ce   : > { %8772 = vmatpush1.bf16.msra.mxu0 %v14044_v30  ;;  %8936 = vmatpush1.bf16.msra.mxu1 %v14046_v31  ;;  %v3220_v30 = vld [vmem:[%s17679_s22 + $0x1a48] sm:$0xff]  ;;  %v14156_v31 = vcombine.low %v3195_v16, %v3203_v17  ;;  %v3307_v17 = vld [vmem:[%s17679_s22 + $0x1d00] sm:$0xff] }
 0x2cf   : > { %8773 = vmatprep.subr.bf16.mxu0 %v14061_v25  ;;  %8937 = vmatprep.subr.bf16.mxu1 %v14063_v32  ;;  %v14158_v25 = vcombine.low %v3196_v18, %v3204_v19  ;;  %v14173_v32 = vcombine.high %v3211_v26, %v3219_v28  ;;  %v14175_v34 = vcombine.high %v3212_v29, %v3220_v30  ;;  %v3315_v18 = vld [vmem:[%s17679_s22 + $0x1d40] sm:$0xff]  ;;  %v3308_v19 = vld [vmem:[%s17679_s22 + $0x1d08] sm:$0xff] }
 0x2d2   : > { %8774 = vmatpush1.bf16.msra.mxu0 %v14060_v39  ;;  %8938 = vmatpush1.bf16.msra.mxu1 %v14062_v40  ;;  %v3236_v39 = vld [vmem:[%s17679_s22 + $0x1ac8] sm:$0xff]  ;;  %v14172_v40 = vcombine.low %v3211_v26, %v3219_v28  ;;  %v3323_v28 = vld [vmem:[%s17679_s22 + $0x1d80] sm:$0xff] }
 0x2d3   : > { %8775 = vmatprep.subr.bf16.mxu0 %v14077_v42  ;;  %8939 = vmatprep.subr.bf16.mxu1 %v14079_v44  ;;  %v14174_v42 = vcombine.low %v3212_v29, %v3220_v30  ;;  %v14189_v44 = vcombine.high %v3227_v35, %v3235_v36  ;;  %v14191_v45 = vcombine.high %v3228_v37, %v3236_v39  ;;  %v3331_v29 = vld [vmem:[%s17679_s22 + $0x1dc0] sm:$0xff]  ;;  %v3324_v30 = vld [vmem:[%s17679_s22 + $0x1d88] sm:$0xff] }
 0x2d6   : > { %8776 = vmatpush1.bf16.msra.mxu0 %v14076_v50  ;;  %8940 = vmatpush1.bf16.msra.mxu1 %v14078_v51  ;;  %v3252_v50 = vld [vmem:[%s17679_s22 + $0x1b48] sm:$0xff]  ;;  %v14188_v51 = vcombine.low %v3227_v35, %v3235_v36  ;;  %v3339_v36 = vld [vmem:[%s17679_s22 + $0x1e00] sm:$0xff] }
 0x2d7   : > { %8777 = vmatprep.subr.bf16.mxu0 %v14093_v52  ;;  %8941 = vmatprep.subr.bf16.mxu1 %v14095_v53  ;;  %v14190_v52 = vcombine.low %v3228_v37, %v3236_v39  ;;  %v14205_v53 = vcombine.high %v3243_v46, %v3251_v48  ;;  %v14207_v54 = vcombine.high %v3244_v49, %v3252_v50  ;;  %v3347_v37 = vld [vmem:[%s17679_s22 + $0x1e40] sm:$0xff]  ;;  %v3340_v39 = vld [vmem:[%s17679_s22 + $0x1e08] sm:$0xff] }
 0x2da   : > { %8778 = vmatpush1.bf16.msra.mxu0 %v14092_v58  ;;  %8942 = vmatpush1.bf16.msra.mxu1 %v14094_v59  ;;  %v3268_v58 = vld [vmem:[%s17679_s22 + $0x1bc8] sm:$0xff]  ;;  %v14204_v59 = vcombine.low %v3243_v46, %v3251_v48  ;;  %v3355_v48 = vld [vmem:[%s17679_s22 + $0x1e80] sm:$0xff] }
 0x2db   : > { %8788 = vmatprep.subr.bf16.mxu0 %v14109_v60  ;;  %8952 = vmatprep.subr.bf16.mxu1 %v14111_v61  ;;  %v14206_v60 = vcombine.low %v3244_v49, %v3252_v50  ;;  %v14221_v61 = vcombine.high %v3259_v55, %v3267_v56  ;;  %v14223_v62 = vcombine.high %v3260_v57, %v3268_v58  ;;  %v3363_v49 = vld [vmem:[%s17679_s22 + $0x1ec0] sm:$0xff]  ;;  %v3356_v50 = vld [vmem:[%s17679_s22 + $0x1e88] sm:$0xff] }
 0x2dd   : > { %8780 = vmatmul.mubr.bf16.vlgmr.msra.gmra.mrb[0].mxu0 %v17786_v38  ;;  %8944 = vmatmul.mubr.bf16.vlgmr.msra.gmra.mrb[0].mxu1 %v17786_v38 }
 0x2de   : > { %8789 = vmatpush1.bf16.msra.mxu0 %v14108_v2  ;;  %8953 = vmatpush1.bf16.msra.mxu1 %v14110_v4  ;;  %v3284_v2 = vld [vmem:[%s17679_s22 + $0x1c48] sm:$0xff]  ;;  %v14220_v4 = vcombine.low %v3259_v55, %v3267_v56  ;;  %v3371_v56 = vld [vmem:[%s17679_s22 + $0x1f00] sm:$0xff] }
 0x2df   : > { %8790 = vmatprep.subr.bf16.mxu0 %v14125_v5  ;;  %8954 = vmatprep.subr.bf16.mxu1 %v14127_v6  ;;  %v14222_v5 = vcombine.low %v3260_v57, %v3268_v58  ;;  %v14237_v6 = vcombine.high %v3275_v63, %v3283_v0  ;;  %v14239_v7 = vcombine.high %v3276_v1, %v3284_v2  ;;  %v3379_v57 = vld [vmem:[%s17679_s22 + $0x1f40] sm:$0xff]  ;;  %v3372_v58 = vld [vmem:[%s17679_s22 + $0x1f08] sm:$0xff] }
 0x2e0   : > { %8820 = vmatprep.mubr.bf16.mxu0 %v17933_v9  ;;  %8984 = vmatprep.mubr.bf16.mxu1 %v17933_v9 }
 0x2e2   : > { %8791 = vmatpush1.bf16.msra.mxu0 %v14124_v12  ;;  %8955 = vmatpush1.bf16.msra.mxu1 %v14126_v13  ;;  %v3300_v12 = vld [vmem:[%s17679_s22 + $0x1cc8] sm:$0xff]  ;;  %v14236_v13 = vcombine.low %v3275_v63, %v3283_v0  ;;  %v3387_v0 = vld [vmem:[%s17679_s22 + $0x1f80] sm:$0xff] }
 0x2e3   : > { %8792 = vmatprep.subr.bf16.mxu0 %v14141_v14  ;;  %8956 = vmatprep.subr.bf16.mxu1 %v14143_v15  ;;  %v14238_v14 = vcombine.low %v3276_v1, %v3284_v2  ;;  %v14253_v15 = vcombine.high %v3291_v8, %v3299_v10  ;;  %v14255_v16 = vcombine.high %v3292_v11, %v3300_v12  ;;  %v3395_v1 = vld [vmem:[%s17679_s22 + $0x1fc0] sm:$0xff]  ;;  %v3388_v2 = vld [vmem:[%s17679_s22 + $0x1f88] sm:$0xff] }
 0x2e6   : > { %8793 = vmatpush1.bf16.msra.mxu0 %v14140_v20  ;;  %8957 = vmatpush1.bf16.msra.mxu1 %v14142_v21  ;;  %v3316_v20 = vld [vmem:[%s17679_s22 + $0x1d48] sm:$0xff]  ;;  %v14252_v21 = vcombine.low %v3291_v8, %v3299_v10  ;;  %v2381_v10 = vld [vmem:[%s17679_s22 + $0x10] sm:$0xff] }
 0x2e7   : > { %8794 = vmatprep.subr.bf16.mxu0 %v14157_v22  ;;  %8958 = vmatprep.subr.bf16.mxu1 %v14159_v24  ;;  %v14254_v22 = vcombine.low %v3292_v11, %v3300_v12  ;;  %v14269_v24 = vcombine.high %v3307_v17, %v3315_v18  ;;  %v14271_v26 = vcombine.high %v3308_v19, %v3316_v20  ;;  %v2389_v11 = vld [vmem:[%s17679_s22 + $0x50] sm:$0xff]  ;;  %v2382_v12 = vld [vmem:[%s17679_s22 + $0x18] sm:$0xff] }
 0x2ea   : > { %8795 = vmatpush1.bf16.msra.mxu0 %v14156_v31  ;;  %8959 = vmatpush1.bf16.msra.mxu1 %v14158_v25  ;;  %v3332_v31 = vld [vmem:[%s17679_s22 + $0x1dc8] sm:$0xff]  ;;  %v14268_v25 = vcombine.low %v3307_v17, %v3315_v18  ;;  %v2397_v18 = vld [vmem:[%s17679_s22 + $0x90] sm:$0xff] }
 0x2eb   : > { %8796 = vmatprep.subr.bf16.mxu0 %v14173_v32  ;;  %8960 = vmatprep.subr.bf16.mxu1 %v14175_v34  ;;  %v14270_v32 = vcombine.low %v3308_v19, %v3316_v20  ;;  %v14285_v34 = vcombine.high %v3323_v28, %v3331_v29  ;;  %v14287_v35 = vcombine.high %v3324_v30, %v3332_v31  ;;  %v2405_v19 = vld [vmem:[%s17679_s22 + $0xd0] sm:$0xff] }
 0x2ec   : > { %v18001_v20 = vcombine.high %v17786_v38, %v17786_v38 }
 0x2ee   : > { %8797 = vmatpush1.bf16.msra.mxu0 %v14172_v40  ;;  %8961 = vmatpush1.bf16.msra.mxu1 %v14174_v42  ;;  %v3348_v40 = vld [vmem:[%s17679_s22 + $0x1e48] sm:$0xff]  ;;  %v14284_v42 = vcombine.low %v3323_v28, %v3331_v29  ;;  %v13361_v28 = vcombine.high %v2397_v18, %v2405_v19 }
 0x2ef   : > { %8798 = vmatprep.subr.bf16.mxu0 %v14189_v44  ;;  %8962 = vmatprep.subr.bf16.mxu1 %v14191_v45  ;;  %v14286_v44 = vcombine.low %v3324_v30, %v3332_v31  ;;  %v14301_v45 = vcombine.high %v3339_v36, %v3347_v37  ;;  %v14303_v46 = vcombine.high %v3340_v39, %v3348_v40  ;;  %v2413_v30 = vld [vmem:[%s17679_s22 + $0x110] sm:$0xff] }
 0x2f0   : > { %v2421_v31 = vld [vmem:[%s17679_s22 + $0x150] sm:$0xff] }
 0x2f2   : > { %8799 = vmatpush1.bf16.msra.mxu0 %v14188_v51  ;;  %8963 = vmatpush1.bf16.msra.mxu1 %v14190_v52  ;;  %v3364_v51 = vld [vmem:[%s17679_s22 + $0x1ec8] sm:$0xff]  ;;  %v14300_v52 = vcombine.low %v3339_v36, %v3347_v37  ;;  %v13377_v36 = vcombine.high %v2413_v30, %v2421_v31 }
 0x2f3   : > { %8800 = vmatprep.subr.bf16.mxu0 %v14205_v53  ;;  %8964 = vmatprep.subr.bf16.mxu1 %v14207_v54  ;;  %v14302_v53 = vcombine.low %v3340_v39, %v3348_v40  ;;  %v14317_v54 = vcombine.high %v3355_v48, %v3363_v49  ;;  %v14319_v55 = vcombine.high %v3356_v50, %v3364_v51  ;;  %v2429_v39 = vld [vmem:[%s17679_s22 + $0x190] sm:$0xff] }
 0x2f4   : > { %v2437_v40 = vld [vmem:[%s17679_s22 + $0x1d0] sm:$0xff] }
 0x2f6   : > { %8801 = vmatpush1.bf16.msra.mxu0 %v14204_v59  ;;  %8965 = vmatpush1.bf16.msra.mxu1 %v14206_v60  ;;  %v3380_v59 = vld [vmem:[%s17679_s22 + $0x1f48] sm:$0xff]  ;;  %v14316_v60 = vcombine.low %v3355_v48, %v3363_v49  ;;  %v13393_v48 = vcombine.high %v2429_v39, %v2437_v40 }
 0x2f7   : > { %8802 = vmatprep.subr.bf16.mxu0 %v14221_v61  ;;  %8966 = vmatprep.subr.bf16.mxu1 %v14223_v62  ;;  %v14318_v61 = vcombine.low %v3356_v50, %v3364_v51  ;;  %v14333_v62 = vcombine.high %v3371_v56, %v3379_v57  ;;  %v14335_v63 = vcombine.high %v3372_v58, %v3380_v59  ;;  %v2445_v50 = vld [vmem:[%s17679_s22 + $0x210] sm:$0xff] }
 0x2f8   : > { %v2453_v51 = vld [vmem:[%s17679_s22 + $0x250] sm:$0xff] }
 0x2fa   : > { %8803 = vmatpush1.bf16.msra.mxu0 %v14220_v4  ;;  %8967 = vmatpush1.bf16.msra.mxu1 %v14222_v5  ;;  %v3396_v4 = vld [vmem:[%s17679_s22 + $0x1fc8] sm:$0xff]  ;;  %v14332_v5 = vcombine.low %v3371_v56, %v3379_v57  ;;  %v13409_v56 = vcombine.high %v2445_v50, %v2453_v51 }
 0x2fb   : > { %8804 = vmatprep.subr.bf16.mxu0 %v14237_v6  ;;  %8968 = vmatprep.subr.bf16.mxu1 %v14239_v7  ;;  %v14334_v6 = vcombine.low %v3372_v58, %v3380_v59  ;;  %v14349_v7 = vcombine.high %v3387_v0, %v3395_v1  ;;  %v14351_v8 = vcombine.high %v3388_v2, %v3396_v4  ;;  %v2461_v58 = vld [vmem:[%s17679_s22 + $0x290] sm:$0xff] }
 0x2fc   : > { %v2469_v59 = vld [vmem:[%s17679_s22 + $0x2d0] sm:$0xff] }
 0x2fe   : > { %8805 = vmatpush1.bf16.msra.mxu0 %v14236_v13  ;;  %8969 = vmatpush1.bf16.msra.mxu1 %v14238_v14  ;;  %v2390_v13 = vld [vmem:[%s17679_s22 + $0x58] sm:$0xff]  ;;  %v14348_v14 = vcombine.low %v3387_v0, %v3395_v1  ;;  %v13425_v0 = vcombine.high %v2461_v58, %v2469_v59 }
 0x2ff   : > { %8806 = vmatprep.subr.bf16.mxu0 %v14253_v15  ;;  %8970 = vmatprep.subr.bf16.mxu1 %v14255_v16  ;;  %v14350_v15 = vcombine.low %v3388_v2, %v3396_v4  ;;  %v13345_v16 = vcombine.high %v2381_v10, %v2389_v11  ;;  %v13347_v17 = vcombine.high %v2382_v12, %v2390_v13  ;;  %v2477_v2 = vld [vmem:[%s17679_s22 + $0x310] sm:$0xff] }
 0x300   : > { %v2485_v4 = vld [vmem:[%s17679_s22 + $0x350] sm:$0xff] }
 0x302   : > { %8807 = vmatpush1.bf16.msra.mxu0 %v14252_v21  ;;  %8971 = vmatpush1.bf16.msra.mxu1 %v14254_v22  ;;  %v2398_v21 = vld [vmem:[%s17679_s22 + $0x98] sm:$0xff] }
 0x303   : > { %8808 = vmatprep.subr.bf16.mxu0 %v14269_v24  ;;  %8972 = vmatprep.subr.bf16.mxu1 %v14271_v26  ;;  %v2406_v22 = vld [vmem:[%s17679_s22 + $0xd8] sm:$0xff]  ;;  %v13344_v24 = vcombine.low %v2381_v10, %v2389_v11  ;;  %v13346_v26 = vcombine.low %v2382_v12, %v2390_v13  ;;  %v13441_v10 = vcombine.high %v2477_v2, %v2485_v4  ;;  %v2493_v12 = vld [vmem:[%s17679_s22 + $0x390] sm:$0xff] }
 0x304   : > { %v13363_v29 = vcombine.high %v2398_v21, %v2406_v22  ;;  %v2501_v13 = vld [vmem:[%s17679_s22 + $0x3d0] sm:$0xff] }
 0x306   : > { %8809 = vmatpush1.bf16.msra.mxu0 %v14268_v25  ;;  %8973 = vmatpush1.bf16.msra.mxu1 %v14270_v32  ;;  %v2414_v25 = vld [vmem:[%s17679_s22 + $0x118] sm:$0xff] }
 0x307   : > { %8810 = vmatprep.subr.bf16.mxu0 %v14285_v34  ;;  %8974 = vmatprep.subr.bf16.mxu1 %v14287_v35  ;;  %v2422_v32 = vld [vmem:[%s17679_s22 + $0x158] sm:$0xff]  ;;  %v13360_v34 = vcombine.low %v2397_v18, %v2405_v19  ;;  %v13362_v35 = vcombine.low %v2398_v21, %v2406_v22  ;;  %v13457_v18 = vcombine.high %v2493_v12, %v2501_v13  ;;  %v2509_v21 = vld [vmem:[%s17679_s22 + $0x410] sm:$0xff] }
 0x308   : > { %v13379_v37 = vcombine.high %v2414_v25, %v2422_v32  ;;  %v2517_v22 = vld [vmem:[%s17679_s22 + $0x450] sm:$0xff] }
 0x30a   : > { %8811 = vmatpush1.bf16.msra.mxu0 %v14284_v42  ;;  %8975 = vmatpush1.bf16.msra.mxu1 %v14286_v44  ;;  %v2430_v42 = vld [vmem:[%s17679_s22 + $0x198] sm:$0xff] }
 0x30b   : > { %8812 = vmatprep.subr.bf16.mxu0 %v14301_v45  ;;  %8976 = vmatprep.subr.bf16.mxu1 %v14303_v46  ;;  %v2438_v44 = vld [vmem:[%s17679_s22 + $0x1d8] sm:$0xff]  ;;  %v13376_v45 = vcombine.low %v2413_v30, %v2421_v31  ;;  %v13378_v46 = vcombine.low %v2414_v25, %v2422_v32  ;;  %v13473_v30 = vcombine.high %v2509_v21, %v2517_v22  ;;  %v2525_v25 = vld [vmem:[%s17679_s22 + $0x490] sm:$0xff] }
 0x30c   : > { %v13395_v49 = vcombine.high %v2430_v42, %v2438_v44  ;;  %v2533_v32 = vld [vmem:[%s17679_s22 + $0x4d0] sm:$0xff] }
 0x30e   : > { %8813 = vmatpush1.bf16.msra.mxu0 %v14300_v52  ;;  %8977 = vmatpush1.bf16.msra.mxu1 %v14302_v53  ;;  %v2446_v52 = vld [vmem:[%s17679_s22 + $0x218] sm:$0xff] }
 0x30f   : > { %8814 = vmatprep.subr.bf16.mxu0 %v14317_v54  ;;  %8978 = vmatprep.subr.bf16.mxu1 %v14319_v55  ;;  %v2454_v53 = vld [vmem:[%s17679_s22 + $0x258] sm:$0xff]  ;;  %v13392_v54 = vcombine.low %v2429_v39, %v2437_v40  ;;  %v13394_v55 = vcombine.low %v2430_v42, %v2438_v44  ;;  %v13489_v39 = vcombine.high %v2525_v25, %v2533_v32  ;;  %v2541_v42 = vld [vmem:[%s17679_s22 + $0x510] sm:$0xff] }
 0x310   : > { %v13411_v57 = vcombine.high %v2446_v52, %v2454_v53  ;;  %v2549_v44 = vld [vmem:[%s17679_s22 + $0x550] sm:$0xff] }
 0x312   : > { %8815 = vmatpush1.bf16.msra.mxu0 %v14316_v60  ;;  %8979 = vmatpush1.bf16.msra.mxu1 %v14318_v61  ;;  %v2462_v60 = vld [vmem:[%s17679_s22 + $0x298] sm:$0xff] }
 0x313   : > { %8816 = vmatprep.subr.bf16.mxu0 %v14333_v62  ;;  %8980 = vmatprep.subr.bf16.mxu1 %v14335_v63  ;;  %v2470_v61 = vld [vmem:[%s17679_s22 + $0x2d8] sm:$0xff]  ;;  %v13408_v62 = vcombine.low %v2445_v50, %v2453_v51  ;;  %v13410_v63 = vcombine.low %v2446_v52, %v2454_v53  ;;  %v13505_v50 = vcombine.high %v2541_v42, %v2549_v44  ;;  %v2557_v52 = vld [vmem:[%s17679_s22 + $0x590] sm:$0xff] }
 0x314   : > { %v13427_v1 = vcombine.high %v2462_v60, %v2470_v61  ;;  %v2565_v53 = vld [vmem:[%s17679_s22 + $0x5d0] sm:$0xff] }
 0x316   : > { %8817 = vmatpush1.bf16.msra.mxu0 %v14332_v5  ;;  %8981 = vmatpush1.bf16.msra.mxu1 %v14334_v6  ;;  %v2478_v5 = vld [vmem:[%s17679_s22 + $0x318] sm:$0xff] }
 0x317   : > { %8818 = vmatprep.subr.bf16.mxu0 %v14349_v7  ;;  %8982 = vmatprep.subr.bf16.mxu1 %v14351_v8  ;;  %v2486_v6 = vld [vmem:[%s17679_s22 + $0x358] sm:$0xff]  ;;  %v13424_v7 = vcombine.low %v2461_v58, %v2469_v59  ;;  %v13426_v8 = vcombine.low %v2462_v60, %v2470_v61  ;;  %v13521_v58 = vcombine.high %v2557_v52, %v2565_v53  ;;  %v2573_v60 = vld [vmem:[%s17679_s22 + $0x610] sm:$0xff] }
 0x318   : > { %v13443_v11 = vcombine.high %v2478_v5, %v2486_v6  ;;  %v2581_v61 = vld [vmem:[%s17679_s22 + $0x650] sm:$0xff] }
 0x31a   : > { %8819 = vmatpush1.bf16.msra.mxu0 %v14348_v14  ;;  %8983 = vmatpush1.bf16.msra.mxu1 %v14350_v15  ;;  %v2494_v14 = vld [vmem:[%s17679_s22 + $0x398] sm:$0xff] }
 0x31b   : > { %8993 = vmatprep.subr.bf16.mxu0 %v13345_v16  ;;  %9157 = vmatprep.subr.bf16.mxu1 %v13347_v17  ;;  %v2502_v15 = vld [vmem:[%s17679_s22 + $0x3d8] sm:$0xff]  ;;  %v13440_v16 = vcombine.low %v2477_v2, %v2485_v4  ;;  %v13442_v17 = vcombine.low %v2478_v5, %v2486_v6  ;;  %v13537_v2 = vcombine.high %v2573_v60, %v2581_v61  ;;  %v2589_v5 = vld [vmem:[%s17679_s22 + $0x690] sm:$0xff] }
 0x31c   : > { %v13459_v19 = vcombine.high %v2494_v14, %v2502_v15  ;;  %v2597_v6 = vld [vmem:[%s17679_s22 + $0x6d0] sm:$0xff] }
 0x31d   : > { %8821 = vmatmul.mubr.bf16.vlgmr.msra.gmra.mrb[0].mxu0 %v18001_v20  ;;  %8985 = vmatmul.mubr.bf16.vlgmr.msra.gmra.mrb[0].mxu1 %v18001_v20 }
 0x31e   : > { %8994 = vmatpush1.bf16.msra.mxu0 %v13344_v24  ;;  %9158 = vmatpush1.bf16.msra.mxu1 %v13346_v26  ;;  %v2510_v24 = vld [vmem:[%s17679_s22 + $0x418] sm:$0xff] }
 0x31f   : > { %8995 = vmatprep.subr.bf16.mxu0 %v13361_v28  ;;  %9159 = vmatprep.subr.bf16.mxu1 %v13363_v29  ;;  %v2518_v26 = vld [vmem:[%s17679_s22 + $0x458] sm:$0xff]  ;;  %v13456_v28 = vcombine.low %v2493_v12, %v2501_v13  ;;  %v13458_v29 = vcombine.low %v2494_v14, %v2502_v15  ;;  %v13553_v12 = vcombine.high %v2589_v5, %v2597_v6  ;;  %v2605_v14 = vld [vmem:[%s17679_s22 + $0x710] sm:$0xff] }
 0x320   : > { %9025 = vmatprep.mubr.bf16.mxu0 %v17716_v43  ;;  %9189 = vmatprep.mubr.bf16.mxu1 %v17716_v43  ;;  %v13475_v31 = vcombine.high %v2510_v24, %v2518_v26  ;;  %v2613_v15 = vld [vmem:[%s17679_s22 + $0x750] sm:$0xff] }
 0x322   : > { %8996 = vmatpush1.bf16.msra.mxu0 %v13360_v34  ;;  %9160 = vmatpush1.bf16.msra.mxu1 %v13362_v35  ;;  %v2526_v34 = vld [vmem:[%s17679_s22 + $0x498] sm:$0xff] }
 0x323   : > { %8997 = vmatprep.subr.bf16.mxu0 %v13377_v36  ;;  %9161 = vmatprep.subr.bf16.mxu1 %v13379_v37  ;;  %v2534_v35 = vld [vmem:[%s17679_s22 + $0x4d8] sm:$0xff]  ;;  %v13472_v36 = vcombine.low %v2509_v21, %v2517_v22  ;;  %v13474_v37 = vcombine.low %v2510_v24, %v2518_v26  ;;  %v13569_v21 = vcombine.high %v2605_v14, %v2613_v15  ;;  %v2621_v24 = vld [vmem:[%s17679_s22 + $0x790] sm:$0xff] }
 0x324   : > { %v13491_v40 = vcombine.high %v2526_v34, %v2534_v35  ;;  %v2629_v26 = vld [vmem:[%s17679_s22 + $0x7d0] sm:$0xff] }
 0x326   : > { %8998 = vmatpush1.bf16.msra.mxu0 %v13376_v45  ;;  %9162 = vmatpush1.bf16.msra.mxu1 %v13378_v46  ;;  %v2542_v45 = vld [vmem:[%s17679_s22 + $0x518] sm:$0xff] }
 0x327   : > { %8999 = vmatprep.subr.bf16.mxu0 %v13393_v48  ;;  %9163 = vmatprep.subr.bf16.mxu1 %v13395_v49  ;;  %v2550_v46 = vld [vmem:[%s17679_s22 + $0x558] sm:$0xff]  ;;  %v13488_v48 = vcombine.low %v2525_v25, %v2533_v32  ;;  %v13490_v49 = vcombine.low %v2526_v34, %v2534_v35  ;;  %v13585_v25 = vcombine.high %v2621_v24, %v2629_v26  ;;  %v2637_v34 = vld [vmem:[%s17679_s22 + $0x810] sm:$0xff] }
 0x328   : > { %v13507_v51 = vcombine.high %v2542_v45, %v2550_v46  ;;  %v2645_v35 = vld [vmem:[%s17679_s22 + $0x850] sm:$0xff] }
 0x32a   : > { %9000 = vmatpush1.bf16.msra.mxu0 %v13392_v54  ;;  %9164 = vmatpush1.bf16.msra.mxu1 %v13394_v55  ;;  %v2558_v54 = vld [vmem:[%s17679_s22 + $0x598] sm:$0xff] }
 0x32b   : > { %9001 = vmatprep.subr.bf16.mxu0 %v13409_v56  ;;  %9165 = vmatprep.subr.bf16.mxu1 %v13411_v57  ;;  %v2566_v55 = vld [vmem:[%s17679_s22 + $0x5d8] sm:$0xff]  ;;  %v13504_v56 = vcombine.low %v2541_v42, %v2549_v44  ;;  %v13506_v57 = vcombine.low %v2542_v45, %v2550_v46  ;;  %v13601_v42 = vcombine.high %v2637_v34, %v2645_v35  ;;  %v2653_v45 = vld [vmem:[%s17679_s22 + $0x890] sm:$0xff] }
 0x32c   : > { %v13523_v59 = vcombine.high %v2558_v54, %v2566_v55  ;;  %v2661_v46 = vld [vmem:[%s17679_s22 + $0x8d0] sm:$0xff] }
 0x32e   : > { %9002 = vmatpush1.bf16.msra.mxu0 %v13408_v62  ;;  %9166 = vmatpush1.bf16.msra.mxu1 %v13410_v63  ;;  %v2574_v62 = vld [vmem:[%s17679_s22 + $0x618] sm:$0xff] }
 0x32f   : > { %9003 = vmatprep.subr.bf16.mxu0 %v13425_v0  ;;  %9167 = vmatprep.subr.bf16.mxu1 %v13427_v1  ;;  %v2582_v63 = vld [vmem:[%s17679_s22 + $0x658] sm:$0xff]  ;;  %v13520_v0 = vcombine.low %v2557_v52, %v2565_v53  ;;  %v13522_v1 = vcombine.low %v2558_v54, %v2566_v55  ;;  %v13617_v52 = vcombine.high %v2653_v45, %v2661_v46  ;;  %v2669_v54 = vld [vmem:[%s17679_s22 + $0x910] sm:$0xff] }
 0x330   : > { %v13539_v4 = vcombine.high %v2574_v62, %v2582_v63  ;;  %v2677_v55 = vld [vmem:[%s17679_s22 + $0x950] sm:$0xff] }
 0x332   : > { %9004 = vmatpush1.bf16.msra.mxu0 %v13424_v7  ;;  %9168 = vmatpush1.bf16.msra.mxu1 %v13426_v8  ;;  %v2590_v7 = vld [vmem:[%s17679_s22 + $0x698] sm:$0xff] }
 0x333   : > { %9005 = vmatprep.subr.bf16.mxu0 %v13441_v10  ;;  %9169 = vmatprep.subr.bf16.mxu1 %v13443_v11  ;;  %v2598_v8 = vld [vmem:[%s17679_s22 + $0x6d8] sm:$0xff]  ;;  %v13536_v10 = vcombine.low %v2573_v60, %v2581_v61  ;;  %v13538_v11 = vcombine.low %v2574_v62, %v2582_v63  ;;  %v13633_v60 = vcombine.high %v2669_v54, %v2677_v55  ;;  %v2685_v62 = vld [vmem:[%s17679_s22 + $0x990] sm:$0xff] }
 0x334   : > { %v13555_v13 = vcombine.high %v2590_v7, %v2598_v8  ;;  %v2693_v63 = vld [vmem:[%s17679_s22 + $0x9d0] sm:$0xff] }
 0x336   : > { %9006 = vmatpush1.bf16.msra.mxu0 %v13440_v16  ;;  %9170 = vmatpush1.bf16.msra.mxu1 %v13442_v17  ;;  %v2606_v16 = vld [vmem:[%s17679_s22 + $0x718] sm:$0xff] }
 0x337   : > { %9007 = vmatprep.subr.bf16.mxu0 %v13457_v18  ;;  %9171 = vmatprep.subr.bf16.mxu1 %v13459_v19  ;;  %v2614_v17 = vld [vmem:[%s17679_s22 + $0x758] sm:$0xff]  ;;  %v13552_v18 = vcombine.low %v2589_v5, %v2597_v6  ;;  %v13554_v19 = vcombine.low %v2590_v7, %v2598_v8  ;;  %v13649_v5 = vcombine.high %v2685_v62, %v2693_v63  ;;  %v2701_v7 = vld [vmem:[%s17679_s22 + $0xa10] sm:$0xff] }
 0x338   : > { %v13571_v22 = vcombine.high %v2606_v16, %v2614_v17  ;;  %v2709_v8 = vld [vmem:[%s17679_s22 + $0xa50] sm:$0xff] }
 0x33a   : > { %9008 = vmatpush1.bf16.msra.mxu0 %v13456_v28  ;;  %9172 = vmatpush1.bf16.msra.mxu1 %v13458_v29  ;;  %v2622_v28 = vld [vmem:[%s17679_s22 + $0x798] sm:$0xff] }
 0x33b   : > { %9009 = vmatprep.subr.bf16.mxu0 %v13473_v30  ;;  %9173 = vmatprep.subr.bf16.mxu1 %v13475_v31  ;;  %v2630_v29 = vld [vmem:[%s17679_s22 + $0x7d8] sm:$0xff]  ;;  %v13568_v30 = vcombine.low %v2605_v14, %v2613_v15  ;;  %v13570_v31 = vcombine.low %v2606_v16, %v2614_v17  ;;  %v13665_v14 = vcombine.high %v2701_v7, %v2709_v8  ;;  %v2717_v16 = vld [vmem:[%s17679_s22 + $0xa90] sm:$0xff] }
 0x33c   : > { %v13587_v32 = vcombine.high %v2622_v28, %v2630_v29  ;;  %v2725_v17 = vld [vmem:[%s17679_s22 + $0xad0] sm:$0xff] }
 0x33e   : > { %9010 = vmatpush1.bf16.msra.mxu0 %v13472_v36  ;;  %9174 = vmatpush1.bf16.msra.mxu1 %v13474_v37  ;;  %v2638_v36 = vld [vmem:[%s17679_s22 + $0x818] sm:$0xff] }
 0x33f   : > { %9011 = vmatprep.subr.bf16.mxu0 %v13489_v39  ;;  %9175 = vmatprep.subr.bf16.mxu1 %v13491_v40  ;;  %v2646_v37 = vld [vmem:[%s17679_s22 + $0x858] sm:$0xff]  ;;  %v13584_v39 = vcombine.low %v2621_v24, %v2629_v26  ;;  %v13586_v40 = vcombine.low %v2622_v28, %v2630_v29  ;;  %v13681_v24 = vcombine.high %v2717_v16, %v2725_v17  ;;  %v2733_v28 = vld [vmem:[%s17679_s22 + $0xb10] sm:$0xff] }
 0x340   : > { %v13603_v44 = vcombine.high %v2638_v36, %v2646_v37  ;;  %v2741_v29 = vld [vmem:[%s17679_s22 + $0xb50] sm:$0xff] }
 0x342   : > { %9012 = vmatpush1.bf16.msra.mxu0 %v13488_v48  ;;  %9176 = vmatpush1.bf16.msra.mxu1 %v13490_v49  ;;  %v2654_v48 = vld [vmem:[%s17679_s22 + $0x898] sm:$0xff] }
 0x343   : > { %9013 = vmatprep.subr.bf16.mxu0 %v13505_v50  ;;  %9177 = vmatprep.subr.bf16.mxu1 %v13507_v51  ;;  %v2662_v49 = vld [vmem:[%s17679_s22 + $0x8d8] sm:$0xff]  ;;  %v13600_v50 = vcombine.low %v2637_v34, %v2645_v35  ;;  %v13602_v51 = vcombine.low %v2638_v36, %v2646_v37  ;;  %v13697_v34 = vcombine.high %v2733_v28, %v2741_v29  ;;  %v2749_v36 = vld [vmem:[%s17679_s22 + $0xb90] sm:$0xff] }
 0x344   : > { %v13619_v53 = vcombine.high %v2654_v48, %v2662_v49  ;;  %v2757_v37 = vld [vmem:[%s17679_s22 + $0xbd0] sm:$0xff] }
 0x346   : > { %9014 = vmatpush1.bf16.msra.mxu0 %v13504_v56  ;;  %9178 = vmatpush1.bf16.msra.mxu1 %v13506_v57  ;;  %v2670_v56 = vld [vmem:[%s17679_s22 + $0x918] sm:$0xff] }
 0x347   : > { %9015 = vmatprep.subr.bf16.mxu0 %v13521_v58  ;;  %9179 = vmatprep.subr.bf16.mxu1 %v13523_v59  ;;  %v2678_v57 = vld [vmem:[%s17679_s22 + $0x958] sm:$0xff]  ;;  %v13616_v58 = vcombine.low %v2653_v45, %v2661_v46  ;;  %v13618_v59 = vcombine.low %v2654_v48, %v2662_v49  ;;  %v13713_v45 = vcombine.high %v2749_v36, %v2757_v37  ;;  %v2765_v48 = vld [vmem:[%s17679_s22 + $0xc10] sm:$0xff] }
 0x348   : > { %v13635_v61 = vcombine.high %v2670_v56, %v2678_v57  ;;  %v2773_v49 = vld [vmem:[%s17679_s22 + $0xc50] sm:$0xff] }
 0x34a   : > { %9016 = vmatpush1.bf16.msra.mxu0 %v13520_v0  ;;  %9180 = vmatpush1.bf16.msra.mxu1 %v13522_v1  ;;  %v2686_v0 = vld [vmem:[%s17679_s22 + $0x998] sm:$0xff] }
 0x34b   : > { %9017 = vmatprep.subr.bf16.mxu0 %v13537_v2  ;;  %9181 = vmatprep.subr.bf16.mxu1 %v13539_v4  ;;  %v2694_v1 = vld [vmem:[%s17679_s22 + $0x9d8] sm:$0xff]  ;;  %v13632_v2 = vcombine.low %v2669_v54, %v2677_v55  ;;  %v13634_v4 = vcombine.low %v2670_v56, %v2678_v57  ;;  %v13729_v54 = vcombine.high %v2765_v48, %v2773_v49  ;;  %v2781_v56 = vld [vmem:[%s17679_s22 + $0xc90] sm:$0xff] }
 0x34c   : > { %v13651_v6 = vcombine.high %v2686_v0, %v2694_v1  ;;  %v2789_v57 = vld [vmem:[%s17679_s22 + $0xcd0] sm:$0xff] }
 0x34e   : > { %9018 = vmatpush1.bf16.msra.mxu0 %v13536_v10  ;;  %9182 = vmatpush1.bf16.msra.mxu1 %v13538_v11  ;;  %v2702_v10 = vld [vmem:[%s17679_s22 + $0xa18] sm:$0xff] }
 0x34f   : > { %9019 = vmatprep.subr.bf16.mxu0 %v13553_v12  ;;  %9183 = vmatprep.subr.bf16.mxu1 %v13555_v13  ;;  %v2710_v11 = vld [vmem:[%s17679_s22 + $0xa58] sm:$0xff]  ;;  %v13648_v12 = vcombine.low %v2685_v62, %v2693_v63  ;;  %v13650_v13 = vcombine.low %v2686_v0, %v2694_v1  ;;  %v13745_v62 = vcombine.high %v2781_v56, %v2789_v57  ;;  %v2797_v0 = vld [vmem:[%s17679_s22 + $0xd10] sm:$0xff] }
 0x350   : > { %v13667_v15 = vcombine.high %v2702_v10, %v2710_v11  ;;  %v2805_v1 = vld [vmem:[%s17679_s22 + $0xd50] sm:$0xff] }
 0x352   : > { %9020 = vmatpush1.bf16.msra.mxu0 %v13552_v18  ;;  %9184 = vmatpush1.bf16.msra.mxu1 %v13554_v19  ;;  %v2718_v18 = vld [vmem:[%s17679_s22 + $0xa98] sm:$0xff] }
 0x353   : > { %9021 = vmatprep.subr.bf16.mxu0 %v13569_v21  ;;  %9185 = vmatprep.subr.bf16.mxu1 %v13571_v22  ;;  %v2726_v19 = vld [vmem:[%s17679_s22 + $0xad8] sm:$0xff]  ;;  %v13664_v21 = vcombine.low %v2701_v7, %v2709_v8  ;;  %v13666_v22 = vcombine.low %v2702_v10, %v2710_v11  ;;  %v13761_v7 = vcombine.high %v2797_v0, %v2805_v1  ;;  %v2813_v10 = vld [vmem:[%s17679_s22 + $0xd90] sm:$0xff] }
 0x354   : > { %v13683_v26 = vcombine.high %v2718_v18, %v2726_v19  ;;  %v2821_v11 = vld [vmem:[%s17679_s22 + $0xdd0] sm:$0xff] }
 0x356   : > { %9022 = vmatpush1.bf16.msra.mxu0 %v13568_v30  ;;  %9186 = vmatpush1.bf16.msra.mxu1 %v13570_v31  ;;  %v2734_v30 = vld [vmem:[%s17679_s22 + $0xb18] sm:$0xff] }
 0x357   : > { %9023 = vmatprep.subr.bf16.mxu0 %v13585_v25  ;;  %9187 = vmatprep.subr.bf16.mxu1 %v13587_v32  ;;  %v2742_v31 = vld [vmem:[%s17679_s22 + $0xb58] sm:$0xff]  ;;  %v13680_v25 = vcombine.low %v2717_v16, %v2725_v17  ;;  %v13682_v32 = vcombine.low %v2718_v18, %v2726_v19  ;;  %v13777_v16 = vcombine.high %v2813_v10, %v2821_v11  ;;  %v2829_v18 = vld [vmem:[%s17679_s22 + $0xe10] sm:$0xff] }
 0x358   : > { %v13699_v35 = vcombine.high %v2734_v30, %v2742_v31  ;;  %v2837_v19 = vld [vmem:[%s17679_s22 + $0xe50] sm:$0xff] }
 0x35a   : > { %9024 = vmatpush1.bf16.msra.mxu0 %v13584_v39  ;;  %9188 = vmatpush1.bf16.msra.mxu1 %v13586_v40  ;;  %v2750_v39 = vld [vmem:[%s17679_s22 + $0xb98] sm:$0xff] }
 0x35b   : > { %9034 = vmatprep.subr.bf16.mxu0 %v13601_v42  ;;  %9198 = vmatprep.subr.bf16.mxu1 %v13603_v44  ;;  %v2758_v40 = vld [vmem:[%s17679_s22 + $0xbd8] sm:$0xff]  ;;  %v13696_v42 = vcombine.low %v2733_v28, %v2741_v29  ;;  %v13698_v44 = vcombine.low %v2734_v30, %v2742_v31  ;;  %v13793_v28 = vcombine.high %v2829_v18, %v2837_v19  ;;  %v2845_v30 = vld [vmem:[%s17679_s22 + $0xe90] sm:$0xff] }
 0x35c   : > { %v13715_v46 = vcombine.high %v2750_v39, %v2758_v40  ;;  %v2853_v31 = vld [vmem:[%s17679_s22 + $0xed0] sm:$0xff] }
 0x35d   : > { %9026 = vmatmul.mubr.bf16.vlgmr.msra.gmra.mrb[4].mxu0 %v17774_v27  ;;  %9190 = vmatmul.mubr.bf16.vlgmr.msra.gmra.mrb[4].mxu1 %v17774_v27 }
 0x35e   : > { %9035 = vmatpush1.bf16.msra.mxu0 %v13600_v50  ;;  %9199 = vmatpush1.bf16.msra.mxu1 %v13602_v51  ;;  %v2766_v50 = vld [vmem:[%s17679_s22 + $0xc18] sm:$0xff] }
 0x35f   : > { %9036 = vmatprep.subr.bf16.mxu0 %v13617_v52  ;;  %9200 = vmatprep.subr.bf16.mxu1 %v13619_v53  ;;  %v2774_v51 = vld [vmem:[%s17679_s22 + $0xc58] sm:$0xff]  ;;  %v13712_v52 = vcombine.low %v2749_v36, %v2757_v37  ;;  %v13714_v53 = vcombine.low %v2750_v39, %v2758_v40  ;;  %v13809_v36 = vcombine.high %v2845_v30, %v2853_v31  ;;  %v2861_v39 = vld [vmem:[%s17679_s22 + $0xf10] sm:$0xff] }
 0x360   : > { %9066 = vmatprep.mubr.bf16.mxu0 %v17783_v33  ;;  %9230 = vmatprep.mubr.bf16.mxu1 %v17783_v33  ;;  %v13731_v55 = vcombine.high %v2766_v50, %v2774_v51  ;;  %v2869_v40 = vld [vmem:[%s17679_s22 + $0xf50] sm:$0xff] }
 0x362   : > { %9037 = vmatpush1.bf16.msra.mxu0 %v13616_v58  ;;  %9201 = vmatpush1.bf16.msra.mxu1 %v13618_v59  ;;  %v2782_v58 = vld [vmem:[%s17679_s22 + $0xc98] sm:$0xff] }
 0x363   : > { %9038 = vmatprep.subr.bf16.mxu0 %v13633_v60  ;;  %9202 = vmatprep.subr.bf16.mxu1 %v13635_v61  ;;  %v2790_v59 = vld [vmem:[%s17679_s22 + $0xcd8] sm:$0xff]  ;;  %v13728_v60 = vcombine.low %v2765_v48, %v2773_v49  ;;  %v13730_v61 = vcombine.low %v2766_v50, %v2774_v51  ;;  %v13825_v48 = vcombine.high %v2861_v39, %v2869_v40  ;;  %v2877_v50 = vld [vmem:[%s17679_s22 + $0xf90] sm:$0xff] }
 0x364   : > { %v13747_v63 = vcombine.high %v2782_v58, %v2790_v59  ;;  %v2885_v51 = vld [vmem:[%s17679_s22 + $0xfd0] sm:$0xff] }
 0x366   : > { %9039 = vmatpush1.bf16.msra.mxu0 %v13632_v2  ;;  %9203 = vmatpush1.bf16.msra.mxu1 %v13634_v4  ;;  %v2798_v2 = vld [vmem:[%s17679_s22 + $0xd18] sm:$0xff] }
 0x367   : > { %9040 = vmatprep.subr.bf16.mxu0 %v13649_v5  ;;  %9204 = vmatprep.subr.bf16.mxu1 %v13651_v6  ;;  %v2806_v4 = vld [vmem:[%s17679_s22 + $0xd58] sm:$0xff]  ;;  %v13744_v5 = vcombine.low %v2781_v56, %v2789_v57  ;;  %v13746_v6 = vcombine.low %v2782_v58, %v2790_v59  ;;  %v13841_v56 = vcombine.high %v2877_v50, %v2885_v51  ;;  %v2893_v58 = vld [vmem:[%s17679_s22 + $0x1010] sm:$0xff] }
 0x368   : > { %v13763_v8 = vcombine.high %v2798_v2, %v2806_v4  ;;  %v2901_v59 = vld [vmem:[%s17679_s22 + $0x1050] sm:$0xff] }
 0x36a   : > { %9041 = vmatpush1.bf16.msra.mxu0 %v13648_v12  ;;  %9205 = vmatpush1.bf16.msra.mxu1 %v13650_v13  ;;  %v2814_v12 = vld [vmem:[%s17679_s22 + $0xd98] sm:$0xff] }
 0x36b   : > { %9042 = vmatprep.subr.bf16.mxu0 %v13665_v14  ;;  %9206 = vmatprep.subr.bf16.mxu1 %v13667_v15  ;;  %v2822_v13 = vld [vmem:[%s17679_s22 + $0xdd8] sm:$0xff]  ;;  %v13760_v14 = vcombine.low %v2797_v0, %v2805_v1  ;;  %v13762_v15 = vcombine.low %v2798_v2, %v2806_v4  ;;  %v13857_v0 = vcombine.high %v2893_v58, %v2901_v59  ;;  %v2909_v2 = vld [vmem:[%s17679_s22 + $0x1090] sm:$0xff] }
 0x36c   : > { %v13779_v17 = vcombine.high %v2814_v12, %v2822_v13  ;;  %v2917_v4 = vld [vmem:[%s17679_s22 + $0x10d0] sm:$0xff] }
 0x36e   : > { %9043 = vmatpush1.bf16.msra.mxu0 %v13664_v21  ;;  %9207 = vmatpush1.bf16.msra.mxu1 %v13666_v22  ;;  %v2830_v21 = vld [vmem:[%s17679_s22 + $0xe18] sm:$0xff] }
 0x36f   : > { %9044 = vmatprep.subr.bf16.mxu0 %v13681_v24  ;;  %9208 = vmatprep.subr.bf16.mxu1 %v13683_v26  ;;  %v2838_v22 = vld [vmem:[%s17679_s22 + $0xe58] sm:$0xff]  ;;  %v13776_v24 = vcombine.low %v2813_v10, %v2821_v11  ;;  %v13778_v26 = vcombine.low %v2814_v12, %v2822_v13  ;;  %v13873_v10 = vcombine.high %v2909_v2, %v2917_v4  ;;  %v2925_v12 = vld [vmem:[%s17679_s22 + $0x1110] sm:$0xff] }
 0x370   : > { %v13795_v29 = vcombine.high %v2830_v21, %v2838_v22  ;;  %v2933_v13 = vld [vmem:[%s17679_s22 + $0x1150] sm:$0xff] }
 0x372   : > { %9045 = vmatpush1.bf16.msra.mxu0 %v13680_v25  ;;  %9209 = vmatpush1.bf16.msra.mxu1 %v13682_v32  ;;  %v2846_v25 = vld [vmem:[%s17679_s22 + $0xe98] sm:$0xff] }
 0x373   : > { %9046 = vmatprep.subr.bf16.mxu0 %v13697_v34  ;;  %9210 = vmatprep.subr.bf16.mxu1 %v13699_v35  ;;  %v2854_v32 = vld [vmem:[%s17679_s22 + $0xed8] sm:$0xff]  ;;  %v13792_v34 = vcombine.low %v2829_v18, %v2837_v19  ;;  %v13794_v35 = vcombine.low %v2830_v21, %v2838_v22  ;;  %v13889_v18 = vcombine.high %v2925_v12, %v2933_v13  ;;  %v2941_v21 = vld [vmem:[%s17679_s22 + $0x1190] sm:$0xff] }
 0x374   : > { %v13811_v37 = vcombine.high %v2846_v25, %v2854_v32  ;;  %v2949_v22 = vld [vmem:[%s17679_s22 + $0x11d0] sm:$0xff] }
 0x376   : > { %9047 = vmatpush1.bf16.msra.mxu0 %v13696_v42  ;;  %9211 = vmatpush1.bf16.msra.mxu1 %v13698_v44  ;;  %v2862_v42 = vld [vmem:[%s17679_s22 + $0xf18] sm:$0xff] }
 0x377   : > { %9048 = vmatprep.subr.bf16.mxu0 %v13713_v45  ;;  %9212 = vmatprep.subr.bf16.mxu1 %v13715_v46  ;;  %v2870_v44 = vld [vmem:[%s17679_s22 + $0xf58] sm:$0xff]  ;;  %v13808_v45 = vcombine.low %v2845_v30, %v2853_v31  ;;  %v13810_v46 = vcombine.low %v2846_v25, %v2854_v32  ;;  %v13905_v30 = vcombine.high %v2941_v21, %v2949_v22  ;;  %v2957_v25 = vld [vmem:[%s17679_s22 + $0x1210] sm:$0xff] }
 0x378   : > { %v13827_v49 = vcombine.high %v2862_v42, %v2870_v44  ;;  %v2965_v32 = vld [vmem:[%s17679_s22 + $0x1250] sm:$0xff] }
 0x37a   : > { %9049 = vmatpush1.bf16.msra.mxu0 %v13712_v52  ;;  %9213 = vmatpush1.bf16.msra.mxu1 %v13714_v53  ;;  %v2878_v52 = vld [vmem:[%s17679_s22 + $0xf98] sm:$0xff] }
 0x37b   : > { %9050 = vmatprep.subr.bf16.mxu0 %v13729_v54  ;;  %9214 = vmatprep.subr.bf16.mxu1 %v13731_v55  ;;  %v2886_v53 = vld [vmem:[%s17679_s22 + $0xfd8] sm:$0xff]  ;;  %v13824_v54 = vcombine.low %v2861_v39, %v2869_v40  ;;  %v13826_v55 = vcombine.low %v2862_v42, %v2870_v44  ;;  %v13921_v39 = vcombine.high %v2957_v25, %v2965_v32  ;;  %v2973_v42 = vld [vmem:[%s17679_s22 + $0x1290] sm:$0xff] }
 0x37c   : > { %v13843_v57 = vcombine.high %v2878_v52, %v2886_v53  ;;  %v2981_v44 = vld [vmem:[%s17679_s22 + $0x12d0] sm:$0xff] }
 0x37e   : > { %9051 = vmatpush1.bf16.msra.mxu0 %v13728_v60  ;;  %9215 = vmatpush1.bf16.msra.mxu1 %v13730_v61  ;;  %v2894_v60 = vld [vmem:[%s17679_s22 + $0x1018] sm:$0xff] }
 0x37f   : > { %9052 = vmatprep.subr.bf16.mxu0 %v13745_v62  ;;  %9216 = vmatprep.subr.bf16.mxu1 %v13747_v63  ;;  %v2902_v61 = vld [vmem:[%s17679_s22 + $0x1058] sm:$0xff]  ;;  %v13840_v62 = vcombine.low %v2877_v50, %v2885_v51  ;;  %v13842_v63 = vcombine.low %v2878_v52, %v2886_v53  ;;  %v13937_v50 = vcombine.high %v2973_v42, %v2981_v44  ;;  %v2989_v52 = vld [vmem:[%s17679_s22 + $0x1310] sm:$0xff] }
 0x380   : > { %v13859_v1 = vcombine.high %v2894_v60, %v2902_v61  ;;  %v2997_v53 = vld [vmem:[%s17679_s22 + $0x1350] sm:$0xff] }
 0x382   : > { %9053 = vmatpush1.bf16.msra.mxu0 %v13744_v5  ;;  %9217 = vmatpush1.bf16.msra.mxu1 %v13746_v6  ;;  %v2910_v5 = vld [vmem:[%s17679_s22 + $0x1098] sm:$0xff] }
 0x383   : > { %9054 = vmatprep.subr.bf16.mxu0 %v13761_v7  ;;  %9218 = vmatprep.subr.bf16.mxu1 %v13763_v8  ;;  %v2918_v6 = vld [vmem:[%s17679_s22 + $0x10d8] sm:$0xff]  ;;  %v13856_v7 = vcombine.low %v2893_v58, %v2901_v59  ;;  %v13858_v8 = vcombine.low %v2894_v60, %v2902_v61  ;;  %v13953_v58 = vcombine.high %v2989_v52, %v2997_v53  ;;  %v3005_v60 = vld [vmem:[%s17679_s22 + $0x1390] sm:$0xff] }
 0x384   : > { %v13875_v11 = vcombine.high %v2910_v5, %v2918_v6  ;;  %v3013_v61 = vld [vmem:[%s17679_s22 + $0x13d0] sm:$0xff] }
 0x386   : > { %9055 = vmatpush1.bf16.msra.mxu0 %v13760_v14  ;;  %9219 = vmatpush1.bf16.msra.mxu1 %v13762_v15  ;;  %v2926_v14 = vld [vmem:[%s17679_s22 + $0x1118] sm:$0xff] }
 0x387   : > { %9056 = vmatprep.subr.bf16.mxu0 %v13777_v16  ;;  %9220 = vmatprep.subr.bf16.mxu1 %v13779_v17  ;;  %v2934_v15 = vld [vmem:[%s17679_s22 + $0x1158] sm:$0xff]  ;;  %v13872_v16 = vcombine.low %v2909_v2, %v2917_v4  ;;  %v13874_v17 = vcombine.low %v2910_v5, %v2918_v6  ;;  %v13969_v2 = vcombine.high %v3005_v60, %v3013_v61  ;;  %v3021_v5 = vld [vmem:[%s17679_s22 + $0x1410] sm:$0xff] }
 0x388   : > { %v13891_v19 = vcombine.high %v2926_v14, %v2934_v15  ;;  %v3029_v6 = vld [vmem:[%s17679_s22 + $0x1450] sm:$0xff] }
 0x38a   : > { %9057 = vmatpush1.bf16.msra.mxu0 %v13776_v24  ;;  %9221 = vmatpush1.bf16.msra.mxu1 %v13778_v26  ;;  %v2942_v24 = vld [vmem:[%s17679_s22 + $0x1198] sm:$0xff] }
 0x38b   : > { %9058 = vmatprep.subr.bf16.mxu0 %v13793_v28  ;;  %9222 = vmatprep.subr.bf16.mxu1 %v13795_v29  ;;  %v2950_v26 = vld [vmem:[%s17679_s22 + $0x11d8] sm:$0xff]  ;;  %v13888_v28 = vcombine.low %v2925_v12, %v2933_v13  ;;  %v13890_v29 = vcombine.low %v2926_v14, %v2934_v15  ;;  %v13985_v12 = vcombine.high %v3021_v5, %v3029_v6  ;;  %v3037_v14 = vld [vmem:[%s17679_s22 + $0x1490] sm:$0xff] }
 0x38c   : > { %v13907_v31 = vcombine.high %v2942_v24, %v2950_v26  ;;  %v3045_v15 = vld [vmem:[%s17679_s22 + $0x14d0] sm:$0xff] }
 0x38e   : > { %9059 = vmatpush1.bf16.msra.mxu0 %v13792_v34  ;;  %9223 = vmatpush1.bf16.msra.mxu1 %v13794_v35  ;;  %v2958_v34 = vld [vmem:[%s17679_s22 + $0x1218] sm:$0xff] }
 0x38f   : > { %9060 = vmatprep.subr.bf16.mxu0 %v13809_v36  ;;  %9224 = vmatprep.subr.bf16.mxu1 %v13811_v37  ;;  %v2966_v35 = vld [vmem:[%s17679_s22 + $0x1258] sm:$0xff]  ;;  %v13904_v36 = vcombine.low %v2941_v21, %v2949_v22  ;;  %v13906_v37 = vcombine.low %v2942_v24, %v2950_v26  ;;  %v14001_v21 = vcombine.high %v3037_v14, %v3045_v15  ;;  %v3053_v24 = vld [vmem:[%s17679_s22 + $0x1510] sm:$0xff] }
 0x390   : > { %v13923_v40 = vcombine.high %v2958_v34, %v2966_v35  ;;  %v3061_v26 = vld [vmem:[%s17679_s22 + $0x1550] sm:$0xff] }
 0x392   : > { %9061 = vmatpush1.bf16.msra.mxu0 %v13808_v45  ;;  %9225 = vmatpush1.bf16.msra.mxu1 %v13810_v46  ;;  %v2974_v45 = vld [vmem:[%s17679_s22 + $0x1298] sm:$0xff] }
 0x393   : > { %9062 = vmatprep.subr.bf16.mxu0 %v13825_v48  ;;  %9226 = vmatprep.subr.bf16.mxu1 %v13827_v49  ;;  %v2982_v46 = vld [vmem:[%s17679_s22 + $0x12d8] sm:$0xff]  ;;  %v13920_v48 = vcombine.low %v2957_v25, %v2965_v32  ;;  %v13922_v49 = vcombine.low %v2958_v34, %v2966_v35  ;;  %v14017_v25 = vcombine.high %v3053_v24, %v3061_v26  ;;  %v3069_v34 = vld [vmem:[%s17679_s22 + $0x1590] sm:$0xff] }
 0x394   : > { %v13939_v51 = vcombine.high %v2974_v45, %v2982_v46  ;;  %v3077_v35 = vld [vmem:[%s17679_s22 + $0x15d0] sm:$0xff] }
 0x396   : > { %9063 = vmatpush1.bf16.msra.mxu0 %v13824_v54  ;;  %9227 = vmatpush1.bf16.msra.mxu1 %v13826_v55  ;;  %v2990_v54 = vld [vmem:[%s17679_s22 + $0x1318] sm:$0xff] }
 0x397   : > { %9064 = vmatprep.subr.bf16.mxu0 %v13841_v56  ;;  %9228 = vmatprep.subr.bf16.mxu1 %v13843_v57  ;;  %v2998_v55 = vld [vmem:[%s17679_s22 + $0x1358] sm:$0xff]  ;;  %v13936_v56 = vcombine.low %v2973_v42, %v2981_v44  ;;  %v13938_v57 = vcombine.low %v2974_v45, %v2982_v46  ;;  %v14033_v42 = vcombine.high %v3069_v34, %v3077_v35  ;;  %v3085_v45 = vld [vmem:[%s17679_s22 + $0x1610] sm:$0xff] }
 0x398   : > { %v13955_v59 = vcombine.high %v2990_v54, %v2998_v55  ;;  %v3093_v46 = vld [vmem:[%s17679_s22 + $0x1650] sm:$0xff] }
 0x39a   : > { %9065 = vmatpush1.bf16.msra.mxu0 %v13840_v62  ;;  %9229 = vmatpush1.bf16.msra.mxu1 %v13842_v63  ;;  %v3006_v62 = vld [vmem:[%s17679_s22 + $0x1398] sm:$0xff] }
 0x39b   : > { %9075 = vmatprep.subr.bf16.mxu0 %v13857_v0  ;;  %9239 = vmatprep.subr.bf16.mxu1 %v13859_v1  ;;  %v3014_v63 = vld [vmem:[%s17679_s22 + $0x13d8] sm:$0xff]  ;;  %v13952_v0 = vcombine.low %v2989_v52, %v2997_v53  ;;  %v13954_v1 = vcombine.low %v2990_v54, %v2998_v55  ;;  %v14049_v52 = vcombine.high %v3085_v45, %v3093_v46  ;;  %v3101_v54 = vld [vmem:[%s17679_s22 + $0x1690] sm:$0xff] }
 0x39c   : > { %v13971_v4 = vcombine.high %v3006_v62, %v3014_v63  ;;  %v3109_v55 = vld [vmem:[%s17679_s22 + $0x16d0] sm:$0xff] }
 0x39d   : > { %9067 = vmatmul.mubr.bf16.vlgmr.msra.gmra.mrb[4].mxu0 %v17857_v47  ;;  %9231 = vmatmul.mubr.bf16.vlgmr.msra.gmra.mrb[4].mxu1 %v17857_v47 }
 0x39e   : > { %9076 = vmatpush1.bf16.msra.mxu0 %v13856_v7  ;;  %9240 = vmatpush1.bf16.msra.mxu1 %v13858_v8  ;;  %v3022_v7 = vld [vmem:[%s17679_s22 + $0x1418] sm:$0xff] }
 0x39f   : > { %9077 = vmatprep.subr.bf16.mxu0 %v13873_v10  ;;  %9241 = vmatprep.subr.bf16.mxu1 %v13875_v11  ;;  %v3030_v8 = vld [vmem:[%s17679_s22 + $0x1458] sm:$0xff]  ;;  %v13968_v10 = vcombine.low %v3005_v60, %v3013_v61  ;;  %v13970_v11 = vcombine.low %v3006_v62, %v3014_v63  ;;  %v14065_v60 = vcombine.high %v3101_v54, %v3109_v55  ;;  %v3117_v62 = vld [vmem:[%s17679_s22 + $0x1710] sm:$0xff] }
 0x3a0   : > { %9107 = vmatprep.mubr.bf16.mxu0 %v17792_v41  ;;  %9271 = vmatprep.mubr.bf16.mxu1 %v17792_v41  ;;  %v13987_v13 = vcombine.high %v3022_v7, %v3030_v8  ;;  %v3125_v63 = vld [vmem:[%s17679_s22 + $0x1750] sm:$0xff] }
 0x3a2   : > { %9078 = vmatpush1.bf16.msra.mxu0 %v13872_v16  ;;  %9242 = vmatpush1.bf16.msra.mxu1 %v13874_v17  ;;  %v3038_v16 = vld [vmem:[%s17679_s22 + $0x1498] sm:$0xff] }
 0x3a3   : > { %9079 = vmatprep.subr.bf16.mxu0 %v13889_v18  ;;  %9243 = vmatprep.subr.bf16.mxu1 %v13891_v19  ;;  %v3046_v17 = vld [vmem:[%s17679_s22 + $0x14d8] sm:$0xff]  ;;  %v13984_v18 = vcombine.low %v3021_v5, %v3029_v6  ;;  %v13986_v19 = vcombine.low %v3022_v7, %v3030_v8  ;;  %v14081_v5 = vcombine.high %v3117_v62, %v3125_v63  ;;  %v3133_v7 = vld [vmem:[%s17679_s22 + $0x1790] sm:$0xff] }
 0x3a4   : > { %v14003_v22 = vcombine.high %v3038_v16, %v3046_v17  ;;  %v3141_v8 = vld [vmem:[%s17679_s22 + $0x17d0] sm:$0xff] }
 0x3a6   : > { %9080 = vmatpush1.bf16.msra.mxu0 %v13888_v28  ;;  %9244 = vmatpush1.bf16.msra.mxu1 %v13890_v29  ;;  %v3054_v28 = vld [vmem:[%s17679_s22 + $0x1518] sm:$0xff] }
 0x3a7   : > { %9081 = vmatprep.subr.bf16.mxu0 %v13905_v30  ;;  %9245 = vmatprep.subr.bf16.mxu1 %v13907_v31  ;;  %v3062_v29 = vld [vmem:[%s17679_s22 + $0x1558] sm:$0xff]  ;;  %v14000_v30 = vcombine.low %v3037_v14, %v3045_v15  ;;  %v14002_v31 = vcombine.low %v3038_v16, %v3046_v17  ;;  %v14097_v14 = vcombine.high %v3133_v7, %v3141_v8  ;;  %v3149_v16 = vld [vmem:[%s17679_s22 + $0x1810] sm:$0xff] }
 0x3a8   : > { %v14019_v32 = vcombine.high %v3054_v28, %v3062_v29  ;;  %v3157_v17 = vld [vmem:[%s17679_s22 + $0x1850] sm:$0xff] }
 0x3aa   : > { %9082 = vmatpush1.bf16.msra.mxu0 %v13904_v36  ;;  %9246 = vmatpush1.bf16.msra.mxu1 %v13906_v37  ;;  %v3070_v36 = vld [vmem:[%s17679_s22 + $0x1598] sm:$0xff] }
 0x3ab   : > { %9083 = vmatprep.subr.bf16.mxu0 %v13921_v39  ;;  %9247 = vmatprep.subr.bf16.mxu1 %v13923_v40  ;;  %v3078_v37 = vld [vmem:[%s17679_s22 + $0x15d8] sm:$0xff]  ;;  %v14016_v39 = vcombine.low %v3053_v24, %v3061_v26  ;;  %v14018_v40 = vcombine.low %v3054_v28, %v3062_v29  ;;  %v14113_v24 = vcombine.high %v3149_v16, %v3157_v17  ;;  %v3165_v28 = vld [vmem:[%s17679_s22 + $0x1890] sm:$0xff] }
 0x3ac   : > { %v14035_v44 = vcombine.high %v3070_v36, %v3078_v37  ;;  %v3173_v29 = vld [vmem:[%s17679_s22 + $0x18d0] sm:$0xff] }
 0x3ae   : > { %9084 = vmatpush1.bf16.msra.mxu0 %v13920_v48  ;;  %9248 = vmatpush1.bf16.msra.mxu1 %v13922_v49  ;;  %v3086_v48 = vld [vmem:[%s17679_s22 + $0x1618] sm:$0xff] }
 0x3af   : > { %9085 = vmatprep.subr.bf16.mxu0 %v13937_v50  ;;  %9249 = vmatprep.subr.bf16.mxu1 %v13939_v51  ;;  %v3094_v49 = vld [vmem:[%s17679_s22 + $0x1658] sm:$0xff]  ;;  %v14032_v50 = vcombine.low %v3069_v34, %v3077_v35  ;;  %v14034_v51 = vcombine.low %v3070_v36, %v3078_v37  ;;  %v14129_v34 = vcombine.high %v3165_v28, %v3173_v29  ;;  %v3181_v36 = vld [vmem:[%s17679_s22 + $0x1910] sm:$0xff] }
 0x3b0   : > { %v14051_v53 = vcombine.high %v3086_v48, %v3094_v49  ;;  %v3189_v37 = vld [vmem:[%s17679_s22 + $0x1950] sm:$0xff] }
 0x3b2   : > { %9086 = vmatpush1.bf16.msra.mxu0 %v13936_v56  ;;  %9250 = vmatpush1.bf16.msra.mxu1 %v13938_v57  ;;  %v3102_v56 = vld [vmem:[%s17679_s22 + $0x1698] sm:$0xff] }
 0x3b3   : > { %9087 = vmatprep.subr.bf16.mxu0 %v13953_v58  ;;  %9251 = vmatprep.subr.bf16.mxu1 %v13955_v59  ;;  %v3110_v57 = vld [vmem:[%s17679_s22 + $0x16d8] sm:$0xff]  ;;  %v14048_v58 = vcombine.low %v3085_v45, %v3093_v46  ;;  %v14050_v59 = vcombine.low %v3086_v48, %v3094_v49  ;;  %v14145_v45 = vcombine.high %v3181_v36, %v3189_v37  ;;  %v3197_v48 = vld [vmem:[%s17679_s22 + $0x1990] sm:$0xff] }
 0x3b4   : > { %v14067_v61 = vcombine.high %v3102_v56, %v3110_v57  ;;  %v3205_v49 = vld [vmem:[%s17679_s22 + $0x19d0] sm:$0xff] }
 0x3b6   : > { %9088 = vmatpush1.bf16.msra.mxu0 %v13952_v0  ;;  %9252 = vmatpush1.bf16.msra.mxu1 %v13954_v1  ;;  %v3118_v0 = vld [vmem:[%s17679_s22 + $0x1718] sm:$0xff] }
 0x3b7   : > { %9089 = vmatprep.subr.bf16.mxu0 %v13969_v2  ;;  %9253 = vmatprep.subr.bf16.mxu1 %v13971_v4  ;;  %v3126_v1 = vld [vmem:[%s17679_s22 + $0x1758] sm:$0xff]  ;;  %v14064_v2 = vcombine.low %v3101_v54, %v3109_v55  ;;  %v14066_v4 = vcombine.low %v3102_v56, %v3110_v57  ;;  %v14161_v54 = vcombine.high %v3197_v48, %v3205_v49  ;;  %v3213_v56 = vld [vmem:[%s17679_s22 + $0x1a10] sm:$0xff] }
 0x3b8   : > { %v14083_v6 = vcombine.high %v3118_v0, %v3126_v1  ;;  %v3221_v57 = vld [vmem:[%s17679_s22 + $0x1a50] sm:$0xff] }
 0x3ba   : > { %9090 = vmatpush1.bf16.msra.mxu0 %v13968_v10  ;;  %9254 = vmatpush1.bf16.msra.mxu1 %v13970_v11  ;;  %v3134_v10 = vld [vmem:[%s17679_s22 + $0x1798] sm:$0xff] }
 0x3bb   : > { %9091 = vmatprep.subr.bf16.mxu0 %v13985_v12  ;;  %9255 = vmatprep.subr.bf16.mxu1 %v13987_v13  ;;  %v3142_v11 = vld [vmem:[%s17679_s22 + $0x17d8] sm:$0xff]  ;;  %v14080_v12 = vcombine.low %v3117_v62, %v3125_v63  ;;  %v14082_v13 = vcombine.low %v3118_v0, %v3126_v1  ;;  %v14177_v62 = vcombine.high %v3213_v56, %v3221_v57  ;;  %v3229_v0 = vld [vmem:[%s17679_s22 + $0x1a90] sm:$0xff] }
 0x3bc   : > { %v14099_v15 = vcombine.high %v3134_v10, %v3142_v11  ;;  %v3237_v1 = vld [vmem:[%s17679_s22 + $0x1ad0] sm:$0xff] }
 0x3be   : > { %9092 = vmatpush1.bf16.msra.mxu0 %v13984_v18  ;;  %9256 = vmatpush1.bf16.msra.mxu1 %v13986_v19  ;;  %v3150_v18 = vld [vmem:[%s17679_s22 + $0x1818] sm:$0xff] }
 0x3bf   : > { %9093 = vmatprep.subr.bf16.mxu0 %v14001_v21  ;;  %9257 = vmatprep.subr.bf16.mxu1 %v14003_v22  ;;  %v3158_v19 = vld [vmem:[%s17679_s22 + $0x1858] sm:$0xff]  ;;  %v14096_v21 = vcombine.low %v3133_v7, %v3141_v8  ;;  %v14098_v22 = vcombine.low %v3134_v10, %v3142_v11  ;;  %v3403_v7 = vld [vmem:[%s18235_s10] sm:$0xff]  ;;  %v3417_v8 = vsub.s32 2, %v17677_v3  ;;  %v3413_v10 = vsub.s32 1, %v17677_v3 }
 0x3c0   : > { %v14115_v26 = vcombine.high %v3150_v18, %v3158_v19 }
 0x3c2   : > { %9094 = vmatpush1.bf16.msra.mxu0 %v14000_v30  ;;  %9258 = vmatpush1.bf16.msra.mxu1 %v14002_v31  ;;  %v3166_v30 = vld [vmem:[%s17679_s22 + $0x1898] sm:$0xff] }
 0x3c3   : > { %9095 = vmatprep.subr.bf16.mxu0 %v14017_v25  ;;  %9259 = vmatprep.subr.bf16.mxu1 %v14019_v32  ;;  %v3174_v31 = vld [vmem:[%s17679_s22 + $0x18d8] sm:$0xff]  ;;  %v14112_v25 = vcombine.low %v3149_v16, %v3157_v17  ;;  %v14114_v32 = vcombine.low %v3150_v18, %v3158_v19  ;;  %v3253_v16 = vld [vmem:[%s17679_s22 + $0x1b50] sm:$0xff] }
 0x3c4   : > { %v14131_v35 = vcombine.high %v3166_v30, %v3174_v31  ;;  %v3246_v18 = vld [vmem:[%s17679_s22 + $0x1b18] sm:$0xff] }
 0x3c5   : > { %v3254_v19 = vld [vmem:[%s17679_s22 + $0x1b58] sm:$0xff] }
 0x3c6   : > { %9096 = vmatpush1.bf16.msra.mxu0 %v14016_v39  ;;  %9260 = vmatpush1.bf16.msra.mxu1 %v14018_v40  ;;  %v3182_v39 = vld [vmem:[%s17679_s22 + $0x1918] sm:$0xff] }
 0x3c7   : > { %9097 = vmatprep.subr.bf16.mxu0 %v14033_v42  ;;  %9261 = vmatprep.subr.bf16.mxu1 %v14035_v44  ;;  %v3190_v40 = vld [vmem:[%s17679_s22 + $0x1958] sm:$0xff]  ;;  %v14128_v42 = vcombine.low %v3165_v28, %v3173_v29  ;;  %v14130_v44 = vcombine.low %v3166_v30, %v3174_v31  ;;  %v14211_v31 = vcombine.high %v3246_v18, %v3254_v19 }
 0x3c8   : > { %v14147_v46 = vcombine.high %v3182_v39, %v3190_v40 }
 0x3ca   : > { %9098 = vmatpush1.bf16.msra.mxu0 %v14032_v50  ;;  %9262 = vmatpush1.bf16.msra.mxu1 %v14034_v51  ;;  %v3198_v50 = vld [vmem:[%s17679_s22 + $0x1998] sm:$0xff] }
 0x3cb   : > { %9099 = vmatprep.subr.bf16.mxu0 %v14049_v52  ;;  %9263 = vmatprep.subr.bf16.mxu1 %v14051_v53  ;;  %v3206_v51 = vld [vmem:[%s17679_s22 + $0x19d8] sm:$0xff]  ;;  %v14144_v52 = vcombine.low %v3181_v36, %v3189_v37  ;;  %v14146_v53 = vcombine.low %v3182_v39, %v3190_v40 }
 0x3cc   : > { %v14163_v55 = vcombine.high %v3198_v50, %v3206_v51  ;;  %v3262_v37 = vld [vmem:[%s17679_s22 + $0x1b98] sm:$0xff] }
 0x3cd   : > { %v3270_v39 = vld [vmem:[%s17679_s22 + $0x1bd8] sm:$0xff] }
 0x3ce   : > { %9100 = vmatpush1.bf16.msra.mxu0 %v14048_v58  ;;  %9264 = vmatpush1.bf16.msra.mxu1 %v14050_v59  ;;  %v3214_v58 = vld [vmem:[%s17679_s22 + $0x1a18] sm:$0xff] }
 0x3cf   : > { %9101 = vmatprep.subr.bf16.mxu0 %v14065_v60  ;;  %9265 = vmatprep.subr.bf16.mxu1 %v14067_v61  ;;  %v3222_v59 = vld [vmem:[%s17679_s22 + $0x1a58] sm:$0xff]  ;;  %v14160_v60 = vcombine.low %v3197_v48, %v3205_v49  ;;  %v14162_v61 = vcombine.low %v3198_v50, %v3206_v51  ;;  %v14210_v51 = vcombine.low %v3246_v18, %v3254_v19 }
 0x3d0   : > { %v14179_v63 = vcombine.high %v3214_v58, %v3222_v59  ;;  %v14178_v11 = vcombine.low %v3214_v58, %v3222_v59  ;;  %v3286_v58 = vld [vmem:[%s17679_s22 + $0x1c58] sm:$0xff] }
 0x3d2   : > { %9102 = vmatpush1.bf16.msra.mxu0 %v14064_v2  ;;  %9266 = vmatpush1.bf16.msra.mxu1 %v14066_v4  ;;  %v3409_v2 = vsub.s32 0, %v17677_v3  ;;  %v3230_v4 = vld [vmem:[%s17679_s22 + $0x1a98] sm:$0xff] }
 0x3d3   : > { %9103 = vmatprep.subr.bf16.mxu0 %v14081_v5  ;;  %9267 = vmatprep.subr.bf16.mxu1 %v14083_v6  ;;  %v3238_v5 = vld [vmem:[%s17679_s22 + $0x1ad8] sm:$0xff]  ;;  %v14176_v6 = vcombine.low %v3213_v56, %v3221_v57  ;;  %v3285_v56 = vld [vmem:[%s17679_s22 + $0x1c50] sm:$0xff] }
 0x3d4   : > { %v3410_v17 = vrot.slane %v3403_v7, %v3409_v2  ;;  %v14194_v28 = vcombine.low %v3230_v4, %v3238_v5  ;;  %v3278_v57 = vld [vmem:[%s17679_s22 + $0x1c18] sm:$0xff] }
 0x3d6   : > { %9104 = vmatpush1.bf16.msra.mxu0 %v14080_v12  ;;  %9268 = vmatpush1.bf16.msra.mxu1 %v14082_v13  ;;  %v3421_v12 = vsub.s32 3, %v17677_v3  ;;  %v14193_v13 = vcombine.high %v3229_v0, %v3237_v1 }
 0x3d7   : > { %9105 = vmatprep.subr.bf16.mxu0 %v14097_v14  ;;  %9269 = vmatprep.subr.bf16.mxu1 %v14099_v15  ;;  %v14195_v14 = vcombine.high %v3230_v4, %v3238_v5  ;;  %v3245_v15 = vld [vmem:[%s17679_s22 + $0x1b10] sm:$0xff]  ;;  %v3302_v4 = vld [vmem:[%s17679_s22 + $0x1cd8] sm:$0xff] }
 0x3d8   : > { %v14209_v29 = vcombine.high %v3245_v15, %v3253_v16 }
 0x3da   : > { %9106 = vmatpush1.bf16.msra.mxu0 %v14096_v21  ;;  %9270 = vmatpush1.bf16.msra.mxu1 %v14098_v22  ;;  %v3418_v21 = vrot.slane %v3403_v7, %v3417_v8  ;;  %v3414_v22 = vrot.slane %v3403_v7, %v3413_v10 }
 0x3db   : > { %9116 = vmatprep.subr.bf16.mxu0 %v14113_v24  ;;  %9280 = vmatprep.subr.bf16.mxu1 %v14115_v26  ;;  %v14192_v24 = vcombine.low %v3229_v0, %v3237_v1  ;;  %v3422_v26 = vrot.slane %v3403_v7, %v3421_v12  ;;  %v3301_v0 = vld [vmem:[%s17679_s22 + $0x1cd0] sm:$0xff]  ;;  %v3294_v1 = vld [vmem:[%s17679_s22 + $0x1c98] sm:$0xff] }
 0x3dd   : > { %9108 = vmatmul.mubr.bf16.vlgmr.msra.gmra.mrb[4].mxu0 %v17786_v38  ;;  %9272 = vmatmul.mubr.bf16.vlgmr.msra.gmra.mrb[4].mxu1 %v17786_v38 }
 0x3de   : > { %9117 = vmatpush1.bf16.msra.mxu0 %v14112_v25  ;;  %9281 = vmatpush1.bf16.msra.mxu1 %v14114_v32  ;;  %v3261_v25 = vld [vmem:[%s17679_s22 + $0x1b90] sm:$0xff] }
 0x3df   : > { %9118 = vmatprep.subr.bf16.mxu0 %v14129_v34  ;;  %9282 = vmatprep.subr.bf16.mxu1 %v14131_v35  ;;  %v3269_v32 = vld [vmem:[%s17679_s22 + $0x1bd0] sm:$0xff] }
 0x3e0   : > { %9148 = vmatprep.mubr.bf16.mxu0 %v17933_v9  ;;  %9312 = vmatprep.mubr.bf16.mxu1 %v17933_v9  ;;  %v14224_v59 = vcombine.low %v3261_v25, %v3269_v32 }
 0x3e2   : > { %9119 = vmatpush1.bf16.msra.mxu0 %v14128_v42  ;;  %9283 = vmatpush1.bf16.msra.mxu1 %v14130_v44 }
 0x3e3   : > { %9120 = vmatprep.subr.bf16.mxu0 %v14145_v45  ;;  %9284 = vmatprep.subr.bf16.mxu1 %v14147_v46  ;;  %v14208_v46 = vcombine.low %v3245_v15, %v3253_v16  ;;  %v3310_v16 = vld [vmem:[%s17679_s22 + $0x1d18] sm:$0xff] }
 0x3e6   : > { %9121 = vmatpush1.bf16.msra.mxu0 %v14144_v52  ;;  %9285 = vmatpush1.bf16.msra.mxu1 %v14146_v53  ;;  %v14225_v52 = vcombine.high %v3261_v25, %v3269_v32  ;;  %v3334_v25 = vld [vmem:[%s17679_s22 + $0x1dd8] sm:$0xff] }
 0x3e7   : > { %9122 = vmatprep.subr.bf16.mxu0 %v14161_v54  ;;  %9286 = vmatprep.subr.bf16.mxu1 %v14163_v55  ;;  %v14227_v54 = vcombine.high %v3262_v37, %v3270_v39  ;;  %v3277_v55 = vld [vmem:[%s17679_s22 + $0x1c10] sm:$0xff] }
 0x3e8   : > { %v14240_v5 = vcombine.low %v3277_v55, %v3285_v56 }
 0x3ea   : > { %9123 = vmatpush1.bf16.msra.mxu0 %v14160_v60  ;;  %9287 = vmatpush1.bf16.msra.mxu1 %v14162_v61  ;;  %v14226_v60 = vcombine.low %v3262_v37, %v3270_v39  ;;  %v14241_v61 = vcombine.high %v3277_v55, %v3285_v56  ;;  %v3341_v37 = vld [vmem:[%s17679_s22 + $0x1e10] sm:$0xff] }
 0x3eb   : > { %9124 = vmatprep.subr.bf16.mxu0 %v14177_v62  ;;  %9288 = vmatprep.subr.bf16.mxu1 %v14179_v63  ;;  %v14243_v62 = vcombine.high %v3278_v57, %v3286_v58  ;;  %v3293_v63 = vld [vmem:[%s17679_s22 + $0x1c90] sm:$0xff] }
 0x3ec   : > { %v14257_v7 = vcombine.high %v3293_v63, %v3301_v0  ;;  %v14256_v19 = vcombine.low %v3293_v63, %v3301_v0  ;;  %v3349_v39 = vld [vmem:[%s17679_s22 + $0x1e50] sm:$0xff] }
 0x3ee   : > { %9125 = vmatpush1.bf16.msra.mxu0 %v14176_v6  ;;  %9289 = vmatpush1.bf16.msra.mxu1 %v14178_v11  ;;  %v14242_v6 = vcombine.low %v3278_v57, %v3286_v58  ;;  %v14259_v11 = vcombine.high %v3294_v1, %v3302_v4  ;;  %v3373_v57 = vld [vmem:[%s17679_s22 + $0x1f10] sm:$0xff] }
 0x3ef   : > { %9126 = vmatprep.subr.bf16.mxu0 %v14193_v13  ;;  %9290 = vmatprep.subr.bf16.mxu1 %v14195_v14  ;;  %v3309_v13 = vld [vmem:[%s17679_s22 + $0x1d10] sm:$0xff] }
 0x3f0   : > { %v8822_v30 = vpop.f32.mrb[0].mxu0  ;;  %v8986_v35 = vpop.f32.mrb[0].mxu1  ;;  %v3317_v14 = vld [vmem:[%s17679_s22 + $0x1d50] sm:$0xff] }
 0x3f1   : > { %v14999_v34 = vadd.f32 %v8822_v30, %v3410_v17  ;;  %v8824_v36 = vpop.f32.mrb[1].mxu0  ;;  %v15001_v40 = vadd.f32 %v8986_v35, %v3418_v21  ;;  %v8988_v44 = vpop.f32.mrb[1].mxu1  ;;  %v3318_v17 = vld [vmem:[%s17679_s22 + $0x1d58] sm:$0xff]  ;;  %v3333_v30 = vld [vmem:[%s17679_s22 + $0x1dd0] sm:$0xff]  ;;  %v14272_v32 = vcombine.low %v3309_v13, %v3317_v14 }
 0x3f2   : > { %v15000_v42 = vadd.f32 %v8824_v36, %v3414_v22  ;;  %v8826_v45 = vpop.f32.mrb[2].mxu0  ;;  %9127 = vmatpush1.bf16.msra.mxu0 %v14192_v24  ;;  %v15002_v48 = vadd.f32 %v8988_v44, %v3422_v26  ;;  %v8990_v49 = vpop.f32.mrb[2].mxu1  ;;  %9291 = vmatpush1.bf16.msra.mxu1 %v14194_v28  ;;  %v14258_v22 = vcombine.low %v3294_v1, %v3302_v4  ;;  %v3381_v58 = vld [vmem:[%s17679_s22 + $0x1f50] sm:$0xff] }
 0x3f3   : > { %15153 = vtanh.f32 %v14999_v34  ;;  %v8827_v50 = vpop.f32.mrb[3].mxu0  ;;  %9128 = vmatprep.subr.bf16.mxu0 %v14209_v29  ;;  %v8991_v53 = vpop.f32.mrb[3].mxu1  ;;  %9292 = vmatprep.subr.bf16.mxu1 %v14211_v31  ;;  %v14273_v24 = vcombine.high %v3309_v13, %v3317_v14  ;;  %v14275_v28 = vcombine.high %v3310_v16, %v3318_v17  ;;  %v3325_v29 = vld [vmem:[%s17679_s22 + $0x1d90] sm:$0xff]  ;;  %v3326_v31 = vld [vmem:[%s17679_s22 + $0x1d98] sm:$0xff]  ;;  %v14274_v34 = vcombine.low %v3310_v16, %v3318_v17  ;;  %v2383_v16 = vld [vmem:[%s17679_s22 + $0x20] sm:$0xff] }
 0x3f4   : > { %15155 = vtanh.f32 %v15001_v40  ;;  %v14289_v35 = vcombine.high %v3325_v29, %v3333_v30  ;;  %v14291_v36 = vcombine.high %v3326_v31, %v3334_v25  ;;  %v3342_v40 = vld [vmem:[%s17679_s22 + $0x1e18] sm:$0xff]  ;;  %v14288_v44 = vcombine.low %v3325_v29, %v3333_v30  ;;  %v3357_v49 = vld [vmem:[%s17679_s22 + $0x1e90] sm:$0xff]  ;;  %v2391_v17 = vld [vmem:[%s17679_s22 + $0x60] sm:$0xff] }
 0x3f5   : > { %15157 = vtanh.f32 %v15000_v42  ;;  %v3350_v42 = vld [vmem:[%s17679_s22 + $0x1e58] sm:$0xff]  ;;  %v14290_v45 = vcombine.low %v3326_v31, %v3334_v25  ;;  %v3365_v50 = vld [vmem:[%s17679_s22 + $0x1ed0] sm:$0xff]  ;;  %v14304_v53 = vcombine.low %v3341_v37, %v3349_v39  ;;  %v14337_v63 = vcombine.high %v3373_v57, %v3381_v58  ;;  %v2399_v31 = vld [vmem:[%s17679_s22 + $0xa0] sm:$0xff] }
 0x3f6   : > { %15159 = vtanh.f32 %v15002_v48  ;;  %9129 = vmatpush1.bf16.msra.mxu0 %v14208_v46  ;;  %9293 = vmatpush1.bf16.msra.mxu1 %v14210_v51  ;;  %v14305_v46 = vcombine.high %v3341_v37, %v3349_v39  ;;  %v14307_v48 = vcombine.high %v3342_v40, %v3350_v42  ;;  %v3358_v51 = vld [vmem:[%s17679_s22 + $0x1e98] sm:$0xff]  ;;  %v14321_v55 = vcombine.high %v3357_v49, %v3365_v50  ;;  %v3389_v1 = vld [vmem:[%s17679_s22 + $0x1f90] sm:$0xff]  ;;  %v2407_v25 = vld [vmem:[%s17679_s22 + $0xe0] sm:$0xff] }
 0x3f7   : > { %9130 = vmatprep.subr.bf16.mxu0 %v14225_v52  ;;  %9294 = vmatprep.subr.bf16.mxu1 %v14227_v54  ;;  %v3366_v52 = vld [vmem:[%s17679_s22 + $0x1ed8] sm:$0xff]  ;;  %v14306_v54 = vcombine.low %v3342_v40, %v3350_v42  ;;  %v3397_v4 = vld [vmem:[%s17679_s22 + $0x1fd0] sm:$0xff]  ;;  %v13349_v29 = vcombine.high %v2383_v16, %v2391_v17  ;;  %v13365_v37 = vcombine.high %v2399_v31, %v2407_v25  ;;  %v2415_v40 = vld [vmem:[%s17679_s22 + $0x120] sm:$0xff] }
 0x3f8   : > { %v14323_v56 = vcombine.high %v3358_v51, %v3366_v52  ;;  %v14353_v13 = vcombine.high %v3389_v1, %v3397_v4  ;;  %v2423_v42 = vld [vmem:[%s17679_s22 + $0x160] sm:$0xff] }
 0x3fa   : > { %9131 = vmatpush1.bf16.msra.mxu0 %v14224_v59  ;;  %9295 = vmatpush1.bf16.msra.mxu1 %v14226_v60  ;;  %v3374_v59 = vld [vmem:[%s17679_s22 + $0x1f18] sm:$0xff] }
 0x3fb   : > { %9132 = vmatprep.subr.bf16.mxu0 %v14241_v61  ;;  %9296 = vmatprep.subr.bf16.mxu1 %v14243_v62  ;;  %v3382_v60 = vld [vmem:[%s17679_s22 + $0x1f58] sm:$0xff]  ;;  %v14320_v61 = vcombine.low %v3357_v49, %v3365_v50  ;;  %v14322_v62 = vcombine.low %v3358_v51, %v3366_v52  ;;  %v13381_v49 = vcombine.high %v2415_v40, %v2423_v42  ;;  %v2431_v51 = vld [vmem:[%s17679_s22 + $0x1a0] sm:$0xff] }
 0x3fc   : > { %v14339_v0 = vcombine.high %v3374_v59, %v3382_v60  ;;  %v2439_v52 = vld [vmem:[%s17679_s22 + $0x1e0] sm:$0xff] }
 0x3fd   : > { %v18272_v15 = vpop.eup %15153 }
 0x3fe   : > { %v18276_v18 = vpop.eup %15155  ;;  %9133 = vmatpush1.bf16.msra.mxu0 %v14240_v5  ;;  %9297 = vmatpush1.bf16.msra.mxu1 %v14242_v6  ;;  %v3390_v5 = vld [vmem:[%s17679_s22 + $0x1f98] sm:$0xff] }
 0x3ff   : > { %v18278_v21 = vpop.eup %15157  ;;  %9134 = vmatprep.subr.bf16.mxu0 %v14257_v7  ;;  %9298 = vmatprep.subr.bf16.mxu1 %v14259_v11  ;;  %v3398_v6 = vld [vmem:[%s17679_s22 + $0x1fd8] sm:$0xff]  ;;  %v14336_v7 = vcombine.low %v3373_v57, %v3381_v58  ;;  %v14338_v11 = vcombine.low %v3374_v59, %v3382_v60  ;;  %v13397_v57 = vcombine.high %v2431_v51, %v2439_v52  ;;  %v2447_v59 = vld [vmem:[%s17679_s22 + $0x220] sm:$0xff] }
 0x400   : > { %v18280_v26 = vpop.eup %15159  ;;  %v14355_v14 = vcombine.high %v3390_v5, %v3398_v6  ;;  %v2455_v60 = vld [vmem:[%s17679_s22 + $0x260] sm:$0xff] }
 0x402   : > { %9135 = vmatpush1.bf16.msra.mxu0 %v14256_v19  ;;  %9299 = vmatpush1.bf16.msra.mxu1 %v14258_v22  ;;  %v2384_v19 = vld [vmem:[%s17679_s22 + $0x28] sm:$0xff] }
 0x403   : > { %9136 = vmatprep.subr.bf16.mxu0 %v14273_v24  ;;  %9300 = vmatprep.subr.bf16.mxu1 %v14275_v28  ;;  %v2392_v22 = vld [vmem:[%s17679_s22 + $0x68] sm:$0xff]  ;;  %v14352_v24 = vcombine.low %v3389_v1, %v3397_v4  ;;  %v14354_v28 = vcombine.low %v3390_v5, %v3398_v6  ;;  %v13413_v1 = vcombine.high %v2447_v59, %v2455_v60  ;;  %v2463_v5 = vld [vmem:[%s17679_s22 + $0x2a0] sm:$0xff] }
 0x404   : > { %v13351_v30 = vcombine.high %v2384_v19, %v2392_v22  ;;  %v2471_v6 = vld [vmem:[%s17679_s22 + $0x2e0] sm:$0xff] }
 0x406   : > { %9137 = vmatpush1.bf16.msra.mxu0 %v14272_v32  ;;  %9301 = vmatpush1.bf16.msra.mxu1 %v14274_v34  ;;  %v2400_v32 = vld [vmem:[%s17679_s22 + $0xa8] sm:$0xff] }
 0x407   : > { %9138 = vmatprep.subr.bf16.mxu0 %v14289_v35  ;;  %9302 = vmatprep.subr.bf16.mxu1 %v14291_v36  ;;  %v2408_v34 = vld [vmem:[%s17679_s22 + $0xe8] sm:$0xff]  ;;  %v13348_v35 = vcombine.low %v2383_v16, %v2391_v17  ;;  %v13350_v36 = vcombine.low %v2384_v19, %v2392_v22  ;;  %v13429_v16 = vcombine.high %v2463_v5, %v2471_v6  ;;  %v2479_v19 = vld [vmem:[%s17679_s22 + $0x320] sm:$0xff] }
 0x408   : > { %v13367_v39 = vcombine.high %v2400_v32, %v2408_v34  ;;  %v2487_v22 = vld [vmem:[%s17679_s22 + $0x360] sm:$0xff] }
 0x40a   : > { %9139 = vmatpush1.bf16.msra.mxu0 %v14288_v44  ;;  %9303 = vmatpush1.bf16.msra.mxu1 %v14290_v45  ;;  %v2416_v44 = vld [vmem:[%s17679_s22 + $0x128] sm:$0xff] }
 0x40b   : > { %9140 = vmatprep.subr.bf16.mxu0 %v14305_v46  ;;  %9304 = vmatprep.subr.bf16.mxu1 %v14307_v48  ;;  %v2424_v45 = vld [vmem:[%s17679_s22 + $0x168] sm:$0xff]  ;;  %v13364_v46 = vcombine.low %v2399_v31, %v2407_v25  ;;  %v13366_v48 = vcombine.low %v2400_v32, %v2408_v34  ;;  %v13445_v31 = vcombine.high %v2479_v19, %v2487_v22  ;;  %v2495_v32 = vld [vmem:[%s17679_s22 + $0x3a0] sm:$0xff] }
 0x40c   : > { %v13383_v50 = vcombine.high %v2416_v44, %v2424_v45  ;;  %v2503_v34 = vld [vmem:[%s17679_s22 + $0x3e0] sm:$0xff] }
 0x40e   : > { %9141 = vmatpush1.bf16.msra.mxu0 %v14304_v53  ;;  %9305 = vmatpush1.bf16.msra.mxu1 %v14306_v54  ;;  %v2432_v53 = vld [vmem:[%s17679_s22 + $0x1a8] sm:$0xff] }
 0x40f   : > { %9142 = vmatprep.subr.bf16.mxu0 %v14321_v55  ;;  %9306 = vmatprep.subr.bf16.mxu1 %v14323_v56  ;;  %v2440_v54 = vld [vmem:[%s17679_s22 + $0x1e8] sm:$0xff]  ;;  %v13380_v55 = vcombine.low %v2415_v40, %v2423_v42  ;;  %v13382_v56 = vcombine.low %v2416_v44, %v2424_v45  ;;  %v13461_v40 = vcombine.high %v2495_v32, %v2503_v34  ;;  %v2511_v44 = vld [vmem:[%s17679_s22 + $0x420] sm:$0xff] }
 0x410   : > { %v13399_v58 = vcombine.high %v2432_v53, %v2440_v54  ;;  %v2519_v45 = vld [vmem:[%s17679_s22 + $0x460] sm:$0xff] }
 0x412   : > { %9143 = vmatpush1.bf16.msra.mxu0 %v14320_v61  ;;  %9307 = vmatpush1.bf16.msra.mxu1 %v14322_v62  ;;  %v2448_v61 = vld [vmem:[%s17679_s22 + $0x228] sm:$0xff] }
 0x413   : > { %9144 = vmatprep.subr.bf16.mxu0 %v14337_v63  ;;  %9308 = vmatprep.subr.bf16.mxu1 %v14339_v0  ;;  %v2456_v62 = vld [vmem:[%s17679_s22 + $0x268] sm:$0xff]  ;;  %v13396_v63 = vcombine.low %v2431_v51, %v2439_v52  ;;  %v13398_v0 = vcombine.low %v2432_v53, %v2440_v54  ;;  %v13477_v51 = vcombine.high %v2511_v44, %v2519_v45  ;;  %v2527_v53 = vld [vmem:[%s17679_s22 + $0x4a0] sm:$0xff] }
 0x414   : > { %v13415_v4 = vcombine.high %v2448_v61, %v2456_v62  ;;  %v2535_v54 = vld [vmem:[%s17679_s22 + $0x4e0] sm:$0xff] }
 0x416   : > { %9145 = vmatpush1.bf16.msra.mxu0 %v14336_v7  ;;  %9309 = vmatpush1.bf16.msra.mxu1 %v14338_v11  ;;  %v2464_v7 = vld [vmem:[%s17679_s22 + $0x2a8] sm:$0xff] }
 0x417   : > { %9146 = vmatprep.subr.bf16.mxu0 %v14353_v13  ;;  %9310 = vmatprep.subr.bf16.mxu1 %v14355_v14  ;;  %v2472_v11 = vld [vmem:[%s17679_s22 + $0x2e8] sm:$0xff]  ;;  %v13412_v13 = vcombine.low %v2447_v59, %v2455_v60  ;;  %v13414_v14 = vcombine.low %v2448_v61, %v2456_v62  ;;  %v13493_v59 = vcombine.high %v2527_v53, %v2535_v54  ;;  %v2543_v61 = vld [vmem:[%s17679_s22 + $0x520] sm:$0xff] }
 0x418   : > { %v13431_v17 = vcombine.high %v2464_v7, %v2472_v11  ;;  %v2551_v62 = vld [vmem:[%s17679_s22 + $0x560] sm:$0xff] }
 0x41a   : > { %9147 = vmatpush1.bf16.msra.mxu0 %v14352_v24  ;;  %9311 = vmatpush1.bf16.msra.mxu1 %v14354_v28  ;;  %v2480_v24 = vld [vmem:[%s17679_s22 + $0x328] sm:$0xff] }
 0x41b   : > { %9321 = vmatprep.subr.bf16.mxu0 %v13349_v29  ;;  %9485 = vmatprep.subr.bf16.mxu1 %v13351_v30  ;;  %v2488_v28 = vld [vmem:[%s17679_s22 + $0x368] sm:$0xff]  ;;  %v13428_v29 = vcombine.low %v2463_v5, %v2471_v6  ;;  %v13430_v30 = vcombine.low %v2464_v7, %v2472_v11  ;;  %v13509_v5 = vcombine.high %v2543_v61, %v2551_v62  ;;  %v2559_v7 = vld [vmem:[%s17679_s22 + $0x5a0] sm:$0xff] }
 0x41c   : > { %v13447_v25 = vcombine.high %v2480_v24, %v2488_v28  ;;  %v2567_v11 = vld [vmem:[%s17679_s22 + $0x5e0] sm:$0xff] }
 0x41d   : > { %9149 = vmatmul.mubr.bf16.vlgmr.msra.gmra.mrb[4].mxu0 %v18001_v20  ;;  %9313 = vmatmul.mubr.bf16.vlgmr.msra.gmra.mrb[4].mxu1 %v18001_v20 }
 0x41e   : > { %9322 = vmatpush1.bf16.msra.mxu0 %v13348_v35  ;;  %9486 = vmatpush1.bf16.msra.mxu1 %v13350_v36  ;;  %v2496_v35 = vld [vmem:[%s17679_s22 + $0x3a8] sm:$0xff] }
 0x41f   : > { %9323 = vmatprep.subr.bf16.mxu0 %v13365_v37  ;;  %9487 = vmatprep.subr.bf16.mxu1 %v13367_v39  ;;  %v2504_v36 = vld [vmem:[%s17679_s22 + $0x3e8] sm:$0xff]  ;;  %v13444_v37 = vcombine.low %v2479_v19, %v2487_v22  ;;  %v13446_v39 = vcombine.low %v2480_v24, %v2488_v28  ;;  %v13525_v19 = vcombine.high %v2559_v7, %v2567_v11  ;;  %v2575_v24 = vld [vmem:[%s17679_s22 + $0x620] sm:$0xff] }
 0x420   : > { %9353 = vmatprep.mubr.bf16.mxu0 %v17716_v43  ;;  %9517 = vmatprep.mubr.bf16.mxu1 %v17716_v43  ;;  %v13463_v42 = vcombine.high %v2496_v35, %v2504_v36  ;;  %v2583_v28 = vld [vmem:[%s17679_s22 + $0x660] sm:$0xff] }
 0x422   : > { %9324 = vmatpush1.bf16.msra.mxu0 %v13364_v46  ;;  %9488 = vmatpush1.bf16.msra.mxu1 %v13366_v48  ;;  %v2512_v46 = vld [vmem:[%s17679_s22 + $0x428] sm:$0xff] }
 0x423   : > { %9325 = vmatprep.subr.bf16.mxu0 %v13381_v49  ;;  %9489 = vmatprep.subr.bf16.mxu1 %v13383_v50  ;;  %v2520_v48 = vld [vmem:[%s17679_s22 + $0x468] sm:$0xff]  ;;  %v13460_v49 = vcombine.low %v2495_v32, %v2503_v34  ;;  %v13462_v50 = vcombine.low %v2496_v35, %v2504_v36  ;;  %v13541_v32 = vcombine.high %v2575_v24, %v2583_v28  ;;  %v2591_v35 = vld [vmem:[%s17679_s22 + $0x6a0] sm:$0xff] }
 0x424   : > { %v13479_v52 = vcombine.high %v2512_v46, %v2520_v48  ;;  %v2599_v36 = vld [vmem:[%s17679_s22 + $0x6e0] sm:$0xff] }
 0x426   : > { %9326 = vmatpush1.bf16.msra.mxu0 %v13380_v55  ;;  %9490 = vmatpush1.bf16.msra.mxu1 %v13382_v56  ;;  %v2528_v55 = vld [vmem:[%s17679_s22 + $0x4a8] sm:$0xff] }
 0x427   : > { %9327 = vmatprep.subr.bf16.mxu0 %v13397_v57  ;;  %9491 = vmatprep.subr.bf16.mxu1 %v13399_v58  ;;  %v2536_v56 = vld [vmem:[%s17679_s22 + $0x4e8] sm:$0xff]  ;;  %v13476_v57 = vcombine.low %v2511_v44, %v2519_v45  ;;  %v13478_v58 = vcombine.low %v2512_v46, %v2520_v48  ;;  %v13557_v44 = vcombine.high %v2591_v35, %v2599_v36  ;;  %v2607_v46 = vld [vmem:[%s17679_s22 + $0x720] sm:$0xff] }
 0x428   : > { %v13495_v60 = vcombine.high %v2528_v55, %v2536_v56  ;;  %v2615_v48 = vld [vmem:[%s17679_s22 + $0x760] sm:$0xff] }
 0x42a   : > { %9328 = vmatpush1.bf16.msra.mxu0 %v13396_v63  ;;  %9492 = vmatpush1.bf16.msra.mxu1 %v13398_v0  ;;  %v2544_v63 = vld [vmem:[%s17679_s22 + $0x528] sm:$0xff] }
 0x42b   : > { %9329 = vmatprep.subr.bf16.mxu0 %v13413_v1  ;;  %9493 = vmatprep.subr.bf16.mxu1 %v13415_v4  ;;  %v2552_v0 = vld [vmem:[%s17679_s22 + $0x568] sm:$0xff]  ;;  %v13492_v1 = vcombine.low %v2527_v53, %v2535_v54  ;;  %v13494_v4 = vcombine.low %v2528_v55, %v2536_v56  ;;  %v13573_v53 = vcombine.high %v2607_v46, %v2615_v48  ;;  %v2623_v55 = vld [vmem:[%s17679_s22 + $0x7a0] sm:$0xff] }
 0x42c   : > { %v13511_v6 = vcombine.high %v2544_v63, %v2552_v0  ;;  %v2631_v56 = vld [vmem:[%s17679_s22 + $0x7e0] sm:$0xff] }
 0x42e   : > { %9330 = vmatpush1.bf16.msra.mxu0 %v13412_v13  ;;  %9494 = vmatpush1.bf16.msra.mxu1 %v13414_v14  ;;  %v2560_v13 = vld [vmem:[%s17679_s22 + $0x5a8] sm:$0xff] }
 0x42f   : > { %9331 = vmatprep.subr.bf16.mxu0 %v13429_v16  ;;  %9495 = vmatprep.subr.bf16.mxu1 %v13431_v17  ;;  %v2568_v14 = vld [vmem:[%s17679_s22 + $0x5e8] sm:$0xff]  ;;  %v13508_v16 = vcombine.low %v2543_v61, %v2551_v62  ;;  %v13510_v17 = vcombine.low %v2544_v63, %v2552_v0  ;;  %v13589_v61 = vcombine.high %v2623_v55, %v2631_v56  ;;  %v2639_v63 = vld [vmem:[%s17679_s22 + $0x820] sm:$0xff] }
 0x430   : > { %v13527_v22 = vcombine.high %v2560_v13, %v2568_v14  ;;  %v2647_v0 = vld [vmem:[%s17679_s22 + $0x860] sm:$0xff] }
 0x432   : > { %9332 = vmatpush1.bf16.msra.mxu0 %v13428_v29  ;;  %9496 = vmatpush1.bf16.msra.mxu1 %v13430_v30  ;;  %v2576_v29 = vld [vmem:[%s17679_s22 + $0x628] sm:$0xff] }
 0x433   : > { %9333 = vmatprep.subr.bf16.mxu0 %v13445_v31  ;;  %9497 = vmatprep.subr.bf16.mxu1 %v13447_v25  ;;  %v2584_v30 = vld [vmem:[%s17679_s22 + $0x668] sm:$0xff]  ;;  %v13524_v31 = vcombine.low %v2559_v7, %v2567_v11  ;;  %v13526_v25 = vcombine.low %v2560_v13, %v2568_v14  ;;  %v13605_v7 = vcombine.high %v2639_v63, %v2647_v0  ;;  %v2655_v13 = vld [vmem:[%s17679_s22 + $0x8a0] sm:$0xff] }
 0x434   : > { %v13543_v34 = vcombine.high %v2576_v29, %v2584_v30  ;;  %v2663_v14 = vld [vmem:[%s17679_s22 + $0x8e0] sm:$0xff] }
 0x436   : > { %9334 = vmatpush1.bf16.msra.mxu0 %v13444_v37  ;;  %9498 = vmatpush1.bf16.msra.mxu1 %v13446_v39  ;;  %v2592_v37 = vld [vmem:[%s17679_s22 + $0x6a8] sm:$0xff] }
 0x437   : > { %9335 = vmatprep.subr.bf16.mxu0 %v13461_v40  ;;  %9499 = vmatprep.subr.bf16.mxu1 %v13463_v42  ;;  %v2600_v39 = vld [vmem:[%s17679_s22 + $0x6e8] sm:$0xff]  ;;  %v13540_v40 = vcombine.low %v2575_v24, %v2583_v28  ;;  %v13542_v42 = vcombine.low %v2576_v29, %v2584_v30  ;;  %v13621_v24 = vcombine.high %v2655_v13, %v2663_v14  ;;  %v2671_v29 = vld [vmem:[%s17679_s22 + $0x920] sm:$0xff] }
 0x438   : > { %v13559_v45 = vcombine.high %v2592_v37, %v2600_v39  ;;  %v2679_v30 = vld [vmem:[%s17679_s22 + $0x960] sm:$0xff] }
 0x43a   : > { %9336 = vmatpush1.bf16.msra.mxu0 %v13460_v49  ;;  %9500 = vmatpush1.bf16.msra.mxu1 %v13462_v50  ;;  %v2608_v49 = vld [vmem:[%s17679_s22 + $0x728] sm:$0xff] }
 0x43b   : > { %9337 = vmatprep.subr.bf16.mxu0 %v13477_v51  ;;  %9501 = vmatprep.subr.bf16.mxu1 %v13479_v52  ;;  %v2616_v50 = vld [vmem:[%s17679_s22 + $0x768] sm:$0xff]  ;;  %v13556_v51 = vcombine.low %v2591_v35, %v2599_v36  ;;  %v13558_v52 = vcombine.low %v2592_v37, %v2600_v39  ;;  %v13637_v35 = vcombine.high %v2671_v29, %v2679_v30  ;;  %v2687_v37 = vld [vmem:[%s17679_s22 + $0x9a0] sm:$0xff] }
 0x43c   : > { %v13575_v54 = vcombine.high %v2608_v49, %v2616_v50  ;;  %v2695_v39 = vld [vmem:[%s17679_s22 + $0x9e0] sm:$0xff] }
 0x43e   : > { %9338 = vmatpush1.bf16.msra.mxu0 %v13476_v57  ;;  %9502 = vmatpush1.bf16.msra.mxu1 %v13478_v58  ;;  %v2624_v57 = vld [vmem:[%s17679_s22 + $0x7a8] sm:$0xff] }
 0x43f   : > { %9339 = vmatprep.subr.bf16.mxu0 %v13493_v59  ;;  %9503 = vmatprep.subr.bf16.mxu1 %v13495_v60  ;;  %v2632_v58 = vld [vmem:[%s17679_s22 + $0x7e8] sm:$0xff]  ;;  %v13572_v59 = vcombine.low %v2607_v46, %v2615_v48  ;;  %v13574_v60 = vcombine.low %v2608_v49, %v2616_v50  ;;  %v13653_v46 = vcombine.high %v2687_v37, %v2695_v39  ;;  %v2703_v49 = vld [vmem:[%s17679_s22 + $0xa20] sm:$0xff] }
 0x440   : > { %v13591_v62 = vcombine.high %v2624_v57, %v2632_v58  ;;  %v2711_v50 = vld [vmem:[%s17679_s22 + $0xa60] sm:$0xff] }
 0x442   : > { %9340 = vmatpush1.bf16.msra.mxu0 %v13492_v1  ;;  %9504 = vmatpush1.bf16.msra.mxu1 %v13494_v4  ;;  %v2640_v1 = vld [vmem:[%s17679_s22 + $0x828] sm:$0xff] }
 0x443   : > { %9341 = vmatprep.subr.bf16.mxu0 %v13509_v5  ;;  %9505 = vmatprep.subr.bf16.mxu1 %v13511_v6  ;;  %v2648_v4 = vld [vmem:[%s17679_s22 + $0x868] sm:$0xff]  ;;  %v13588_v5 = vcombine.low %v2623_v55, %v2631_v56  ;;  %v13590_v6 = vcombine.low %v2624_v57, %v2632_v58  ;;  %v13669_v55 = vcombine.high %v2703_v49, %v2711_v50  ;;  %v2719_v57 = vld [vmem:[%s17679_s22 + $0xaa0] sm:$0xff] }
 0x444   : > { %v13607_v11 = vcombine.high %v2640_v1, %v2648_v4  ;;  %v2727_v58 = vld [vmem:[%s17679_s22 + $0xae0] sm:$0xff] }
 0x446   : > { %9342 = vmatpush1.bf16.msra.mxu0 %v13508_v16  ;;  %9506 = vmatpush1.bf16.msra.mxu1 %v13510_v17  ;;  %v2656_v16 = vld [vmem:[%s17679_s22 + $0x8a8] sm:$0xff] }
 0x447   : > { %9343 = vmatprep.subr.bf16.mxu0 %v13525_v19  ;;  %9507 = vmatprep.subr.bf16.mxu1 %v13527_v22  ;;  %v2664_v17 = vld [vmem:[%s17679_s22 + $0x8e8] sm:$0xff]  ;;  %v13604_v19 = vcombine.low %v2639_v63, %v2647_v0  ;;  %v13606_v22 = vcombine.low %v2640_v1, %v2648_v4  ;;  %v13685_v63 = vcombine.high %v2719_v57, %v2727_v58  ;;  %v2735_v1 = vld [vmem:[%s17679_s22 + $0xb20] sm:$0xff] }
 0x448   : > { %v13623_v28 = vcombine.high %v2656_v16, %v2664_v17  ;;  %v2743_v4 = vld [vmem:[%s17679_s22 + $0xb60] sm:$0xff] }
 0x44a   : > { %9344 = vmatpush1.bf16.msra.mxu0 %v13524_v31  ;;  %9508 = vmatpush1.bf16.msra.mxu1 %v13526_v25  ;;  %v2672_v31 = vld [vmem:[%s17679_s22 + $0x928] sm:$0xff] }
 0x44b   : > { %9345 = vmatprep.subr.bf16.mxu0 %v13541_v32  ;;  %9509 = vmatprep.subr.bf16.mxu1 %v13543_v34  ;;  %v2680_v25 = vld [vmem:[%s17679_s22 + $0x968] sm:$0xff]  ;;  %v13620_v32 = vcombine.low %v2655_v13, %v2663_v14  ;;  %v13622_v34 = vcombine.low %v2656_v16, %v2664_v17  ;;  %v13701_v13 = vcombine.high %v2735_v1, %v2743_v4  ;;  %v2751_v16 = vld [vmem:[%s17679_s22 + $0xba0] sm:$0xff] }
 0x44c   : > { %v13639_v36 = vcombine.high %v2672_v31, %v2680_v25  ;;  %v2759_v17 = vld [vmem:[%s17679_s22 + $0xbe0] sm:$0xff] }
 0x44e   : > { %9346 = vmatpush1.bf16.msra.mxu0 %v13540_v40  ;;  %9510 = vmatpush1.bf16.msra.mxu1 %v13542_v42  ;;  %v2688_v40 = vld [vmem:[%s17679_s22 + $0x9a8] sm:$0xff] }
 0x44f   : > { %9347 = vmatprep.subr.bf16.mxu0 %v13557_v44  ;;  %9511 = vmatprep.subr.bf16.mxu1 %v13559_v45  ;;  %v2696_v42 = vld [vmem:[%s17679_s22 + $0x9e8] sm:$0xff]  ;;  %v13636_v44 = vcombine.low %v2671_v29, %v2679_v30  ;;  %v13638_v45 = vcombine.low %v2672_v31, %v2680_v25  ;;  %v13717_v29 = vcombine.high %v2751_v16, %v2759_v17  ;;  %v2767_v31 = vld [vmem:[%s17679_s22 + $0xc20] sm:$0xff] }
 0x450   : > { %v13655_v48 = vcombine.high %v2688_v40, %v2696_v42  ;;  %v2775_v25 = vld [vmem:[%s17679_s22 + $0xc60] sm:$0xff] }
 0x452   : > { %9348 = vmatpush1.bf16.msra.mxu0 %v13556_v51  ;;  %9512 = vmatpush1.bf16.msra.mxu1 %v13558_v52  ;;  %v2704_v51 = vld [vmem:[%s17679_s22 + $0xa28] sm:$0xff] }
 0x453   : > { %9349 = vmatprep.subr.bf16.mxu0 %v13573_v53  ;;  %9513 = vmatprep.subr.bf16.mxu1 %v13575_v54  ;;  %v2712_v52 = vld [vmem:[%s17679_s22 + $0xa68] sm:$0xff]  ;;  %v13652_v53 = vcombine.low %v2687_v37, %v2695_v39  ;;  %v13654_v54 = vcombine.low %v2688_v40, %v2696_v42  ;;  %v13733_v37 = vcombine.high %v2767_v31, %v2775_v25  ;;  %v2783_v40 = vld [vmem:[%s17679_s22 + $0xca0] sm:$0xff] }
 0x454   : > { %v13671_v56 = vcombine.high %v2704_v51, %v2712_v52  ;;  %v2791_v42 = vld [vmem:[%s17679_s22 + $0xce0] sm:$0xff] }
 0x456   : > { %9350 = vmatpush1.bf16.msra.mxu0 %v13572_v59  ;;  %9514 = vmatpush1.bf16.msra.mxu1 %v13574_v60  ;;  %v2720_v59 = vld [vmem:[%s17679_s22 + $0xaa8] sm:$0xff] }
 0x457   : > { %9351 = vmatprep.subr.bf16.mxu0 %v13589_v61  ;;  %9515 = vmatprep.subr.bf16.mxu1 %v13591_v62  ;;  %v2728_v60 = vld [vmem:[%s17679_s22 + $0xae8] sm:$0xff]  ;;  %v13668_v61 = vcombine.low %v2703_v49, %v2711_v50  ;;  %v13670_v62 = vcombine.low %v2704_v51, %v2712_v52  ;;  %v13749_v49 = vcombine.high %v2783_v40, %v2791_v42  ;;  %v2799_v51 = vld [vmem:[%s17679_s22 + $0xd20] sm:$0xff] }
 0x458   : > { %v13687_v0 = vcombine.high %v2720_v59, %v2728_v60  ;;  %v2807_v52 = vld [vmem:[%s17679_s22 + $0xd60] sm:$0xff] }
 0x45a   : > { %9352 = vmatpush1.bf16.msra.mxu0 %v13588_v5  ;;  %9516 = vmatpush1.bf16.msra.mxu1 %v13590_v6  ;;  %v2736_v5 = vld [vmem:[%s17679_s22 + $0xb28] sm:$0xff] }
 0x45b   : > { %9362 = vmatprep.subr.bf16.mxu0 %v13605_v7  ;;  %9526 = vmatprep.subr.bf16.mxu1 %v13607_v11  ;;  %v2744_v6 = vld [vmem:[%s17679_s22 + $0xb68] sm:$0xff]  ;;  %v13684_v7 = vcombine.low %v2719_v57, %v2727_v58  ;;  %v13686_v11 = vcombine.low %v2720_v59, %v2728_v60  ;;  %v13765_v57 = vcombine.high %v2799_v51, %v2807_v52  ;;  %v2815_v59 = vld [vmem:[%s17679_s22 + $0xda0] sm:$0xff] }
 0x45c   : > { %v13703_v14 = vcombine.high %v2736_v5, %v2744_v6  ;;  %v2823_v60 = vld [vmem:[%s17679_s22 + $0xde0] sm:$0xff] }
 0x45d   : > { %9354 = vmatmul.mubr.bf16.vlgmr.msra.gmra.mrb[8].mxu0 %v17774_v27  ;;  %9518 = vmatmul.mubr.bf16.vlgmr.msra.gmra.mrb[8].mxu1 %v17774_v27 }
 0x45e   : > { %9363 = vmatpush1.bf16.msra.mxu0 %v13604_v19  ;;  %9527 = vmatpush1.bf16.msra.mxu1 %v13606_v22  ;;  %v2752_v19 = vld [vmem:[%s17679_s22 + $0xba8] sm:$0xff] }
 0x45f   : > { %9364 = vmatprep.subr.bf16.mxu0 %v13621_v24  ;;  %9528 = vmatprep.subr.bf16.mxu1 %v13623_v28  ;;  %v2760_v22 = vld [vmem:[%s17679_s22 + $0xbe8] sm:$0xff]  ;;  %v13700_v24 = vcombine.low %v2735_v1, %v2743_v4  ;;  %v13702_v28 = vcombine.low %v2736_v5, %v2744_v6  ;;  %v13781_v1 = vcombine.high %v2815_v59, %v2823_v60  ;;  %v2831_v5 = vld [vmem:[%s17679_s22 + $0xe20] sm:$0xff] }
 0x460   : > { %9394 = vmatprep.mubr.bf16.mxu0 %v17783_v33  ;;  %9558 = vmatprep.mubr.bf16.mxu1 %v17783_v33  ;;  %v13719_v30 = vcombine.high %v2752_v19, %v2760_v22  ;;  %v2839_v6 = vld [vmem:[%s17679_s22 + $0xe60] sm:$0xff] }
 0x462   : > { %9365 = vmatpush1.bf16.msra.mxu0 %v13620_v32  ;;  %9529 = vmatpush1.bf16.msra.mxu1 %v13622_v34  ;;  %v2768_v32 = vld [vmem:[%s17679_s22 + $0xc28] sm:$0xff] }
 0x463   : > { %9366 = vmatprep.subr.bf16.mxu0 %v13637_v35  ;;  %9530 = vmatprep.subr.bf16.mxu1 %v13639_v36  ;;  %v2776_v34 = vld [vmem:[%s17679_s22 + $0xc68] sm:$0xff]  ;;  %v13716_v35 = vcombine.low %v2751_v16, %v2759_v17  ;;  %v13718_v36 = vcombine.low %v2752_v19, %v2760_v22  ;;  %v13797_v16 = vcombine.high %v2831_v5, %v2839_v6  ;;  %v2847_v19 = vld [vmem:[%s17679_s22 + $0xea0] sm:$0xff] }
 0x464   : > { %v13735_v39 = vcombine.high %v2768_v32, %v2776_v34  ;;  %v2855_v22 = vld [vmem:[%s17679_s22 + $0xee0] sm:$0xff] }
 0x466   : > { %9367 = vmatpush1.bf16.msra.mxu0 %v13636_v44  ;;  %9531 = vmatpush1.bf16.msra.mxu1 %v13638_v45  ;;  %v2784_v44 = vld [vmem:[%s17679_s22 + $0xca8] sm:$0xff] }
 0x467   : > { %9368 = vmatprep.subr.bf16.mxu0 %v13653_v46  ;;  %9532 = vmatprep.subr.bf16.mxu1 %v13655_v48  ;;  %v2792_v45 = vld [vmem:[%s17679_s22 + $0xce8] sm:$0xff]  ;;  %v13732_v46 = vcombine.low %v2767_v31, %v2775_v25  ;;  %v13734_v48 = vcombine.low %v2768_v32, %v2776_v34  ;;  %v13813_v31 = vcombine.high %v2847_v19, %v2855_v22  ;;  %v2863_v32 = vld [vmem:[%s17679_s22 + $0xf20] sm:$0xff] }
 0x468   : > { %v13751_v50 = vcombine.high %v2784_v44, %v2792_v45  ;;  %v2871_v34 = vld [vmem:[%s17679_s22 + $0xf60] sm:$0xff] }
 0x46a   : > { %9369 = vmatpush1.bf16.msra.mxu0 %v13652_v53  ;;  %9533 = vmatpush1.bf16.msra.mxu1 %v13654_v54  ;;  %v2800_v53 = vld [vmem:[%s17679_s22 + $0xd28] sm:$0xff] }
 0x46b   : > { %9370 = vmatprep.subr.bf16.mxu0 %v13669_v55  ;;  %9534 = vmatprep.subr.bf16.mxu1 %v13671_v56  ;;  %v2808_v54 = vld [vmem:[%s17679_s22 + $0xd68] sm:$0xff]  ;;  %v13748_v55 = vcombine.low %v2783_v40, %v2791_v42  ;;  %v13750_v56 = vcombine.low %v2784_v44, %v2792_v45  ;;  %v13829_v40 = vcombine.high %v2863_v32, %v2871_v34  ;;  %v2879_v44 = vld [vmem:[%s17679_s22 + $0xfa0] sm:$0xff] }
 0x46c   : > { %v13767_v58 = vcombine.high %v2800_v53, %v2808_v54  ;;  %v2887_v45 = vld [vmem:[%s17679_s22 + $0xfe0] sm:$0xff] }
 0x46e   : > { %9371 = vmatpush1.bf16.msra.mxu0 %v13668_v61  ;;  %9535 = vmatpush1.bf16.msra.mxu1 %v13670_v62  ;;  %v2816_v61 = vld [vmem:[%s17679_s22 + $0xda8] sm:$0xff] }
 0x46f   : > { %9372 = vmatprep.subr.bf16.mxu0 %v13685_v63  ;;  %9536 = vmatprep.subr.bf16.mxu1 %v13687_v0  ;;  %v2824_v62 = vld [vmem:[%s17679_s22 + $0xde8] sm:$0xff]  ;;  %v13764_v63 = vcombine.low %v2799_v51, %v2807_v52  ;;  %v13766_v0 = vcombine.low %v2800_v53, %v2808_v54  ;;  %v13845_v51 = vcombine.high %v2879_v44, %v2887_v45  ;;  %v2895_v53 = vld [vmem:[%s17679_s22 + $0x1020] sm:$0xff] }
 0x470   : > { %v13783_v4 = vcombine.high %v2816_v61, %v2824_v62  ;;  %v2903_v54 = vld [vmem:[%s17679_s22 + $0x1060] sm:$0xff] }
 0x472   : > { %9373 = vmatpush1.bf16.msra.mxu0 %v13684_v7  ;;  %9537 = vmatpush1.bf16.msra.mxu1 %v13686_v11  ;;  %v2832_v7 = vld [vmem:[%s17679_s22 + $0xe28] sm:$0xff] }
 0x473   : > { %9374 = vmatprep.subr.bf16.mxu0 %v13701_v13  ;;  %9538 = vmatprep.subr.bf16.mxu1 %v13703_v14  ;;  %v2840_v11 = vld [vmem:[%s17679_s22 + $0xe68] sm:$0xff]  ;;  %v13780_v13 = vcombine.low %v2815_v59, %v2823_v60  ;;  %v13782_v14 = vcombine.low %v2816_v61, %v2824_v62  ;;  %v13861_v59 = vcombine.high %v2895_v53, %v2903_v54  ;;  %v2911_v61 = vld [vmem:[%s17679_s22 + $0x10a0] sm:$0xff] }
 0x474   : > { %v13799_v17 = vcombine.high %v2832_v7, %v2840_v11  ;;  %v2919_v62 = vld [vmem:[%s17679_s22 + $0x10e0] sm:$0xff] }
 0x476   : > { %9375 = vmatpush1.bf16.msra.mxu0 %v13700_v24  ;;  %9539 = vmatpush1.bf16.msra.mxu1 %v13702_v28  ;;  %v2848_v24 = vld [vmem:[%s17679_s22 + $0xea8] sm:$0xff] }
 0x477   : > { %9376 = vmatprep.subr.bf16.mxu0 %v13717_v29  ;;  %9540 = vmatprep.subr.bf16.mxu1 %v13719_v30  ;;  %v2856_v28 = vld [vmem:[%s17679_s22 + $0xee8] sm:$0xff]  ;;  %v13796_v29 = vcombine.low %v2831_v5, %v2839_v6  ;;  %v13798_v30 = vcombine.low %v2832_v7, %v2840_v11  ;;  %v13877_v5 = vcombine.high %v2911_v61, %v2919_v62  ;;  %v2927_v7 = vld [vmem:[%s17679_s22 + $0x1120] sm:$0xff] }
 0x478   : > { %v13815_v25 = vcombine.high %v2848_v24, %v2856_v28  ;;  %v2935_v11 = vld [vmem:[%s17679_s22 + $0x1160] sm:$0xff] }
 0x47a   : > { %9377 = vmatpush1.bf16.msra.mxu0 %v13716_v35  ;;  %9541 = vmatpush1.bf16.msra.mxu1 %v13718_v36  ;;  %v2864_v35 = vld [vmem:[%s17679_s22 + $0xf28] sm:$0xff] }
 0x47b   : > { %9378 = vmatprep.subr.bf16.mxu0 %v13733_v37  ;;  %9542 = vmatprep.subr.bf16.mxu1 %v13735_v39  ;;  %v2872_v36 = vld [vmem:[%s17679_s22 + $0xf68] sm:$0xff]  ;;  %v13812_v37 = vcombine.low %v2847_v19, %v2855_v22  ;;  %v13814_v39 = vcombine.low %v2848_v24, %v2856_v28  ;;  %v13893_v19 = vcombine.high %v2927_v7, %v2935_v11  ;;  %v2943_v24 = vld [vmem:[%s17679_s22 + $0x11a0] sm:$0xff] }
 0x47c   : > { %v13831_v42 = vcombine.high %v2864_v35, %v2872_v36  ;;  %v2951_v28 = vld [vmem:[%s17679_s22 + $0x11e0] sm:$0xff] }
 0x47e   : > { %9379 = vmatpush1.bf16.msra.mxu0 %v13732_v46  ;;  %9543 = vmatpush1.bf16.msra.mxu1 %v13734_v48  ;;  %v2880_v46 = vld [vmem:[%s17679_s22 + $0xfa8] sm:$0xff] }
 0x47f   : > { %9380 = vmatprep.subr.bf16.mxu0 %v13749_v49  ;;  %9544 = vmatprep.subr.bf16.mxu1 %v13751_v50  ;;  %v2888_v48 = vld [vmem:[%s17679_s22 + $0xfe8] sm:$0xff]  ;;  %v13828_v49 = vcombine.low %v2863_v32, %v2871_v34  ;;  %v13830_v50 = vcombine.low %v2864_v35, %v2872_v36  ;;  %v13909_v32 = vcombine.high %v2943_v24, %v2951_v28  ;;  %v2959_v35 = vld [vmem:[%s17679_s22 + $0x1220] sm:$0xff] }
 0x480   : > { %v13847_v52 = vcombine.high %v2880_v46, %v2888_v48  ;;  %v2967_v36 = vld [vmem:[%s17679_s22 + $0x1260] sm:$0xff] }
 0x482   : > { %9381 = vmatpush1.bf16.msra.mxu0 %v13748_v55  ;;  %9545 = vmatpush1.bf16.msra.mxu1 %v13750_v56  ;;  %v2896_v55 = vld [vmem:[%s17679_s22 + $0x1028] sm:$0xff] }
 0x483   : > { %9382 = vmatprep.subr.bf16.mxu0 %v13765_v57  ;;  %9546 = vmatprep.subr.bf16.mxu1 %v13767_v58  ;;  %v2904_v56 = vld [vmem:[%s17679_s22 + $0x1068] sm:$0xff]  ;;  %v13844_v57 = vcombine.low %v2879_v44, %v2887_v45  ;;  %v13846_v58 = vcombine.low %v2880_v46, %v2888_v48  ;;  %v13925_v44 = vcombine.high %v2959_v35, %v2967_v36  ;;  %v2975_v46 = vld [vmem:[%s17679_s22 + $0x12a0] sm:$0xff] }
 0x484   : > { %v13863_v60 = vcombine.high %v2896_v55, %v2904_v56  ;;  %v2983_v48 = vld [vmem:[%s17679_s22 + $0x12e0] sm:$0xff] }
 0x486   : > { %9383 = vmatpush1.bf16.msra.mxu0 %v13764_v63  ;;  %9547 = vmatpush1.bf16.msra.mxu1 %v13766_v0  ;;  %v2912_v63 = vld [vmem:[%s17679_s22 + $0x10a8] sm:$0xff] }
 0x487   : > { %9384 = vmatprep.subr.bf16.mxu0 %v13781_v1  ;;  %9548 = vmatprep.subr.bf16.mxu1 %v13783_v4  ;;  %v2920_v0 = vld [vmem:[%s17679_s22 + $0x10e8] sm:$0xff]  ;;  %v13860_v1 = vcombine.low %v2895_v53, %v2903_v54  ;;  %v13862_v4 = vcombine.low %v2896_v55, %v2904_v56  ;;  %v13941_v53 = vcombine.high %v2975_v46, %v2983_v48  ;;  %v2991_v55 = vld [vmem:[%s17679_s22 + $0x1320] sm:$0xff] }
 0x488   : > { %v13879_v6 = vcombine.high %v2912_v63, %v2920_v0  ;;  %v2999_v56 = vld [vmem:[%s17679_s22 + $0x1360] sm:$0xff] }
 0x48a   : > { %9385 = vmatpush1.bf16.msra.mxu0 %v13780_v13  ;;  %9549 = vmatpush1.bf16.msra.mxu1 %v13782_v14  ;;  %v2928_v13 = vld [vmem:[%s17679_s22 + $0x1128] sm:$0xff] }
 0x48b   : > { %9386 = vmatprep.subr.bf16.mxu0 %v13797_v16  ;;  %9550 = vmatprep.subr.bf16.mxu1 %v13799_v17  ;;  %v2936_v14 = vld [vmem:[%s17679_s22 + $0x1168] sm:$0xff]  ;;  %v13876_v16 = vcombine.low %v2911_v61, %v2919_v62  ;;  %v13878_v17 = vcombine.low %v2912_v63, %v2920_v0  ;;  %v13957_v61 = vcombine.high %v2991_v55, %v2999_v56  ;;  %v3007_v63 = vld [vmem:[%s17679_s22 + $0x13a0] sm:$0xff] }
 0x48c   : > { %v13895_v22 = vcombine.high %v2928_v13, %v2936_v14  ;;  %v3015_v0 = vld [vmem:[%s17679_s22 + $0x13e0] sm:$0xff] }
 0x48e   : > { %9387 = vmatpush1.bf16.msra.mxu0 %v13796_v29  ;;  %9551 = vmatpush1.bf16.msra.mxu1 %v13798_v30  ;;  %v2944_v29 = vld [vmem:[%s17679_s22 + $0x11a8] sm:$0xff] }
 0x48f   : > { %9388 = vmatprep.subr.bf16.mxu0 %v13813_v31  ;;  %9552 = vmatprep.subr.bf16.mxu1 %v13815_v25  ;;  %v2952_v30 = vld [vmem:[%s17679_s22 + $0x11e8] sm:$0xff]  ;;  %v13892_v31 = vcombine.low %v2927_v7, %v2935_v11  ;;  %v13894_v25 = vcombine.low %v2928_v13, %v2936_v14  ;;  %v13973_v7 = vcombine.high %v3007_v63, %v3015_v0  ;;  %v3023_v13 = vld [vmem:[%s17679_s22 + $0x1420] sm:$0xff] }
 0x490   : > { %v13911_v34 = vcombine.high %v2944_v29, %v2952_v30  ;;  %v3031_v14 = vld [vmem:[%s17679_s22 + $0x1460] sm:$0xff] }
 0x492   : > { %9389 = vmatpush1.bf16.msra.mxu0 %v13812_v37  ;;  %9553 = vmatpush1.bf16.msra.mxu1 %v13814_v39  ;;  %v2960_v37 = vld [vmem:[%s17679_s22 + $0x1228] sm:$0xff] }
 0x493   : > { %9390 = vmatprep.subr.bf16.mxu0 %v13829_v40  ;;  %9554 = vmatprep.subr.bf16.mxu1 %v13831_v42  ;;  %v2968_v39 = vld [vmem:[%s17679_s22 + $0x1268] sm:$0xff]  ;;  %v13908_v40 = vcombine.low %v2943_v24, %v2951_v28  ;;  %v13910_v42 = vcombine.low %v2944_v29, %v2952_v30  ;;  %v13989_v24 = vcombine.high %v3023_v13, %v3031_v14  ;;  %v3039_v29 = vld [vmem:[%s17679_s22 + $0x14a0] sm:$0xff] }
 0x494   : > { %v13927_v45 = vcombine.high %v2960_v37, %v2968_v39  ;;  %v3047_v30 = vld [vmem:[%s17679_s22 + $0x14e0] sm:$0xff] }
 0x496   : > { %9391 = vmatpush1.bf16.msra.mxu0 %v13828_v49  ;;  %9555 = vmatpush1.bf16.msra.mxu1 %v13830_v50  ;;  %v2976_v49 = vld [vmem:[%s17679_s22 + $0x12a8] sm:$0xff] }
 0x497   : > { %9392 = vmatprep.subr.bf16.mxu0 %v13845_v51  ;;  %9556 = vmatprep.subr.bf16.mxu1 %v13847_v52  ;;  %v2984_v50 = vld [vmem:[%s17679_s22 + $0x12e8] sm:$0xff]  ;;  %v13924_v51 = vcombine.low %v2959_v35, %v2967_v36  ;;  %v13926_v52 = vcombine.low %v2960_v37, %v2968_v39  ;;  %v14005_v35 = vcombine.high %v3039_v29, %v3047_v30  ;;  %v3055_v37 = vld [vmem:[%s17679_s22 + $0x1520] sm:$0xff] }
 0x498   : > { %v13943_v54 = vcombine.high %v2976_v49, %v2984_v50  ;;  %v3063_v39 = vld [vmem:[%s17679_s22 + $0x1560] sm:$0xff] }
 0x49a   : > { %9393 = vmatpush1.bf16.msra.mxu0 %v13844_v57  ;;  %9557 = vmatpush1.bf16.msra.mxu1 %v13846_v58  ;;  %v2992_v57 = vld [vmem:[%s17679_s22 + $0x1328] sm:$0xff] }
 0x49b   : > { %9403 = vmatprep.subr.bf16.mxu0 %v13861_v59  ;;  %9567 = vmatprep.subr.bf16.mxu1 %v13863_v60  ;;  %v3000_v58 = vld [vmem:[%s17679_s22 + $0x1368] sm:$0xff]  ;;  %v13940_v59 = vcombine.low %v2975_v46, %v2983_v48  ;;  %v13942_v60 = vcombine.low %v2976_v49, %v2984_v50  ;;  %v14021_v46 = vcombine.high %v3055_v37, %v3063_v39  ;;  %v3071_v49 = vld [vmem:[%s17679_s22 + $0x15a0] sm:$0xff] }
 0x49c   : > { %v13959_v62 = vcombine.high %v2992_v57, %v3000_v58  ;;  %v3079_v50 = vld [vmem:[%s17679_s22 + $0x15e0] sm:$0xff] }
 0x49d   : > { %9395 = vmatmul.mubr.bf16.vlgmr.msra.gmra.mrb[8].mxu0 %v17857_v47  ;;  %9559 = vmatmul.mubr.bf16.vlgmr.msra.gmra.mrb[8].mxu1 %v17857_v47 }
 0x49e   : > { %9404 = vmatpush1.bf16.msra.mxu0 %v13860_v1  ;;  %9568 = vmatpush1.bf16.msra.mxu1 %v13862_v4  ;;  %v3008_v1 = vld [vmem:[%s17679_s22 + $0x13a8] sm:$0xff] }
 0x49f   : > { %9405 = vmatprep.subr.bf16.mxu0 %v13877_v5  ;;  %9569 = vmatprep.subr.bf16.mxu1 %v13879_v6  ;;  %v3016_v4 = vld [vmem:[%s17679_s22 + $0x13e8] sm:$0xff]  ;;  %v13956_v5 = vcombine.low %v2991_v55, %v2999_v56  ;;  %v13958_v6 = vcombine.low %v2992_v57, %v3000_v58  ;;  %v14037_v55 = vcombine.high %v3071_v49, %v3079_v50  ;;  %v3087_v57 = vld [vmem:[%s17679_s22 + $0x1620] sm:$0xff] }
 0x4a0   : > { %9435 = vmatprep.mubr.bf16.mxu0 %v17792_v41  ;;  %9599 = vmatprep.mubr.bf16.mxu1 %v17792_v41  ;;  %v13975_v11 = vcombine.high %v3008_v1, %v3016_v4  ;;  %v3095_v58 = vld [vmem:[%s17679_s22 + $0x1660] sm:$0xff] }
 0x4a2   : > { %9406 = vmatpush1.bf16.msra.mxu0 %v13876_v16  ;;  %9570 = vmatpush1.bf16.msra.mxu1 %v13878_v17  ;;  %v3024_v16 = vld [vmem:[%s17679_s22 + $0x1428] sm:$0xff] }
 0x4a3   : > { %9407 = vmatprep.subr.bf16.mxu0 %v13893_v19  ;;  %9571 = vmatprep.subr.bf16.mxu1 %v13895_v22  ;;  %v3032_v17 = vld [vmem:[%s17679_s22 + $0x1468] sm:$0xff]  ;;  %v13972_v19 = vcombine.low %v3007_v63, %v3015_v0  ;;  %v13974_v22 = vcombine.low %v3008_v1, %v3016_v4  ;;  %v14053_v63 = vcombine.high %v3087_v57, %v3095_v58  ;;  %v3103_v1 = vld [vmem:[%s17679_s22 + $0x16a0] sm:$0xff] }
 0x4a4   : > { %v13991_v28 = vcombine.high %v3024_v16, %v3032_v17  ;;  %v3111_v4 = vld [vmem:[%s17679_s22 + $0x16e0] sm:$0xff] }
 0x4a6   : > { %9408 = vmatpush1.bf16.msra.mxu0 %v13892_v31  ;;  %9572 = vmatpush1.bf16.msra.mxu1 %v13894_v25  ;;  %v3040_v31 = vld [vmem:[%s17679_s22 + $0x14a8] sm:$0xff] }
 0x4a7   : > { %9409 = vmatprep.subr.bf16.mxu0 %v13909_v32  ;;  %9573 = vmatprep.subr.bf16.mxu1 %v13911_v34  ;;  %v3048_v25 = vld [vmem:[%s17679_s22 + $0x14e8] sm:$0xff]  ;;  %v13988_v32 = vcombine.low %v3023_v13, %v3031_v14  ;;  %v13990_v34 = vcombine.low %v3024_v16, %v3032_v17  ;;  %v14069_v13 = vcombine.high %v3103_v1, %v3111_v4  ;;  %v3119_v16 = vld [vmem:[%s17679_s22 + $0x1720] sm:$0xff] }
 0x4a8   : > { %v14007_v36 = vcombine.high %v3040_v31, %v3048_v25  ;;  %v3127_v17 = vld [vmem:[%s17679_s22 + $0x1760] sm:$0xff] }
 0x4aa   : > { %9410 = vmatpush1.bf16.msra.mxu0 %v13908_v40  ;;  %9574 = vmatpush1.bf16.msra.mxu1 %v13910_v42  ;;  %v3056_v40 = vld [vmem:[%s17679_s22 + $0x1528] sm:$0xff] }
 0x4ab   : > { %9411 = vmatprep.subr.bf16.mxu0 %v13925_v44  ;;  %9575 = vmatprep.subr.bf16.mxu1 %v13927_v45  ;;  %v3064_v42 = vld [vmem:[%s17679_s22 + $0x1568] sm:$0xff]  ;;  %v14004_v44 = vcombine.low %v3039_v29, %v3047_v30  ;;  %v14006_v45 = vcombine.low %v3040_v31, %v3048_v25  ;;  %v14085_v29 = vcombine.high %v3119_v16, %v3127_v17  ;;  %v3135_v31 = vld [vmem:[%s17679_s22 + $0x17a0] sm:$0xff] }
 0x4ac   : > { %v14023_v48 = vcombine.high %v3056_v40, %v3064_v42  ;;  %v3143_v25 = vld [vmem:[%s17679_s22 + $0x17e0] sm:$0xff] }
 0x4ae   : > { %9412 = vmatpush1.bf16.msra.mxu0 %v13924_v51  ;;  %9576 = vmatpush1.bf16.msra.mxu1 %v13926_v52  ;;  %v3072_v51 = vld [vmem:[%s17679_s22 + $0x15a8] sm:$0xff] }
 0x4af   : > { %9413 = vmatprep.subr.bf16.mxu0 %v13941_v53  ;;  %9577 = vmatprep.subr.bf16.mxu1 %v13943_v54  ;;  %v3080_v52 = vld [vmem:[%s17679_s22 + $0x15e8] sm:$0xff]  ;;  %v14020_v53 = vcombine.low %v3055_v37, %v3063_v39  ;;  %v14022_v54 = vcombine.low %v3056_v40, %v3064_v42  ;;  %v14101_v37 = vcombine.high %v3135_v31, %v3143_v25  ;;  %v3151_v40 = vld [vmem:[%s17679_s22 + $0x1820] sm:$0xff] }
 0x4b0   : > { %v14039_v56 = vcombine.high %v3072_v51, %v3080_v52  ;;  %v3159_v42 = vld [vmem:[%s17679_s22 + $0x1860] sm:$0xff] }
 0x4b2   : > { %9414 = vmatpush1.bf16.msra.mxu0 %v13940_v59  ;;  %9578 = vmatpush1.bf16.msra.mxu1 %v13942_v60  ;;  %v3088_v59 = vld [vmem:[%s17679_s22 + $0x1628] sm:$0xff] }
 0x4b3   : > { %9415 = vmatprep.subr.bf16.mxu0 %v13957_v61  ;;  %9579 = vmatprep.subr.bf16.mxu1 %v13959_v62  ;;  %v3096_v60 = vld [vmem:[%s17679_s22 + $0x1668] sm:$0xff]  ;;  %v14036_v61 = vcombine.low %v3071_v49, %v3079_v50  ;;  %v14038_v62 = vcombine.low %v3072_v51, %v3080_v52  ;;  %v14117_v49 = vcombine.high %v3151_v40, %v3159_v42  ;;  %v3167_v51 = vld [vmem:[%s17679_s22 + $0x18a0] sm:$0xff] }
 0x4b4   : > { %v14055_v0 = vcombine.high %v3088_v59, %v3096_v60  ;;  %v3175_v52 = vld [vmem:[%s17679_s22 + $0x18e0] sm:$0xff] }
 0x4b6   : > { %9416 = vmatpush1.bf16.msra.mxu0 %v13956_v5  ;;  %9580 = vmatpush1.bf16.msra.mxu1 %v13958_v6  ;;  %v3104_v5 = vld [vmem:[%s17679_s22 + $0x16a8] sm:$0xff] }
 0x4b7   : > { %9417 = vmatprep.subr.bf16.mxu0 %v13973_v7  ;;  %9581 = vmatprep.subr.bf16.mxu1 %v13975_v11  ;;  %v3112_v6 = vld [vmem:[%s17679_s22 + $0x16e8] sm:$0xff]  ;;  %v14052_v7 = vcombine.low %v3087_v57, %v3095_v58  ;;  %v14054_v11 = vcombine.low %v3088_v59, %v3096_v60  ;;  %v14133_v57 = vcombine.high %v3167_v51, %v3175_v52  ;;  %v3183_v59 = vld [vmem:[%s17679_s22 + $0x1920] sm:$0xff] }
 0x4b8   : > { %v14071_v14 = vcombine.high %v3104_v5, %v3112_v6  ;;  %v3191_v60 = vld [vmem:[%s17679_s22 + $0x1960] sm:$0xff] }
 0x4ba   : > { %9418 = vmatpush1.bf16.msra.mxu0 %v13972_v19  ;;  %9582 = vmatpush1.bf16.msra.mxu1 %v13974_v22  ;;  %v3120_v19 = vld [vmem:[%s17679_s22 + $0x1728] sm:$0xff] }
 0x4bb   : > { %9419 = vmatprep.subr.bf16.mxu0 %v13989_v24  ;;  %9583 = vmatprep.subr.bf16.mxu1 %v13991_v28  ;;  %v3128_v22 = vld [vmem:[%s17679_s22 + $0x1768] sm:$0xff]  ;;  %v14068_v24 = vcombine.low %v3103_v1, %v3111_v4  ;;  %v14070_v28 = vcombine.low %v3104_v5, %v3112_v6  ;;  %v14149_v1 = vcombine.high %v3183_v59, %v3191_v60  ;;  %v3199_v5 = vld [vmem:[%s17679_s22 + $0x19a0] sm:$0xff] }
 0x4bc   : > { %v14087_v30 = vcombine.high %v3120_v19, %v3128_v22  ;;  %v3207_v6 = vld [vmem:[%s17679_s22 + $0x19e0] sm:$0xff] }
 0x4be   : > { %9420 = vmatpush1.bf16.msra.mxu0 %v13988_v32  ;;  %9584 = vmatpush1.bf16.msra.mxu1 %v13990_v34  ;;  %v3136_v32 = vld [vmem:[%s17679_s22 + $0x17a8] sm:$0xff] }
 0x4bf   : > { %9421 = vmatprep.subr.bf16.mxu0 %v14005_v35  ;;  %9585 = vmatprep.subr.bf16.mxu1 %v14007_v36  ;;  %v3144_v34 = vld [vmem:[%s17679_s22 + $0x17e8] sm:$0xff]  ;;  %v14084_v35 = vcombine.low %v3119_v16, %v3127_v17  ;;  %v14086_v36 = vcombine.low %v3120_v19, %v3128_v22  ;;  %v14165_v16 = vcombine.high %v3199_v5, %v3207_v6  ;;  %v3215_v19 = vld [vmem:[%s17679_s22 + $0x1a20] sm:$0xff] }
 0x4c0   : > { %v14103_v39 = vcombine.high %v3136_v32, %v3144_v34  ;;  %v3223_v22 = vld [vmem:[%s17679_s22 + $0x1a60] sm:$0xff] }
 0x4c2   : > { %9422 = vmatpush1.bf16.msra.mxu0 %v14004_v44  ;;  %9586 = vmatpush1.bf16.msra.mxu1 %v14006_v45  ;;  %v3152_v44 = vld [vmem:[%s17679_s22 + $0x1828] sm:$0xff] }
 0x4c3   : > { %9423 = vmatprep.subr.bf16.mxu0 %v14021_v46  ;;  %9587 = vmatprep.subr.bf16.mxu1 %v14023_v48  ;;  %v3160_v45 = vld [vmem:[%s17679_s22 + $0x1868] sm:$0xff]  ;;  %v14100_v46 = vcombine.low %v3135_v31, %v3143_v25  ;;  %v14102_v48 = vcombine.low %v3136_v32, %v3144_v34  ;;  %v14181_v31 = vcombine.high %v3215_v19, %v3223_v22  ;;  %v3231_v32 = vld [vmem:[%s17679_s22 + $0x1aa0] sm:$0xff] }
 0x4c4   : > { %v14119_v50 = vcombine.high %v3152_v44, %v3160_v45  ;;  %v3239_v34 = vld [vmem:[%s17679_s22 + $0x1ae0] sm:$0xff] }
 0x4c6   : > { %9424 = vmatpush1.bf16.msra.mxu0 %v14020_v53  ;;  %9588 = vmatpush1.bf16.msra.mxu1 %v14022_v54  ;;  %v3168_v53 = vld [vmem:[%s17679_s22 + $0x18a8] sm:$0xff] }
 0x4c7   : > { %9425 = vmatprep.subr.bf16.mxu0 %v14037_v55  ;;  %9589 = vmatprep.subr.bf16.mxu1 %v14039_v56  ;;  %v3176_v54 = vld [vmem:[%s17679_s22 + $0x18e8] sm:$0xff]  ;;  %v14116_v55 = vcombine.low %v3151_v40, %v3159_v42  ;;  %v14118_v56 = vcombine.low %v3152_v44, %v3160_v45  ;;  %v3433_v40 = vsub.s32 6, %v17677_v3  ;;  %v3429_v42 = vsub.s32 5, %v17677_v3 }
 0x4c8   : > { %v14135_v58 = vcombine.high %v3168_v53, %v3176_v54  ;;  %v3437_v45 = vsub.s32 7, %v17677_v3 }
 0x4ca   : > { %9426 = vmatpush1.bf16.msra.mxu0 %v14036_v61  ;;  %9590 = vmatpush1.bf16.msra.mxu1 %v14038_v62  ;;  %v3184_v61 = vld [vmem:[%s17679_s22 + $0x1928] sm:$0xff] }
 0x4cb   : > { %9427 = vmatprep.subr.bf16.mxu0 %v14053_v63  ;;  %9591 = vmatprep.subr.bf16.mxu1 %v14055_v0  ;;  %v3192_v62 = vld [vmem:[%s17679_s22 + $0x1968] sm:$0xff]  ;;  %v14132_v63 = vcombine.low %v3167_v51, %v3175_v52  ;;  %v14134_v0 = vcombine.low %v3168_v53, %v3176_v54  ;;  %v15185_v51 = vld [vmem:[%s18235_s10] sm:$0xff] }
 0x4cc   : > { %v14151_v4 = vcombine.high %v3184_v61, %v3192_v62  ;;  %v3248_v53 = vld [vmem:[%s17679_s22 + $0x1b28] sm:$0xff] }
 0x4cd   : > { %v3256_v54 = vld [vmem:[%s17679_s22 + $0x1b68] sm:$0xff] }
 0x4ce   : > { %9428 = vmatpush1.bf16.msra.mxu0 %v14052_v7  ;;  %9592 = vmatpush1.bf16.msra.mxu1 %v14054_v11  ;;  %v3200_v7 = vld [vmem:[%s17679_s22 + $0x19a8] sm:$0xff] }
 0x4cf   : > { %9429 = vmatprep.subr.bf16.mxu0 %v14069_v13  ;;  %9593 = vmatprep.subr.bf16.mxu1 %v14071_v14  ;;  %v3208_v11 = vld [vmem:[%s17679_s22 + $0x19e8] sm:$0xff]  ;;  %v14148_v13 = vcombine.low %v3183_v59, %v3191_v60  ;;  %v14150_v14 = vcombine.low %v3184_v61, %v3192_v62  ;;  %v14215_v62 = vcombine.high %v3248_v53, %v3256_v54 }
 0x4d0   : > { %v14167_v17 = vcombine.high %v3200_v7, %v3208_v11 }
 0x4d2   : > { %9430 = vmatpush1.bf16.msra.mxu0 %v14068_v24  ;;  %9594 = vmatpush1.bf16.msra.mxu1 %v14070_v28  ;;  %v3216_v24 = vld [vmem:[%s17679_s22 + $0x1a28] sm:$0xff] }
 0x4d3   : > { %9431 = vmatprep.subr.bf16.mxu0 %v14085_v29  ;;  %9595 = vmatprep.subr.bf16.mxu1 %v14087_v30  ;;  %v3224_v28 = vld [vmem:[%s17679_s22 + $0x1a68] sm:$0xff]  ;;  %v14164_v29 = vcombine.low %v3199_v5, %v3207_v6  ;;  %v14166_v30 = vcombine.low %v3200_v7, %v3208_v11 }
 0x4d4   : > { %v14183_v25 = vcombine.high %v3216_v24, %v3224_v28  ;;  %v14182_v44 = vcombine.low %v3216_v24, %v3224_v28  ;;  %v3264_v6 = vld [vmem:[%s17679_s22 + $0x1ba8] sm:$0xff]  ;;  %v14214_v28 = vcombine.low %v3248_v53, %v3256_v54 }
 0x4d5   : > { %v3272_v7 = vld [vmem:[%s17679_s22 + $0x1be8] sm:$0xff] }
 0x4d6   : > { %9432 = vmatpush1.bf16.msra.mxu0 %v14084_v35  ;;  %9596 = vmatpush1.bf16.msra.mxu1 %v14086_v36  ;;  %v3425_v35 = vsub.s32 4, %v17677_v3  ;;  %v3232_v36 = vld [vmem:[%s17679_s22 + $0x1aa8] sm:$0xff] }
 0x4d7   : > { %9433 = vmatprep.subr.bf16.mxu0 %v14101_v37  ;;  %9597 = vmatprep.subr.bf16.mxu1 %v14103_v39  ;;  %v3240_v37 = vld [vmem:[%s17679_s22 + $0x1ae8] sm:$0xff]  ;;  %v14180_v39 = vcombine.low %v3215_v19, %v3223_v22 }
 0x4d8   : > { %v3426_v52 = vrot.slane %v15185_v51, %v3425_v35  ;;  %v14198_v59 = vcombine.low %v3232_v36, %v3240_v37 }
 0x4da   : > { %9434 = vmatpush1.bf16.msra.mxu0 %v14100_v46  ;;  %9598 = vmatpush1.bf16.msra.mxu1 %v14102_v48  ;;  %v14197_v46 = vcombine.high %v3231_v32, %v3239_v34  ;;  %v14199_v48 = vcombine.high %v3232_v36, %v3240_v37  ;;  %v3288_v36 = vld [vmem:[%s17679_s22 + $0x1c68] sm:$0xff] }
 0x4db   : > { %9444 = vmatprep.subr.bf16.mxu0 %v14117_v49  ;;  %9608 = vmatprep.subr.bf16.mxu1 %v14119_v50  ;;  %v3247_v49 = vld [vmem:[%s17679_s22 + $0x1b20] sm:$0xff] }
 0x4dc   : > { %v3255_v50 = vld [vmem:[%s17679_s22 + $0x1b60] sm:$0xff] }
 0x4dd   : > { %9436 = vmatmul.mubr.bf16.vlgmr.msra.gmra.mrb[8].mxu0 %v17786_v38  ;;  %9600 = vmatmul.mubr.bf16.vlgmr.msra.gmra.mrb[8].mxu1 %v17786_v38  ;;  %v14213_v60 = vcombine.high %v3247_v49, %v3255_v50 }
 0x4de   : > { %9445 = vmatpush1.bf16.msra.mxu0 %v14116_v55  ;;  %9609 = vmatpush1.bf16.msra.mxu1 %v14118_v56  ;;  %v3434_v55 = vrot.slane %v15185_v51, %v3433_v40  ;;  %v3430_v56 = vrot.slane %v15185_v51, %v3429_v42 }
 0x4df   : > { %9446 = vmatprep.subr.bf16.mxu0 %v14133_v57  ;;  %9610 = vmatprep.subr.bf16.mxu1 %v14135_v58  ;;  %v14196_v57 = vcombine.low %v3231_v32, %v3239_v34  ;;  %v3438_v58 = vrot.slane %v15185_v51, %v3437_v45  ;;  %v3287_v32 = vld [vmem:[%s17679_s22 + $0x1c60] sm:$0xff]  ;;  %v3280_v34 = vld [vmem:[%s17679_s22 + $0x1c28] sm:$0xff] }
 0x4e0   : > { %9476 = vmatprep.mubr.bf16.mxu0 %v17933_v9  ;;  %9640 = vmatprep.mubr.bf16.mxu1 %v17933_v9  ;;  %v3304_v51 = vld [vmem:[%s17679_s22 + $0x1ce8] sm:$0xff]  ;;  %v14246_v53 = vcombine.low %v3280_v34, %v3288_v36 }
 0x4e2   : > { %9447 = vmatpush1.bf16.msra.mxu0 %v14132_v63  ;;  %9611 = vmatpush1.bf16.msra.mxu1 %v14134_v0  ;;  %v3263_v63 = vld [vmem:[%s17679_s22 + $0x1ba0] sm:$0xff] }
 0x4e3   : > { %9448 = vmatprep.subr.bf16.mxu0 %v14149_v1  ;;  %9612 = vmatprep.subr.bf16.mxu1 %v14151_v4  ;;  %v3271_v0 = vld [vmem:[%s17679_s22 + $0x1be0] sm:$0xff] }
 0x4e4   : > { %v14228_v37 = vcombine.low %v3263_v63, %v3271_v0 }
 0x4e6   : > { %9449 = vmatpush1.bf16.msra.mxu0 %v14148_v13  ;;  %9613 = vmatpush1.bf16.msra.mxu1 %v14150_v14 }
 0x4e7   : > { %9450 = vmatprep.subr.bf16.mxu0 %v14165_v16  ;;  %9614 = vmatprep.subr.bf16.mxu1 %v14167_v17  ;;  %v14212_v17 = vcombine.low %v3247_v49, %v3255_v50  ;;  %v3303_v49 = vld [vmem:[%s17679_s22 + $0x1ce0] sm:$0xff]  ;;  %v3296_v50 = vld [vmem:[%s17679_s22 + $0x1ca8] sm:$0xff] }
 0x4ea   : > { %9451 = vmatpush1.bf16.msra.mxu0 %v14164_v29  ;;  %9615 = vmatpush1.bf16.msra.mxu1 %v14166_v30  ;;  %v14229_v29 = vcombine.high %v3263_v63, %v3271_v0  ;;  %v14262_v0 = vcombine.low %v3296_v50, %v3304_v51 }
 0x4eb   : > { %9452 = vmatprep.subr.bf16.mxu0 %v14181_v31  ;;  %9616 = vmatprep.subr.bf16.mxu1 %v14183_v25  ;;  %v14231_v31 = vcombine.high %v3264_v6, %v3272_v7  ;;  %v3279_v25 = vld [vmem:[%s17679_s22 + $0x1c20] sm:$0xff] }
 0x4ee   : > { %9453 = vmatpush1.bf16.msra.mxu0 %v14180_v39  ;;  %9617 = vmatpush1.bf16.msra.mxu1 %v14182_v44  ;;  %v14230_v39 = vcombine.low %v3264_v6, %v3272_v7  ;;  %v14245_v44 = vcombine.high %v3279_v25, %v3287_v32  ;;  %v3327_v6 = vld [vmem:[%s17679_s22 + $0x1da0] sm:$0xff] }
 0x4ef   : > { %9454 = vmatprep.subr.bf16.mxu0 %v14197_v46  ;;  %9618 = vmatprep.subr.bf16.mxu1 %v14199_v48  ;;  %v14247_v46 = vcombine.high %v3280_v34, %v3288_v36  ;;  %v3295_v48 = vld [vmem:[%s17679_s22 + $0x1ca0] sm:$0xff] }
 0x4f0   : > { %v9150_v61 = vpop.f32.mrb[4].mxu0  ;;  %v9314_v4 = vpop.f32.mrb[4].mxu1  ;;  %v14261_v54 = vcombine.high %v3295_v48, %v3303_v49  ;;  %v3335_v7 = vld [vmem:[%s17679_s22 + $0x1de0] sm:$0xff] }
 0x4f1   : > { %v15003_v1 = vadd.f32 %v9150_v61, %v3426_v52  ;;  %v9152_v5 = vpop.f32.mrb[5].mxu0  ;;  %v15005_v11 = vadd.f32 %v9314_v4, %v3434_v55  ;;  %v9316_v14 = vpop.f32.mrb[5].mxu1  ;;  %v14244_v52 = vcombine.low %v3279_v25, %v3287_v32  ;;  %v14263_v55 = vcombine.high %v3296_v50, %v3304_v51  ;;  %v3359_v34 = vld [vmem:[%s17679_s22 + $0x1ea0] sm:$0xff] }
 0x4f2   : > { %v15004_v13 = vadd.f32 %v9152_v5, %v3430_v56  ;;  %v9154_v16 = vpop.f32.mrb[6].mxu0  ;;  %9455 = vmatpush1.bf16.msra.mxu0 %v14196_v57  ;;  %v15006_v19 = vadd.f32 %v9316_v14, %v3438_v58  ;;  %v9318_v22 = vpop.f32.mrb[6].mxu1  ;;  %9619 = vmatpush1.bf16.msra.mxu1 %v14198_v59  ;;  %v3311_v56 = vld [vmem:[%s17679_s22 + $0x1d20] sm:$0xff]  ;;  %v3312_v59 = vld [vmem:[%s17679_s22 + $0x1d28] sm:$0xff] }
 0x4f3   : > { %15161 = vtanh.f32 %v15003_v1  ;;  %v9155_v24 = vpop.f32.mrb[7].mxu0  ;;  %9456 = vmatprep.subr.bf16.mxu0 %v14213_v60  ;;  %v9319_v30 = vpop.f32.mrb[7].mxu1  ;;  %9620 = vmatprep.subr.bf16.mxu1 %v14215_v62  ;;  %v3319_v57 = vld [vmem:[%s17679_s22 + $0x1d60] sm:$0xff]  ;;  %v3320_v60 = vld [vmem:[%s17679_s22 + $0x1d68] sm:$0xff]  ;;  %v14260_v62 = vcombine.low %v3295_v48, %v3303_v49 }
 0x4f4   : > { %15163 = vtanh.f32 %v15005_v11  ;;  %v14277_v1 = vcombine.high %v3311_v56, %v3319_v57  ;;  %v14279_v5 = vcombine.high %v3312_v59, %v3320_v60  ;;  %v3328_v11 = vld [vmem:[%s17679_s22 + $0x1da8] sm:$0xff]  ;;  %v14276_v14 = vcombine.low %v3311_v56, %v3319_v57  ;;  %v3343_v22 = vld [vmem:[%s17679_s22 + $0x1e20] sm:$0xff] }
 0x4f5   : > { %15165 = vtanh.f32 %v15004_v13  ;;  %v3336_v13 = vld [vmem:[%s17679_s22 + $0x1de8] sm:$0xff]  ;;  %v14278_v16 = vcombine.low %v3312_v59, %v3320_v60  ;;  %v3351_v24 = vld [vmem:[%s17679_s22 + $0x1e60] sm:$0xff]  ;;  %v14292_v30 = vcombine.low %v3327_v6, %v3335_v7 }
 0x4f6   : > { %15167 = vtanh.f32 %v15006_v19  ;;  %9457 = vmatpush1.bf16.msra.mxu0 %v14212_v17  ;;  %9621 = vmatpush1.bf16.msra.mxu1 %v14214_v28  ;;  %v14293_v17 = vcombine.high %v3327_v6, %v3335_v7  ;;  %v14295_v19 = vcombine.high %v3328_v11, %v3336_v13  ;;  %v3344_v28 = vld [vmem:[%s17679_s22 + $0x1e28] sm:$0xff]  ;;  %v14309_v25 = vcombine.high %v3343_v22, %v3351_v24  ;;  %v3367_v36 = vld [vmem:[%s17679_s22 + $0x1ee0] sm:$0xff] }
 0x4f7   : > { %9458 = vmatprep.subr.bf16.mxu0 %v14229_v29  ;;  %9622 = vmatprep.subr.bf16.mxu1 %v14231_v31  ;;  %v3352_v29 = vld [vmem:[%s17679_s22 + $0x1e68] sm:$0xff]  ;;  %v14294_v31 = vcombine.low %v3328_v11, %v3336_v13  ;;  %v14325_v48 = vcombine.high %v3359_v34, %v3367_v36  ;;  %v3375_v50 = vld [vmem:[%s17679_s22 + $0x1f20] sm:$0xff]  ;;  %v2385_v11 = vld [vmem:[%s17679_s22 + $0x30] sm:$0xff] }
 0x4f8   : > { %v14311_v32 = vcombine.high %v3344_v28, %v3352_v29  ;;  %v3383_v51 = vld [vmem:[%s17679_s22 + $0x1f60] sm:$0xff]  ;;  %v2393_v13 = vld [vmem:[%s17679_s22 + $0x70] sm:$0xff] }
 0x4f9   : > { %v14341_v56 = vcombine.high %v3375_v50, %v3383_v51  ;;  %v3391_v59 = vld [vmem:[%s17679_s22 + $0x1fa0] sm:$0xff] }
 0x4fa   : > { %9459 = vmatpush1.bf16.msra.mxu0 %v14228_v37  ;;  %9623 = vmatpush1.bf16.msra.mxu1 %v14230_v39  ;;  %v3360_v37 = vld [vmem:[%s17679_s22 + $0x1ea8] sm:$0xff]  ;;  %v3399_v60 = vld [vmem:[%s17679_s22 + $0x1fe0] sm:$0xff] }
 0x4fb   : > { %9460 = vmatprep.subr.bf16.mxu0 %v14245_v44  ;;  %9624 = vmatprep.subr.bf16.mxu1 %v14247_v46  ;;  %v3368_v39 = vld [vmem:[%s17679_s22 + $0x1ee8] sm:$0xff]  ;;  %v14308_v44 = vcombine.low %v3343_v22, %v3351_v24  ;;  %v14310_v46 = vcombine.low %v3344_v28, %v3352_v29  ;;  %v14357_v6 = vcombine.high %v3391_v59, %v3399_v60  ;;  %v2401_v28 = vld [vmem:[%s17679_s22 + $0xb0] sm:$0xff] }
 0x4fc   : > { %v14327_v49 = vcombine.high %v3360_v37, %v3368_v39  ;;  %v13353_v22 = vcombine.high %v2385_v11, %v2393_v13  ;;  %v2409_v29 = vld [vmem:[%s17679_s22 + $0xf0] sm:$0xff] }
 0x4fd   : > { %v18565_v58 = vpop.eup %15161 }
 0x4fe   : > { %v18569_v61 = vpop.eup %15163  ;;  %9461 = vmatpush1.bf16.msra.mxu0 %v14244_v52  ;;  %9625 = vmatpush1.bf16.msra.mxu1 %v14246_v53  ;;  %v3376_v52 = vld [vmem:[%s17679_s22 + $0x1f28] sm:$0xff] }
 0x4ff   : > { %v18571_v63 = vpop.eup %15165  ;;  %9462 = vmatprep.subr.bf16.mxu0 %v14261_v54  ;;  %9626 = vmatprep.subr.bf16.mxu1 %v14263_v55  ;;  %v3384_v53 = vld [vmem:[%s17679_s22 + $0x1f68] sm:$0xff]  ;;  %v14324_v54 = vcombine.low %v3359_v34, %v3367_v36  ;;  %v14326_v55 = vcombine.low %v3360_v37, %v3368_v39  ;;  %v13369_v34 = vcombine.high %v2401_v28, %v2409_v29  ;;  %v2417_v37 = vld [vmem:[%s17679_s22 + $0x130] sm:$0xff] }
 0x500   : > { %v18573_v4 = vpop.eup %15167  ;;  %v14343_v57 = vcombine.high %v3376_v52, %v3384_v53  ;;  %v2425_v39 = vld [vmem:[%s17679_s22 + $0x170] sm:$0xff] }
 0x502   : > { %9463 = vmatpush1.bf16.msra.mxu0 %v14260_v62  ;;  %9627 = vmatpush1.bf16.msra.mxu1 %v14262_v0  ;;  %v3392_v62 = vld [vmem:[%s17679_s22 + $0x1fa8] sm:$0xff] }
 0x503   : > { %9464 = vmatprep.subr.bf16.mxu0 %v14277_v1  ;;  %9628 = vmatprep.subr.bf16.mxu1 %v14279_v5  ;;  %v3400_v0 = vld [vmem:[%s17679_s22 + $0x1fe8] sm:$0xff]  ;;  %v14340_v1 = vcombine.low %v3375_v50, %v3383_v51  ;;  %v14342_v5 = vcombine.low %v3376_v52, %v3384_v53  ;;  %v13385_v50 = vcombine.high %v2417_v37, %v2425_v39  ;;  %v2433_v52 = vld [vmem:[%s17679_s22 + $0x1b0] sm:$0xff] }
 0x504   : > { %v14359_v7 = vcombine.high %v3392_v62, %v3400_v0  ;;  %v2441_v53 = vld [vmem:[%s17679_s22 + $0x1f0] sm:$0xff] }
 0x506   : > { %9465 = vmatpush1.bf16.msra.mxu0 %v14276_v14  ;;  %9629 = vmatpush1.bf16.msra.mxu1 %v14278_v16  ;;  %v2386_v14 = vld [vmem:[%s17679_s22 + $0x38] sm:$0xff] }
 0x507   : > { %9466 = vmatprep.subr.bf16.mxu0 %v14293_v17  ;;  %9630 = vmatprep.subr.bf16.mxu1 %v14295_v19  ;;  %v2394_v16 = vld [vmem:[%s17679_s22 + $0x78] sm:$0xff]  ;;  %v14356_v17 = vcombine.low %v3391_v59, %v3399_v60  ;;  %v14358_v19 = vcombine.low %v3392_v62, %v3400_v0  ;;  %v13401_v59 = vcombine.high %v2433_v52, %v2441_v53  ;;  %v2449_v62 = vld [vmem:[%s17679_s22 + $0x230] sm:$0xff] }
 0x508   : > { %v13355_v24 = vcombine.high %v2386_v14, %v2394_v16  ;;  %v2457_v0 = vld [vmem:[%s17679_s22 + $0x270] sm:$0xff] }
 0x50a   : > { %9467 = vmatpush1.bf16.msra.mxu0 %v14292_v30  ;;  %9631 = vmatpush1.bf16.msra.mxu1 %v14294_v31  ;;  %v2402_v30 = vld [vmem:[%s17679_s22 + $0xb8] sm:$0xff] }
 0x50b   : > { %9468 = vmatprep.subr.bf16.mxu0 %v14309_v25  ;;  %9632 = vmatprep.subr.bf16.mxu1 %v14311_v32  ;;  %v2410_v31 = vld [vmem:[%s17679_s22 + $0xf8] sm:$0xff]  ;;  %v13352_v25 = vcombine.low %v2385_v11, %v2393_v13  ;;  %v13354_v32 = vcombine.low %v2386_v14, %v2394_v16  ;;  %v2465_v13 = vld [vmem:[%s17679_s22 + $0x2b0] sm:$0xff] }
 0x50c   : > { %v13371_v36 = vcombine.high %v2402_v30, %v2410_v31  ;;  %v2473_v14 = vld [vmem:[%s17679_s22 + $0x2f0] sm:$0xff]  ;;  %v2466_v16 = vld [vmem:[%s17679_s22 + $0x2b8] sm:$0xff] }
 0x50e   : > { %9469 = vmatpush1.bf16.msra.mxu0 %v14308_v44  ;;  %9633 = vmatpush1.bf16.msra.mxu1 %v14310_v46  ;;  %v2418_v44 = vld [vmem:[%s17679_s22 + $0x138] sm:$0xff] }
 0x50f   : > { %9470 = vmatprep.subr.bf16.mxu0 %v14325_v48  ;;  %9634 = vmatprep.subr.bf16.mxu1 %v14327_v49  ;;  %v2426_v46 = vld [vmem:[%s17679_s22 + $0x178] sm:$0xff]  ;;  %v13368_v48 = vcombine.low %v2401_v28, %v2409_v29  ;;  %v13370_v49 = vcombine.low %v2402_v30, %v2410_v31  ;;  %v2481_v29 = vld [vmem:[%s17679_s22 + $0x330] sm:$0xff] }
 0x510   : > { %v13387_v51 = vcombine.high %v2418_v44, %v2426_v46  ;;  %v2489_v30 = vld [vmem:[%s17679_s22 + $0x370] sm:$0xff]  ;;  %v2482_v31 = vld [vmem:[%s17679_s22 + $0x338] sm:$0xff] }
 0x512   : > { %9471 = vmatpush1.bf16.msra.mxu0 %v14324_v54  ;;  %9635 = vmatpush1.bf16.msra.mxu1 %v14326_v55  ;;  %v2434_v54 = vld [vmem:[%s17679_s22 + $0x1b8] sm:$0xff] }
 0x513   : > { %9472 = vmatprep.subr.bf16.mxu0 %v14341_v56  ;;  %9636 = vmatprep.subr.bf16.mxu1 %v14343_v57  ;;  %v2442_v55 = vld [vmem:[%s17679_s22 + $0x1f8] sm:$0xff]  ;;  %v13384_v56 = vcombine.low %v2417_v37, %v2425_v39  ;;  %v13386_v57 = vcombine.low %v2418_v44, %v2426_v46  ;;  %v2497_v39 = vld [vmem:[%s17679_s22 + $0x3b0] sm:$0xff] }
 0x514   : > { %v13403_v60 = vcombine.high %v2434_v54, %v2442_v55  ;;  %v2505_v44 = vld [vmem:[%s17679_s22 + $0x3f0] sm:$0xff]  ;;  %v2498_v46 = vld [vmem:[%s17679_s22 + $0x3b8] sm:$0xff] }
 0x516   : > { %9473 = vmatpush1.bf16.msra.mxu0 %v14340_v1  ;;  %9637 = vmatpush1.bf16.msra.mxu1 %v14342_v5  ;;  %v2450_v1 = vld [vmem:[%s17679_s22 + $0x238] sm:$0xff] }
 0x517   : > { %9474 = vmatprep.subr.bf16.mxu0 %v14357_v6  ;;  %9638 = vmatprep.subr.bf16.mxu1 %v14359_v7  ;;  %v2458_v5 = vld [vmem:[%s17679_s22 + $0x278] sm:$0xff]  ;;  %v13400_v6 = vcombine.low %v2433_v52, %v2441_v53  ;;  %v13417_v7 = vcombine.high %v2449_v62, %v2457_v0  ;;  %v2513_v53 = vld [vmem:[%s17679_s22 + $0x430] sm:$0xff] }
 0x518   : > { %v13419_v11 = vcombine.high %v2450_v1, %v2458_v5 }
 0x51a   : > { %9475 = vmatpush1.bf16.msra.mxu0 %v14356_v17  ;;  %9639 = vmatpush1.bf16.msra.mxu1 %v14358_v19  ;;  %v2474_v17 = vld [vmem:[%s17679_s22 + $0x2f8] sm:$0xff]  ;;  %v13416_v19 = vcombine.low %v2449_v62, %v2457_v0  ;;  %v2529_v0 = vld [vmem:[%s17679_s22 + $0x4b0] sm:$0xff] }
 0x51b   : > { %9649 = vmatprep.subr.bf16.mxu0 %v13353_v22  ;;  %9813 = vmatprep.subr.bf16.mxu1 %v13355_v24  ;;  %v13418_v22 = vcombine.low %v2450_v1, %v2458_v5  ;;  %v13433_v24 = vcombine.high %v2465_v13, %v2473_v14  ;;  %v13435_v28 = vcombine.high %v2466_v16, %v2474_v17  ;;  %v2537_v1 = vld [vmem:[%s17679_s22 + $0x4f0] sm:$0xff]  ;;  %v2530_v5 = vld [vmem:[%s17679_s22 + $0x4b8] sm:$0xff] }
 0x51d   : > { %9477 = vmatmul.mubr.bf16.vlgmr.msra.gmra.mrb[8].mxu0 %v18001_v20  ;;  %9641 = vmatmul.mubr.bf16.vlgmr.msra.gmra.mrb[8].mxu1 %v18001_v20 }
 0x51e   : > { %9650 = vmatpush1.bf16.msra.mxu0 %v13352_v25  ;;  %9814 = vmatpush1.bf16.msra.mxu1 %v13354_v32  ;;  %v2490_v25 = vld [vmem:[%s17679_s22 + $0x378] sm:$0xff]  ;;  %v13432_v32 = vcombine.low %v2465_v13, %v2473_v14  ;;  %v2545_v14 = vld [vmem:[%s17679_s22 + $0x530] sm:$0xff] }
 0x51f   : > { %9651 = vmatprep.subr.bf16.mxu0 %v13369_v34  ;;  %9815 = vmatprep.subr.bf16.mxu1 %v13371_v36  ;;  %v13434_v34 = vcombine.low %v2466_v16, %v2474_v17  ;;  %v13449_v36 = vcombine.high %v2481_v29, %v2489_v30  ;;  %v13451_v37 = vcombine.high %v2482_v31, %v2490_v25  ;;  %v2553_v16 = vld [vmem:[%s17679_s22 + $0x570] sm:$0xff]  ;;  %v2546_v17 = vld [vmem:[%s17679_s22 + $0x538] sm:$0xff] }
 0x520   : > { %9681 = vmatprep.mubr.bf16.mxu0 %v17716_v43  ;;  %9845 = vmatprep.mubr.bf16.mxu1 %v17716_v43  ;;  %v13402_v43 = vcombine.low %v2434_v54, %v2442_v55  ;;  %v2521_v54 = vld [vmem:[%s17679_s22 + $0x470] sm:$0xff]  ;;  %v2514_v55 = vld [vmem:[%s17679_s22 + $0x438] sm:$0xff] }
 0x522   : > { %9652 = vmatpush1.bf16.msra.mxu0 %v13368_v48  ;;  %9816 = vmatpush1.bf16.msra.mxu1 %v13370_v49  ;;  %v2506_v48 = vld [vmem:[%s17679_s22 + $0x3f8] sm:$0xff]  ;;  %v13448_v49 = vcombine.low %v2481_v29, %v2489_v30  ;;  %v2561_v30 = vld [vmem:[%s17679_s22 + $0x5b0] sm:$0xff] }
 0x523   : > { %9653 = vmatprep.subr.bf16.mxu0 %v13385_v50  ;;  %9817 = vmatprep.subr.bf16.mxu1 %v13387_v51  ;;  %v13450_v50 = vcombine.low %v2482_v31, %v2490_v25  ;;  %v13465_v51 = vcombine.high %v2497_v39, %v2505_v44  ;;  %v13467_v52 = vcombine.high %v2498_v46, %v2506_v48  ;;  %v2569_v31 = vld [vmem:[%s17679_s22 + $0x5f0] sm:$0xff]  ;;  %v2562_v25 = vld [vmem:[%s17679_s22 + $0x5b8] sm:$0xff] }
 0x526   : > { %9654 = vmatpush1.bf16.msra.mxu0 %v13384_v56  ;;  %9818 = vmatpush1.bf16.msra.mxu1 %v13386_v57  ;;  %v2522_v56 = vld [vmem:[%s17679_s22 + $0x478] sm:$0xff]  ;;  %v13464_v57 = vcombine.low %v2497_v39, %v2505_v44  ;;  %v2577_v44 = vld [vmem:[%s17679_s22 + $0x630] sm:$0xff] }
 0x527   : > { %9655 = vmatprep.subr.bf16.mxu0 %v13401_v59  ;;  %9819 = vmatprep.subr.bf16.mxu1 %v13403_v60  ;;  %v13466_v59 = vcombine.low %v2498_v46, %v2506_v48  ;;  %v13481_v60 = vcombine.high %v2513_v53, %v2521_v54  ;;  %v13483_v62 = vcombine.high %v2514_v55, %v2522_v56  ;;  %v2585_v46 = vld [vmem:[%s17679_s22 + $0x670] sm:$0xff]  ;;  %v2578_v48 = vld [vmem:[%s17679_s22 + $0x638] sm:$0xff] }
 0x52a   : > { %9656 = vmatpush1.bf16.msra.mxu0 %v13400_v6  ;;  %9820 = vmatpush1.bf16.msra.mxu1 %v13402_v43  ;;  %v2538_v6 = vld [vmem:[%s17679_s22 + $0x4f8] sm:$0xff]  ;;  %v13480_v43 = vcombine.low %v2513_v53, %v2521_v54  ;;  %v2593_v54 = vld [vmem:[%s17679_s22 + $0x6b0] sm:$0xff] }
 0x52b   : > { %9657 = vmatprep.subr.bf16.mxu0 %v13417_v7  ;;  %9821 = vmatprep.subr.bf16.mxu1 %v13419_v11  ;;  %v13482_v7 = vcombine.low %v2514_v55, %v2522_v56  ;;  %v13497_v11 = vcombine.high %v2529_v0, %v2537_v1  ;;  %v13499_v13 = vcombine.high %v2530_v5, %v2538_v6  ;;  %v2601_v55 = vld [vmem:[%s17679_s22 + $0x6f0] sm:$0xff]  ;;  %v2594_v56 = vld [vmem:[%s17679_s22 + $0x6b8] sm:$0xff] }
 0x52e   : > { %9658 = vmatpush1.bf16.msra.mxu0 %v13416_v19  ;;  %9822 = vmatpush1.bf16.msra.mxu1 %v13418_v22  ;;  %v2554_v19 = vld [vmem:[%s17679_s22 + $0x578] sm:$0xff]  ;;  %v13496_v22 = vcombine.low %v2529_v0, %v2537_v1  ;;  %v2609_v1 = vld [vmem:[%s17679_s22 + $0x730] sm:$0xff] }
 0x52f   : > { %9659 = vmatprep.subr.bf16.mxu0 %v13433_v24  ;;  %9823 = vmatprep.subr.bf16.mxu1 %v13435_v28  ;;  %v13498_v24 = vcombine.low %v2530_v5, %v2538_v6  ;;  %v13513_v28 = vcombine.high %v2545_v14, %v2553_v16  ;;  %v13515_v29 = vcombine.high %v2546_v17, %v2554_v19  ;;  %v2617_v5 = vld [vmem:[%s17679_s22 + $0x770] sm:$0xff]  ;;  %v2610_v6 = vld [vmem:[%s17679_s22 + $0x738] sm:$0xff] }
 0x532   : > { %9660 = vmatpush1.bf16.msra.mxu0 %v13432_v32  ;;  %9824 = vmatpush1.bf16.msra.mxu1 %v13434_v34  ;;  %v2570_v32 = vld [vmem:[%s17679_s22 + $0x5f8] sm:$0xff]  ;;  %v13512_v34 = vcombine.low %v2545_v14, %v2553_v16  ;;  %v2625_v16 = vld [vmem:[%s17679_s22 + $0x7b0] sm:$0xff] }
 0x533   : > { %9661 = vmatprep.subr.bf16.mxu0 %v13449_v36  ;;  %9825 = vmatprep.subr.bf16.mxu1 %v13451_v37  ;;  %v13514_v36 = vcombine.low %v2546_v17, %v2554_v19  ;;  %v13529_v37 = vcombine.high %v2561_v30, %v2569_v31  ;;  %v13531_v39 = vcombine.high %v2562_v25, %v2570_v32  ;;  %v2633_v17 = vld [vmem:[%s17679_s22 + $0x7f0] sm:$0xff]  ;;  %v2626_v19 = vld [vmem:[%s17679_s22 + $0x7b8] sm:$0xff] }
 0x536   : > { %9662 = vmatpush1.bf16.msra.mxu0 %v13448_v49  ;;  %9826 = vmatpush1.bf16.msra.mxu1 %v13450_v50  ;;  %v2586_v49 = vld [vmem:[%s17679_s22 + $0x678] sm:$0xff]  ;;  %v13528_v50 = vcombine.low %v2561_v30, %v2569_v31  ;;  %v2641_v31 = vld [vmem:[%s17679_s22 + $0x830] sm:$0xff] }
 0x537   : > { %9663 = vmatprep.subr.bf16.mxu0 %v13465_v51  ;;  %9827 = vmatprep.subr.bf16.mxu1 %v13467_v52  ;;  %v13530_v51 = vcombine.low %v2562_v25, %v2570_v32  ;;  %v13545_v52 = vcombine.high %v2577_v44, %v2585_v46  ;;  %v13547_v53 = vcombine.high %v2578_v48, %v2586_v49  ;;  %v2649_v25 = vld [vmem:[%s17679_s22 + $0x870] sm:$0xff]  ;;  %v2642_v32 = vld [vmem:[%s17679_s22 + $0x838] sm:$0xff] }
 0x53a   : > { %9664 = vmatpush1.bf16.msra.mxu0 %v13464_v57  ;;  %9828 = vmatpush1.bf16.msra.mxu1 %v13466_v59  ;;  %v2602_v57 = vld [vmem:[%s17679_s22 + $0x6f8] sm:$0xff]  ;;  %v13544_v59 = vcombine.low %v2577_v44, %v2585_v46  ;;  %v2657_v46 = vld [vmem:[%s17679_s22 + $0x8b0] sm:$0xff] }
 0x53b   : > { %9665 = vmatprep.subr.bf16.mxu0 %v13481_v60  ;;  %9829 = vmatprep.subr.bf16.mxu1 %v13483_v62  ;;  %v13546_v60 = vcombine.low %v2578_v48, %v2586_v49  ;;  %v13561_v62 = vcombine.high %v2593_v54, %v2601_v55  ;;  %v13563_v0 = vcombine.high %v2594_v56, %v2602_v57  ;;  %v2665_v48 = vld [vmem:[%s17679_s22 + $0x8f0] sm:$0xff]  ;;  %v2658_v49 = vld [vmem:[%s17679_s22 + $0x8b8] sm:$0xff] }
 0x53e   : > { %9666 = vmatpush1.bf16.msra.mxu0 %v13480_v43  ;;  %9830 = vmatpush1.bf16.msra.mxu1 %v13482_v7  ;;  %v2618_v43 = vld [vmem:[%s17679_s22 + $0x778] sm:$0xff]  ;;  %v13560_v7 = vcombine.low %v2593_v54, %v2601_v55  ;;  %v2673_v55 = vld [vmem:[%s17679_s22 + $0x930] sm:$0xff] }
 0x53f   : > { %9667 = vmatprep.subr.bf16.mxu0 %v13497_v11  ;;  %9831 = vmatprep.subr.bf16.mxu1 %v13499_v13  ;;  %v13562_v11 = vcombine.low %v2594_v56, %v2602_v57  ;;  %v13577_v13 = vcombine.high %v2609_v1, %v2617_v5  ;;  %v13579_v14 = vcombine.high %v2610_v6, %v2618_v43  ;;  %v2681_v56 = vld [vmem:[%s17679_s22 + $0x970] sm:$0xff]  ;;  %v2674_v57 = vld [vmem:[%s17679_s22 + $0x938] sm:$0xff] }
 0x542   : > { %9668 = vmatpush1.bf16.msra.mxu0 %v13496_v22  ;;  %9832 = vmatpush1.bf16.msra.mxu1 %v13498_v24  ;;  %v2634_v22 = vld [vmem:[%s17679_s22 + $0x7f8] sm:$0xff]  ;;  %v13576_v24 = vcombine.low %v2609_v1, %v2617_v5  ;;  %v2689_v5 = vld [vmem:[%s17679_s22 + $0x9b0] sm:$0xff] }
 0x543   : > { %9669 = vmatprep.subr.bf16.mxu0 %v13513_v28  ;;  %9833 = vmatprep.subr.bf16.mxu1 %v13515_v29  ;;  %v13578_v28 = vcombine.low %v2610_v6, %v2618_v43  ;;  %v13593_v29 = vcombine.high %v2625_v16, %v2633_v17  ;;  %v13595_v30 = vcombine.high %v2626_v19, %v2634_v22  ;;  %v2697_v6 = vld [vmem:[%s17679_s22 + $0x9f0] sm:$0xff]  ;;  %v2690_v43 = vld [vmem:[%s17679_s22 + $0x9b8] sm:$0xff] }
 0x546   : > { %9670 = vmatpush1.bf16.msra.mxu0 %v13512_v34  ;;  %9834 = vmatpush1.bf16.msra.mxu1 %v13514_v36  ;;  %v2650_v34 = vld [vmem:[%s17679_s22 + $0x878] sm:$0xff]  ;;  %v13592_v36 = vcombine.low %v2625_v16, %v2633_v17  ;;  %v2705_v16 = vld [vmem:[%s17679_s22 + $0xa30] sm:$0xff] }
 0x547   : > { %9671 = vmatprep.subr.bf16.mxu0 %v13529_v37  ;;  %9835 = vmatprep.subr.bf16.mxu1 %v13531_v39  ;;  %v13594_v37 = vcombine.low %v2626_v19, %v2634_v22  ;;  %v13609_v39 = vcombine.high %v2641_v31, %v2649_v25  ;;  %v13611_v44 = vcombine.high %v2642_v32, %v2650_v34  ;;  %v2713_v17 = vld [vmem:[%s17679_s22 + $0xa70] sm:$0xff]  ;;  %v2706_v19 = vld [vmem:[%s17679_s22 + $0xa38] sm:$0xff] }
 0x548   : > { %v2714_v22 = vld [vmem:[%s17679_s22 + $0xa78] sm:$0xff] }
 0x54a   : > { %9672 = vmatpush1.bf16.msra.mxu0 %v13528_v50  ;;  %9836 = vmatpush1.bf16.msra.mxu1 %v13530_v51  ;;  %v2666_v50 = vld [vmem:[%s17679_s22 + $0x8f8] sm:$0xff]  ;;  %v13608_v51 = vcombine.low %v2641_v31, %v2649_v25  ;;  %v2729_v31 = vld [vmem:[%s17679_s22 + $0xaf0] sm:$0xff] }
 0x54b   : > { %9673 = vmatprep.subr.bf16.mxu0 %v13545_v52  ;;  %9837 = vmatprep.subr.bf16.mxu1 %v13547_v53  ;;  %v13610_v52 = vcombine.low %v2642_v32, %v2650_v34  ;;  %v13625_v53 = vcombine.high %v2657_v46, %v2665_v48  ;;  %v13627_v54 = vcombine.high %v2658_v49, %v2666_v50  ;;  %v2722_v25 = vld [vmem:[%s17679_s22 + $0xab8] sm:$0xff] }
 0x54c   : > { %v2730_v32 = vld [vmem:[%s17679_s22 + $0xaf8] sm:$0xff]  ;;  %v13672_v34 = vcombine.low %v2705_v16, %v2713_v17 }
 0x54e   : > { %9674 = vmatpush1.bf16.msra.mxu0 %v13544_v59  ;;  %9838 = vmatpush1.bf16.msra.mxu1 %v13546_v60  ;;  %v2682_v59 = vld [vmem:[%s17679_s22 + $0x978] sm:$0xff]  ;;  %v13624_v60 = vcombine.low %v2657_v46, %v2665_v48  ;;  %v2745_v46 = vld [vmem:[%s17679_s22 + $0xb70] sm:$0xff] }
 0x54f   : > { %9675 = vmatprep.subr.bf16.mxu0 %v13561_v62  ;;  %9839 = vmatprep.subr.bf16.mxu1 %v13563_v0  ;;  %v13626_v62 = vcombine.low %v2658_v49, %v2666_v50  ;;  %v13641_v0 = vcombine.high %v2673_v55, %v2681_v56  ;;  %v13643_v1 = vcombine.high %v2674_v57, %v2682_v59  ;;  %v2738_v48 = vld [vmem:[%s17679_s22 + $0xb38] sm:$0xff] }
 0x550   : > { %v2746_v49 = vld [vmem:[%s17679_s22 + $0xb78] sm:$0xff] }
 0x552   : > { %9676 = vmatpush1.bf16.msra.mxu0 %v13560_v7  ;;  %9840 = vmatpush1.bf16.msra.mxu1 %v13562_v11  ;;  %v2698_v7 = vld [vmem:[%s17679_s22 + $0x9f8] sm:$0xff]  ;;  %v13642_v11 = vcombine.low %v2674_v57, %v2682_v59 }
 0x553   : > { %9677 = vmatprep.subr.bf16.mxu0 %v13577_v13  ;;  %9841 = vmatprep.subr.bf16.mxu1 %v13579_v14  ;;  %v13657_v13 = vcombine.high %v2689_v5, %v2697_v6  ;;  %v13659_v14 = vcombine.high %v2690_v43, %v2698_v7  ;;  %v2762_v57 = vld [vmem:[%s17679_s22 + $0xbf8] sm:$0xff] }
 0x556   : > { %9678 = vmatpush1.bf16.msra.mxu0 %v13576_v24  ;;  %9842 = vmatpush1.bf16.msra.mxu1 %v13578_v28  ;;  %v13656_v24 = vcombine.low %v2689_v5, %v2697_v6  ;;  %v13673_v28 = vcombine.high %v2705_v16, %v2713_v17  ;;  %v2777_v5 = vld [vmem:[%s17679_s22 + $0xc70] sm:$0xff]  ;;  %v2770_v6 = vld [vmem:[%s17679_s22 + $0xc38] sm:$0xff] }
 0x557   : > { %9679 = vmatprep.subr.bf16.mxu0 %v13593_v29  ;;  %9843 = vmatprep.subr.bf16.mxu1 %v13595_v30  ;;  %v13675_v29 = vcombine.high %v2706_v19, %v2714_v22  ;;  %v2721_v30 = vld [vmem:[%s17679_s22 + $0xab0] sm:$0xff]  ;;  %v2786_v17 = vld [vmem:[%s17679_s22 + $0xcb8] sm:$0xff] }
 0x558   : > { %v13688_v50 = vcombine.low %v2721_v30, %v2729_v31  ;;  %v2793_v16 = vld [vmem:[%s17679_s22 + $0xcf0] sm:$0xff] }
 0x55a   : > { %9680 = vmatpush1.bf16.msra.mxu0 %v13592_v36  ;;  %9844 = vmatpush1.bf16.msra.mxu1 %v13594_v37  ;;  %v13674_v36 = vcombine.low %v2706_v19, %v2714_v22  ;;  %v13689_v37 = vcombine.high %v2721_v30, %v2729_v31  ;;  %v2794_v19 = vld [vmem:[%s17679_s22 + $0xcf8] sm:$0xff]  ;;  %v2809_v30 = vld [vmem:[%s17679_s22 + $0xd70] sm:$0xff] }
 0x55b   : > { %9690 = vmatprep.subr.bf16.mxu0 %v13609_v39  ;;  %9854 = vmatprep.subr.bf16.mxu1 %v13611_v44  ;;  %v13691_v39 = vcombine.high %v2722_v25, %v2730_v32  ;;  %v2737_v44 = vld [vmem:[%s17679_s22 + $0xb30] sm:$0xff]  ;;  %v2802_v31 = vld [vmem:[%s17679_s22 + $0xd38] sm:$0xff] }
 0x55c   : > { %v13704_v59 = vcombine.low %v2737_v44, %v2745_v46 }
 0x55d   : > { %9682 = vmatmul.mubr.bf16.vlgmr.msra.gmra.mrb[12].mxu0 %v17774_v27  ;;  %9846 = vmatmul.mubr.bf16.vlgmr.msra.gmra.mrb[12].mxu1 %v17774_v27  ;;  %v13640_v27 = vcombine.low %v2673_v55, %v2681_v56  ;;  %v2761_v55 = vld [vmem:[%s17679_s22 + $0xbf0] sm:$0xff]  ;;  %v2754_v56 = vld [vmem:[%s17679_s22 + $0xbb8] sm:$0xff] }
 0x55e   : > { %9691 = vmatpush1.bf16.msra.mxu0 %v13608_v51  ;;  %9855 = vmatpush1.bf16.msra.mxu1 %v13610_v52  ;;  %v13690_v51 = vcombine.low %v2722_v25, %v2730_v32  ;;  %v13705_v52 = vcombine.high %v2737_v44, %v2745_v46  ;;  %v2810_v25 = vld [vmem:[%s17679_s22 + $0xd78] sm:$0xff]  ;;  %v2825_v44 = vld [vmem:[%s17679_s22 + $0xdf0] sm:$0xff] }
 0x55f   : > { %9692 = vmatprep.subr.bf16.mxu0 %v13625_v53  ;;  %9856 = vmatprep.subr.bf16.mxu1 %v13627_v54  ;;  %v13707_v53 = vcombine.high %v2738_v48, %v2746_v49  ;;  %v2753_v54 = vld [vmem:[%s17679_s22 + $0xbb0] sm:$0xff]  ;;  %v2818_v46 = vld [vmem:[%s17679_s22 + $0xdb8] sm:$0xff] }
 0x560   : > { %9722 = vmatprep.mubr.bf16.mxu0 %v17783_v33  ;;  %9886 = vmatprep.mubr.bf16.mxu1 %v17783_v33  ;;  %v13658_v33 = vcombine.low %v2690_v43, %v2698_v7  ;;  %v2778_v43 = vld [vmem:[%s17679_s22 + $0xc78] sm:$0xff]  ;;  %v13720_v7 = vcombine.low %v2753_v54, %v2761_v55 }
 0x562   : > { %9693 = vmatpush1.bf16.msra.mxu0 %v13624_v60  ;;  %9857 = vmatpush1.bf16.msra.mxu1 %v13626_v62  ;;  %v13706_v60 = vcombine.low %v2738_v48, %v2746_v49  ;;  %v13721_v62 = vcombine.high %v2753_v54, %v2761_v55  ;;  %v2826_v48 = vld [vmem:[%s17679_s22 + $0xdf8] sm:$0xff]  ;;  %v2841_v54 = vld [vmem:[%s17679_s22 + $0xe70] sm:$0xff] }
 0x563   : > { %9694 = vmatprep.subr.bf16.mxu0 %v13641_v0  ;;  %9858 = vmatprep.subr.bf16.mxu1 %v13643_v1  ;;  %v13723_v0 = vcombine.high %v2754_v56, %v2762_v57  ;;  %v2769_v1 = vld [vmem:[%s17679_s22 + $0xc30] sm:$0xff]  ;;  %v2834_v55 = vld [vmem:[%s17679_s22 + $0xe38] sm:$0xff] }
 0x564   : > { %v13736_v22 = vcombine.low %v2769_v1, %v2777_v5 }
 0x566   : > { %9695 = vmatpush1.bf16.msra.mxu0 %v13640_v27  ;;  %9859 = vmatpush1.bf16.msra.mxu1 %v13642_v11  ;;  %v13722_v27 = vcombine.low %v2754_v56, %v2762_v57  ;;  %v13737_v11 = vcombine.high %v2769_v1, %v2777_v5  ;;  %v2842_v56 = vld [vmem:[%s17679_s22 + $0xe78] sm:$0xff]  ;;  %v2857_v1 = vld [vmem:[%s17679_s22 + $0xef0] sm:$0xff] }
 0x567   : > { %9696 = vmatprep.subr.bf16.mxu0 %v13657_v13  ;;  %9860 = vmatprep.subr.bf16.mxu1 %v13659_v14  ;;  %v13739_v13 = vcombine.high %v2770_v6, %v2778_v43  ;;  %v2785_v14 = vld [vmem:[%s17679_s22 + $0xcb0] sm:$0xff]  ;;  %v2850_v5 = vld [vmem:[%s17679_s22 + $0xeb8] sm:$0xff] }
 0x568   : > { %v13752_v32 = vcombine.low %v2785_v14, %v2793_v16 }
 0x56a   : > { %9697 = vmatpush1.bf16.msra.mxu0 %v13656_v24  ;;  %9861 = vmatpush1.bf16.msra.mxu1 %v13658_v33  ;;  %v13738_v24 = vcombine.low %v2770_v6, %v2778_v43  ;;  %v13753_v33 = vcombine.high %v2785_v14, %v2793_v16  ;;  %v2858_v6 = vld [vmem:[%s17679_s22 + $0xef8] sm:$0xff]  ;;  %v2873_v14 = vld [vmem:[%s17679_s22 + $0xf70] sm:$0xff] }
 0x56b   : > { %9698 = vmatprep.subr.bf16.mxu0 %v13673_v28  ;;  %9862 = vmatprep.subr.bf16.mxu1 %v13675_v29  ;;  %v13755_v28 = vcombine.high %v2786_v17, %v2794_v19  ;;  %v2801_v29 = vld [vmem:[%s17679_s22 + $0xd30] sm:$0xff]  ;;  %v2866_v16 = vld [vmem:[%s17679_s22 + $0xf38] sm:$0xff] }
 0x56c   : > { %v13768_v49 = vcombine.low %v2801_v29, %v2809_v30 }
 0x56e   : > { %9699 = vmatpush1.bf16.msra.mxu0 %v13672_v34  ;;  %9863 = vmatpush1.bf16.msra.mxu1 %v13674_v36  ;;  %v13754_v34 = vcombine.low %v2786_v17, %v2794_v19  ;;  %v13769_v36 = vcombine.high %v2801_v29, %v2809_v30  ;;  %v2874_v17 = vld [vmem:[%s17679_s22 + $0xf78] sm:$0xff]  ;;  %v2889_v29 = vld [vmem:[%s17679_s22 + $0xff0] sm:$0xff] }
 0x56f   : > { %9700 = vmatprep.subr.bf16.mxu0 %v13689_v37  ;;  %9864 = vmatprep.subr.bf16.mxu1 %v13691_v39  ;;  %v13771_v37 = vcombine.high %v2802_v31, %v2810_v25  ;;  %v2817_v39 = vld [vmem:[%s17679_s22 + $0xdb0] sm:$0xff]  ;;  %v2882_v30 = vld [vmem:[%s17679_s22 + $0xfb8] sm:$0xff] }
 0x570   : > { %v13784_v57 = vcombine.low %v2817_v39, %v2825_v44 }
 0x572   : > { %9701 = vmatpush1.bf16.msra.mxu0 %v13688_v50  ;;  %9865 = vmatpush1.bf16.msra.mxu1 %v13690_v51  ;;  %v13770_v50 = vcombine.low %v2802_v31, %v2810_v25  ;;  %v13785_v51 = vcombine.high %v2817_v39, %v2825_v44  ;;  %v2890_v31 = vld [vmem:[%s17679_s22 + $0xff8] sm:$0xff]  ;;  %v2905_v39 = vld [vmem:[%s17679_s22 + $0x1070] sm:$0xff] }
 0x573   : > { %9702 = vmatprep.subr.bf16.mxu0 %v13705_v52  ;;  %9866 = vmatprep.subr.bf16.mxu1 %v13707_v53  ;;  %v13787_v52 = vcombine.high %v2818_v46, %v2826_v48  ;;  %v2833_v53 = vld [vmem:[%s17679_s22 + $0xe30] sm:$0xff]  ;;  %v2898_v44 = vld [vmem:[%s17679_s22 + $0x1038] sm:$0xff] }
 0x574   : > { %v13800_v43 = vcombine.low %v2833_v53, %v2841_v54 }
 0x576   : > { %9703 = vmatpush1.bf16.msra.mxu0 %v13704_v59  ;;  %9867 = vmatpush1.bf16.msra.mxu1 %v13706_v60  ;;  %v13786_v59 = vcombine.low %v2818_v46, %v2826_v48  ;;  %v13801_v60 = vcombine.high %v2833_v53, %v2841_v54  ;;  %v2906_v46 = vld [vmem:[%s17679_s22 + $0x1078] sm:$0xff]  ;;  %v2921_v53 = vld [vmem:[%s17679_s22 + $0x10f0] sm:$0xff] }
 0x577   : > { %9704 = vmatprep.subr.bf16.mxu0 %v13721_v62  ;;  %9868 = vmatprep.subr.bf16.mxu1 %v13723_v0  ;;  %v13803_v62 = vcombine.high %v2834_v55, %v2842_v56  ;;  %v2849_v0 = vld [vmem:[%s17679_s22 + $0xeb0] sm:$0xff]  ;;  %v2914_v54 = vld [vmem:[%s17679_s22 + $0x10b8] sm:$0xff] }
 0x578   : > { %v13816_v19 = vcombine.low %v2849_v0, %v2857_v1 }
 0x57a   : > { %9705 = vmatpush1.bf16.msra.mxu0 %v13720_v7  ;;  %9869 = vmatpush1.bf16.msra.mxu1 %v13722_v27  ;;  %v13802_v7 = vcombine.low %v2834_v55, %v2842_v56  ;;  %v13817_v27 = vcombine.high %v2849_v0, %v2857_v1  ;;  %v2922_v55 = vld [vmem:[%s17679_s22 + $0x10f8] sm:$0xff]  ;;  %v2937_v0 = vld [vmem:[%s17679_s22 + $0x1170] sm:$0xff] }
 0x57b   : > { %9706 = vmatprep.subr.bf16.mxu0 %v13737_v11  ;;  %9870 = vmatprep.subr.bf16.mxu1 %v13739_v13  ;;  %v13819_v11 = vcombine.high %v2850_v5, %v2858_v6  ;;  %v2865_v13 = vld [vmem:[%s17679_s22 + $0xf30] sm:$0xff]  ;;  %v2930_v1 = vld [vmem:[%s17679_s22 + $0x1138] sm:$0xff] }
 0x57c   : > { %v13832_v25 = vcombine.low %v2865_v13, %v2873_v14 }
 0x57e   : > { %9707 = vmatpush1.bf16.msra.mxu0 %v13736_v22  ;;  %9871 = vmatpush1.bf16.msra.mxu1 %v13738_v24  ;;  %v13818_v22 = vcombine.low %v2850_v5, %v2858_v6  ;;  %v13833_v24 = vcombine.high %v2865_v13, %v2873_v14  ;;  %v2938_v5 = vld [vmem:[%s17679_s22 + $0x1178] sm:$0xff]  ;;  %v2953_v13 = vld [vmem:[%s17679_s22 + $0x11f0] sm:$0xff] }
 0x57f   : > { %9708 = vmatprep.subr.bf16.mxu0 %v13753_v33  ;;  %9872 = vmatprep.subr.bf16.mxu1 %v13755_v28  ;;  %v13835_v33 = vcombine.high %v2866_v16, %v2874_v17  ;;  %v2881_v28 = vld [vmem:[%s17679_s22 + $0xfb0] sm:$0xff]  ;;  %v2946_v14 = vld [vmem:[%s17679_s22 + $0x11b8] sm:$0xff] }
 0x580   : > { %v13848_v48 = vcombine.low %v2881_v28, %v2889_v29 }
 0x582   : > { %9709 = vmatpush1.bf16.msra.mxu0 %v13752_v32  ;;  %9873 = vmatpush1.bf16.msra.mxu1 %v13754_v34  ;;  %v13834_v32 = vcombine.low %v2866_v16, %v2874_v17  ;;  %v13849_v34 = vcombine.high %v2881_v28, %v2889_v29  ;;  %v2954_v16 = vld [vmem:[%s17679_s22 + $0x11f8] sm:$0xff]  ;;  %v13898_v17 = vcombine.low %v2930_v1, %v2938_v5 }
 0x583   : > { %9710 = vmatprep.subr.bf16.mxu0 %v13769_v36  ;;  %9874 = vmatprep.subr.bf16.mxu1 %v13771_v37  ;;  %v13851_v36 = vcombine.high %v2882_v30, %v2890_v31  ;;  %v2897_v37 = vld [vmem:[%s17679_s22 + $0x1030] sm:$0xff]  ;;  %v2962_v28 = vld [vmem:[%s17679_s22 + $0x1238] sm:$0xff] }
 0x584   : > { %v13864_v56 = vcombine.low %v2897_v37, %v2905_v39  ;;  %v2970_v29 = vld [vmem:[%s17679_s22 + $0x1278] sm:$0xff] }
 0x586   : > { %9711 = vmatpush1.bf16.msra.mxu0 %v13768_v49  ;;  %9875 = vmatpush1.bf16.msra.mxu1 %v13770_v50  ;;  %v13850_v49 = vcombine.low %v2882_v30, %v2890_v31  ;;  %v13865_v50 = vcombine.high %v2897_v37, %v2905_v39  ;;  %v2986_v37 = vld [vmem:[%s17679_s22 + $0x12f8] sm:$0xff] }
 0x587   : > { %9712 = vmatprep.subr.bf16.mxu0 %v13785_v51  ;;  %9876 = vmatprep.subr.bf16.mxu1 %v13787_v52  ;;  %v13867_v51 = vcombine.high %v2898_v44, %v2906_v46  ;;  %v2913_v52 = vld [vmem:[%s17679_s22 + $0x10b0] sm:$0xff] }
 0x588   : > { %v13880_v6 = vcombine.low %v2913_v52, %v2921_v53 }
 0x58a   : > { %9713 = vmatpush1.bf16.msra.mxu0 %v13784_v57  ;;  %9877 = vmatpush1.bf16.msra.mxu1 %v13786_v59  ;;  %v13866_v57 = vcombine.low %v2898_v44, %v2906_v46  ;;  %v13881_v59 = vcombine.high %v2913_v52, %v2921_v53  ;;  %v13930_v44 = vcombine.low %v2962_v28, %v2970_v29  ;;  %v3002_v52 = vld [vmem:[%s17679_s22 + $0x1378] sm:$0xff] }
 0x58b   : > { %9714 = vmatprep.subr.bf16.mxu0 %v13801_v60  ;;  %9878 = vmatprep.subr.bf16.mxu1 %v13803_v62  ;;  %v13883_v60 = vcombine.high %v2914_v54, %v2922_v55  ;;  %v2929_v62 = vld [vmem:[%s17679_s22 + $0x1130] sm:$0xff] }
 0x58e   : > { %9715 = vmatpush1.bf16.msra.mxu0 %v13800_v43  ;;  %9879 = vmatpush1.bf16.msra.mxu1 %v13802_v7  ;;  %v13882_v43 = vcombine.low %v2914_v54, %v2922_v55  ;;  %v13897_v7 = vcombine.high %v2929_v62, %v2937_v0 }
 0x58f   : > { %9716 = vmatprep.subr.bf16.mxu0 %v13817_v27  ;;  %9880 = vmatprep.subr.bf16.mxu1 %v13819_v11  ;;  %v13899_v27 = vcombine.high %v2930_v1, %v2938_v5  ;;  %v2945_v11 = vld [vmem:[%s17679_s22 + $0x11b0] sm:$0xff] }
 0x590   : > { %v13912_v30 = vcombine.low %v2945_v11, %v2953_v13 }
 0x592   : > { %9717 = vmatpush1.bf16.msra.mxu0 %v13816_v19  ;;  %9881 = vmatpush1.bf16.msra.mxu1 %v13818_v22  ;;  %v13913_v19 = vcombine.high %v2945_v11, %v2953_v13  ;;  %v13915_v22 = vcombine.high %v2946_v14, %v2954_v16  ;;  %v3034_v11 = vld [vmem:[%s17679_s22 + $0x1478] sm:$0xff] }
 0x593   : > { %9718 = vmatprep.subr.bf16.mxu0 %v13833_v24  ;;  %9882 = vmatprep.subr.bf16.mxu1 %v13835_v33  ;;  %v2961_v24 = vld [vmem:[%s17679_s22 + $0x1230] sm:$0xff] }
 0x594   : > { %v2969_v33 = vld [vmem:[%s17679_s22 + $0x1270] sm:$0xff] }
 0x595   : > { %v13929_v31 = vcombine.high %v2961_v24, %v2969_v33  ;;  %v13928_v39 = vcombine.low %v2961_v24, %v2969_v33  ;;  %v3050_v24 = vld [vmem:[%s17679_s22 + $0x14f8] sm:$0xff] }
 0x596   : > { %9719 = vmatpush1.bf16.msra.mxu0 %v13832_v25  ;;  %9883 = vmatpush1.bf16.msra.mxu1 %v13834_v32  ;;  %v13931_v25 = vcombine.high %v2962_v28, %v2970_v29  ;;  %v2977_v32 = vld [vmem:[%s17679_s22 + $0x12b0] sm:$0xff] }
 0x597   : > { %9720 = vmatprep.subr.bf16.mxu0 %v13849_v34  ;;  %9884 = vmatprep.subr.bf16.mxu1 %v13851_v36  ;;  %v2985_v34 = vld [vmem:[%s17679_s22 + $0x12f0] sm:$0xff]  ;;  %v2978_v36 = vld [vmem:[%s17679_s22 + $0x12b8] sm:$0xff] }
 0x598   : > { %v13945_v46 = vcombine.high %v2977_v32, %v2985_v34  ;;  %v13944_v53 = vcombine.low %v2977_v32, %v2985_v34  ;;  %v13946_v54 = vcombine.low %v2978_v36, %v2986_v37  ;;  %v3066_v32 = vld [vmem:[%s17679_s22 + $0x1578] sm:$0xff] }
 0x59a   : > { %9721 = vmatpush1.bf16.msra.mxu0 %v13848_v48  ;;  %9885 = vmatpush1.bf16.msra.mxu1 %v13850_v49  ;;  %v13947_v48 = vcombine.high %v2978_v36, %v2986_v37  ;;  %v2993_v49 = vld [vmem:[%s17679_s22 + $0x1330] sm:$0xff] }
 0x59b   : > { %9731 = vmatprep.subr.bf16.mxu0 %v13865_v50  ;;  %9895 = vmatprep.subr.bf16.mxu1 %v13867_v51  ;;  %v3001_v50 = vld [vmem:[%s17679_s22 + $0x1370] sm:$0xff]  ;;  %v2994_v51 = vld [vmem:[%s17679_s22 + $0x1338] sm:$0xff] }
 0x59c   : > { %v13961_v55 = vcombine.high %v2993_v49, %v3001_v50  ;;  %v13962_v1 = vcombine.low %v2994_v51, %v3002_v52 }
 0x59d   : > { %9723 = vmatmul.mubr.bf16.vlgmr.msra.gmra.mrb[12].mxu0 %v17857_v47  ;;  %9887 = vmatmul.mubr.bf16.vlgmr.msra.gmra.mrb[12].mxu1 %v17857_v47  ;;  %v13896_v47 = vcombine.low %v2929_v62, %v2937_v0  ;;  %v3018_v62 = vld [vmem:[%s17679_s22 + $0x13f8] sm:$0xff]  ;;  %v13960_v0 = vcombine.low %v2993_v49, %v3001_v50 }
 0x59e   : > { %9732 = vmatpush1.bf16.msra.mxu0 %v13864_v56  ;;  %9896 = vmatpush1.bf16.msra.mxu1 %v13866_v57  ;;  %v13963_v56 = vcombine.high %v2994_v51, %v3002_v52  ;;  %v3009_v57 = vld [vmem:[%s17679_s22 + $0x13b0] sm:$0xff]  ;;  %v3082_v49 = vld [vmem:[%s17679_s22 + $0x15f8] sm:$0xff] }
 0x59f   : > { %9733 = vmatprep.subr.bf16.mxu0 %v13881_v59  ;;  %9897 = vmatprep.subr.bf16.mxu1 %v13883_v60  ;;  %v3017_v59 = vld [vmem:[%s17679_s22 + $0x13f0] sm:$0xff]  ;;  %v3010_v60 = vld [vmem:[%s17679_s22 + $0x13b8] sm:$0xff] }
 0x5a0   : > { %9763 = vmatprep.mubr.bf16.mxu0 %v17792_v41  ;;  %9927 = vmatprep.mubr.bf16.mxu1 %v17792_v41  ;;  %v13914_v41 = vcombine.low %v2946_v14, %v2954_v16  ;;  %v13977_v5 = vcombine.high %v3009_v57, %v3017_v59  ;;  %v13976_v13 = vcombine.low %v3009_v57, %v3017_v59  ;;  %v3098_v57 = vld [vmem:[%s17679_s22 + $0x1678] sm:$0xff] }
 0x5a1   : > { %v13978_v14 = vcombine.low %v3010_v60, %v3018_v62 }
 0x5a2   : > { %9734 = vmatpush1.bf16.msra.mxu0 %v13880_v6  ;;  %9898 = vmatpush1.bf16.msra.mxu1 %v13882_v43  ;;  %v13979_v6 = vcombine.high %v3010_v60, %v3018_v62  ;;  %v3025_v43 = vld [vmem:[%s17679_s22 + $0x1430] sm:$0xff] }
 0x5a3   : > { %9735 = vmatprep.subr.bf16.mxu0 %v13897_v7  ;;  %9899 = vmatprep.subr.bf16.mxu1 %v13899_v27  ;;  %v3033_v7 = vld [vmem:[%s17679_s22 + $0x1470] sm:$0xff]  ;;  %v3026_v27 = vld [vmem:[%s17679_s22 + $0x1438] sm:$0xff] }
 0x5a4   : > { %v13993_v16 = vcombine.high %v3025_v43, %v3033_v7  ;;  %v13992_v33 = vcombine.low %v3025_v43, %v3033_v7  ;;  %v13994_v28 = vcombine.low %v3026_v27, %v3034_v11  ;;  %v3114_v43 = vld [vmem:[%s17679_s22 + $0x16f8] sm:$0xff] }
 0x5a6   : > { %9736 = vmatpush1.bf16.msra.mxu0 %v13896_v47  ;;  %9900 = vmatpush1.bf16.msra.mxu1 %v13898_v17  ;;  %v13995_v47 = vcombine.high %v3026_v27, %v3034_v11  ;;  %v3041_v17 = vld [vmem:[%s17679_s22 + $0x14b0] sm:$0xff] }
 0x5a7   : > { %9737 = vmatprep.subr.bf16.mxu0 %v13913_v19  ;;  %9901 = vmatprep.subr.bf16.mxu1 %v13915_v22  ;;  %v3049_v19 = vld [vmem:[%s17679_s22 + $0x14f0] sm:$0xff]  ;;  %v3042_v22 = vld [vmem:[%s17679_s22 + $0x14b8] sm:$0xff] }
 0x5a8   : > { %v14009_v29 = vcombine.high %v3041_v17, %v3049_v19  ;;  %v14008_v34 = vcombine.low %v3041_v17, %v3049_v19  ;;  %v14010_v36 = vcombine.low %v3042_v22, %v3050_v24  ;;  %v3130_v17 = vld [vmem:[%s17679_s22 + $0x1778] sm:$0xff] }
 0x5aa   : > { %9738 = vmatpush1.bf16.msra.mxu0 %v13912_v30  ;;  %9902 = vmatpush1.bf16.msra.mxu1 %v13914_v41  ;;  %v14011_v30 = vcombine.high %v3042_v22, %v3050_v24  ;;  %v3057_v41 = vld [vmem:[%s17679_s22 + $0x1530] sm:$0xff] }
 0x5ab   : > { %9739 = vmatprep.subr.bf16.mxu0 %v13929_v31  ;;  %9903 = vmatprep.subr.bf16.mxu1 %v13931_v25  ;;  %v3065_v31 = vld [vmem:[%s17679_s22 + $0x1570] sm:$0xff]  ;;  %v3058_v25 = vld [vmem:[%s17679_s22 + $0x1538] sm:$0xff] }
 0x5ac   : > { %v14025_v37 = vcombine.high %v3057_v41, %v3065_v31  ;;  %v14024_v50 = vcombine.low %v3057_v41, %v3065_v31  ;;  %v14026_v51 = vcombine.low %v3058_v25, %v3066_v32  ;;  %v3146_v41 = vld [vmem:[%s17679_s22 + $0x17f8] sm:$0xff] }
 0x5ae   : > { %9740 = vmatpush1.bf16.msra.mxu0 %v13928_v39  ;;  %9904 = vmatpush1.bf16.msra.mxu1 %v13930_v44  ;;  %v14027_v39 = vcombine.high %v3058_v25, %v3066_v32  ;;  %v3073_v44 = vld [vmem:[%s17679_s22 + $0x15b0] sm:$0xff] }
 0x5af   : > { %9741 = vmatprep.subr.bf16.mxu0 %v13945_v46  ;;  %9905 = vmatprep.subr.bf16.mxu1 %v13947_v48  ;;  %v3081_v46 = vld [vmem:[%s17679_s22 + $0x15f0] sm:$0xff]  ;;  %v3074_v48 = vld [vmem:[%s17679_s22 + $0x15b8] sm:$0xff] }
 0x5b0   : > { %v14041_v52 = vcombine.high %v3073_v44, %v3081_v46  ;;  %v14040_v59 = vcombine.low %v3073_v44, %v3081_v46  ;;  %v14042_v60 = vcombine.low %v3074_v48, %v3082_v49  ;;  %v3162_v44 = vld [vmem:[%s17679_s22 + $0x1878] sm:$0xff] }
 0x5b2   : > { %9742 = vmatpush1.bf16.msra.mxu0 %v13944_v53  ;;  %9906 = vmatpush1.bf16.msra.mxu1 %v13946_v54  ;;  %v14043_v53 = vcombine.high %v3074_v48, %v3082_v49  ;;  %v3089_v54 = vld [vmem:[%s17679_s22 + $0x1630] sm:$0xff] }
 0x5b3   : > { %9743 = vmatprep.subr.bf16.mxu0 %v13961_v55  ;;  %9907 = vmatprep.subr.bf16.mxu1 %v13963_v56  ;;  %v3097_v55 = vld [vmem:[%s17679_s22 + $0x1670] sm:$0xff]  ;;  %v3090_v56 = vld [vmem:[%s17679_s22 + $0x1638] sm:$0xff] }
 0x5b4   : > { %v14057_v62 = vcombine.high %v3089_v54, %v3097_v55  ;;  %v14056_v7 = vcombine.low %v3089_v54, %v3097_v55  ;;  %v14058_v27 = vcombine.low %v3090_v56, %v3098_v57  ;;  %v3178_v54 = vld [vmem:[%s17679_s22 + $0x18f8] sm:$0xff] }
 0x5b6   : > { %9744 = vmatpush1.bf16.msra.mxu0 %v13960_v0  ;;  %9908 = vmatpush1.bf16.msra.mxu1 %v13962_v1  ;;  %v14059_v0 = vcombine.high %v3090_v56, %v3098_v57  ;;  %v3105_v1 = vld [vmem:[%s17679_s22 + $0x16b0] sm:$0xff] }
 0x5b7   : > { %9745 = vmatprep.subr.bf16.mxu0 %v13977_v5  ;;  %9909 = vmatprep.subr.bf16.mxu1 %v13979_v6  ;;  %v3113_v5 = vld [vmem:[%s17679_s22 + $0x16f0] sm:$0xff]  ;;  %v3106_v6 = vld [vmem:[%s17679_s22 + $0x16b8] sm:$0xff] }
 0x5b8   : > { %v14073_v11 = vcombine.high %v3105_v1, %v3113_v5  ;;  %v14072_v19 = vcombine.low %v3105_v1, %v3113_v5  ;;  %v14074_v22 = vcombine.low %v3106_v6, %v3114_v43  ;;  %v3194_v1 = vld [vmem:[%s17679_s22 + $0x1978] sm:$0xff] }
 0x5ba   : > { %9746 = vmatpush1.bf16.msra.mxu0 %v13976_v13  ;;  %9910 = vmatpush1.bf16.msra.mxu1 %v13978_v14  ;;  %v14075_v13 = vcombine.high %v3106_v6, %v3114_v43  ;;  %v3121_v14 = vld [vmem:[%s17679_s22 + $0x1730] sm:$0xff] }
 0x5bb   : > { %9747 = vmatprep.subr.bf16.mxu0 %v13993_v16  ;;  %9911 = vmatprep.subr.bf16.mxu1 %v13995_v47  ;;  %v3129_v16 = vld [vmem:[%s17679_s22 + $0x1770] sm:$0xff]  ;;  %v3122_v47 = vld [vmem:[%s17679_s22 + $0x1738] sm:$0xff] }
 0x5bc   : > { %v14089_v24 = vcombine.high %v3121_v14, %v3129_v16  ;;  %v14088_v31 = vcombine.low %v3121_v14, %v3129_v16  ;;  %v14090_v25 = vcombine.low %v3122_v47, %v3130_v17  ;;  %v3210_v14 = vld [vmem:[%s17679_s22 + $0x19f8] sm:$0xff] }
 0x5be   : > { %9748 = vmatpush1.bf16.msra.mxu0 %v13992_v33  ;;  %9912 = vmatpush1.bf16.msra.mxu1 %v13994_v28  ;;  %v14091_v33 = vcombine.high %v3122_v47, %v3130_v17  ;;  %v3137_v28 = vld [vmem:[%s17679_s22 + $0x17b0] sm:$0xff] }
 0x5bf   : > { %9749 = vmatprep.subr.bf16.mxu0 %v14009_v29  ;;  %9913 = vmatprep.subr.bf16.mxu1 %v14011_v30  ;;  %v3145_v29 = vld [vmem:[%s17679_s22 + $0x17f0] sm:$0xff]  ;;  %v3138_v30 = vld [vmem:[%s17679_s22 + $0x17b8] sm:$0xff] }
 0x5c0   : > { %v14105_v32 = vcombine.high %v3137_v28, %v3145_v29  ;;  %v14104_v46 = vcombine.low %v3137_v28, %v3145_v29  ;;  %v14106_v48 = vcombine.low %v3138_v30, %v3146_v41 }
 0x5c2   : > { %9750 = vmatpush1.bf16.msra.mxu0 %v14008_v34  ;;  %9914 = vmatpush1.bf16.msra.mxu1 %v14010_v36  ;;  %v14107_v34 = vcombine.high %v3138_v30, %v3146_v41  ;;  %v3153_v36 = vld [vmem:[%s17679_s22 + $0x1830] sm:$0xff] }
 0x5c3   : > { %9751 = vmatprep.subr.bf16.mxu0 %v14025_v37  ;;  %9915 = vmatprep.subr.bf16.mxu1 %v14027_v39  ;;  %v3161_v37 = vld [vmem:[%s17679_s22 + $0x1870] sm:$0xff]  ;;  %v3154_v39 = vld [vmem:[%s17679_s22 + $0x1838] sm:$0xff] }
 0x5c4   : > { %v14121_v49 = vcombine.high %v3153_v36, %v3161_v37  ;;  %v14120_v55 = vcombine.low %v3153_v36, %v3161_v37  ;;  %v14122_v56 = vcombine.low %v3154_v39, %v3162_v44  ;;  %v3233_v41 = vld [vmem:[%s17679_s22 + $0x1ab0] sm:$0xff]  ;;  %v18828_v36 = vld [vmem:[%s18235_s10 + $0x8] sm:$0xff] }
 0x5c6   : > { %9752 = vmatpush1.bf16.msra.mxu0 %v14024_v50  ;;  %9916 = vmatpush1.bf16.msra.mxu1 %v14026_v51  ;;  %v14123_v50 = vcombine.high %v3154_v39, %v3162_v44  ;;  %v3169_v51 = vld [vmem:[%s17679_s22 + $0x18b0] sm:$0xff] }
 0x5c7   : > { %9753 = vmatprep.subr.bf16.mxu0 %v14041_v52  ;;  %9917 = vmatprep.subr.bf16.mxu1 %v14043_v53  ;;  %v3177_v52 = vld [vmem:[%s17679_s22 + $0x18f0] sm:$0xff]  ;;  %v3170_v53 = vld [vmem:[%s17679_s22 + $0x18b8] sm:$0xff] }
 0x5c8   : > { %v14137_v57 = vcombine.high %v3169_v51, %v3177_v52  ;;  %v14136_v5 = vcombine.low %v3169_v51, %v3177_v52  ;;  %v14138_v6 = vcombine.low %v3170_v53, %v3178_v54  ;;  %v3258_v51 = vld [vmem:[%s17679_s22 + $0x1b78] sm:$0xff]  ;;  %v3450_v52 = vrot.slane %v18828_v36, %v3417_v8  ;;  %v3273_v8 = vld [vmem:[%s17679_s22 + $0x1bf0] sm:$0xff] }
 0x5ca   : > { %9754 = vmatpush1.bf16.msra.mxu0 %v14040_v59  ;;  %9918 = vmatpush1.bf16.msra.mxu1 %v14042_v60  ;;  %v14139_v59 = vcombine.high %v3170_v53, %v3178_v54  ;;  %v3185_v60 = vld [vmem:[%s17679_s22 + $0x1930] sm:$0xff]  ;;  %v3446_v53 = vrot.slane %v18828_v36, %v3413_v10  ;;  %v3274_v10 = vld [vmem:[%s17679_s22 + $0x1bf8] sm:$0xff] }
 0x5cb   : > { %9755 = vmatprep.subr.bf16.mxu0 %v14057_v62  ;;  %9919 = vmatprep.subr.bf16.mxu1 %v14059_v0  ;;  %v3193_v62 = vld [vmem:[%s17679_s22 + $0x1970] sm:$0xff]  ;;  %v3186_v0 = vld [vmem:[%s17679_s22 + $0x1938] sm:$0xff] }
 0x5cc   : > { %v14153_v43 = vcombine.high %v3185_v60, %v3193_v62  ;;  %v14154_v16 = vcombine.low %v3186_v0, %v3194_v1 }
 0x5ce   : > { %9756 = vmatpush1.bf16.msra.mxu0 %v14056_v7  ;;  %9920 = vmatpush1.bf16.msra.mxu1 %v14058_v27  ;;  %v14155_v7 = vcombine.high %v3186_v0, %v3194_v1  ;;  %v3201_v27 = vld [vmem:[%s17679_s22 + $0x19b0] sm:$0xff] }
 0x5cf   : > { %9757 = vmatprep.subr.bf16.mxu0 %v14073_v11  ;;  %9921 = vmatprep.subr.bf16.mxu1 %v14075_v13  ;;  %v3209_v11 = vld [vmem:[%s17679_s22 + $0x19f0] sm:$0xff]  ;;  %v3202_v13 = vld [vmem:[%s17679_s22 + $0x19b8] sm:$0xff] }
 0x5d0   : > { %v14169_v47 = vcombine.high %v3201_v27, %v3209_v11  ;;  %v14171_v17 = vcombine.high %v3202_v13, %v3210_v14  ;;  %v14168_v28 = vcombine.low %v3201_v27, %v3209_v11 }
 0x5d2   : > { %9758 = vmatpush1.bf16.msra.mxu0 %v14072_v19  ;;  %9922 = vmatpush1.bf16.msra.mxu1 %v14074_v22  ;;  %v3217_v19 = vld [vmem:[%s17679_s22 + $0x1a30] sm:$0xff] }
 0x5d3   : > { %9759 = vmatprep.subr.bf16.mxu0 %v14089_v24  ;;  %9923 = vmatprep.subr.bf16.mxu1 %v14091_v33  ;;  %v3225_v22 = vld [vmem:[%s17679_s22 + $0x1a70] sm:$0xff]  ;;  %v3218_v24 = vld [vmem:[%s17679_s22 + $0x1a38] sm:$0xff] }
 0x5d4   : > { %v3226_v33 = vld [vmem:[%s17679_s22 + $0x1a78] sm:$0xff]  ;;  %v14185_v29 = vcombine.high %v3217_v19, %v3225_v22 }
 0x5d5   : > { %v14187_v30 = vcombine.high %v3218_v24, %v3226_v33  ;;  %v14186_v37 = vcombine.low %v3218_v24, %v3226_v33  ;;  %v3282_v24 = vld [vmem:[%s17679_s22 + $0x1c38] sm:$0xff] }
 0x5d6   : > { %9760 = vmatpush1.bf16.msra.mxu0 %v14088_v31  ;;  %9924 = vmatpush1.bf16.msra.mxu1 %v14090_v25  ;;  %v3241_v31 = vld [vmem:[%s17679_s22 + $0x1af0] sm:$0xff]  ;;  %v3234_v25 = vld [vmem:[%s17679_s22 + $0x1ab8] sm:$0xff] }
 0x5d7   : > { %9761 = vmatprep.subr.bf16.mxu0 %v14105_v32  ;;  %9925 = vmatprep.subr.bf16.mxu1 %v14107_v34  ;;  %v3242_v32 = vld [vmem:[%s17679_s22 + $0x1af8] sm:$0xff]  ;;  %v14184_v34 = vcombine.low %v3217_v19, %v3225_v22  ;;  %v14201_v39 = vcombine.high %v3233_v41, %v3241_v31  ;;  %v14200_v54 = vcombine.low %v3233_v41, %v3241_v31  ;;  %v3281_v19 = vld [vmem:[%s17679_s22 + $0x1c30] sm:$0xff] }
 0x5d8   : > { %v14203_v44 = vcombine.high %v3234_v25, %v3242_v32  ;;  %v3289_v22 = vld [vmem:[%s17679_s22 + $0x1c70] sm:$0xff]  ;;  %v3290_v33 = vld [vmem:[%s17679_s22 + $0x1c78] sm:$0xff] }
 0x5d9   : > { %v3297_v41 = vld [vmem:[%s17679_s22 + $0x1cb0] sm:$0xff] }
 0x5da   : > { %9762 = vmatpush1.bf16.msra.mxu0 %v14104_v46  ;;  %9926 = vmatpush1.bf16.msra.mxu1 %v14106_v48  ;;  %v3249_v46 = vld [vmem:[%s17679_s22 + $0x1b30] sm:$0xff] }
 0x5db   : > { %9772 = vmatprep.subr.bf16.mxu0 %v14121_v49  ;;  %9936 = vmatprep.subr.bf16.mxu1 %v14123_v50  ;;  %v3257_v48 = vld [vmem:[%s17679_s22 + $0x1b70] sm:$0xff]  ;;  %v3442_v49 = vrot.slane %v18828_v36, %v3409_v2  ;;  %v3250_v50 = vld [vmem:[%s17679_s22 + $0x1b38] sm:$0xff]  ;;  %v3454_v2 = vrot.slane %v18828_v36, %v3421_v12 }
 0x5dc   : > { %v14216_v12 = vcombine.low %v3249_v46, %v3257_v48  ;;  %v3305_v31 = vld [vmem:[%s17679_s22 + $0x1cf0] sm:$0xff] }
 0x5dd   : > { %9764 = vmatmul.mubr.bf16.vlgmr.msra.gmra.mrb[12].mxu0 %v17786_v38  ;;  %9928 = vmatmul.mubr.bf16.vlgmr.msra.gmra.mrb[12].mxu1 %v17786_v38  ;;  %v14152_v38 = vcombine.low %v3185_v60, %v3193_v62  ;;  %v3265_v60 = vld [vmem:[%s17679_s22 + $0x1bb0] sm:$0xff] }
 0x5de   : > { %9773 = vmatpush1.bf16.msra.mxu0 %v14120_v55  ;;  %9937 = vmatpush1.bf16.msra.mxu1 %v14122_v56  ;;  %v14202_v55 = vcombine.low %v3234_v25, %v3242_v32  ;;  %v14217_v56 = vcombine.high %v3249_v46, %v3257_v48  ;;  %v3298_v25 = vld [vmem:[%s17679_s22 + $0x1cb8] sm:$0xff]  ;;  %v3313_v46 = vld [vmem:[%s17679_s22 + $0x1d30] sm:$0xff] }
 0x5df   : > { %9774 = vmatprep.subr.bf16.mxu0 %v14137_v57  ;;  %9938 = vmatprep.subr.bf16.mxu1 %v14139_v59  ;;  %v14219_v59 = vcombine.high %v3250_v50, %v3258_v51  ;;  %v3306_v32 = vld [vmem:[%s17679_s22 + $0x1cf8] sm:$0xff]  ;;  %v3321_v48 = vld [vmem:[%s17679_s22 + $0x1d70] sm:$0xff] }
 0x5e0   : > { %9804 = vmatprep.mubr.bf16.mxu0 %v17933_v9  ;;  %9968 = vmatprep.mubr.bf16.mxu1 %v17933_v9  ;;  %v14170_v9 = vcombine.low %v3202_v13, %v3210_v14 }
 0x5e2   : > { %9775 = vmatpush1.bf16.msra.mxu0 %v14136_v5  ;;  %9939 = vmatpush1.bf16.msra.mxu1 %v14138_v6  ;;  %v3266_v5 = vld [vmem:[%s17679_s22 + $0x1bb8] sm:$0xff] }
 0x5e3   : > { %9776 = vmatprep.subr.bf16.mxu0 %v14153_v43  ;;  %9940 = vmatprep.subr.bf16.mxu1 %v14155_v7 }
 0x5e6   : > { %9777 = vmatpush1.bf16.msra.mxu0 %v14152_v38  ;;  %9941 = vmatpush1.bf16.msra.mxu1 %v14154_v16  ;;  %v14218_v38 = vcombine.low %v3250_v50, %v3258_v51  ;;  %v14233_v16 = vcombine.high %v3265_v60, %v3273_v8  ;;  %v3314_v50 = vld [vmem:[%s17679_s22 + $0x1d38] sm:$0xff] }
 0x5e7   : > { %9778 = vmatprep.subr.bf16.mxu0 %v14169_v47  ;;  %9942 = vmatprep.subr.bf16.mxu1 %v14171_v17  ;;  %v14235_v17 = vcombine.high %v3266_v5, %v3274_v10  ;;  %v3322_v51 = vld [vmem:[%s17679_s22 + $0x1d78] sm:$0xff] }
 0x5ea   : > { %9779 = vmatpush1.bf16.msra.mxu0 %v14168_v28  ;;  %9943 = vmatpush1.bf16.msra.mxu1 %v14170_v9  ;;  %v14232_v28 = vcombine.low %v3265_v60, %v3273_v8  ;;  %v14234_v9 = vcombine.low %v3266_v5, %v3274_v10  ;;  %v3337_v60 = vld [vmem:[%s17679_s22 + $0x1df0] sm:$0xff]  ;;  %v3330_v8 = vld [vmem:[%s17679_s22 + $0x1db8] sm:$0xff] }
 0x5eb   : > { %9780 = vmatprep.subr.bf16.mxu0 %v14185_v29  ;;  %9944 = vmatprep.subr.bf16.mxu1 %v14187_v30  ;;  %v14249_v29 = vcombine.high %v3281_v19, %v3289_v22  ;;  %v14251_v30 = vcombine.high %v3282_v24, %v3290_v33 }
 0x5ee   : > { %9781 = vmatpush1.bf16.msra.mxu0 %v14184_v34  ;;  %9945 = vmatpush1.bf16.msra.mxu1 %v14186_v37  ;;  %v14248_v34 = vcombine.low %v3281_v19, %v3289_v22  ;;  %v14250_v37 = vcombine.low %v3282_v24, %v3290_v33 }
 0x5ef   : > { %9782 = vmatprep.subr.bf16.mxu0 %v14201_v39  ;;  %9946 = vmatprep.subr.bf16.mxu1 %v14203_v44  ;;  %v14265_v39 = vcombine.high %v3297_v41, %v3305_v31  ;;  %v14267_v44 = vcombine.high %v3298_v25, %v3306_v32 }
 0x5f0   : > { %v9478_v57 = vpop.f32.mrb[8].mxu0  ;;  %v9642_v0 = vpop.f32.mrb[8].mxu1 }
 0x5f1   : > { %v15007_v62 = vadd.f32 %v9478_v57, %v3442_v49  ;;  %v9480_v1 = vpop.f32.mrb[9].mxu0  ;;  %v15009_v6 = vadd.f32 %v9642_v0, %v3450_v52  ;;  %v9644_v7 = vpop.f32.mrb[9].mxu1  ;;  %v14283_v57 = vcombine.high %v3314_v50, %v3322_v51  ;;  %v14280_v0 = vcombine.low %v3313_v46, %v3321_v48 }
 0x5f2   : > { %v15008_v43 = vadd.f32 %v9480_v1, %v3446_v53  ;;  %v9482_v27 = vpop.f32.mrb[10].mxu0  ;;  %9783 = vmatpush1.bf16.msra.mxu0 %v14200_v54  ;;  %v15010_v11 = vadd.f32 %v9644_v7, %v3454_v2  ;;  %v9646_v13 = vpop.f32.mrb[10].mxu1  ;;  %9947 = vmatpush1.bf16.msra.mxu1 %v14202_v55  ;;  %v14264_v53 = vcombine.low %v3297_v41, %v3305_v31  ;;  %v3346_v7 = vld [vmem:[%s17679_s22 + $0x1e38] sm:$0xff] }
 0x5f3   : > { %15169 = vtanh.f32 %v15007_v62  ;;  %v9483_v14 = vpop.f32.mrb[11].mxu0  ;;  %9784 = vmatprep.subr.bf16.mxu0 %v14217_v56  ;;  %v9647_v47 = vpop.f32.mrb[11].mxu1  ;;  %9948 = vmatprep.subr.bf16.mxu1 %v14219_v59  ;;  %v14266_v2 = vcombine.low %v3298_v25, %v3306_v32  ;;  %v14281_v55 = vcombine.high %v3313_v46, %v3321_v48  ;;  %v3329_v59 = vld [vmem:[%s17679_s22 + $0x1db0] sm:$0xff]  ;;  %v3338_v62 = vld [vmem:[%s17679_s22 + $0x1df8] sm:$0xff]  ;;  %v14282_v1 = vcombine.low %v3314_v50, %v3322_v51 }
 0x5f4   : > { %15171 = vtanh.f32 %v15009_v6  ;;  %v14297_v5 = vcombine.high %v3329_v59, %v3337_v60  ;;  %v14299_v10 = vcombine.high %v3330_v8, %v3338_v62  ;;  %v3345_v6 = vld [vmem:[%s17679_s22 + $0x1e30] sm:$0xff]  ;;  %v3354_v27 = vld [vmem:[%s17679_s22 + $0x1e78] sm:$0xff] }
 0x5f5   : > { %15173 = vtanh.f32 %v15008_v43  ;;  %v3353_v43 = vld [vmem:[%s17679_s22 + $0x1e70] sm:$0xff]  ;;  %v14315_v14 = vcombine.high %v3346_v7, %v3354_v27  ;;  %v3362_v47 = vld [vmem:[%s17679_s22 + $0x1eb8] sm:$0xff]  ;;  %v14314_v22 = vcombine.low %v3346_v7, %v3354_v27  ;;  %v14365_v27 = vpack.c.bf16 (!%p14364_p9), %v18278_v21, %v18272_v15 }
 0x5f6   : > { %15175 = vtanh.f32 %v15010_v11  ;;  %9785 = vmatpush1.bf16.msra.mxu0 %v14216_v12  ;;  %9949 = vmatpush1.bf16.msra.mxu1 %v14218_v38  ;;  %v14296_v12 = vcombine.low %v3329_v59, %v3337_v60  ;;  %v14298_v11 = vcombine.low %v3330_v8, %v3338_v62  ;;  %v14313_v13 = vcombine.high %v3345_v6, %v3353_v43  ;;  %v3361_v38 = vld [vmem:[%s17679_s22 + $0x1eb0] sm:$0xff] }
 0x5f7   : > { %9786 = vmatprep.subr.bf16.mxu0 %v14233_v16  ;;  %9950 = vmatprep.subr.bf16.mxu1 %v14235_v17  ;;  %v3369_v16 = vld [vmem:[%s17679_s22 + $0x1ef0] sm:$0xff]  ;;  %v3370_v17 = vld [vmem:[%s17679_s22 + $0x1ef8] sm:$0xff]  ;;  %v14312_v19 = vcombine.low %v3345_v6, %v3353_v43  ;;  %v3462_v59 = vrot.slane %v18828_v36, %v3429_v42  ;;  %v3470_v60 = vrot.slane %v18828_v36, %v3437_v45 }
 0x5f8   : > { %v14329_v24 = vcombine.high %v3361_v38, %v3369_v16  ;;  %v14331_v33 = vcombine.high %v3362_v47, %v3370_v17  ;;  %v14328_v41 = vcombine.low %v3361_v38, %v3369_v16  ;;  %v14330_v31 = vcombine.low %v3362_v47, %v3370_v17 }
 0x5f9   : > { %v10039_v17 = vrot.slane (!%p14364_p9), %v14365_v27, %v17694_v23 }
 0x5fa   : > { %9787 = vmatpush1.bf16.msra.mxu0 %v14232_v28  ;;  %9951 = vmatpush1.bf16.msra.mxu1 %v14234_v9  ;;  %v3377_v28 = vld [vmem:[%s17679_s22 + $0x1f30] sm:$0xff] }
 0x5fb   : > { %9788 = vmatprep.subr.bf16.mxu0 %v14249_v29  ;;  %9952 = vmatprep.subr.bf16.mxu1 %v14251_v30  ;;  %v3385_v9 = vld [vmem:[%s17679_s22 + $0x1f70] sm:$0xff]  ;;  %v3378_v29 = vld [vmem:[%s17679_s22 + $0x1f38] sm:$0xff] }
 0x5fc   : > { %v3386_v30 = vld [vmem:[%s17679_s22 + $0x1f78] sm:$0xff]  ;;  %v14345_v25 = vcombine.high %v3377_v28, %v3385_v9  ;;  %v14344_v46 = vcombine.low %v3377_v28, %v3385_v9 }
 0x5fd   : > { %v18860_v49 = vpop.eup %15169  ;;  %v14347_v32 = vcombine.high %v3378_v29, %v3386_v30  ;;  %v14346_v48 = vcombine.low %v3378_v29, %v3386_v30 }
 0x5fe   : > { %v18864_v52 = vpop.eup %15171  ;;  %9789 = vmatpush1.bf16.msra.mxu0 %v14248_v34  ;;  %9953 = vmatpush1.bf16.msra.mxu1 %v14250_v37  ;;  %v3393_v34 = vld [vmem:[%s17679_s22 + $0x1fb0] sm:$0xff] }
 0x5ff   : > { %v18866_v54 = vpop.eup %15173  ;;  %9790 = vmatprep.subr.bf16.mxu0 %v14265_v39  ;;  %9954 = vmatprep.subr.bf16.mxu1 %v14267_v44  ;;  %v3401_v37 = vld [vmem:[%s17679_s22 + $0x1ff0] sm:$0xff]  ;;  %v3394_v39 = vld [vmem:[%s17679_s22 + $0x1fb8] sm:$0xff] }
 0x600   : > { %v18868_v56 = vpop.eup %15175  ;;  %v3402_v44 = vld [vmem:[%s17679_s22 + $0x1ff8] sm:$0xff]  ;;  %v14361_v50 = vcombine.high %v3393_v34, %v3401_v37 }
 0x601   : > { %v14363_v51 = vcombine.high %v3394_v39, %v3402_v44  ;;  %v14370_v38 = vpack.c.bf16 (!%p14364_p9), %v18868_v56, %v18864_v52 }
 0x602   : > { %9791 = vmatpush1.bf16.msra.mxu0 %v14264_v53  ;;  %9955 = vmatpush1.bf16.msra.mxu1 %v14266_v2  ;;  %v14360_v53 = vcombine.low %v3393_v34, %v3401_v37  ;;  %v14362_v2 = vcombine.low %v3394_v39, %v3402_v44 }
 0x603   : > { %9792 = vmatprep.subr.bf16.mxu0 %v14281_v55  ;;  %9956 = vmatprep.subr.bf16.mxu1 %v14283_v57  ;;  %v3458_v55 = vrot.slane %v18828_v36, %v3425_v35  ;;  %v3466_v57 = vrot.slane %v18828_v36, %v3433_v40  ;;  %v10095_v28 = vrot.slane (!%p14364_p9), %v14370_v38, %v17694_v23 }
 0x606   : > { %9793 = vmatpush1.bf16.msra.mxu0 %v14280_v0  ;;  %9957 = vmatpush1.bf16.msra.mxu1 %v14282_v1 }
 0x607   : > { %9794 = vmatprep.subr.bf16.mxu0 %v14297_v5  ;;  %9958 = vmatprep.subr.bf16.mxu1 %v14299_v10 }
 0x60a   : > { %9795 = vmatpush1.bf16.msra.mxu0 %v14296_v12  ;;  %9959 = vmatpush1.bf16.msra.mxu1 %v14298_v11  ;;  %v14366_v12 = vpack.c.bf16 (!%p14364_p9), %v18280_v26, %v18276_v18  ;;  %v14367_v11 = vpack.c.bf16 (!%p14364_p9), %v18571_v63, %v18565_v58 }
 0x60b   : > { %9796 = vmatprep.subr.bf16.mxu0 %v14313_v13  ;;  %9960 = vmatprep.subr.bf16.mxu1 %v14315_v14  ;;  %v14368_v13 = vpack.c.bf16 (!%p14364_p9), %v18573_v4, %v18569_v61  ;;  %v14369_v14 = vpack.c.bf16 (!%p14364_p9), %v18866_v54, %v18860_v49 }
 0x60e   : > { %9797 = vmatpush1.bf16.msra.mxu0 %v14312_v19  ;;  %9961 = vmatpush1.bf16.msra.mxu1 %v14314_v22  ;;  %v10046_v19 = vrot.slane (!%p14364_p9), %v14366_v12, %v17694_v23  ;;  %v10053_v22 = vrot.slane (!%p14364_p9), %v14367_v11, %v17694_v23 }
 0x60f   : > { %9798 = vmatprep.subr.bf16.mxu0 %v14329_v24  ;;  %9962 = vmatprep.subr.bf16.mxu1 %v14331_v33  ;;  %v10060_v24 = vrot.slane (!%p14364_p9), %v14368_v13, %v17694_v23  ;;  %v10088_v33 = vrot.slane (!%p14364_p9), %v14369_v14, %v17694_v23 }
 0x610   : > { %v10061_v30 = vcombine.low (!%p14364_p9), %v10039_v17, %v10046_v19 }
 0x612   : > { %9799 = vmatpush1.bf16.msra.mxu0 %v14328_v41  ;;  %9963 = vmatpush1.bf16.msra.mxu1 %v14330_v31  ;;  %v10062_v41 = vcombine.low (!%p14364_p9), %v10053_v22, %v10060_v24  ;;  %v10110_v31 = vcombine.low (!%p14364_p9), %v10088_v33, %v10095_v28 }
 0x613   : > { %9800 = vmatprep.subr.bf16.mxu0 %v14345_v25  ;;  %9964 = vmatprep.subr.bf16.mxu1 %v14347_v32  ;;  %v10069_v32 = vrot.slane (!%p14364_p9), %v10061_v30, %v17694_v23 }
 0x614   : > { %v10076_v34 = vrot.slane (!%p14364_p9), %v10062_v41, %v17694_v23  ;;  %v10118_v37 = vrot.slane (!%p14364_p9), %v10110_v31, %v17694_v23 }
 0x616   : > { %9801 = vmatpush1.bf16.msra.mxu0 %v14344_v46  ;;  %9965 = vmatpush1.bf16.msra.mxu1 %v14346_v48  ;;  %v10077_v44 = vcombine.low (!%p14364_p9), %v10069_v32, %v10076_v34 }
 0x617   : > { %9802 = vmatprep.subr.bf16.mxu0 %v14361_v50  ;;  %9966 = vmatprep.subr.bf16.mxu1 %v14363_v51 }
 0x618   : > { %10129 = vst [vmem:[#allocation2] sm:$0xff] (!%p14364_p9), %v10077_v44 }
 0x61a   : > { %9803 = vmatpush1.bf16.msra.mxu0 %v14360_v53  ;;  %9967 = vmatpush1.bf16.msra.mxu1 %v14362_v2 }
 0x61d   : > { %9805 = vmatmul.mubr.bf16.vlgmr.msra.gmra.mrb[12].mxu0 %v18001_v20  ;;  %9969 = vmatmul.mubr.bf16.vlgmr.msra.gmra.mrb[12].mxu1 %v18001_v20 }
 0x6f0   : > { %v9806_v8 = vpop.f32.mrb[12].mxu0  ;;  %v9970_v0 = vpop.f32.mrb[12].mxu1 }
 0x6f1   : > { %v15011_v62 = vadd.f32 %v9806_v8, %v3458_v55  ;;  %v9808_v20 = vpop.f32.mrb[13].mxu0  ;;  %v15013_v1 = vadd.f32 %v9970_v0, %v3466_v57  ;;  %v9972_v10 = vpop.f32.mrb[13].mxu1 }
 0x6f2   : > { %v15012_v5 = vadd.f32 %v9808_v20, %v3462_v59  ;;  %v9810_v35 = vpop.f32.mrb[14].mxu0  ;;  %v15014_v6 = vadd.f32 %v9972_v10, %v3470_v60  ;;  %v9974_v43 = vpop.f32.mrb[14].mxu1 }
 0x6f3   : > { %15177 = vtanh.f32 %v15011_v62  ;;  %v9811_v40 = vpop.f32.mrb[15].mxu0  ;;  %v9975_v7 = vpop.f32.mrb[15].mxu1 }
 0x6f4   : > { %15179 = vtanh.f32 %v15013_v1 }
 0x6f5   : > { %15181 = vtanh.f32 %v15012_v5 }
 0x6f6   : > { %15183 = vtanh.f32 %v15014_v6 }
 0x6fa   : > { %10012 = sbr.rel (%p14364_p9) target bundleno = 1804 (0x70c), region = 75 }
 0x6fd   : > { %v18904_v42 = vpop.eup %15177 }
 0x6fe   : > { %v18906_v3 = vpop.eup %15179 }
 0x6ff   : > { %v18908_v45 = vpop.eup %15181 }
 0x700   : > { %v18910_v36 = vpop.eup %15183  ;;  %v14371_v16 = vpack.c.bf16 (!%p14364_p9), %v18908_v45, %v18904_v42 }
 0x701   : > { %v14372_v47 = vpack.c.bf16 %v18910_v36, %v18906_v3 }
 0x702   : > { %v10102_v9 = vrot.slane %v14371_v16, %v17694_v23 }
 0x703   : > { %v10109_v29 = vrot.slane %v14372_v47, %v17694_v23 }
 0x705   : > { %v10111_v25 = vcombine.low %v10102_v9, %v10109_v29 }
 0x707   : > { %v10125_v39 = vrot.slane %v10111_v25, %v17694_v23 }
 0x709   : > { %v10126_v46 = vcombine.low %v10118_v37, %v10125_v39 }
 0x70b   : > { %10130 = vst [vmem:[#allocation2 + $0x8] sm:$0xff] %v10126_v46 }
 0x70c PF: > { %p14373_p10 = scmp.ne.s32.totalorder %s15602_s30, 1 }
 0x70d   : > { %v15186_v48 = vld [vmem:[%s19869_s3 + $0x40] sm:$0xff] (!%p14373_p10)   ;;  %v15190_v2 = vld [vmem:[%s19869_s3 + $0x48] sm:$0xff] (!%p14373_p10)   ;;  %v15194_v60 = vld [vmem:[%s19869_s3 + $0x50] sm:$0xff] (!%p14373_p10)   ;;  %v14374_v13 = vpack.c.bf16 (!%p14373_p10), %v18278_v21, %v18272_v15  ;;  %v14375_v14 = vpack.c.bf16 (!%p14373_p10), %v18280_v26, %v18276_v18  ;;  %v14376_v38 = vpack.c.bf16 (!%p14373_p10), %v18571_v63, %v18565_v58  ;;  %v14377_v16 = vpack.c.bf16 (!%p14373_p10), %v18573_v4, %v18569_v61 }
 0x70e   : > { %10134 = sbr.rel (%p14373_p10) target bundleno = 2536 (0x9e8), region = 79  ;;  %v15187_v50 = vld [vmem:[%s19869_s3 + $0xc0] sm:$0xff] (!%p14373_p10)   ;;  %14647 = vmatprep.subr.bf16.mxu0 (!%p14373_p10), %v15186_v48  ;;  %v15191_v55 = vld [vmem:[%s19869_s3 + $0xc8] sm:$0xff] (!%p14373_p10)   ;;  %v15195_v8 = vld [vmem:[%s19869_s3 + $0xd0] sm:$0xff] (!%p14373_p10)   ;;  %vm13184_vm0 = vcmask (!%p14373_p10), 58368   ;;  %vm13246_vm3 = vcmask (!%p14373_p10), 0  }
 0x70f   : > { %v15188_v51 = vld [vmem:[%s19869_s3] sm:$0xff] (!%p14373_p10)   ;;  %14669 = vmatprep.subr.bf16.mxu1 (!%p14373_p10), %v15187_v50  ;;  %v15192_v57 = vld [vmem:[%s19869_s3 + $0x8] sm:$0xff] (!%p14373_p10)   ;;  %v15196_v62 = vld [vmem:[%s19869_s3 + $0x10] sm:$0xff] (!%p14373_p10)   ;;  %v10161_v15 = vrot.slane (!%p14373_p10), %v14374_v13, %v17694_v23  ;;  %v10168_v18 = vrot.slane (!%p14373_p10), %v14375_v14, %v17694_v23  ;;  %v10175_v21 = vrot.slane (!%p14373_p10), %v14376_v38, %v17694_v23  ;;  %v10182_v26 = vrot.slane (!%p14373_p10), %v14377_v16, %v17694_v23 }
 0x710   : > { %v15189_v53 = vld [vmem:[%s19869_s3 + $0x80] sm:$0xff] (!%p14373_p10)   ;;  %14648 = vmatpush3.bf16.msra.mxu0 (!%p14373_p10), %v15188_v51  ;;  %v15193_v59 = vld [vmem:[%s19869_s3 + $0x88] sm:$0xff] (!%p14373_p10)   ;;  %v15197_v0 = vld [vmem:[%s19869_s3 + $0x90] sm:$0xff] (!%p14373_p10)  }
 0x711   : > { %14670 = vmatpush3.bf16.msra.mxu1 (!%p14373_p10), %v15189_v53  ;;  %14649 = vmatprep.subr.bf16.mxu0 (!%p14373_p10), %v15190_v2  ;;  %v15198_v20 = vld [vmem:[%s19869_s3 + $0x58] sm:$0xff] (!%p14373_p10)   ;;  %v15202_v35 = vld [vmem:[%s19869_s3 + $0x60] sm:$0xff] (!%p14373_p10)   ;;  %v15206_v7 = vld [vmem:[%s19869_s3 + $0x68] sm:$0xff] (!%p14373_p10)   ;;  %v10183_v63 = vcombine.low (!%p14373_p10), %v10161_v15, %v10168_v18  ;;  %v10184_v4 = vcombine.low (!%p14373_p10), %v10175_v21, %v10182_v26 }
 0x712   : > { %14671 = vmatprep.subr.bf16.mxu1 (!%p14373_p10), %v15191_v55  ;;  %v15199_v1 = vld [vmem:[%s19869_s3 + $0xd8] sm:$0xff] (!%p14373_p10)   ;;  %v15203_v6 = vld [vmem:[%s19869_s3 + $0xe0] sm:$0xff] (!%p14373_p10)   ;;  %v15207_v27 = vld [vmem:[%s19869_s3 + $0xe8] sm:$0xff] (!%p14373_p10)  }
 0x713   : > { %v15200_v5 = vld [vmem:[%s19869_s3 + $0x18] sm:$0xff] (!%p14373_p10)   ;;  %v15204_v43 = vld [vmem:[%s19869_s3 + $0x20] sm:$0xff] (!%p14373_p10)   ;;  %v15208_v12 = vld [vmem:[%s19869_s3 + $0x28] sm:$0xff] (!%p14373_p10)   ;;  %v10191_v24 = vrot.slane (!%p14373_p10), %v10183_v63, %v17694_v23  ;;  %v10198_v33 = vrot.slane (!%p14373_p10), %v10184_v4, %v17694_v23 }
 0x714   : > { %14650 = vmatpush3.bf16.msra.mxu0 (!%p14373_p10), %v15192_v57  ;;  %v15201_v10 = vld [vmem:[%s19869_s3 + $0x98] sm:$0xff] (!%p14373_p10)   ;;  %v15205_v40 = vld [vmem:[%s19869_s3 + $0xa0] sm:$0xff] (!%p14373_p10)   ;;  %v15209_v11 = vld [vmem:[%s19869_s3 + $0xa8] sm:$0xff] (!%p14373_p10)  }
 0x715   : > { %14672 = vmatpush3.bf16.msra.mxu1 %v15193_v59  ;;  %14651 = vmatprep.subr.bf16.mxu0 %v15194_v60  ;;  %v15210_v47 = vld [vmem:[%s19869_s3 + $0x70] sm:$0xff]   ;;  %v15214_v19 = vld [vmem:[%s19869_s3 + $0x78] sm:$0xff]   ;;  %v19052_v29 = vcombine.low %v10191_v24, %v10198_v33  ;;  %v10253_v30 = vld [vmem:[#allocation2] sm:$0xff] }
 0x716   : > { %14673 = vmatprep.subr.bf16.mxu1 %v15195_v8  ;;  %v15211_v17 = vld [vmem:[%s19869_s3 + $0xf0] sm:$0xff]   ;;  %v15215_v22 = vld [vmem:[%s19869_s3 + $0xf8] sm:$0xff]   ;;  %v10780_v41 = vcombine.high %v10253_v30, %v10253_v30  ;;  %v10787_v31 = vrot.slane %v10253_v30, %v17694_v23  ;;  %v15219_v25 = vld [vmem:[%s19869_s3 + $0x140] sm:$0xff]  }
 0x717   : > { %v15212_v58 = vld [vmem:[%s19869_s3 + $0x30] sm:$0xff]   ;;  %v15216_v28 = vld [vmem:[%s19869_s3 + $0x38] sm:$0xff]   ;;  %10251 = vst [vmem:[#allocation2 + $0x10] sm:$0xff] %v19052_v29  ;;  %v15220_v32 = vld [vmem:[%s19869_s3 + $0x1c0] sm:$0xff]  }
 0x718   : > { %14652 = vmatpush3.bf16.msra.mxu0 %v15196_v62  ;;  %v15213_v61 = vld [vmem:[%s19869_s3 + $0xb0] sm:$0xff]   ;;  %v15217_v9 = vld [vmem:[%s19869_s3 + $0xb8] sm:$0xff]   ;;  %v10795_v34 = vcombine.high %v10787_v31, %v10787_v31  ;;  %v10803_v37 = vrot.slane %v10787_v31, %v17694_v23  ;;  %v19064_v39 = vrot.slane %v10780_v41, %v17694_v23  ;;  %v15221_v46 = vld [vmem:[%s19869_s3 + $0x100] sm:$0xff]  }
 0x719   : > { %14674 = vmatpush3.bf16.msra.mxu1 %v15197_v0  ;;  %14653 = vmatprep.subr.bf16.mxu0 %v15198_v20  ;;  %v15223_v51 = vld [vmem:[%s19869_s3 + $0x148] sm:$0xff]   ;;  %v15222_v2 = vld [vmem:[%s19869_s3 + $0x180] sm:$0xff]   ;;  %v15227_v8 = vld [vmem:[%s19869_s3 + $0x150] sm:$0xff]  }
 0x71a   : > { %14675 = vmatprep.subr.bf16.mxu1 %v15199_v1  ;;  %v10817_v44 = vrot.slane %v10795_v34, %v17694_v23  ;;  %v10796_v48 = vcombine.high %v19064_v39, %v19064_v39  ;;  %v10825_v50 = vcombine.high %v10803_v37, %v10803_v37  ;;  %v15224_v57 = vld [vmem:[%s19869_s3 + $0x1c8] sm:$0xff]   ;;  %v15228_v0 = vld [vmem:[%s19869_s3 + $0x1d0] sm:$0xff]   ;;  %v15231_v1 = vld [vmem:[%s19869_s3 + $0x158] sm:$0xff]   ;;  %v10810_v26 = vrot.slane %v19064_v39, %v17694_v23 }
 0x71b   : > { %v15225_v59 = vld [vmem:[%s19869_s3 + $0x108] sm:$0xff]   ;;  %v15229_v20 = vld [vmem:[%s19869_s3 + $0x110] sm:$0xff]   ;;  %v15248_v18 = vld [vmem:[%s19869_s3 + $0x1f8] sm:$0xff]  }
 0x71c   : > { %14654 = vmatpush3.bf16.msra.mxu0 %v15200_v5  ;;  %12576 = vmatprep.mubr.bf16.mxu0 %v10817_v44  ;;  %v10827_v53 = vcombine.high %v10817_v44, %v10817_v44  ;;  %v10824_v55 = vrot.slane %v10796_v48, %v17694_v23  ;;  %v15226_v62 = vld [vmem:[%s19869_s3 + $0x188] sm:$0xff]   ;;  %v15230_v5 = vld [vmem:[%s19869_s3 + $0x190] sm:$0xff]   ;;  %v15249_v21 = vld [vmem:[%s19869_s3 + $0x138] sm:$0xff]  }
 0x71d   : > { %14676 = vmatpush3.bf16.msra.mxu1 %v15201_v10  ;;  %14655 = vmatprep.subr.bf16.mxu0 %v15202_v35  ;;  %v15232_v10 = vld [vmem:[%s19869_s3 + $0x1d8] sm:$0xff]   ;;  %v15241_v13 = vld [vmem:[%s19869_s3 + $0x128] sm:$0xff]   ;;  %v15243_v14 = vld [vmem:[%s19869_s3 + $0x170] sm:$0xff]  }
 0x71e   : > { %14677 = vmatprep.subr.bf16.mxu1 %v15203_v6  ;;  %12616 = vmatprep.mubr.bf16.mxu1 %v10827_v53  ;;  %v10828_v60 = vcombine.high %v10824_v55, %v10824_v55  ;;  %v15233_v35 = vld [vmem:[%s19869_s3 + $0x118] sm:$0xff]   ;;  %v15235_v6 = vld [vmem:[%s19869_s3 + $0x160] sm:$0xff]   ;;  %v15242_v38 = vld [vmem:[%s19869_s3 + $0x1a8] sm:$0xff]   ;;  %v14378_v53 = vpack.c.bf16 %v18866_v54, %v18860_v49 }
 0x71f   : > { %v15244_v16 = vld [vmem:[%s19869_s3 + $0x1f0] sm:$0xff]   ;;  %v15252_v63 = vld [vmem:[%s19869_s3 + $0x2c0] sm:$0xff]   ;;  %v15256_v33 = vld [vmem:[%s19869_s3 + $0x2c8] sm:$0xff]  }
 0x720   : > { %14656 = vmatpush3.bf16.msra.mxu0 %v15204_v43  ;;  %v15234_v43 = vld [vmem:[%s19869_s3 + $0x198] sm:$0xff]   ;;  %v15246_v15 = vld [vmem:[%s19869_s3 + $0x1b0] sm:$0xff]   ;;  %v15253_v4 = vld [vmem:[%s19869_s3 + $0x200] sm:$0xff]   ;;  %v10210_v49 = vrot.slane %v14378_v53, %v17694_v23 }
 0x721   : > { %14678 = vmatpush3.bf16.msra.mxu1 %v15205_v40  ;;  %14657 = vmatprep.subr.bf16.mxu0 %v15206_v7  ;;  %v15236_v40 = vld [vmem:[%s19869_s3 + $0x1e0] sm:$0xff]   ;;  %v15258_v30 = vld [vmem:[%s19869_s3 + $0x288] sm:$0xff]   ;;  %v15260_v41 = vld [vmem:[%s19869_s3 + $0x2d0] sm:$0xff]  }
 0x722   : > { %14679 = vmatprep.subr.bf16.mxu1 %v15207_v27  ;;  %v15237_v7 = vld [vmem:[%s19869_s3 + $0x120] sm:$0xff]   ;;  %v15239_v27 = vld [vmem:[%s19869_s3 + $0x168] sm:$0xff]   ;;  %v15261_v31 = vld [vmem:[%s19869_s3 + $0x210] sm:$0xff]  }
 0x723   : > { %v15254_v24 = vld [vmem:[%s19869_s3 + $0x280] sm:$0xff]   ;;  %v15264_v34 = vld [vmem:[%s19869_s3 + $0x2d8] sm:$0xff]   ;;  %v15308_v53 = vld [vmem:[%s19869_s3 + $0x3f0] sm:$0xff]  }
 0x724   : > { %14658 = vmatpush3.bf16.msra.mxu0 %v15208_v12  ;;  %v15238_v12 = vld [vmem:[%s19869_s3 + $0x1a0] sm:$0xff]   ;;  %v15266_v44 = vld [vmem:[%s19869_s3 + $0x298] sm:$0xff]  }
 0x725   : > { %14680 = vmatpush3.bf16.msra.mxu1 %v15209_v11  ;;  %14659 = vmatprep.subr.bf16.mxu0 %v15210_v47  ;;  %v15240_v11 = vld [vmem:[%s19869_s3 + $0x1e8] sm:$0xff]   ;;  %v15245_v47 = vld [vmem:[%s19869_s3 + $0x130] sm:$0xff]   ;;  %v15267_v39 = vld [vmem:[%s19869_s3 + $0x260] sm:$0xff]  }
 0x726   : > { %14681 = vmatprep.subr.bf16.mxu1 %v15211_v17  ;;  %v15247_v17 = vld [vmem:[%s19869_s3 + $0x178] sm:$0xff]   ;;  %v15269_v48 = vld [vmem:[%s19869_s3 + $0x220] sm:$0xff]  }
 0x728   : > { %14660 = vmatpush3.bf16.msra.mxu0 %v15212_v58  ;;  %v15251_v58 = vld [vmem:[%s19869_s3 + $0x240] sm:$0xff]  }
 0x729   : > { %14682 = vmatpush3.bf16.msra.mxu1 %v15213_v61  ;;  %14661 = vmatprep.subr.bf16.mxu0 %v15214_v19  ;;  %v15250_v61 = vld [vmem:[%s19869_s3 + $0x1b8] sm:$0xff]   ;;  %v10826_v19 = vcombine.high %v10810_v26, %v10810_v26 }
 0x72a   : > { %14683 = vmatprep.subr.bf16.mxu1 %v15215_v22  ;;  %v15255_v22 = vld [vmem:[%s19869_s3 + $0x248] sm:$0xff]  }
 0x72c   : > { %14662 = vmatpush3.bf16.msra.mxu0 %v15216_v28  ;;  %v15257_v28 = vld [vmem:[%s19869_s3 + $0x208] sm:$0xff]  }
 0x72d   : > { %14684 = vmatpush3.bf16.msra.mxu1 %v15217_v9  ;;  %14691 = vmatprep.subr.bf16.mxu0 %v15219_v25  ;;  %v15259_v9 = vld [vmem:[%s19869_s3 + $0x250] sm:$0xff]   ;;  %v15263_v25 = vld [vmem:[%s19869_s3 + $0x258] sm:$0xff]  }
 0x72e   : > { %14713 = vmatprep.subr.bf16.mxu1 %v15220_v32  ;;  %v15262_v32 = vld [vmem:[%s19869_s3 + $0x290] sm:$0xff]  }
 0x72f   : > { %12577 = vmatmul.mubr.bf16.vlgmr.msra.gmra.mrb[0].mxu0 %v10803_v37  ;;  %v15265_v37 = vld [vmem:[%s19869_s3 + $0x218] sm:$0xff]  }
 0x730   : > { %14692 = vmatpush3.bf16.msra.mxu0 %v15221_v46  ;;  %12617 = vmatmul.mubr.bf16.vlgmr.msra.gmra.mrb[0].mxu1 %v10825_v50  ;;  %v15268_v46 = vld [vmem:[%s19869_s3 + $0x2e0] sm:$0xff]   ;;  %v15271_v50 = vld [vmem:[%s19869_s3 + $0x268] sm:$0xff]  }
 0x731   : > { %14693 = vmatprep.subr.bf16.mxu0 %v15223_v51  ;;  %14714 = vmatpush3.bf16.msra.mxu1 %v15222_v2  ;;  %v15270_v51 = vld [vmem:[%s19869_s3 + $0x2a0] sm:$0xff]   ;;  %v14379_v2 = vpack.c.bf16 %v18868_v56, %v18864_v52 }
 0x732   : > { %12656 = vmatprep.mubr.bf16.mxu0 %v10824_v55  ;;  %14715 = vmatprep.subr.bf16.mxu1 %v15224_v57  ;;  %v14380_v55 = vpack.c.bf16 %v18908_v45, %v18904_v42  ;;  %v14381_v57 = vpack.c.bf16 %v18910_v36, %v18906_v3  ;;  %v15275_v42 = vld [vmem:[%s19869_s3 + $0x270] sm:$0xff]   ;;  %v15274_v3 = vld [vmem:[%s19869_s3 + $0x2a8] sm:$0xff]  }
 0x733   : > { %12696 = vmatprep.mubr.bf16.mxu1 %v10828_v60  ;;  %v15273_v60 = vld [vmem:[%s19869_s3 + $0x228] sm:$0xff]   ;;  %v10217_v52 = vrot.slane %v14379_v2, %v17694_v23  ;;  %v15309_v2 = vld [vmem:[%s19869_s3 + $0x330] sm:$0xff]  }
 0x734   : > { %14694 = vmatpush3.bf16.msra.mxu0 %v15225_v59  ;;  %v15272_v59 = vld [vmem:[%s19869_s3 + $0x2e8] sm:$0xff]   ;;  %v10224_v54 = vrot.slane %v14380_v55, %v17694_v23  ;;  %v10231_v56 = vrot.slane %v14381_v57, %v17694_v23  ;;  %v15311_v55 = vld [vmem:[%s19869_s3 + $0x378] sm:$0xff]  }
 0x735   : > { %14695 = vmatprep.subr.bf16.mxu0 %v15227_v8  ;;  %14716 = vmatpush3.bf16.msra.mxu1 %v15226_v62  ;;  %v10232_v45 = vcombine.low %v10210_v49, %v10217_v52  ;;  %v15276_v8 = vld [vmem:[%s19869_s3 + $0x2f0] sm:$0xff]   ;;  %v15316_v52 = vld [vmem:[%s19869_s3 + $0x440] sm:$0xff]  }
 0x736   : > { %14717 = vmatprep.subr.bf16.mxu1 %v15228_v0  ;;  %v10233_v36 = vcombine.low %v10224_v54, %v10231_v56  ;;  %v15277_v62 = vld [vmem:[%s19869_s3 + $0x230] sm:$0xff]   ;;  %v15314_v54 = vld [vmem:[%s19869_s3 + $0x3b8] sm:$0xff]  }
 0x737   : > { %v10240_v0 = vrot.slane %v10232_v45, %v17694_v23 }
 0x738   : > { %14696 = vmatpush3.bf16.msra.mxu0 %v15229_v20  ;;  %v10247_v20 = vrot.slane %v10233_v36, %v17694_v23  ;;  %v15320_v36 = vld [vmem:[%s19869_s3 + $0x448] sm:$0xff]  }
 0x739   : > { %14697 = vmatprep.subr.bf16.mxu0 %v15231_v1  ;;  %14718 = vmatpush3.bf16.msra.mxu1 %v15230_v5  ;;  %v15279_v1 = vld [vmem:[%s19869_s3 + $0x278] sm:$0xff]   ;;  %v15278_v5 = vld [vmem:[%s19869_s3 + $0x2b0] sm:$0xff]  }
 0x73a   : > { %14719 = vmatprep.subr.bf16.mxu1 %v15232_v10  ;;  %v19263_v10 = vcombine.low %v10240_v0, %v10247_v20  ;;  %v15321_v0 = vld [vmem:[%s19869_s3 + $0x4c8] sm:$0xff]  }
 0x73b   : > { %v15322_v20 = vld [vmem:[%s19869_s3 + $0x408] sm:$0xff]  }
 0x73c   : > { %14698 = vmatpush3.bf16.msra.mxu0 %v15233_v35  ;;  %v15280_v35 = vld [vmem:[%s19869_s3 + $0x2f8] sm:$0xff]   ;;  %10252 = vst [vmem:[#allocation2 + $0x18] sm:$0xff] %v19263_v10 }
 0x73d   : > { %14699 = vmatprep.subr.bf16.mxu0 %v15235_v6  ;;  %14720 = vmatpush3.bf16.msra.mxu1 %v15234_v43  ;;  %v10254_v6 = vld [vmem:[#allocation2 + $0x8] sm:$0xff]  ;;  %v15281_v43 = vld [vmem:[%s19869_s3 + $0x238] sm:$0xff]  }
 0x73e   : > { %14721 = vmatprep.subr.bf16.mxu1 %v15236_v40  ;;  %v10836_v40 = vrot.slane %v10254_v6, %v17694_v23 }
 0x740   : > { %14700 = vmatpush3.bf16.msra.mxu0 %v15237_v7  ;;  %v10829_v7 = vcombine.high %v10254_v6, %v10254_v6  ;;  %v15326_v6 = vld [vmem:[%s19869_s3 + $0x410] sm:$0xff]  }
 0x741   : > { %14701 = vmatprep.subr.bf16.mxu0 %v15239_v27  ;;  %14722 = vmatpush3.bf16.msra.mxu1 %v15238_v12  ;;  %v15283_v27 = vld [vmem:[%s19869_s3 + $0x340] sm:$0xff]   ;;  %v15282_v12 = vld [vmem:[%s19869_s3 + $0x2b8] sm:$0xff]  }
 0x742   : > { %14723 = vmatprep.subr.bf16.mxu1 %v15240_v11  ;;  %v10844_v11 = vcombine.high %v10836_v40, %v10836_v40 }
 0x744   : > { %14702 = vmatpush3.bf16.msra.mxu0 %v15241_v13  ;;  %v10852_v13 = vrot.slane %v10836_v40, %v17694_v23  ;;  %v15327_v40 = vld [vmem:[%s19869_s3 + $0x490] sm:$0xff]  }
 0x745   : > { %14703 = vmatprep.subr.bf16.mxu0 %v15243_v14  ;;  %14724 = vmatpush3.bf16.msra.mxu1 %v15242_v38  ;;  %v19281_v14 = vrot.slane %v10829_v7, %v17694_v23  ;;  %v15284_v38 = vld [vmem:[%s19869_s3 + $0x3c0] sm:$0xff]   ;;  %v15329_v7 = vld [vmem:[%s19869_s3 + $0x4d8] sm:$0xff]  }
 0x746   : > { %14725 = vmatprep.subr.bf16.mxu1 %v15244_v16  ;;  %v10866_v16 = vrot.slane %v10844_v11, %v17694_v23  ;;  %v15331_v11 = vld [vmem:[%s19869_s3 + $0x498] sm:$0xff]  }
 0x747   : > { %v10859_v49 = vrot.slane %v19281_v14, %v17694_v23 }
 0x748   : > { %14704 = vmatpush3.bf16.msra.mxu0 %v15245_v47  ;;  %v15285_v47 = vld [vmem:[%s19869_s3 + $0x300] sm:$0xff]  }
 0x749   : > { %14705 = vmatprep.subr.bf16.mxu0 %v15247_v17  ;;  %14726 = vmatpush3.bf16.msra.mxu1 %v15246_v15  ;;  %v10845_v17 = vcombine.high %v19281_v14, %v19281_v14  ;;  %v10874_v15 = vcombine.high %v10852_v13, %v10852_v13  ;;  %v10875_v45 = vcombine.high %v10859_v49, %v10859_v49  ;;  %v15334_v14 = vld [vmem:[%s19869_s3 + $0x420] sm:$0xff]  }
 0x74a   : > { %14727 = vmatprep.subr.bf16.mxu1 %v15248_v18  ;;  %v15287_v18 = vld [vmem:[%s19869_s3 + $0x348] sm:$0xff]  }
 0x74c   : > { %14706 = vmatpush3.bf16.msra.mxu0 %v15249_v21  ;;  %v10876_v21 = vcombine.high %v10866_v16, %v10866_v16 }
 0x74d   : > { %14735 = vmatprep.subr.bf16.mxu0 %v15251_v58  ;;  %14728 = vmatpush3.bf16.msra.mxu1 %v15250_v61  ;;  %v10873_v58 = vrot.slane %v10845_v17, %v17694_v23  ;;  %v15288_v61 = vld [vmem:[%s19869_s3 + $0x3c8] sm:$0xff]  }
 0x74e   : > { %14757 = vmatprep.subr.bf16.mxu1 %v15252_v63  ;;  %v15289_v63 = vld [vmem:[%s19869_s3 + $0x308] sm:$0xff]  }
 0x74f   : > { %12657 = vmatmul.mubr.bf16.vlgmr.msra.gmra.mrb[4].mxu0 %v10810_v26  ;;  %v15286_v26 = vld [vmem:[%s19869_s3 + $0x380] sm:$0xff]  }
 0x750   : > { %14736 = vmatpush3.bf16.msra.mxu0 %v15253_v4  ;;  %12697 = vmatmul.mubr.bf16.vlgmr.msra.gmra.mrb[4].mxu1 %v10826_v19  ;;  %v10877_v4 = vcombine.high %v10873_v58, %v10873_v58  ;;  %v15291_v19 = vld [vmem:[%s19869_s3 + $0x350] sm:$0xff]  }
 0x751   : > { %14737 = vmatprep.subr.bf16.mxu0 %v15255_v22  ;;  %14758 = vmatpush3.bf16.msra.mxu1 %v15254_v24  ;;  %v15290_v22 = vld [vmem:[%s19869_s3 + $0x388] sm:$0xff]   ;;  %v15292_v24 = vld [vmem:[%s19869_s3 + $0x3d0] sm:$0xff]  }
 0x752   : > { %14759 = vmatprep.subr.bf16.mxu1 %v15256_v33  ;;  %12736 = vmatprep.mubr.bf16.mxu0 %v10866_v16  ;;  %v15293_v33 = vld [vmem:[%s19869_s3 + $0x310] sm:$0xff]   ;;  %v15335_v16 = vld [vmem:[%s19869_s3 + $0x4a0] sm:$0xff]  }
 0x753   : > { %12776 = vmatprep.mubr.bf16.mxu1 %v10876_v21  ;;  %v15340_v21 = vld [vmem:[%s19869_s3 + $0x470] sm:$0xff]  }
 0x754   : > { %14738 = vmatpush3.bf16.msra.mxu0 %v15257_v28  ;;  %v15295_v28 = vld [vmem:[%s19869_s3 + $0x358] sm:$0xff]  }
 0x755   : > { %14739 = vmatprep.subr.bf16.mxu0 %v15259_v9  ;;  %14760 = vmatpush3.bf16.msra.mxu1 %v15258_v30  ;;  %v15294_v9 = vld [vmem:[%s19869_s3 + $0x390] sm:$0xff]   ;;  %v15296_v30 = vld [vmem:[%s19869_s3 + $0x3d8] sm:$0xff]  }
 0x756   : > { %14761 = vmatprep.subr.bf16.mxu1 %v15260_v41  ;;  %v15297_v41 = vld [vmem:[%s19869_s3 + $0x318] sm:$0xff]  }
 0x758   : > { %14740 = vmatpush3.bf16.msra.mxu0 %v15261_v31  ;;  %v15299_v31 = vld [vmem:[%s19869_s3 + $0x360] sm:$0xff]  }
 0x759   : > { %14741 = vmatprep.subr.bf16.mxu0 %v15263_v25  ;;  %14762 = vmatpush3.bf16.msra.mxu1 %v15262_v32  ;;  %v15298_v25 = vld [vmem:[%s19869_s3 + $0x398] sm:$0xff]   ;;  %v15300_v32 = vld [vmem:[%s19869_s3 + $0x3e0] sm:$0xff]  }
 0x75a   : > { %14763 = vmatprep.subr.bf16.mxu1 %v15264_v34  ;;  %v15301_v34 = vld [vmem:[%s19869_s3 + $0x320] sm:$0xff]  }
 0x75c   : > { %14742 = vmatpush3.bf16.msra.mxu0 %v15265_v37  ;;  %v15303_v37 = vld [vmem:[%s19869_s3 + $0x368] sm:$0xff]  }
 0x75d   : > { %14743 = vmatprep.subr.bf16.mxu0 %v15267_v39  ;;  %14764 = vmatpush3.bf16.msra.mxu1 %v15266_v44  ;;  %v15302_v39 = vld [vmem:[%s19869_s3 + $0x3a0] sm:$0xff]   ;;  %v15304_v44 = vld [vmem:[%s19869_s3 + $0x3e8] sm:$0xff]  }
 0x75e   : > { %14765 = vmatprep.subr.bf16.mxu1 %v15268_v46  ;;  %v15305_v46 = vld [vmem:[%s19869_s3 + $0x328] sm:$0xff]  }
 0x760   : > { %14744 = vmatpush3.bf16.msra.mxu0 %v15269_v48  ;;  %v15307_v48 = vld [vmem:[%s19869_s3 + $0x370] sm:$0xff]  }
 0x761   : > { %14745 = vmatprep.subr.bf16.mxu0 %v15271_v50  ;;  %14766 = vmatpush3.bf16.msra.mxu1 %v15270_v51  ;;  %v15306_v50 = vld [vmem:[%s19869_s3 + $0x3a8] sm:$0xff]   ;;  %v19361_v51 = vrot.slane %v19052_v29, %v17694_v23  ;;  %v15310_v29 = vld [vmem:[%s19869_s3 + $0x3b0] sm:$0xff]  }
 0x762   : > { %14767 = vmatprep.subr.bf16.mxu1 %v15272_v59  ;;  %v15312_v59 = vld [vmem:[%s19869_s3 + $0x3f8] sm:$0xff]  }
 0x763   : > { %v10893_v57 = vcombine.high %v19361_v51, %v19361_v51 }
 0x764   : > { %14746 = vmatpush3.bf16.msra.mxu0 %v15273_v60  ;;  %v15313_v60 = vld [vmem:[%s19869_s3 + $0x338] sm:$0xff]  }
 0x765   : > { %14747 = vmatprep.subr.bf16.mxu0 %v15275_v42  ;;  %14768 = vmatpush3.bf16.msra.mxu1 %v15274_v3  ;;  %v10915_v56 = vrot.slane %v10893_v57, %v17694_v23  ;;  %v15317_v42 = vld [vmem:[%s19869_s3 + $0x4c0] sm:$0xff]   ;;  %v15362_v57 = vld [vmem:[%s19869_s3 + $0x518] sm:$0xff]  }
 0x766   : > { %14769 = vmatprep.subr.bf16.mxu1 %v15276_v8  ;;  %v15318_v3 = vld [vmem:[%s19869_s3 + $0x400] sm:$0xff]  }
 0x767   : > { %v15319_v8 = vld [vmem:[%s19869_s3 + $0x480] sm:$0xff]  }
 0x768   : > { %14748 = vmatpush3.bf16.msra.mxu0 %v15277_v62  ;;  %v10925_v62 = vcombine.high %v10915_v56, %v10915_v56 }
 0x769   : > { %14749 = vmatprep.subr.bf16.mxu0 %v15279_v1  ;;  %14770 = vmatpush3.bf16.msra.mxu1 %v15278_v5  ;;  %v15324_v1 = vld [vmem:[%s19869_s3 + $0x450] sm:$0xff]   ;;  %v15323_v5 = vld [vmem:[%s19869_s3 + $0x488] sm:$0xff]  }
 0x76a   : > { %14771 = vmatprep.subr.bf16.mxu1 %v15280_v35  ;;  %v15325_v35 = vld [vmem:[%s19869_s3 + $0x4d0] sm:$0xff]  }
 0x76c   : > { %14750 = vmatpush3.bf16.msra.mxu0 %v15281_v43  ;;  %v15328_v43 = vld [vmem:[%s19869_s3 + $0x458] sm:$0xff]  }
 0x76d   : > { %14779 = vmatprep.subr.bf16.mxu0 %v15283_v27  ;;  %14772 = vmatpush3.bf16.msra.mxu1 %v15282_v12  ;;  %v15330_v27 = vld [vmem:[%s19869_s3 + $0x418] sm:$0xff]   ;;  %v15332_v12 = vld [vmem:[%s19869_s3 + $0x460] sm:$0xff]  }
 0x76e   : > { %14801 = vmatprep.subr.bf16.mxu1 %v15284_v38  ;;  %v15336_v38 = vld [vmem:[%s19869_s3 + $0x468] sm:$0xff]  }
 0x76f   : > { %12737 = vmatmul.mubr.bf16.vlgmr.msra.gmra.mrb[8].mxu0 %v10852_v13  ;;  %v15333_v13 = vld [vmem:[%s19869_s3 + $0x4e0] sm:$0xff]  }
 0x770   : > { %14780 = vmatpush3.bf16.msra.mxu0 %v15285_v47  ;;  %12777 = vmatmul.mubr.bf16.vlgmr.msra.gmra.mrb[8].mxu1 %v10874_v15  ;;  %v15452_v47 = vld [vmem:[#allocation2 + $0x10] sm:$0xff]  ;;  %v15337_v15 = vld [vmem:[%s19869_s3 + $0x4e8] sm:$0xff]  }
 0x771   : > { %14781 = vmatprep.subr.bf16.mxu0 %v15287_v18  ;;  %14802 = vmatpush3.bf16.msra.mxu1 %v15286_v26  ;;  %v10878_v17 = vcombine.high %v15452_v47, %v15452_v47  ;;  %v15338_v18 = vld [vmem:[%s19869_s3 + $0x428] sm:$0xff]  }
 0x772   : > { %12816 = vmatprep.mubr.bf16.mxu0 %v10873_v58  ;;  %14803 = vmatprep.subr.bf16.mxu1 %v15288_v61  ;;  %v15339_v26 = vld [vmem:[%s19869_s3 + $0x4a8] sm:$0xff]   ;;  %v15341_v61 = vld [vmem:[%s19869_s3 + $0x4f0] sm:$0xff]  }
 0x773   : > { %12856 = vmatprep.mubr.bf16.mxu1 %v10877_v4  ;;  %v19465_v58 = vrot.slane %v10878_v17, %v17694_v23  ;;  %v15344_v4 = vld [vmem:[%s19869_s3 + $0x478] sm:$0xff]   ;;  %v15386_v47 = vld [vmem:[%s19869_s3 + $0x608] sm:$0xff]   ;;  %v15388_v17 = vld [vmem:[%s19869_s3 + $0x650] sm:$0xff]  }
 0x774   : > { %14782 = vmatpush3.bf16.msra.mxu0 %v15289_v63  ;;  %v15342_v63 = vld [vmem:[%s19869_s3 + $0x430] sm:$0xff]  }
 0x775   : > { %14783 = vmatprep.subr.bf16.mxu0 %v15291_v19  ;;  %14804 = vmatpush3.bf16.msra.mxu1 %v15290_v22  ;;  %v15343_v19 = vld [vmem:[%s19869_s3 + $0x4b0] sm:$0xff]   ;;  %v10894_v22 = vcombine.high %v19465_v58, %v19465_v58 }
 0x776   : > { %14805 = vmatprep.subr.bf16.mxu1 %v15292_v24  ;;  %v15345_v24 = vld [vmem:[%s19869_s3 + $0x4f8] sm:$0xff]  }
 0x778   : > { %14784 = vmatpush3.bf16.msra.mxu0 %v15293_v33  ;;  %v15346_v33 = vld [vmem:[%s19869_s3 + $0x438] sm:$0xff]  }
 0x779   : > { %14785 = vmatprep.subr.bf16.mxu0 %v15295_v28  ;;  %14806 = vmatpush3.bf16.msra.mxu1 %v15294_v9  ;;  %v10901_v28 = vrot.slane %v19361_v51, %v17694_v23  ;;  %v15348_v9 = vld [vmem:[%s19869_s3 + $0x540] sm:$0xff]   ;;  %v15357_v51 = vld [vmem:[%s19869_s3 + $0x5d0] sm:$0xff]  }
 0x77a   : > { %14807 = vmatprep.subr.bf16.mxu1 %v15296_v30  ;;  %v15347_v30 = vld [vmem:[%s19869_s3 + $0x4b8] sm:$0xff]  }
 0x77c   : > { %14786 = vmatpush3.bf16.msra.mxu0 %v15297_v41  ;;  %v10922_v41 = vrot.slane %v10894_v22, %v17694_v23  ;;  %v15397_v22 = vld [vmem:[%s19869_s3 + $0x6e0] sm:$0xff]  }
 0x77d   : > { %14787 = vmatprep.subr.bf16.mxu0 %v15299_v31  ;;  %14808 = vmatpush3.bf16.msra.mxu1 %v15298_v25  ;;  %v15349_v31 = vld [vmem:[%s19869_s3 + $0x5c0] sm:$0xff]  }
 0x77e   : > { %14809 = vmatprep.subr.bf16.mxu1 %v15300_v32  ;;  %v15350_v25 = vld [vmem:[%s19869_s3 + $0x500] sm:$0xff]   ;;  %v10923_v32 = vcombine.high %v10901_v28, %v10901_v28 }
 0x780   : > { %14788 = vmatpush3.bf16.msra.mxu0 %v15301_v34  ;;  %v15352_v34 = vld [vmem:[%s19869_s3 + $0x548] sm:$0xff]  }
 0x781   : > { %14789 = vmatprep.subr.bf16.mxu0 %v15303_v37  ;;  %14810 = vmatpush3.bf16.msra.mxu1 %v15302_v39  ;;  %v15351_v37 = vld [vmem:[%s19869_s3 + $0x580] sm:$0xff]   ;;  %v10926_v39 = vcombine.high %v10922_v41, %v10922_v41 }
 0x782   : > { %14811 = vmatprep.subr.bf16.mxu1 %v15304_v44  ;;  %v15353_v44 = vld [vmem:[%s19869_s3 + $0x5c8] sm:$0xff]  }
 0x784   : > { %14790 = vmatpush3.bf16.msra.mxu0 %v15305_v46  ;;  %v15354_v46 = vld [vmem:[%s19869_s3 + $0x508] sm:$0xff]  }
 0x785   : > { %14791 = vmatprep.subr.bf16.mxu0 %v15307_v48  ;;  %14812 = vmatpush3.bf16.msra.mxu1 %v15306_v50  ;;  %v15356_v48 = vld [vmem:[%s19869_s3 + $0x550] sm:$0xff]   ;;  %v15355_v50 = vld [vmem:[%s19869_s3 + $0x588] sm:$0xff]  }
 0x786   : > { %14813 = vmatprep.subr.bf16.mxu1 %v15308_v53  ;;  %v15358_v53 = vld [vmem:[%s19869_s3 + $0x510] sm:$0xff]  }
 0x788   : > { %14792 = vmatpush3.bf16.msra.mxu0 %v15309_v2  ;;  %v15360_v2 = vld [vmem:[%s19869_s3 + $0x558] sm:$0xff]  }
 0x789   : > { %14793 = vmatprep.subr.bf16.mxu0 %v15311_v55  ;;  %14814 = vmatpush3.bf16.msra.mxu1 %v15310_v29  ;;  %v15359_v55 = vld [vmem:[%s19869_s3 + $0x590] sm:$0xff]   ;;  %v15361_v29 = vld [vmem:[%s19869_s3 + $0x5d8] sm:$0xff]  }
 0x78a   : > { %14815 = vmatprep.subr.bf16.mxu1 %v15312_v59  ;;  %v15364_v59 = vld [vmem:[%s19869_s3 + $0x560] sm:$0xff]  }
 0x78c   : > { %14794 = vmatpush3.bf16.msra.mxu0 %v15313_v60  ;;  %v15363_v60 = vld [vmem:[%s19869_s3 + $0x598] sm:$0xff]  }
 0x78d   : > { %14823 = vmatprep.subr.bf16.mxu0 %v15316_v52  ;;  %14816 = vmatpush3.bf16.msra.mxu1 %v15314_v54  ;;  %v15366_v52 = vld [vmem:[%s19869_s3 + $0x520] sm:$0xff]   ;;  %v15368_v54 = vld [vmem:[%s19869_s3 + $0x568] sm:$0xff]  }
 0x78e   : > { %14845 = vmatprep.subr.bf16.mxu1 %v15317_v42  ;;  %v15369_v42 = vld [vmem:[%s19869_s3 + $0x5e8] sm:$0xff]  }
 0x78f   : > { %12817 = vmatmul.mubr.bf16.vlgmr.msra.gmra.mrb[12].mxu0 %v10859_v49  ;;  %v15365_v49 = vld [vmem:[%s19869_s3 + $0x5e0] sm:$0xff]  }
 0x790   : > { %14824 = vmatpush3.bf16.msra.mxu0 %v15318_v3  ;;  %12896 = vmatprep.mubr.bf16.mxu0 %v10915_v56  ;;  %v15367_v56 = vld [vmem:[%s19869_s3 + $0x5a0] sm:$0xff]   ;;  %v15370_v3 = vld [vmem:[%s19869_s3 + $0x528] sm:$0xff]  }
 0x791   : > { %12857 = vmatmul.mubr.bf16.vlgmr.msra.gmra.mrb[12].mxu1 %v10875_v45  ;;  %14825 = vmatprep.subr.bf16.mxu0 %v15320_v36  ;;  %v15372_v45 = vld [vmem:[%s19869_s3 + $0x570] sm:$0xff]   ;;  %v15371_v36 = vld [vmem:[%s19869_s3 + $0x5a8] sm:$0xff]  }
 0x792   : > { %14846 = vmatpush3.bf16.msra.mxu1 %v15319_v8  ;;  %12936 = vmatprep.mubr.bf16.mxu1 %v10925_v62  ;;  %v19570_v8 = vrot.slane %v19263_v10, %v17694_v23  ;;  %v15373_v62 = vld [vmem:[%s19869_s3 + $0x5f0] sm:$0xff]  }
 0x793   : > { %14847 = vmatprep.subr.bf16.mxu1 %v15321_v0  ;;  %v15374_v0 = vld [vmem:[%s19869_s3 + $0x530] sm:$0xff]  }
 0x794   : > { %14826 = vmatpush3.bf16.msra.mxu0 %v15322_v20  ;;  %v15376_v20 = vld [vmem:[%s19869_s3 + $0x578] sm:$0xff]   ;;  %v15375_v10 = vld [vmem:[%s19869_s3 + $0x5b0] sm:$0xff]  }
 0x795   : > { %14827 = vmatprep.subr.bf16.mxu0 %v15324_v1  ;;  %v10942_v1 = vcombine.high %v19570_v8, %v19570_v8 }
 0x796   : > { %14848 = vmatpush3.bf16.msra.mxu1 %v15323_v5  ;;  %v15377_v5 = vld [vmem:[%s19869_s3 + $0x5f8] sm:$0xff]  }
 0x797   : > { %14849 = vmatprep.subr.bf16.mxu1 %v15325_v35  ;;  %v15378_v35 = vld [vmem:[%s19869_s3 + $0x538] sm:$0xff]  }
 0x798   : > { %14828 = vmatpush3.bf16.msra.mxu0 %v15326_v6  ;;  %v10908_v6 = vrot.slane %v19465_v58, %v17694_v23  ;;  %v15391_v58 = vld [vmem:[%s19869_s3 + $0x690] sm:$0xff]  }
 0x799   : > { %14829 = vmatprep.subr.bf16.mxu0 %v15328_v43  ;;  %v15380_v43 = vld [vmem:[%s19869_s3 + $0x640] sm:$0xff]  }
 0x79a   : > { %14850 = vmatpush3.bf16.msra.mxu1 %v15327_v40  ;;  %v15379_v40 = vld [vmem:[%s19869_s3 + $0x5b8] sm:$0xff]  }
 0x79b   : > { %14851 = vmatprep.subr.bf16.mxu1 %v15329_v7  ;;  %v10964_v7 = vrot.slane %v10942_v1, %v17694_v23  ;;  %v15428_v1 = vld [vmem:[%s19869_s3 + $0x760] sm:$0xff]  }
 0x79c   : > { %14830 = vmatpush3.bf16.msra.mxu0 %v15330_v27  ;;  %v15381_v27 = vld [vmem:[%s19869_s3 + $0x6c0] sm:$0xff]  }
 0x79d   : > { %14831 = vmatprep.subr.bf16.mxu0 %v15332_v12  ;;  %v15382_v12 = vld [vmem:[%s19869_s3 + $0x600] sm:$0xff]  }
 0x79e   : > { %14852 = vmatpush3.bf16.msra.mxu1 %v15331_v11  ;;  %v10924_v11 = vcombine.high %v10908_v6, %v10908_v6 }
 0x79f   : > { %14853 = vmatprep.subr.bf16.mxu1 %v15333_v13  ;;  %v15384_v13 = vld [vmem:[%s19869_s3 + $0x648] sm:$0xff]  }
 0x7a0   : > { %14832 = vmatpush3.bf16.msra.mxu0 %v15334_v14  ;;  %v15383_v14 = vld [vmem:[%s19869_s3 + $0x680] sm:$0xff]  }
 0x7a1   : > { %14833 = vmatprep.subr.bf16.mxu0 %v15336_v38  ;;  %v10974_v38 = vcombine.high %v10964_v7, %v10964_v7 }
 0x7a2   : > { %14854 = vmatpush3.bf16.msra.mxu1 %v15335_v16  ;;  %v15385_v16 = vld [vmem:[%s19869_s3 + $0x6c8] sm:$0xff]  }
 0x7a3   : > { %14855 = vmatprep.subr.bf16.mxu1 %v15337_v15  ;;  %v15387_v15 = vld [vmem:[%s19869_s3 + $0x688] sm:$0xff]  }
 0x7a4   : > { %14834 = vmatpush3.bf16.msra.mxu0 %v15338_v18  ;;  %v15389_v18 = vld [vmem:[%s19869_s3 + $0x6d0] sm:$0xff]  }
 0x7a5   : > { %14835 = vmatprep.subr.bf16.mxu0 %v15340_v21  ;;  %v15390_v21 = vld [vmem:[%s19869_s3 + $0x610] sm:$0xff]  }
 0x7a6   : > { %14856 = vmatpush3.bf16.msra.mxu1 %v15339_v26  ;;  %v15392_v26 = vld [vmem:[%s19869_s3 + $0x658] sm:$0xff]  }
 0x7a7   : > { %14857 = vmatprep.subr.bf16.mxu1 %v15341_v61  ;;  %v15393_v61 = vld [vmem:[%s19869_s3 + $0x6d8] sm:$0xff]  }
 0x7a8   : > { %14836 = vmatpush3.bf16.msra.mxu0 %v15342_v63  ;;  %v15394_v63 = vld [vmem:[%s19869_s3 + $0x618] sm:$0xff]  }
 0x7a9   : > { %14837 = vmatprep.subr.bf16.mxu0 %v15344_v4  ;;  %v15396_v4 = vld [vmem:[%s19869_s3 + $0x660] sm:$0xff]  }
 0x7aa   : > { %14858 = vmatpush3.bf16.msra.mxu1 %v15343_v19  ;;  %v15395_v19 = vld [vmem:[%s19869_s3 + $0x698] sm:$0xff]  }
 0x7ab   : > { %14859 = vmatprep.subr.bf16.mxu1 %v15345_v24  ;;  %v15398_v24 = vld [vmem:[%s19869_s3 + $0x620] sm:$0xff]  }
 0x7ac   : > { %14838 = vmatpush3.bf16.msra.mxu0 %v15346_v33  ;;  %v15400_v33 = vld [vmem:[%s19869_s3 + $0x668] sm:$0xff]  }
 0x7ad   : > { %14867 = vmatprep.subr.bf16.mxu0 %v15348_v9  ;;  %v15453_v9 = vld [vmem:[#allocation2 + $0x18] sm:$0xff] }
 0x7ae   : > { %14860 = vmatpush3.bf16.msra.mxu1 %v15347_v30  ;;  %v10927_v30 = vcombine.high %v15453_v9, %v15453_v9 }
 0x7af   : > { %12897 = vmatmul.mubr.bf16.vlgmr.msra.gmra.mrb[16].mxu0 %v10901_v28  ;;  %14889 = vmatprep.subr.bf16.mxu1 %v15349_v31  ;;  %v15399_v28 = vld [vmem:[%s19869_s3 + $0x6a0] sm:$0xff]   ;;  %v15402_v31 = vld [vmem:[%s19869_s3 + $0x628] sm:$0xff]  }
 0x7b0   : > { %14868 = vmatpush3.bf16.msra.mxu0 %v15350_v25  ;;  %12976 = vmatprep.mubr.bf16.mxu0 %v10922_v41  ;;  %v15401_v41 = vld [vmem:[%s19869_s3 + $0x6e8] sm:$0xff]   ;;  %v15404_v25 = vld [vmem:[%s19869_s3 + $0x670] sm:$0xff]  }
 0x7b1   : > { %12937 = vmatmul.mubr.bf16.vlgmr.msra.gmra.mrb[16].mxu1 %v10923_v32  ;;  %14869 = vmatprep.subr.bf16.mxu0 %v15352_v34  ;;  %v15403_v32 = vld [vmem:[%s19869_s3 + $0x6a8] sm:$0xff]   ;;  %v19674_v34 = vrot.slane %v10927_v30, %v17694_v23  ;;  %v15443_v30 = vld [vmem:[%s19869_s3 + $0x7b8] sm:$0xff]  }
 0x7b2   : > { %14890 = vmatpush3.bf16.msra.mxu1 %v15351_v37  ;;  %13016 = vmatprep.mubr.bf16.mxu1 %v10926_v39  ;;  %v15405_v37 = vld [vmem:[%s19869_s3 + $0x6f0] sm:$0xff]  }
 0x7b3   : > { %14891 = vmatprep.subr.bf16.mxu1 %v15353_v44  ;;  %v15406_v39 = vld [vmem:[%s19869_s3 + $0x630] sm:$0xff]   ;;  %v15408_v44 = vld [vmem:[%s19869_s3 + $0x678] sm:$0xff]   ;;  %v10957_v9 = vrot.slane %v19674_v34, %v17694_v23 }
 0x7b4   : > { %14870 = vmatpush3.bf16.msra.mxu0 %v15354_v46  ;;  %v15407_v46 = vld [vmem:[%s19869_s3 + $0x6b0] sm:$0xff]  }
 0x7b5   : > { %14871 = vmatprep.subr.bf16.mxu0 %v15356_v48  ;;  %v10943_v48 = vcombine.high %v19674_v34, %v19674_v34 }
 0x7b6   : > { %14892 = vmatpush3.bf16.msra.mxu1 %v15355_v50  ;;  %v15409_v50 = vld [vmem:[%s19869_s3 + $0x6f8] sm:$0xff]  }
 0x7b7   : > { %14893 = vmatprep.subr.bf16.mxu1 %v15357_v51  ;;  %v15410_v51 = vld [vmem:[%s19869_s3 + $0x638] sm:$0xff]  }
 0x7b8   : > { %14872 = vmatpush3.bf16.msra.mxu0 %v15358_v53  ;;  %v10950_v53 = vrot.slane %v19570_v8, %v17694_v23  ;;  %v15422_v8 = vld [vmem:[%s19869_s3 + $0x710] sm:$0xff]  }
 0x7b9   : > { %14873 = vmatprep.subr.bf16.mxu0 %v15360_v2  ;;  %v15412_v2 = vld [vmem:[%s19869_s3 + $0x740] sm:$0xff]  }
 0x7ba   : > { %14894 = vmatpush3.bf16.msra.mxu1 %v15359_v55  ;;  %v15411_v55 = vld [vmem:[%s19869_s3 + $0x6b8] sm:$0xff]  }
 0x7bb   : > { %14895 = vmatprep.subr.bf16.mxu1 %v15361_v29  ;;  %v10971_v29 = vrot.slane %v10943_v48, %v17694_v23 }
 0x7bc   : > { %14874 = vmatpush3.bf16.msra.mxu0 %v15362_v57  ;;  %v15413_v57 = vld [vmem:[%s19869_s3 + $0x7c0] sm:$0xff]  }
 0x7bd   : > { %14875 = vmatprep.subr.bf16.mxu0 %v15364_v59  ;;  %v15414_v59 = vld [vmem:[%s19869_s3 + $0x700] sm:$0xff]  }
 0x7be   : > { %14896 = vmatpush3.bf16.msra.mxu1 %v15363_v60  ;;  %v10972_v60 = vcombine.high %v10950_v53, %v10950_v53 }
 0x7bf   : > { %14897 = vmatprep.subr.bf16.mxu1 %v15365_v49  ;;  %v15416_v49 = vld [vmem:[%s19869_s3 + $0x748] sm:$0xff]  }
 0x7c0   : > { %14876 = vmatpush3.bf16.msra.mxu0 %v15366_v52  ;;  %v15415_v52 = vld [vmem:[%s19869_s3 + $0x780] sm:$0xff]  }
 0x7c1   : > { %14877 = vmatprep.subr.bf16.mxu0 %v15368_v54  ;;  %v10975_v54 = vcombine.high %v10971_v29, %v10971_v29 }
 0x7c2   : > { %14898 = vmatpush3.bf16.msra.mxu1 %v15367_v56  ;;  %v15417_v56 = vld [vmem:[%s19869_s3 + $0x7c8] sm:$0xff]  }
 0x7c3   : > { %14899 = vmatprep.subr.bf16.mxu1 %v15369_v42  ;;  %v15418_v42 = vld [vmem:[%s19869_s3 + $0x708] sm:$0xff]  }
 0x7c4   : > { %14878 = vmatpush3.bf16.msra.mxu0 %v15370_v3  ;;  %v15420_v3 = vld [vmem:[%s19869_s3 + $0x750] sm:$0xff]  }
 0x7c5   : > { %14879 = vmatprep.subr.bf16.mxu0 %v15372_v45  ;;  %v15419_v45 = vld [vmem:[%s19869_s3 + $0x788] sm:$0xff]  }
 0x7c6   : > { %14900 = vmatpush3.bf16.msra.mxu1 %v15371_v36  ;;  %v15421_v36 = vld [vmem:[%s19869_s3 + $0x7d0] sm:$0xff]  }
 0x7c7   : > { %14901 = vmatprep.subr.bf16.mxu1 %v15373_v62  ;;  %v15424_v62 = vld [vmem:[%s19869_s3 + $0x758] sm:$0xff]  }
 0x7c8   : > { %14880 = vmatpush3.bf16.msra.mxu0 %v15374_v0  ;;  %v15423_v0 = vld [vmem:[%s19869_s3 + $0x790] sm:$0xff]  }
 0x7c9   : > { %14881 = vmatprep.subr.bf16.mxu0 %v15376_v20  ;;  %v15425_v20 = vld [vmem:[%s19869_s3 + $0x7d8] sm:$0xff]  }
 0x7ca   : > { %14902 = vmatpush3.bf16.msra.mxu1 %v15375_v10  ;;  %v15426_v10 = vld [vmem:[%s19869_s3 + $0x718] sm:$0xff]  }
 0x7cb   : > { %14903 = vmatprep.subr.bf16.mxu1 %v15377_v5  ;;  %v15427_v5 = vld [vmem:[%s19869_s3 + $0x798] sm:$0xff]  }
 0x7cc   : > { %14882 = vmatpush3.bf16.msra.mxu0 %v15378_v35  ;;  %v15429_v35 = vld [vmem:[%s19869_s3 + $0x7e0] sm:$0xff]  }
 0x7cd   : > { %14911 = vmatprep.subr.bf16.mxu0 %v15380_v43  ;;  %v15431_v43 = vld [vmem:[%s19869_s3 + $0x7a0] sm:$0xff]  }
 0x7ce   : > { %14904 = vmatpush3.bf16.msra.mxu1 %v15379_v40  ;;  %v15432_v40 = vld [vmem:[%s19869_s3 + $0x768] sm:$0xff]  }
 0x7cf   : > { %12977 = vmatmul.mubr.bf16.vlgmr.msra.gmra.mrb[20].mxu0 %v10908_v6  ;;  %14933 = vmatprep.subr.bf16.mxu1 %v15381_v27  ;;  %v15430_v6 = vld [vmem:[%s19869_s3 + $0x720] sm:$0xff]   ;;  %v15434_v27 = vld [vmem:[%s19869_s3 + $0x728] sm:$0xff]  }
 0x7d0   : > { %14912 = vmatpush3.bf16.msra.mxu0 %v15382_v12  ;;  %13056 = vmatprep.mubr.bf16.mxu0 %v10964_v7  ;;  %v15433_v7 = vld [vmem:[%s19869_s3 + $0x7e8] sm:$0xff]  }
 0x7d1   : > { %13017 = vmatmul.mubr.bf16.vlgmr.msra.gmra.mrb[20].mxu1 %v10924_v11  ;;  %14913 = vmatprep.subr.bf16.mxu0 %v15384_v13  ;;  %v15435_v12 = vld [vmem:[%s19869_s3 + $0x7a8] sm:$0xff]   ;;  %v14382_v11 = vld [vmem:[%s19870_s4] ss:$0 sm:$0xff]  ;;  %v15436_v13 = vld [vmem:[%s19869_s3 + $0x770] sm:$0xff]  }
 0x7d2   : > { %14934 = vmatpush3.bf16.msra.mxu1 %v15383_v14  ;;  %13096 = vmatprep.mubr.bf16.mxu1 %v10974_v38  ;;  %v15437_v38 = vld [vmem:[%s19869_s3 + $0x7f0] sm:$0xff]  }
 0x7d3   : > { %14935 = vmatprep.subr.bf16.mxu1 %v15385_v16 }
 0x7d4   : > { %14914 = vmatpush3.bf16.msra.mxu0 %v15386_v47  ;;  %v15438_v47 = vld [vmem:[%s19869_s3 + $0x730] sm:$0xff]  }
 0x7d5   : > { %14915 = vmatprep.subr.bf16.mxu0 %v15388_v17 }
 0x7d6   : > { %14936 = vmatpush3.bf16.msra.mxu1 %v15387_v15 }
 0x7d7   : > { %14937 = vmatprep.subr.bf16.mxu1 %v15389_v18 }
 0x7d8   : > { %14916 = vmatpush3.bf16.msra.mxu0 %v15390_v21 }
 0x7d9   : > { %14917 = vmatprep.subr.bf16.mxu0 %v15392_v26 }
 0x7da   : > { %14938 = vmatpush3.bf16.msra.mxu1 %v15391_v58  ;;  %v15440_v58 = vld [vmem:[%s19869_s3 + $0x778] sm:$0xff]  }
 0x7db   : > { %14939 = vmatprep.subr.bf16.mxu1 %v15393_v61 }
 0x7dc   : > { %14918 = vmatpush3.bf16.msra.mxu0 %v15394_v63 }
 0x7dd   : > { %14919 = vmatprep.subr.bf16.mxu0 %v15396_v4 }
 0x7de   : > { %14940 = vmatpush3.bf16.msra.mxu1 %v15395_v19  ;;  %v15439_v19 = vld [vmem:[%s19869_s3 + $0x7b0] sm:$0xff]  }
 0x7df   : > { %14941 = vmatprep.subr.bf16.mxu1 %v15397_v22 }
 0x7e0   : > { %14920 = vmatpush3.bf16.msra.mxu0 %v15398_v24  ;;  %v15441_v24 = vld [vmem:[%s19869_s3 + $0x7f8] sm:$0xff]  }
 0x7e1   : > { %14921 = vmatprep.subr.bf16.mxu0 %v15400_v33 }
 0x7e2   : > { %14942 = vmatpush3.bf16.msra.mxu1 %v15399_v28  ;;  %v15442_v28 = vld [vmem:[%s19869_s3 + $0x738] sm:$0xff]  }
 0x7e3   : > { %14943 = vmatprep.subr.bf16.mxu1 %v15401_v41  ;;  %v10973_v41 = vcombine.high %v10957_v9, %v10957_v9 }
 0x7e4   : > { %14922 = vmatpush3.bf16.msra.mxu0 %v15402_v31 }
 0x7e5   : > { %14923 = vmatprep.subr.bf16.mxu0 %v15404_v25 }
 0x7e6   : > { %14944 = vmatpush3.bf16.msra.mxu1 %v15403_v32 }
 0x7e7   : > { %14945 = vmatprep.subr.bf16.mxu1 %v15405_v37 }
 0x7e8   : > { %14924 = vmatpush3.bf16.msra.mxu0 %v15406_v39 }
 0x7e9   : > { %14925 = vmatprep.subr.bf16.mxu0 %v15408_v44 }
 0x7ea   : > { %14946 = vmatpush3.bf16.msra.mxu1 %v15407_v46 }
 0x7eb   : > { %14947 = vmatprep.subr.bf16.mxu1 %v15409_v50 }
 0x7ec   : > { %14926 = vmatpush3.bf16.msra.mxu0 %v15410_v51 }
 0x7ed   : > { %14955 = vmatprep.subr.bf16.mxu0 %v15412_v2 }
 0x7ee   : > { %14948 = vmatpush3.bf16.msra.mxu1 %v15411_v55 }
 0x7ef   : > { %13057 = vmatmul.mubr.bf16.vlgmr.msra.gmra.mrb[24].mxu0 %v10950_v53  ;;  %14977 = vmatprep.subr.bf16.mxu1 %v15413_v57 }
 0x7f0   : > { %14956 = vmatpush3.bf16.msra.mxu0 %v15414_v59  ;;  %13136 = vmatprep.mubr.bf16.mxu0 %v10971_v29 }
 0x7f1   : > { %13097 = vmatmul.mubr.bf16.vlgmr.msra.gmra.mrb[24].mxu1 %v10972_v60  ;;  %14957 = vmatprep.subr.bf16.mxu0 %v15416_v49 }
 0x7f2   : > { %14978 = vmatpush3.bf16.msra.mxu1 %v15415_v52  ;;  %13176 = vmatprep.mubr.bf16.mxu1 %v10975_v54 }
 0x7f3   : > { %14979 = vmatprep.subr.bf16.mxu1 %v15417_v56 }
 0x7f4   : > { %14958 = vmatpush3.bf16.msra.mxu0 %v15418_v42 }
 0x7f5   : > { %14959 = vmatprep.subr.bf16.mxu0 %v15420_v3 }
 0x7f6   : > { %14980 = vmatpush3.bf16.msra.mxu1 %v15419_v45 }
 0x7f7   : > { %14981 = vmatprep.subr.bf16.mxu1 %v15421_v36 }
 0x7f8   : > { %14960 = vmatpush3.bf16.msra.mxu0 %v15422_v8 }
 0x7f9   : > { %14961 = vmatprep.subr.bf16.mxu0 %v15424_v62 }
 0x7fa   : > { %14982 = vmatpush3.bf16.msra.mxu1 %v15423_v0 }
 0x7fb   : > { %14983 = vmatprep.subr.bf16.mxu1 %v15425_v20 }
 0x7fc   : > { %14962 = vmatpush3.bf16.msra.mxu0 %v15426_v10 }
 0x7fd   : > { %14963 = vmatprep.subr.bf16.mxu0 %v15428_v1 }
 0x7fe   : > { %14984 = vmatpush3.bf16.msra.mxu1 %v15427_v5 }
 0x7ff   : > { %14985 = vmatprep.subr.bf16.mxu1 %v15429_v35 }
 0x800   : > { %14964 = vmatpush3.bf16.msra.mxu0 %v15430_v6 }
 0x801   : > { %14965 = vmatprep.subr.bf16.mxu0 %v15432_v40 }
 0x802   : > { %14986 = vmatpush3.bf16.msra.mxu1 %v15431_v43  ;;  %v14663_v14 = vpop.f32.mrb[0].mxu0 }
 0x803   : > { %v14664_v16 = vpop.f32.mrb[1].mxu0  ;;  %14987 = vmatprep.subr.bf16.mxu1 %v15433_v7  ;;  %v14685_v17 = vpop.f32.mrb[0].mxu1 }
 0x804   : > { %v14665_v15 = vadd.f32 %v14664_v16, %v14663_v14  ;;  %v14666_v18 = vpop.f32.mrb[2].mxu0  ;;  %14966 = vmatpush3.bf16.msra.mxu0 %v15434_v27  ;;  %v14686_v21 = vpop.f32.mrb[1].mxu1 }
 0x805   : > { %v14667_v26 = vpop.f32.mrb[3].mxu0  ;;  %14967 = vmatprep.subr.bf16.mxu0 %v15436_v13  ;;  %v14687_v63 = vadd.f32 %v14686_v21, %v14685_v17  ;;  %v14688_v4 = vpop.f32.mrb[2].mxu1 }
 0x806   : > { %v12579_v61 = vadd.f32 %v14665_v15, %v14382_v11  ;;  %14988 = vmatpush3.bf16.msra.mxu1 %v15435_v12  ;;  %v14689_v22 = vpop.f32.mrb[3].mxu1 }
 0x807   : > { %14989 = vmatprep.subr.bf16.mxu1 %v15437_v38 }
 0x808   : > { %v12619_v33 = vadd.f32 %v14687_v63, %v12579_v61  ;;  %14968 = vmatpush3.bf16.msra.mxu0 %v15438_v47 }
 0x809   : > { %14969 = vmatprep.subr.bf16.mxu0 %v15440_v58 }
 0x80a   : > { %14990 = vmatpush3.bf16.msra.mxu1 %v15439_v19 }
 0x80b   : > { %14991 = vmatprep.subr.bf16.mxu1 %v15441_v24 }
 0x80c   : > { %14970 = vmatpush3.bf16.msra.mxu0 %v15442_v28 }
 0x80e   : > { %14992 = vmatpush3.bf16.msra.mxu1 %v15443_v30 }
 0x80f   : > { %13137 = vmatmul.mubr.bf16.vlgmr.msra.gmra.mrb[28].mxu0 %v10957_v9 }
 0x811   : > { %13177 = vmatmul.mubr.bf16.vlgmr.msra.gmra.mrb[28].mxu1 %v10973_v41 }
 0x822   : > { %v14707_v31 = vpop.f32.mrb[4].mxu0 }
 0x823   : > { %v14708_v25 = vpop.f32.mrb[5].mxu0  ;;  %v14729_v32 = vpop.f32.mrb[4].mxu1 }
 0x824   : > { %v14709_v37 = vadd.f32 %v14708_v25, %v14707_v31  ;;  %v14710_v39 = vpop.f32.mrb[6].mxu0  ;;  %v14730_v44 = vpop.f32.mrb[5].mxu1 }
 0x825   : > { %v14711_v46 = vpop.f32.mrb[7].mxu0  ;;  %v14731_v23 = vadd.f32 %v14730_v44, %v14729_v32  ;;  %v14732_v34 = vpop.f32.mrb[6].mxu1 }
 0x826   : > { %v12659_v48 = vadd.f32 %v14709_v37, %v12619_v33  ;;  %v14733_v50 = vpop.f32.mrb[7].mxu1 }
 0x828   : > { %v12699_v51 = vadd.f32 %v14731_v23, %v12659_v48 }
 0x842   : > { %v14751_v53 = vpop.f32.mrb[8].mxu0 }
 0x843   : > { %v14752_v2 = vpop.f32.mrb[9].mxu0  ;;  %v14773_v55 = vpop.f32.mrb[8].mxu1 }
 0x844   : > { %v14753_v29 = vadd.f32 %v14752_v2, %v14751_v53  ;;  %v14754_v57 = vpop.f32.mrb[10].mxu0  ;;  %v14774_v59 = vpop.f32.mrb[9].mxu1 }
 0x845   : > { %v14755_v60 = vpop.f32.mrb[11].mxu0  ;;  %v14775_v52 = vadd.f32 %v14774_v59, %v14773_v55  ;;  %v14776_v54 = vpop.f32.mrb[10].mxu1 }
 0x846   : > { %v12739_v49 = vadd.f32 %v14753_v29, %v12699_v51  ;;  %v14777_v56 = vpop.f32.mrb[11].mxu1 }
 0x848   : > { %v12779_v42 = vadd.f32 %v14775_v52, %v12739_v49 }
 0x862   : > { %v14795_v3 = vpop.f32.mrb[12].mxu0 }
 0x863   : > { %v14796_v45 = vpop.f32.mrb[13].mxu0 }
 0x864   : > { %v14817_v36 = vpop.f32.mrb[12].mxu1  ;;  %v14797_v8 = vadd.f32 %v14796_v45, %v14795_v3  ;;  %v14798_v62 = vpop.f32.mrb[14].mxu0 }
 0x865   : > { %v14818_v0 = vpop.f32.mrb[13].mxu1  ;;  %v14799_v20 = vpop.f32.mrb[15].mxu0 }
 0x866   : > { %v12819_v10 = vadd.f32 %v14797_v8, %v12779_v42  ;;  %v14819_v1 = vadd.f32 %v14818_v0, %v14817_v36  ;;  %v14820_v5 = vpop.f32.mrb[14].mxu1 }
 0x867   : > { %v14821_v35 = vpop.f32.mrb[15].mxu1 }
 0x868   : > { %v12859_v6 = vadd.f32 %v14819_v1, %v12819_v10 }
 0x882   : > { %v14839_v43 = vpop.f32.mrb[16].mxu0 }
 0x883   : > { %v14840_v40 = vpop.f32.mrb[17].mxu0 }
 0x884   : > { %v14861_v7 = vpop.f32.mrb[16].mxu1  ;;  %v14841_v27 = vadd.f32 %v14840_v40, %v14839_v43  ;;  %v14842_v12 = vpop.f32.mrb[18].mxu0 }
 0x885   : > { %v14862_v11 = vpop.f32.mrb[17].mxu1  ;;  %v14843_v13 = vpop.f32.mrb[19].mxu0 }
 0x886   : > { %v12899_v14 = vadd.f32 %v14841_v27, %v12859_v6  ;;  %v14863_v38 = vadd.f32 %v14862_v11, %v14861_v7  ;;  %v14864_v16 = vpop.f32.mrb[18].mxu1  ;;  %v13186_v13 = vld [vmem:[%s19872_s6] sm:$0x3] }
 0x887   : > { %v14865_v47 = vpop.f32.mrb[19].mxu1 }
 0x888   : > { %v12939_v17 = vadd.f32 %v14863_v38, %v12899_v14  ;;  %v14639_v14 = vld [vmem:[%s19871_s5] ss:$0 sm:$0xff] }
 0x8a2   : > { %v14883_v15 = vpop.f32.mrb[20].mxu0 }
 0x8a3   : > { %v14884_v18 = vpop.f32.mrb[21].mxu0 }
 0x8a4   : > { %v14905_v21 = vpop.f32.mrb[20].mxu1  ;;  %v14885_v26 = vadd.f32 %v14884_v18, %v14883_v15  ;;  %v14886_v58 = vpop.f32.mrb[22].mxu0 }
 0x8a5   : > { %v14906_v61 = vpop.f32.mrb[21].mxu1  ;;  %v14887_v63 = vpop.f32.mrb[23].mxu0  ;;  %v13227_v58 = vmul.f32 %v14639_v14, %v13186_v13 }
 0x8a6   : > { %v12979_v4 = vadd.f32 %v14885_v26, %v12939_v17  ;;  %v14907_v19 = vadd.f32 %v14906_v61, %v14905_v21  ;;  %v14908_v22 = vpop.f32.mrb[22].mxu1  ;;  %v13229_v61 = vsub.f32 1.0, %v13186_v13 }
 0x8a7   : > { %v14909_v24 = vpop.f32.mrb[23].mxu1 }
 0x8a8   : > { %v13019_v33 = vadd.f32 %v14907_v19, %v12979_v4 }
 0x8c2   : > { %v14927_v28 = vpop.f32.mrb[24].mxu0 }
 0x8c3   : > { %v14928_v9 = vpop.f32.mrb[25].mxu0 }
 0x8c4   : > { %v14949_v30 = vpop.f32.mrb[24].mxu1  ;;  %v14929_v41 = vadd.f32 %v14928_v9, %v14927_v28  ;;  %v14930_v31 = vpop.f32.mrb[26].mxu0 }
 0x8c5   : > { %v14950_v25 = vpop.f32.mrb[25].mxu1  ;;  %v14931_v32 = vpop.f32.mrb[27].mxu0 }
 0x8c6   : > { %v13059_v37 = vadd.f32 %v14929_v41, %v13019_v33  ;;  %v14951_v39 = vadd.f32 %v14950_v25, %v14949_v30  ;;  %v14952_v44 = vpop.f32.mrb[26].mxu1 }
 0x8c7   : > { %v14953_v46 = vpop.f32.mrb[27].mxu1 }
 0x8c8   : > { %v13099_v48 = vadd.f32 %v14951_v39, %v13059_v37 }
 0x8e2   : > { %v14971_v23 = vpop.f32.mrb[28].mxu0 }
 0x8e3   : > { %v14972_v34 = vpop.f32.mrb[29].mxu0 }
 0x8e4   : > { %v14993_v50 = vpop.f32.mrb[28].mxu1  ;;  %v14973_v51 = vadd.f32 %v14972_v34, %v14971_v23  ;;  %v14974_v53 = vpop.f32.mrb[30].mxu0 }
 0x8e5   : > { %v14994_v2 = vpop.f32.mrb[29].mxu1  ;;  %v14975_v55 = vpop.f32.mrb[31].mxu0 }
 0x8e6   : > { %v13139_v29 = vadd.f32 %v14973_v51, %v13099_v48  ;;  %v14995_v57 = vadd.f32 %v14994_v2, %v14993_v50  ;;  %v14996_v59 = vpop.f32.mrb[30].mxu1 }
 0x8e7   : > { %v14997_v60 = vpop.f32.mrb[31].mxu1 }
 0x8e8   : > { %v13179_v49 = vadd.f32 %v14995_v57, %v13139_v29 }
 0x8ea   : > { %v13188_v52 = vsub.f32 0.0, %v13179_v49  ;;  %v13206_v54 = vand.u32 2147483647, %v13179_v49  ;;  %13185 = vst.msk [vmem:[#allocation4] sm:$0x3] %vm13184_vm0, %v13179_v49  ;;  %v13205_v11 = vmax.f32 %v13179_v49, 0.0 }
 0x8ec   : > { %v13190_v56 = vand.u32 2147483647, %v13188_v52  ;;  %v13207_v42 = vsub.f32 0.0, %v13206_v54  ;;  %v13189_v17 = vmax.f32 %v13188_v52, 0.0 }
 0x8ee   : > { %v13191_v3 = vsub.f32 0.0, %v13190_v56  ;;  %v13208_v45 = vmul.f32 1.442695, %v13207_v42 }
 0x8f0   : > { %v13192_v36 = vmul.f32 1.442695, %v13191_v3  ;;  %15444 = vpow2.f32 %v13208_v45 }
 0x8f2   : > { %15446 = vpow2.f32 %v13192_v36 }
 0x8fa   : > { %v15445_v8 = vpop.eup %15444 }
 0x8fb   : > { %v13210_v62 = vadd.f32 1.0, %v15445_v8  ;;  %v13213_v10 = vmul.f32 -0.5, %v15445_v8  ;;  %v13216_v35 = vand.u32 2147483647, %v15445_v8 }
 0x8fc   : > { %v15447_v0 = vpop.eup %15446 }
 0x8fd   : > { %v13194_v20 = vadd.f32 1.0, %v15447_v0  ;;  %15448 = vlog2.f32 %v13210_v62  ;;  %v13197_v1 = vmul.f32 -0.5, %v15447_v0  ;;  %v13214_v5 = vadd.f32 1.0, %v13213_v10 }
 0x8fe   : > { %v13200_v40 = vand.u32 2147483647, %v15447_v0  ;;  %vm13217_vm1 = vcmp.lt.f32.partialorder %v13216_v35, 0.0004427343 }
 0x8ff   : > { %15450 = vlog2.f32 %v13194_v20  ;;  %v13198_v6 = vadd.f32 1.0, %v13197_v1  ;;  %v13215_v27 = vmul.f32 %v15445_v8, %v13214_v5 }
 0x900   : > { %vm13201_vm2 = vcmp.lt.f32.partialorder %v13200_v40, 0.0004427343 }
 0x901   : > { %v13199_v16 = vmul.f32 %v15447_v0, %v13198_v6 }
 0x907   : > { %v15449_v43 = vpop.eup %15448 }
 0x908   : > { %v13212_v7 = vmul.f32 0.6931472, %v15449_v43 }
 0x909   : > { %v15451_v12 = vpop.eup %15450 }
 0x90a   : > { %v13196_v38 = vmul.f32 0.6931472, %v15451_v12  ;;  %v13218_v47 = vsel %vm13217_vm1, %v13215_v27, %v13212_v7 }
 0x90b   : > { %v13219_v15 = vadd.f32 %v13218_v47, %v13205_v11 }
 0x90c   : > { %v13202_v18 = vsel %vm13201_vm2, %v13199_v16, %v13196_v38 }
 0x90d   : > { %v13203_v21 = vadd.f32 %v13202_v18, %v13189_v17  ;;  %v13220_v26 = vsub.f32 0.0, %v13219_v15 }
 0x90f   : > { %v13204_v63 = vsub.f32 0.0, %v13203_v21  ;;  %v13230_v19 = vmul.f32 %v13229_v61, %v13220_v26 }
 0x911   : > { %v13228_v4 = vmul.f32 %v13227_v58, %v13204_v63 }
 0x913   : > { %v13231_v22 = vadd.f32 %v13230_v19, %v13228_v4 }
 0x915   : > { %v13232_v24 = vsub.f32 0.0, %v13231_v22 }
 0x917   : > { %v13233_v33 = vsel %vm13184_vm0, %v13232_v24, 0.0 }
 0x918   : > { %13234 = vadd.xlane.f32.xlu0 %v13233_v33 }
 0x9a5   : > { %v13235_v28 = vpop.xlane.xlu0 %13234 }
 0x9a6   : > { %v13236_v9 = vrot.slane %v13235_v28, 4 }
 0x9a8   : > { %v13237_v30 = vadd.f32 %v13236_v9, %v13235_v28 }
 0x9aa   : > { %v13238_v41 = vrot.slane %v13237_v30, 2 }
 0x9ac   : > { %v13239_v31 = vadd.f32 %v13238_v41, %v13237_v30 }
 0x9ae   : > { %v13240_v25 = vrot.slane %v13239_v31, 1 }
 0x9b0   : > { %v13241_v32 = vadd.f32 %v13240_v25, %v13239_v31 }
 0x9b2   : > { %15111 = vpush %v13241_v32 }
 0x9e3   : > { %s15112_s26 = spop %15111 }
 0x9e4   : > { %v13243_v37 = vstv %s15112_s26 }
 0x9e5   : > { %v13245_v39 = vmul.f32 0.0625, %v13243_v37 }
 0x9e7   : > { %13247 = vst.msk [vmem:[#allocation6] sm:$0x1] %vm13246_vm3, %v13245_v39 }
 0x9e8 PF: > { %p15121_p11 = scmp.eq.s32.totalorder %s15602_s30, 1  ;;  %s15539_s27 = smov [#allocation4]  }
 0x9e9   : > { %s13255_s29 = sshll.u32 %s15539_s27, 4  ;;  %s15540_s10 = smov [#allocation6]   ;;  %s13256_s29 = int_to_ptr.vmem [resolvable:$true] %s13255_s29 }
 0x9ea   : > { %s13266_s11 = sshll.u32 %s15540_s10, 4  ;;  %s15454_s13 = scalar_lea.vmem %s13256_s29, 32  ;;  %s13267_s11 = int_to_ptr.vmem [resolvable:$true] %s13266_s11 }
 0x9eb   : > { %p15455_p12 = scmp.ne.s32.totalorder %s13256_s29, %s15454_s13  ;;  %p15461_p1 = scmp.lt.s32.totalorder %s13256_s29, %s13256_s29 }
 0x9ec   : > { %p15462_p2 = scmp.lt.s32.totalorder %s15454_s13, %s15454_s13 }
 0x9ed   : > { %p15456_p13 = pnand %p15455_p12, %p15121_p11 }
 0x9ee   : > { %p15463_p3 = por %p15462_p2, %p15461_p1 }
 0x9ef   : > { %p15457_p0 = pneg %p15456_p13 }
 0x9f1   : > { %p15464_p4 = pnand %p15463_p3, %p15457_p0 }
 0x9f3   : > { %15467 = shalt.err (!%p15464_p4)
}
 0x9f4   : > { %s15468_s16 = scalar_lea.hbm %s19873_s7, 32 }
 0x9f5   : > { %p15469_p5 = scmp.ne.s32.totalorder %s19873_s7, %s15468_s16  ;;  %p15474_p8 = scmp.lt.u32.totalorder %s15468_s16, %s19873_s7 }
 0x9f7   : > { %p15470_p6 = pnand %p15469_p5, %p15121_p11 }
 0x9f9   : > { %p15471_p7 = pneg %p15470_p6 }
 0x9fb   : > { %p15476_p9 = pnand %p15474_p8, %p15471_p7 }
 0x9fd   : > { %15479 = shalt.err (!%p15476_p9)
}
 0x9fe   : > { %15114 = dma.vmem_to_hbm [thread:$0]  (%p15121_p11), %s13256_s29, 32, %s19873_s7, [#allocation5]  }
 0x9ff   : > { %s15480_s23 = scalar_lea.vmem %s13267_s11, 16  ;;  %s15486_s24 = scalar_lea.vmem %s13267_s11, 32 }
 0xa00   : > { %p15481_p10 = scmp.ne.s32.totalorder %s13267_s11, %s15480_s23  ;;  %p15487_p0 = scmp.lt.s32.totalorder %s13267_s11, %s13267_s11 }
 0xa01   : > { %p15488_p1 = scmp.lt.s32.totalorder %s15486_s24, %s15480_s23 }
 0xa02   : > { %p15482_p12 = pnand %p15481_p10, %p15121_p11 }
 0xa03   : > { %p15489_p2 = por %p15488_p1, %p15487_p0 }
 0xa04   : > { %p15483_p13 = pneg %p15482_p12 }
 0xa06   : > { %p15490_p3 = pnand %p15489_p2, %p15483_p13 }
 0xa08   : > { %15493 = shalt.err (!%p15490_p3)
}
 0xa09   : > { %s15494_s27 = scalar_lea.hbm %s19874_s8, 16 }
 0xa0a   : > { %p15495_p4 = scmp.ne.s32.totalorder %s19874_s8, %s15494_s27  ;;  %p15500_p7 = scmp.lt.u32.totalorder %s15494_s27, %s19874_s8 }
 0xa0c   : > { %p15496_p5 = pnand %p15495_p4, %p15121_p11 }
 0xa0e   : > { %p15497_p6 = pneg %p15496_p5 }
 0xa10   : > { %p15502_p8 = pnand %p15500_p7, %p15497_p6 }
 0xa12   : > { %15505 = shalt.err (!%p15502_p8)
}
 0xa13   : > { %15116 = dma.vmem_to_hbm [thread:$0]  (%p15121_p11), %s13267_s11, 16, %s19874_s8, [#allocation7]  }
 0xa14   : > { %15519 = dma.done.wait (%p15121_p11), [#allocation5], 32  }
 0xa15   : > { %15521 = vsyncadd (%p15121_p11), [#allocation5], 4294967264 }
 0xa16   : > { %15523 = dma.done.wait (%p15121_p11), [#allocation7], 16  }
 0xa17   : > { %15525 = vsyncadd (%p15121_p11), [#allocation7], 4294967280 }
 0xa18 PF: > { %p18_p9 = scmp.ge.s32.totalorder %s15605_s9, 4   ;;  %s19876_s27 = smov %s15532_s28 }
 0xa19   : > { %s19877_s28 = smov %s15614_s12  ;;  %s19878_s29 = smov %s15605_s9 }
 0xa1a   :  { %20 = sbr.rel (!%p18_p9) target bundleno = 3 (0x3), region = 122 }
 0xa21   :  { %13283 = vsyncpa [#allocation5], 1 }
 0xa22   :  { %13285 = vsyncpa [#allocation5 + $0x1], 1 }
 0xa23   :  { %13286 = vsyncpa [#allocation7], 1 }

</bundles_post_ra>
